<compile_context>
chip_gen: v7x
topology: tpu7x:2x2x1
jax: 0.10.0
libtpu: 0.0.40
codegen_flags: <defaults>
</compile_context>

<pallas_src>
import functools
import math

import jax
import jax.numpy as jnp
from jax import lax
from jax.experimental import pallas as pl
from jax.experimental.pallas import tpu as pltpu

# ----------------------------------------------------------------------------
# Hyper-parameters consistent with EntitySimCSE(num_hidden_layers=4,
# hidden_size=32, num_entity_layers=2, pooling='last-avg'):
#   BERT encoder layers = 4 - 2 = 2, heads = 4, intermediate = 128,
#   type_vocab_size = 16 -> 15 entity types, vocab = 21128.
# ----------------------------------------------------------------------------
NUM_HIDDEN_LAYERS = 4
NUM_ENTITY_LAYERS = 2
HIDDEN = 32
HEADS = NUM_HIDDEN_LAYERS          # config: nhead == num_hidden_layers
HEAD_DIM = HIDDEN // HEADS
INTER = 4 * HIDDEN
VOCAB = 21128
TYPE_VOCAB = 16
NUM_ETTY = TYPE_VOCAB - 1          # PyTorch pools types 0..14
EPAD = 16                          # entity rows padded 15 -> 16 for clean tiling
BERT_LAYERS = NUM_HIDDEN_LAYERS - NUM_ENTITY_LAYERS
NUM_LAYERS = BERT_LAYERS + NUM_ENTITY_LAYERS
MAX_POS = 512

B = 2
S = 8

_SQRT_HALF = 0.7071067811865476


# ------------------------------ in-kernel math ------------------------------
def _erf(x):
    # Abramowitz & Stegun 7.1.26 (|err| < 1.5e-7) -- exact-GELU semantics.
    a1, a2, a3, a4, a5 = 0.254829592, -0.284496736, 1.421413741, -1.453152027, 1.061405429
    p = 0.3275911
    ax = jnp.abs(x)
    t = 1.0 / (1.0 + p * ax)
    poly = ((((a5 * t + a4) * t + a3) * t + a2) * t + a1) * t
    res = 1.0 - poly * jnp.exp(-ax * ax)
    return jnp.where(x < 0, -res, res)


def _gelu_exact(x):
    return 0.5 * x * (1.0 + _erf(x * _SQRT_HALF))


# ------------------------------ fused Pallas kernel --------------------------
def _fused_forward_kernel(
    ids_ref,        # (B*S,)    int32 SMEM  word ids (DMA gather indices)
    ttc_ref,        # (B*S, 1)  int32 VMEM  token types, column form
    tt_ref,         # (B, 1, S) int32 VMEM  token types, row form
    am_ref,         # (B, 1, S) f32   VMEM  attention mask
    pos_ref,        # (S, H)    f32   position rows 0..S-1
    type_tab_ref,   # (TYPE_VOCAB, H) f32
    word_tab_ref,   # (VOCAB, H) f32  HBM (pl.ANY) -- gathered via DMA
    embg_ref,       # (1, H) embedding LayerNorm gamma
    embb_ref,       # (1, H) embedding LayerNorm beta
    qkvw_ref,       # (NL, H, 3H) fused Q/K/V weights
    qkvb_ref,       # (NL, 1, 3H)
    aow_ref,        # (NL, NH, Dh, H) attention output projection (head split)
    aob_ref,        # (NL, 1, H)
    ln1g_ref,       # (NL, 1, H)
    ln1b_ref,       # (NL, 1, H)
    f1w_ref,        # (NL, H, I)
    f1b_ref,        # (NL, 1, I)
    f2w_ref,        # (NL, I, H)
    f2b_ref,        # (NL, 1, H)
    ln2g_ref,       # (NL, 1, H)
    ln2b_ref,       # (NL, 1, H)
    out_ref,        # (B, H)
    emb_buf,        # scratch VMEM (B*S, H) -- gathered word embeddings
    dma_sems,       # scratch DMA semaphores (B*S,)
    *, batch, seq,
):
    H, NH, Dh = HIDDEN, HEADS, HEAD_DIM
    n_tok = batch * seq
    scale = 1.0 / math.sqrt(Dh)
    f32 = jnp.float32

    # ---- 1. word-embedding gather: one small row DMA per token, HBM->VMEM ----
    copies = []
    for t in range(n_tok):
        cp = pltpu.make_async_copy(
            word_tab_ref.at[pl.ds(ids_ref[t], 1)],
            emb_buf.at[pl.ds(t, 1)],
            dma_sems.at[t])
        cp.start()
        copies.append(cp)

    # ---- 2. type + position embeddings (overlapped with the gather DMAs) ----
    type_onehot = jnp.where(
        lax.broadcasted_iota(jnp.int32, (n_tok, TYPE_VOCAB), 1) == ttc_ref[...],
        1.0, 0.0)
    emb_rest = jnp.dot(type_onehot, type_tab_ref[...], preferred_element_type=f32)
    emb_rest = emb_rest + jnp.concatenate([pos_ref[...]] * batch, axis=0)

    # hoisted additive attention bias for the BERT layers: (NH*B, 1, S)
    bias_b = (1.0 - am_ref[...]) * -10000.0                              # (B,1,S)
    bias_bert = jnp.broadcast_to(
        bias_b[None], (NH, batch, 1, seq)).reshape(NH * batch, 1, seq)

    for cp in copies:
        cp.wait()

    # ------------------------------ helpers ------------------------------
    def layer_norm(h, g, bta, eps):
        mu = jnp.mean(h, axis=-1, keepdims=True)
        d = h - mu
        var = jnp.mean(d * d, axis=-1, keepdims=True)
        return d * lax.rsqrt(var + eps) * g + bta

    def encoder_layer(x, l, grp, tlen, bias, eps):
        """Post-LN transformer layer on x: (grp*tlen, H); attention batched
        over (heads x grp). bias: (NH*grp, 1, tlen) additive key bias."""
        n = grp * tlen
        qkv = jnp.dot(x, qkvw_ref[l], preferred_element_type=f32) + qkvb_ref[l]

        def split_heads(base):
            hs = [qkv[:, base + h * Dh: base + (h + 1) * Dh] for h in range(NH)]
            m = jnp.stack(hs, axis=0)                                   # (NH, n, Dh)
            return m.reshape(NH, grp, tlen, Dh).reshape(NH * grp, tlen, Dh)

        q = split_heads(0)
        k = split_heads(H)
        v = split_heads(2 * H)

        s = jnp.einsum('gqd,gkd->gqk', q, k, preferred_element_type=f32) * scale
        s = s + bias
        s = s - jnp.max(s, axis=-1, keepdims=True)
        p = jnp.exp(s)
        p = p * pl.reciprocal(jnp.sum(p, axis=-1, keepdims=True), approx=True)
        ctx = jnp.einsum('gqk,gkd->gqd', p, v, preferred_element_type=f32)
        ctx = ctx.reshape(NH, grp, tlen, Dh).reshape(NH, n, Dh)
        parts = jnp.einsum('hnd,hdk->hnk', ctx, aow_ref[l],
                           preferred_element_type=f32)                  # (NH, n, H)
        attn = jnp.sum(parts, axis=0) + aob_ref[l]

        x = layer_norm(attn + x, ln1g_ref[l], ln1b_ref[l], eps)
        hmid = _gelu_exact(jnp.dot(x, f1w_ref[l], preferred_element_type=f32)
                           + f1b_ref[l])
        f = jnp.dot(hmid, f2w_ref[l], preferred_element_type=f32) + f2b_ref[l]
        return layer_norm(f + x, ln2g_ref[l], ln2b_ref[l], eps)

    # ---- 3. BERT embeddings LayerNorm (eps 1e-12) ----
    x = layer_norm(emb_buf[...] + emb_rest, embg_ref[...], embb_ref[...], 1e-12)

    # ---- 4. BERT encoder layers (batched over B) ----
    for l in range(BERT_LAYERS):
        x = encoder_layer(x, l, batch, seq, bias_bert, 1e-12)

    # ---- 5. entity-type masked average pooling, batched over B ----
    x3 = x.reshape(batch, seq, H)                                        # (B,S,H)
    etype = lax.broadcasted_iota(jnp.int32, (EPAD, seq), 0)
    mask = jnp.where(etype[None] == tt_ref[...], 1.0, 0.0)               # (B,EPAD,S)
    summed = jnp.einsum('bes,bsh->beh', mask, x3, preferred_element_type=f32)
    counts = jnp.sum(mask, axis=-1, keepdims=True) + 1e-6
    y = summed * pl.reciprocal(counts, approx=True)                      # (B,EPAD,H)
    y = y.reshape(batch * EPAD, H)

    # ---- 6. entity transformer encoder (eps 1e-5); pad row 15 key-masked ----
    kpos = lax.broadcasted_iota(jnp.int32, (1, EPAD), 1)
    ebias_row = jnp.where(kpos < NUM_ETTY, 0.0, -10000.0)                # (1,EPAD)
    ebias = jnp.broadcast_to(ebias_row[None], (NH * batch, 1, EPAD))
    for l in range(BERT_LAYERS, NUM_LAYERS):
        y = encoder_layer(y, l, batch, EPAD, ebias, 1e-5)

    # ---- 7. pooling == 'last-avg': mean over the 15 real entity rows ----
    y3 = y.reshape(batch, EPAD, H)
    out_ref[...] = jnp.mean(y3[:, :NUM_ETTY, :], axis=1)                 # (B, H)


# ------------------------------ parameters -----------------------------------
def _init_params(key):
    f32 = jnp.float32
    n_per_layer = 6
    keys = jax.random.split(key, 3 + NUM_LAYERS * n_per_layer)

    def nrm(k, shape):
        return 0.02 * jax.random.normal(k, shape, dtype=f32)

    p = {
        "word_emb": nrm(keys[0], (VOCAB, HIDDEN)),
        "pos_emb": nrm(keys[1], (MAX_POS, HIDDEN)),
        "type_emb": nrm(keys[2], (TYPE_VOCAB, HIDDEN)),
        "emb_ln_g": jnp.ones((1, HIDDEN), f32),
        "emb_ln_b": jnp.zeros((1, HIDDEN), f32),
    }

    layers = []
    for i in range(NUM_LAYERS):
        ks = keys[3 + i * n_per_layer: 3 + (i + 1) * n_per_layer]
        qw, kw, vw = (nrm(ks[j], (HIDDEN, HIDDEN)) for j in range(3))
        layers.append(dict(
            qkv_w=jnp.concatenate([qw, kw, vw], axis=1),          # (H, 3H)
            qkv_b=jnp.zeros((1, 3 * HIDDEN), f32),
            out_w=nrm(ks[3], (HIDDEN, HIDDEN)).reshape(HEADS, HEAD_DIM, HIDDEN),
            out_b=jnp.zeros((1, HIDDEN), f32),
            ln1_g=jnp.ones((1, HIDDEN), f32),
            ln1_b=jnp.zeros((1, HIDDEN), f32),
            ff1_w=nrm(ks[4], (HIDDEN, INTER)),
            ff1_b=jnp.zeros((1, INTER), f32),
            ff2_w=nrm(ks[5], (INTER, HIDDEN)),
            ff2_b=jnp.zeros((1, HIDDEN), f32),
            ln2_g=jnp.ones((1, HIDDEN), f32),
            ln2_b=jnp.zeros((1, HIDDEN), f32),
        ))
    # stacked along a leading layer axis: 0..BERT_LAYERS-1 are BERT layers,
    # BERT_LAYERS..NUM_LAYERS-1 are entity-transformer layers.
    p["layers"] = {name: jnp.stack([lp[name] for lp in layers], axis=0)
                   for name in layers[0]}
    return p


# ------------------------------ forward pass ---------------------------------
def _forward(params, input_ids, attention_mask, token_type_ids):
    Bn, Sn = input_ids.shape
    f32, i32 = jnp.float32, jnp.int32

    ids = input_ids.astype(i32).reshape(Bn * Sn)                 # SMEM gather ids
    ttc = token_type_ids.astype(i32).reshape(Bn * Sn, 1)         # one-hot column
    tt = token_type_ids.astype(i32).reshape(Bn, 1, Sn)           # pooling rows
    am = attention_mask.astype(f32).reshape(Bn, 1, Sn)
    pos = params["pos_emb"][:Sn]                                 # static slice, no gather

    L = params["layers"]
    vmem = pl.BlockSpec(memory_space=pltpu.MemorySpace.VMEM)
    smem = pl.BlockSpec(memory_space=pltpu.MemorySpace.SMEM)
    hbm = pl.BlockSpec(memory_space=pl.ANY)
    kernel = functools.partial(_fused_forward_kernel, batch=Bn, seq=Sn)

    return pl.pallas_call(
        kernel,
        out_shape=jax.ShapeDtypeStruct((Bn, HIDDEN), f32),
        in_specs=[smem, vmem, vmem, vmem, vmem, vmem, hbm] + [vmem] * 14,
        out_specs=vmem,
        scratch_shapes=[
            pltpu.VMEM((Bn * Sn, HIDDEN), f32),
            pltpu.SemaphoreType.DMA((Bn * Sn,)),
        ],
    )(ids, ttc, tt, am, pos, params["type_emb"],
      params["word_emb"],
      params["emb_ln_g"], params["emb_ln_b"],
      L["qkv_w"], L["qkv_b"], L["out_w"], L["out_b"],
      L["ln1_g"], L["ln1_b"], L["ff1_w"], L["ff1_b"],
      L["ff2_w"], L["ff2_b"], L["ln2_g"], L["ln2_b"])


entity_simcse_forward = jax.jit(_forward)


# ------------------------------ demo ------------------------------------------
if __name__ == "__main__":
    key = jax.random.PRNGKey(0)
    pkey, ikey, tkey = jax.random.split(key, 3)

    params = _init_params(pkey)
    input_ids = jax.random.randint(ikey, (B, S), 0, VOCAB, dtype=jnp.int32)
    token_type_ids = jax.random.randint(tkey, (B, S), 0, TYPE_VOCAB, dtype=jnp.int32)
    attention_mask = jnp.ones((B, S), jnp.int32).at[1, -2:].set(0)

    out = entity_simcse_forward(params, input_ids, attention_mask, token_type_ids)
    out = jax.block_until_ready(out)

    assert out.shape == (B, HIDDEN), out.shape
    assert bool(jnp.all(jnp.isfinite(out)))
    print("KERNEL_OK")
</pallas_src>

<mosaic_0001>
module attributes {stable_mosaic.version = 11 : i64} {
  func.func @_fused_forward_kernel(%arg0: memref<16xi32, #tpu.memory_space<smem>>, %arg1: memref<16x1xi32, #tpu.memory_space<vmem>>, %arg2: memref<2x1x8xi32, #tpu.memory_space<vmem>>, %arg3: memref<2x1x8xf32, #tpu.memory_space<vmem>>, %arg4: memref<8x32xf32, #tpu.memory_space<vmem>>, %arg5: memref<16x32xf32, #tpu.memory_space<vmem>>, %arg6: memref<21128x32xf32, #tpu.memory_space<any>>, %arg7: memref<1x32xf32, #tpu.memory_space<vmem>>, %arg8: memref<1x32xf32, #tpu.memory_space<vmem>>, %arg9: memref<4x32x96xf32, #tpu.memory_space<vmem>>, %arg10: memref<4x1x96xf32, #tpu.memory_space<vmem>>, %arg11: memref<4x4x8x32xf32, #tpu.memory_space<vmem>>, %arg12: memref<4x1x32xf32, #tpu.memory_space<vmem>>, %arg13: memref<4x1x32xf32, #tpu.memory_space<vmem>>, %arg14: memref<4x1x32xf32, #tpu.memory_space<vmem>>, %arg15: memref<4x32x128xf32, #tpu.memory_space<vmem>>, %arg16: memref<4x1x128xf32, #tpu.memory_space<vmem>>, %arg17: memref<4x128x32xf32, #tpu.memory_space<vmem>>, %arg18: memref<4x1x32xf32, #tpu.memory_space<vmem>>, %arg19: memref<4x1x32xf32, #tpu.memory_space<vmem>>, %arg20: memref<4x1x32xf32, #tpu.memory_space<vmem>>, %arg21: memref<2x32xf32, #tpu.memory_space<vmem>>, %arg22: memref<16x32xf32, #tpu.memory_space<vmem>>, %arg23: memref<16x!tpu.dma_semaphore, #tpu.memory_space<semaphore_mem>>) attributes {dimension_semantics = [], scalar_prefetch = 0 : i64, scratch_operands = 2 : i64, tpu.core_type = #tpu.core_type<tc>} {
    %c0 = arith.constant 0 : index
    %0 = memref.load %arg0[%c0] : memref<16xi32, #tpu.memory_space<smem>>
    %c0_i32 = arith.constant 0 : i32
    %c0_i32_0 = arith.constant 0 : i32
    %1 = tpu.memref_slice %arg6[%0, %c0_i32_0] : memref<21128x32xf32, #tpu.memory_space<any>> -> memref<1x32xf32, #tpu.memory_space<any>>
    %c0_i32_1 = arith.constant 0 : i32
    %c0_i32_2 = arith.constant 0 : i32
    %2 = tpu.memref_slice %arg22[%c0_i32_1, %c0_i32_2] : memref<16x32xf32, #tpu.memory_space<vmem>> -> memref<1x32xf32, #tpu.memory_space<vmem>>
    %3 = tpu.memref_slice %arg23[%c0_i32] : memref<16x!tpu.dma_semaphore, #tpu.memory_space<semaphore_mem>> -> memref<1x!tpu.dma_semaphore, #tpu.memory_space<semaphore_mem>>
    %4 = tpu.memref_squeeze %3 : memref<1x!tpu.dma_semaphore, #tpu.memory_space<semaphore_mem>> -> memref<!tpu.dma_semaphore, #tpu.memory_space<semaphore_mem>>
    tpu.enqueue_dma source(%1 : memref<1x32xf32, #tpu.memory_space<any>>) target(%2 : memref<1x32xf32, #tpu.memory_space<vmem>>) target_semaphore(%4 : memref<!tpu.dma_semaphore, #tpu.memory_space<semaphore_mem>>)
    %c1 = arith.constant 1 : index
    %5 = memref.load %arg0[%c1] : memref<16xi32, #tpu.memory_space<smem>>
    %c1_i32 = arith.constant 1 : i32
    %c0_i32_3 = arith.constant 0 : i32
    %6 = tpu.memref_slice %arg6[%5, %c0_i32_3] : memref<21128x32xf32, #tpu.memory_space<any>> -> memref<1x32xf32, #tpu.memory_space<any>>
    %c1_i32_4 = arith.constant 1 : i32
    %c0_i32_5 = arith.constant 0 : i32
    %7 = tpu.memref_slice %arg22[%c1_i32_4, %c0_i32_5] : memref<16x32xf32, #tpu.memory_space<vmem>> -> memref<1x32xf32, #tpu.memory_space<vmem>>
    %8 = tpu.memref_slice %arg23[%c1_i32] : memref<16x!tpu.dma_semaphore, #tpu.memory_space<semaphore_mem>> -> memref<1x!tpu.dma_semaphore, #tpu.memory_space<semaphore_mem>>
    %9 = tpu.memref_squeeze %8 : memref<1x!tpu.dma_semaphore, #tpu.memory_space<semaphore_mem>> -> memref<!tpu.dma_semaphore, #tpu.memory_space<semaphore_mem>>
    tpu.enqueue_dma source(%6 : memref<1x32xf32, #tpu.memory_space<any>>) target(%7 : memref<1x32xf32, #tpu.memory_space<vmem>>) target_semaphore(%9 : memref<!tpu.dma_semaphore, #tpu.memory_space<semaphore_mem>>)
    %c2 = arith.constant 2 : index
    %10 = memref.load %arg0[%c2] : memref<16xi32, #tpu.memory_space<smem>>
    %c2_i32 = arith.constant 2 : i32
    %c0_i32_6 = arith.constant 0 : i32
    %11 = tpu.memref_slice %arg6[%10, %c0_i32_6] : memref<21128x32xf32, #tpu.memory_space<any>> -> memref<1x32xf32, #tpu.memory_space<any>>
    %c2_i32_7 = arith.constant 2 : i32
    %c0_i32_8 = arith.constant 0 : i32
    %12 = tpu.memref_slice %arg22[%c2_i32_7, %c0_i32_8] : memref<16x32xf32, #tpu.memory_space<vmem>> -> memref<1x32xf32, #tpu.memory_space<vmem>>
    %13 = tpu.memref_slice %arg23[%c2_i32] : memref<16x!tpu.dma_semaphore, #tpu.memory_space<semaphore_mem>> -> memref<1x!tpu.dma_semaphore, #tpu.memory_space<semaphore_mem>>
    %14 = tpu.memref_squeeze %13 : memref<1x!tpu.dma_semaphore, #tpu.memory_space<semaphore_mem>> -> memref<!tpu.dma_semaphore, #tpu.memory_space<semaphore_mem>>
    tpu.enqueue_dma source(%11 : memref<1x32xf32, #tpu.memory_space<any>>) target(%12 : memref<1x32xf32, #tpu.memory_space<vmem>>) target_semaphore(%14 : memref<!tpu.dma_semaphore, #tpu.memory_space<semaphore_mem>>)
    %c3 = arith.constant 3 : index
    %15 = memref.load %arg0[%c3] : memref<16xi32, #tpu.memory_space<smem>>
    %c3_i32 = arith.constant 3 : i32
    %c0_i32_9 = arith.constant 0 : i32
    %16 = tpu.memref_slice %arg6[%15, %c0_i32_9] : memref<21128x32xf32, #tpu.memory_space<any>> -> memref<1x32xf32, #tpu.memory_space<any>>
    %c3_i32_10 = arith.constant 3 : i32
    %c0_i32_11 = arith.constant 0 : i32
    %17 = tpu.memref_slice %arg22[%c3_i32_10, %c0_i32_11] : memref<16x32xf32, #tpu.memory_space<vmem>> -> memref<1x32xf32, #tpu.memory_space<vmem>>
    %18 = tpu.memref_slice %arg23[%c3_i32] : memref<16x!tpu.dma_semaphore, #tpu.memory_space<semaphore_mem>> -> memref<1x!tpu.dma_semaphore, #tpu.memory_space<semaphore_mem>>
    %19 = tpu.memref_squeeze %18 : memref<1x!tpu.dma_semaphore, #tpu.memory_space<semaphore_mem>> -> memref<!tpu.dma_semaphore, #tpu.memory_space<semaphore_mem>>
    tpu.enqueue_dma source(%16 : memref<1x32xf32, #tpu.memory_space<any>>) target(%17 : memref<1x32xf32, #tpu.memory_space<vmem>>) target_semaphore(%19 : memref<!tpu.dma_semaphore, #tpu.memory_space<semaphore_mem>>)
    %c4 = arith.constant 4 : index
    %20 = memref.load %arg0[%c4] : memref<16xi32, #tpu.memory_space<smem>>
    %c4_i32 = arith.constant 4 : i32
    %c0_i32_12 = arith.constant 0 : i32
    %21 = tpu.memref_slice %arg6[%20, %c0_i32_12] : memref<21128x32xf32, #tpu.memory_space<any>> -> memref<1x32xf32, #tpu.memory_space<any>>
    %c4_i32_13 = arith.constant 4 : i32
    %c0_i32_14 = arith.constant 0 : i32
    %22 = tpu.memref_slice %arg22[%c4_i32_13, %c0_i32_14] : memref<16x32xf32, #tpu.memory_space<vmem>> -> memref<1x32xf32, #tpu.memory_space<vmem>>
    %23 = tpu.memref_slice %arg23[%c4_i32] : memref<16x!tpu.dma_semaphore, #tpu.memory_space<semaphore_mem>> -> memref<1x!tpu.dma_semaphore, #tpu.memory_space<semaphore_mem>>
    %24 = tpu.memref_squeeze %23 : memref<1x!tpu.dma_semaphore, #tpu.memory_space<semaphore_mem>> -> memref<!tpu.dma_semaphore, #tpu.memory_space<semaphore_mem>>
    tpu.enqueue_dma source(%21 : memref<1x32xf32, #tpu.memory_space<any>>) target(%22 : memref<1x32xf32, #tpu.memory_space<vmem>>) target_semaphore(%24 : memref<!tpu.dma_semaphore, #tpu.memory_space<semaphore_mem>>)
    %c5 = arith.constant 5 : index
    %25 = memref.load %arg0[%c5] : memref<16xi32, #tpu.memory_space<smem>>
    %c5_i32 = arith.constant 5 : i32
    %c0_i32_15 = arith.constant 0 : i32
    %26 = tpu.memref_slice %arg6[%25, %c0_i32_15] : memref<21128x32xf32, #tpu.memory_space<any>> -> memref<1x32xf32, #tpu.memory_space<any>>
    %c5_i32_16 = arith.constant 5 : i32
    %c0_i32_17 = arith.constant 0 : i32
    %27 = tpu.memref_slice %arg22[%c5_i32_16, %c0_i32_17] : memref<16x32xf32, #tpu.memory_space<vmem>> -> memref<1x32xf32, #tpu.memory_space<vmem>>
    %28 = tpu.memref_slice %arg23[%c5_i32] : memref<16x!tpu.dma_semaphore, #tpu.memory_space<semaphore_mem>> -> memref<1x!tpu.dma_semaphore, #tpu.memory_space<semaphore_mem>>
    %29 = tpu.memref_squeeze %28 : memref<1x!tpu.dma_semaphore, #tpu.memory_space<semaphore_mem>> -> memref<!tpu.dma_semaphore, #tpu.memory_space<semaphore_mem>>
    tpu.enqueue_dma source(%26 : memref<1x32xf32, #tpu.memory_space<any>>) target(%27 : memref<1x32xf32, #tpu.memory_space<vmem>>) target_semaphore(%29 : memref<!tpu.dma_semaphore, #tpu.memory_space<semaphore_mem>>)
    %c6 = arith.constant 6 : index
    %30 = memref.load %arg0[%c6] : memref<16xi32, #tpu.memory_space<smem>>
    %c6_i32 = arith.constant 6 : i32
    %c0_i32_18 = arith.constant 0 : i32
    %31 = tpu.memref_slice %arg6[%30, %c0_i32_18] : memref<21128x32xf32, #tpu.memory_space<any>> -> memref<1x32xf32, #tpu.memory_space<any>>
    %c6_i32_19 = arith.constant 6 : i32
    %c0_i32_20 = arith.constant 0 : i32
    %32 = tpu.memref_slice %arg22[%c6_i32_19, %c0_i32_20] : memref<16x32xf32, #tpu.memory_space<vmem>> -> memref<1x32xf32, #tpu.memory_space<vmem>>
    %33 = tpu.memref_slice %arg23[%c6_i32] : memref<16x!tpu.dma_semaphore, #tpu.memory_space<semaphore_mem>> -> memref<1x!tpu.dma_semaphore, #tpu.memory_space<semaphore_mem>>
    %34 = tpu.memref_squeeze %33 : memref<1x!tpu.dma_semaphore, #tpu.memory_space<semaphore_mem>> -> memref<!tpu.dma_semaphore, #tpu.memory_space<semaphore_mem>>
    tpu.enqueue_dma source(%31 : memref<1x32xf32, #tpu.memory_space<any>>) target(%32 : memref<1x32xf32, #tpu.memory_space<vmem>>) target_semaphore(%34 : memref<!tpu.dma_semaphore, #tpu.memory_space<semaphore_mem>>)
    %c7 = arith.constant 7 : index
    %35 = memref.load %arg0[%c7] : memref<16xi32, #tpu.memory_space<smem>>
    %c7_i32 = arith.constant 7 : i32
    %c0_i32_21 = arith.constant 0 : i32
    %36 = tpu.memref_slice %arg6[%35, %c0_i32_21] : memref<21128x32xf32, #tpu.memory_space<any>> -> memref<1x32xf32, #tpu.memory_space<any>>
    %c7_i32_22 = arith.constant 7 : i32
    %c0_i32_23 = arith.constant 0 : i32
    %37 = tpu.memref_slice %arg22[%c7_i32_22, %c0_i32_23] : memref<16x32xf32, #tpu.memory_space<vmem>> -> memref<1x32xf32, #tpu.memory_space<vmem>>
    %38 = tpu.memref_slice %arg23[%c7_i32] : memref<16x!tpu.dma_semaphore, #tpu.memory_space<semaphore_mem>> -> memref<1x!tpu.dma_semaphore, #tpu.memory_space<semaphore_mem>>
    %39 = tpu.memref_squeeze %38 : memref<1x!tpu.dma_semaphore, #tpu.memory_space<semaphore_mem>> -> memref<!tpu.dma_semaphore, #tpu.memory_space<semaphore_mem>>
    tpu.enqueue_dma source(%36 : memref<1x32xf32, #tpu.memory_space<any>>) target(%37 : memref<1x32xf32, #tpu.memory_space<vmem>>) target_semaphore(%39 : memref<!tpu.dma_semaphore, #tpu.memory_space<semaphore_mem>>)
    %c8 = arith.constant 8 : index
    %40 = memref.load %arg0[%c8] : memref<16xi32, #tpu.memory_space<smem>>
    %c8_i32 = arith.constant 8 : i32
    %c0_i32_24 = arith.constant 0 : i32
    %41 = tpu.memref_slice %arg6[%40, %c0_i32_24] : memref<21128x32xf32, #tpu.memory_space<any>> -> memref<1x32xf32, #tpu.memory_space<any>>
    %c8_i32_25 = arith.constant 8 : i32
    %c0_i32_26 = arith.constant 0 : i32
    %42 = tpu.memref_slice %arg22[%c8_i32_25, %c0_i32_26] : memref<16x32xf32, #tpu.memory_space<vmem>> -> memref<1x32xf32, #tpu.memory_space<vmem>>
    %43 = tpu.memref_slice %arg23[%c8_i32] : memref<16x!tpu.dma_semaphore, #tpu.memory_space<semaphore_mem>> -> memref<1x!tpu.dma_semaphore, #tpu.memory_space<semaphore_mem>>
    %44 = tpu.memref_squeeze %43 : memref<1x!tpu.dma_semaphore, #tpu.memory_space<semaphore_mem>> -> memref<!tpu.dma_semaphore, #tpu.memory_space<semaphore_mem>>
    tpu.enqueue_dma source(%41 : memref<1x32xf32, #tpu.memory_space<any>>) target(%42 : memref<1x32xf32, #tpu.memory_space<vmem>>) target_semaphore(%44 : memref<!tpu.dma_semaphore, #tpu.memory_space<semaphore_mem>>)
    %c9 = arith.constant 9 : index
    %45 = memref.load %arg0[%c9] : memref<16xi32, #tpu.memory_space<smem>>
    %c9_i32 = arith.constant 9 : i32
    %c0_i32_27 = arith.constant 0 : i32
    %46 = tpu.memref_slice %arg6[%45, %c0_i32_27] : memref<21128x32xf32, #tpu.memory_space<any>> -> memref<1x32xf32, #tpu.memory_space<any>>
    %c9_i32_28 = arith.constant 9 : i32
    %c0_i32_29 = arith.constant 0 : i32
    %47 = tpu.memref_slice %arg22[%c9_i32_28, %c0_i32_29] : memref<16x32xf32, #tpu.memory_space<vmem>> -> memref<1x32xf32, #tpu.memory_space<vmem>>
    %48 = tpu.memref_slice %arg23[%c9_i32] : memref<16x!tpu.dma_semaphore, #tpu.memory_space<semaphore_mem>> -> memref<1x!tpu.dma_semaphore, #tpu.memory_space<semaphore_mem>>
    %49 = tpu.memref_squeeze %48 : memref<1x!tpu.dma_semaphore, #tpu.memory_space<semaphore_mem>> -> memref<!tpu.dma_semaphore, #tpu.memory_space<semaphore_mem>>
    tpu.enqueue_dma source(%46 : memref<1x32xf32, #tpu.memory_space<any>>) target(%47 : memref<1x32xf32, #tpu.memory_space<vmem>>) target_semaphore(%49 : memref<!tpu.dma_semaphore, #tpu.memory_space<semaphore_mem>>)
    %c10 = arith.constant 10 : index
    %50 = memref.load %arg0[%c10] : memref<16xi32, #tpu.memory_space<smem>>
    %c10_i32 = arith.constant 10 : i32
    %c0_i32_30 = arith.constant 0 : i32
    %51 = tpu.memref_slice %arg6[%50, %c0_i32_30] : memref<21128x32xf32, #tpu.memory_space<any>> -> memref<1x32xf32, #tpu.memory_space<any>>
    %c10_i32_31 = arith.constant 10 : i32
    %c0_i32_32 = arith.constant 0 : i32
    %52 = tpu.memref_slice %arg22[%c10_i32_31, %c0_i32_32] : memref<16x32xf32, #tpu.memory_space<vmem>> -> memref<1x32xf32, #tpu.memory_space<vmem>>
    %53 = tpu.memref_slice %arg23[%c10_i32] : memref<16x!tpu.dma_semaphore, #tpu.memory_space<semaphore_mem>> -> memref<1x!tpu.dma_semaphore, #tpu.memory_space<semaphore_mem>>
    %54 = tpu.memref_squeeze %53 : memref<1x!tpu.dma_semaphore, #tpu.memory_space<semaphore_mem>> -> memref<!tpu.dma_semaphore, #tpu.memory_space<semaphore_mem>>
    tpu.enqueue_dma source(%51 : memref<1x32xf32, #tpu.memory_space<any>>) target(%52 : memref<1x32xf32, #tpu.memory_space<vmem>>) target_semaphore(%54 : memref<!tpu.dma_semaphore, #tpu.memory_space<semaphore_mem>>)
    %c11 = arith.constant 11 : index
    %55 = memref.load %arg0[%c11] : memref<16xi32, #tpu.memory_space<smem>>
    %c11_i32 = arith.constant 11 : i32
    %c0_i32_33 = arith.constant 0 : i32
    %56 = tpu.memref_slice %arg6[%55, %c0_i32_33] : memref<21128x32xf32, #tpu.memory_space<any>> -> memref<1x32xf32, #tpu.memory_space<any>>
    %c11_i32_34 = arith.constant 11 : i32
    %c0_i32_35 = arith.constant 0 : i32
    %57 = tpu.memref_slice %arg22[%c11_i32_34, %c0_i32_35] : memref<16x32xf32, #tpu.memory_space<vmem>> -> memref<1x32xf32, #tpu.memory_space<vmem>>
    %58 = tpu.memref_slice %arg23[%c11_i32] : memref<16x!tpu.dma_semaphore, #tpu.memory_space<semaphore_mem>> -> memref<1x!tpu.dma_semaphore, #tpu.memory_space<semaphore_mem>>
    %59 = tpu.memref_squeeze %58 : memref<1x!tpu.dma_semaphore, #tpu.memory_space<semaphore_mem>> -> memref<!tpu.dma_semaphore, #tpu.memory_space<semaphore_mem>>
    tpu.enqueue_dma source(%56 : memref<1x32xf32, #tpu.memory_space<any>>) target(%57 : memref<1x32xf32, #tpu.memory_space<vmem>>) target_semaphore(%59 : memref<!tpu.dma_semaphore, #tpu.memory_space<semaphore_mem>>)
    %c12 = arith.constant 12 : index
    %60 = memref.load %arg0[%c12] : memref<16xi32, #tpu.memory_space<smem>>
    %c12_i32 = arith.constant 12 : i32
    %c0_i32_36 = arith.constant 0 : i32
    %61 = tpu.memref_slice %arg6[%60, %c0_i32_36] : memref<21128x32xf32, #tpu.memory_space<any>> -> memref<1x32xf32, #tpu.memory_space<any>>
    %c12_i32_37 = arith.constant 12 : i32
    %c0_i32_38 = arith.constant 0 : i32
    %62 = tpu.memref_slice %arg22[%c12_i32_37, %c0_i32_38] : memref<16x32xf32, #tpu.memory_space<vmem>> -> memref<1x32xf32, #tpu.memory_space<vmem>>
    %63 = tpu.memref_slice %arg23[%c12_i32] : memref<16x!tpu.dma_semaphore, #tpu.memory_space<semaphore_mem>> -> memref<1x!tpu.dma_semaphore, #tpu.memory_space<semaphore_mem>>
    %64 = tpu.memref_squeeze %63 : memref<1x!tpu.dma_semaphore, #tpu.memory_space<semaphore_mem>> -> memref<!tpu.dma_semaphore, #tpu.memory_space<semaphore_mem>>
    tpu.enqueue_dma source(%61 : memref<1x32xf32, #tpu.memory_space<any>>) target(%62 : memref<1x32xf32, #tpu.memory_space<vmem>>) target_semaphore(%64 : memref<!tpu.dma_semaphore, #tpu.memory_space<semaphore_mem>>)
    %c13 = arith.constant 13 : index
    %65 = memref.load %arg0[%c13] : memref<16xi32, #tpu.memory_space<smem>>
    %c13_i32 = arith.constant 13 : i32
    %c0_i32_39 = arith.constant 0 : i32
    %66 = tpu.memref_slice %arg6[%65, %c0_i32_39] : memref<21128x32xf32, #tpu.memory_space<any>> -> memref<1x32xf32, #tpu.memory_space<any>>
    %c13_i32_40 = arith.constant 13 : i32
    %c0_i32_41 = arith.constant 0 : i32
    %67 = tpu.memref_slice %arg22[%c13_i32_40, %c0_i32_41] : memref<16x32xf32, #tpu.memory_space<vmem>> -> memref<1x32xf32, #tpu.memory_space<vmem>>
    %68 = tpu.memref_slice %arg23[%c13_i32] : memref<16x!tpu.dma_semaphore, #tpu.memory_space<semaphore_mem>> -> memref<1x!tpu.dma_semaphore, #tpu.memory_space<semaphore_mem>>
    %69 = tpu.memref_squeeze %68 : memref<1x!tpu.dma_semaphore, #tpu.memory_space<semaphore_mem>> -> memref<!tpu.dma_semaphore, #tpu.memory_space<semaphore_mem>>
    tpu.enqueue_dma source(%66 : memref<1x32xf32, #tpu.memory_space<any>>) target(%67 : memref<1x32xf32, #tpu.memory_space<vmem>>) target_semaphore(%69 : memref<!tpu.dma_semaphore, #tpu.memory_space<semaphore_mem>>)
    %c14 = arith.constant 14 : index
    %70 = memref.load %arg0[%c14] : memref<16xi32, #tpu.memory_space<smem>>
    %c14_i32 = arith.constant 14 : i32
    %c0_i32_42 = arith.constant 0 : i32
    %71 = tpu.memref_slice %arg6[%70, %c0_i32_42] : memref<21128x32xf32, #tpu.memory_space<any>> -> memref<1x32xf32, #tpu.memory_space<any>>
    %c14_i32_43 = arith.constant 14 : i32
    %c0_i32_44 = arith.constant 0 : i32
    %72 = tpu.memref_slice %arg22[%c14_i32_43, %c0_i32_44] : memref<16x32xf32, #tpu.memory_space<vmem>> -> memref<1x32xf32, #tpu.memory_space<vmem>>
    %73 = tpu.memref_slice %arg23[%c14_i32] : memref<16x!tpu.dma_semaphore, #tpu.memory_space<semaphore_mem>> -> memref<1x!tpu.dma_semaphore, #tpu.memory_space<semaphore_mem>>
    %74 = tpu.memref_squeeze %73 : memref<1x!tpu.dma_semaphore, #tpu.memory_space<semaphore_mem>> -> memref<!tpu.dma_semaphore, #tpu.memory_space<semaphore_mem>>
    tpu.enqueue_dma source(%71 : memref<1x32xf32, #tpu.memory_space<any>>) target(%72 : memref<1x32xf32, #tpu.memory_space<vmem>>) target_semaphore(%74 : memref<!tpu.dma_semaphore, #tpu.memory_space<semaphore_mem>>)
    %c15 = arith.constant 15 : index
    %75 = memref.load %arg0[%c15] : memref<16xi32, #tpu.memory_space<smem>>
    %c15_i32 = arith.constant 15 : i32
    %c0_i32_45 = arith.constant 0 : i32
    %76 = tpu.memref_slice %arg6[%75, %c0_i32_45] : memref<21128x32xf32, #tpu.memory_space<any>> -> memref<1x32xf32, #tpu.memory_space<any>>
    %c15_i32_46 = arith.constant 15 : i32
    %c0_i32_47 = arith.constant 0 : i32
    %77 = tpu.memref_slice %arg22[%c15_i32_46, %c0_i32_47] : memref<16x32xf32, #tpu.memory_space<vmem>> -> memref<1x32xf32, #tpu.memory_space<vmem>>
    %78 = tpu.memref_slice %arg23[%c15_i32] : memref<16x!tpu.dma_semaphore, #tpu.memory_space<semaphore_mem>> -> memref<1x!tpu.dma_semaphore, #tpu.memory_space<semaphore_mem>>
    %79 = tpu.memref_squeeze %78 : memref<1x!tpu.dma_semaphore, #tpu.memory_space<semaphore_mem>> -> memref<!tpu.dma_semaphore, #tpu.memory_space<semaphore_mem>>
    tpu.enqueue_dma source(%76 : memref<1x32xf32, #tpu.memory_space<any>>) target(%77 : memref<1x32xf32, #tpu.memory_space<vmem>>) target_semaphore(%79 : memref<!tpu.dma_semaphore, #tpu.memory_space<semaphore_mem>>)
    %80 = tpu.iota {dimensions = array<i32: 1>} : vector<16x16xi32>
    %c0_48 = arith.constant 0 : index
    %c0_49 = arith.constant 0 : index
    %81 = vector.load %arg1[%c0_48, %c0_49] : memref<16x1xi32, #tpu.memory_space<vmem>>, vector<16x1xi32>
    %82 = vector.broadcast %81 : vector<16x1xi32> to vector<16x16xi32>
    %83 = arith.cmpi eq, %80, %82 : vector<16x16xi32>
    %cst = arith.constant 1.000000e+00 : f32
    %cst_50 = arith.constant 0.000000e+00 : f32
    %84 = vector.broadcast %cst : f32 to vector<16x16xf32>
    %85 = vector.broadcast %cst_50 : f32 to vector<16x16xf32>
    %86 = arith.select %83, %84, %85 : vector<16x16xi1>, vector<16x16xf32>
    %c0_51 = arith.constant 0 : index
    %c0_52 = arith.constant 0 : index
    %87 = vector.load %arg5[%c0_51, %c0_52] : memref<16x32xf32, #tpu.memory_space<vmem>>, vector<16x32xf32>
    %cst_53 = arith.constant dense<0.000000e+00> : vector<16x32xf32>
    %88 = tpu.matmul %86, %87, %cst_53 {dimension_numbers = #tpu.dot_dimension_numbers<[1], [0], [0], [1], [0, 0, 1, 1], [], []>} : vector<16x16xf32>, vector<16x32xf32>, vector<16x32xf32> -> vector<16x32xf32>
    %c0_54 = arith.constant 0 : index
    %c0_55 = arith.constant 0 : index
    %89 = vector.load %arg4[%c0_54, %c0_55] : memref<8x32xf32, #tpu.memory_space<vmem>>, vector<8x32xf32>
    %90 = tpu.concatenate %89, %89 in 0 : vector<8x32xf32>, vector<8x32xf32> -> vector<16x32xf32>
    %91 = arith.addf %88, %90 : vector<16x32xf32>
    %c0_56 = arith.constant 0 : index
    %c0_57 = arith.constant 0 : index
    %c0_58 = arith.constant 0 : index
    %92 = vector.load %arg3[%c0_56, %c0_57, %c0_58] : memref<2x1x8xf32, #tpu.memory_space<vmem>>, vector<2x1x8xf32>
    %cst_59 = arith.constant 1.000000e+00 : f32
    %93 = vector.broadcast %cst_59 : f32 to vector<2x1x8xf32>
    %94 = arith.subf %93, %92 : vector<2x1x8xf32>
    %cst_60 = arith.constant -1.000000e+04 : f32
    %95 = vector.broadcast %cst_60 : f32 to vector<2x1x8xf32>
    %96 = arith.mulf %94, %95 : vector<2x1x8xf32>
    %97 = vector.shape_cast %96 : vector<2x1x8xf32> to vector<1x2x1x8xf32>
    %98 = vector.shape_cast %97 : vector<1x2x1x8xf32> to vector<1x2x1x8xf32>
    %99 = vector.broadcast %98 : vector<1x2x1x8xf32> to vector<4x2x1x8xf32>
    %100 = vector.shape_cast %99 : vector<4x2x1x8xf32> to vector<8x1x8xf32>
    %c0_i32_61 = arith.constant 0 : i32
    %c0_i32_62 = arith.constant 0 : i32
    %101 = tpu.memref_slice %arg6[%0, %c0_i32_62] : memref<21128x32xf32, #tpu.memory_space<any>> -> memref<1x32xf32, #tpu.memory_space<any>>
    %c0_i32_63 = arith.constant 0 : i32
    %c0_i32_64 = arith.constant 0 : i32
    %102 = tpu.memref_slice %arg22[%c0_i32_63, %c0_i32_64] : memref<16x32xf32, #tpu.memory_space<vmem>> -> memref<1x32xf32, #tpu.memory_space<vmem>>
    %103 = tpu.memref_slice %arg23[%c0_i32_61] : memref<16x!tpu.dma_semaphore, #tpu.memory_space<semaphore_mem>> -> memref<1x!tpu.dma_semaphore, #tpu.memory_space<semaphore_mem>>
    %104 = tpu.memref_squeeze %103 : memref<1x!tpu.dma_semaphore, #tpu.memory_space<semaphore_mem>> -> memref<!tpu.dma_semaphore, #tpu.memory_space<semaphore_mem>>
    tpu.wait_dma2 semaphore(%104 : memref<!tpu.dma_semaphore, #tpu.memory_space<semaphore_mem>>) src(%101 : memref<1x32xf32, #tpu.memory_space<any>>) dst(%102 : memref<1x32xf32, #tpu.memory_space<vmem>>)
    %c1_i32_65 = arith.constant 1 : i32
    %c0_i32_66 = arith.constant 0 : i32
    %105 = tpu.memref_slice %arg6[%5, %c0_i32_66] : memref<21128x32xf32, #tpu.memory_space<any>> -> memref<1x32xf32, #tpu.memory_space<any>>
    %c1_i32_67 = arith.constant 1 : i32
    %c0_i32_68 = arith.constant 0 : i32
    %106 = tpu.memref_slice %arg22[%c1_i32_67, %c0_i32_68] : memref<16x32xf32, #tpu.memory_space<vmem>> -> memref<1x32xf32, #tpu.memory_space<vmem>>
    %107 = tpu.memref_slice %arg23[%c1_i32_65] : memref<16x!tpu.dma_semaphore, #tpu.memory_space<semaphore_mem>> -> memref<1x!tpu.dma_semaphore, #tpu.memory_space<semaphore_mem>>
    %108 = tpu.memref_squeeze %107 : memref<1x!tpu.dma_semaphore, #tpu.memory_space<semaphore_mem>> -> memref<!tpu.dma_semaphore, #tpu.memory_space<semaphore_mem>>
    tpu.wait_dma2 semaphore(%108 : memref<!tpu.dma_semaphore, #tpu.memory_space<semaphore_mem>>) src(%105 : memref<1x32xf32, #tpu.memory_space<any>>) dst(%106 : memref<1x32xf32, #tpu.memory_space<vmem>>)
    %c2_i32_69 = arith.constant 2 : i32
    %c0_i32_70 = arith.constant 0 : i32
    %109 = tpu.memref_slice %arg6[%10, %c0_i32_70] : memref<21128x32xf32, #tpu.memory_space<any>> -> memref<1x32xf32, #tpu.memory_space<any>>
    %c2_i32_71 = arith.constant 2 : i32
    %c0_i32_72 = arith.constant 0 : i32
    %110 = tpu.memref_slice %arg22[%c2_i32_71, %c0_i32_72] : memref<16x32xf32, #tpu.memory_space<vmem>> -> memref<1x32xf32, #tpu.memory_space<vmem>>
    %111 = tpu.memref_slice %arg23[%c2_i32_69] : memref<16x!tpu.dma_semaphore, #tpu.memory_space<semaphore_mem>> -> memref<1x!tpu.dma_semaphore, #tpu.memory_space<semaphore_mem>>
    %112 = tpu.memref_squeeze %111 : memref<1x!tpu.dma_semaphore, #tpu.memory_space<semaphore_mem>> -> memref<!tpu.dma_semaphore, #tpu.memory_space<semaphore_mem>>
    tpu.wait_dma2 semaphore(%112 : memref<!tpu.dma_semaphore, #tpu.memory_space<semaphore_mem>>) src(%109 : memref<1x32xf32, #tpu.memory_space<any>>) dst(%110 : memref<1x32xf32, #tpu.memory_space<vmem>>)
    %c3_i32_73 = arith.constant 3 : i32
    %c0_i32_74 = arith.constant 0 : i32
    %113 = tpu.memref_slice %arg6[%15, %c0_i32_74] : memref<21128x32xf32, #tpu.memory_space<any>> -> memref<1x32xf32, #tpu.memory_space<any>>
    %c3_i32_75 = arith.constant 3 : i32
    %c0_i32_76 = arith.constant 0 : i32
    %114 = tpu.memref_slice %arg22[%c3_i32_75, %c0_i32_76] : memref<16x32xf32, #tpu.memory_space<vmem>> -> memref<1x32xf32, #tpu.memory_space<vmem>>
    %115 = tpu.memref_slice %arg23[%c3_i32_73] : memref<16x!tpu.dma_semaphore, #tpu.memory_space<semaphore_mem>> -> memref<1x!tpu.dma_semaphore, #tpu.memory_space<semaphore_mem>>
    %116 = tpu.memref_squeeze %115 : memref<1x!tpu.dma_semaphore, #tpu.memory_space<semaphore_mem>> -> memref<!tpu.dma_semaphore, #tpu.memory_space<semaphore_mem>>
    tpu.wait_dma2 semaphore(%116 : memref<!tpu.dma_semaphore, #tpu.memory_space<semaphore_mem>>) src(%113 : memref<1x32xf32, #tpu.memory_space<any>>) dst(%114 : memref<1x32xf32, #tpu.memory_space<vmem>>)
    %c4_i32_77 = arith.constant 4 : i32
    %c0_i32_78 = arith.constant 0 : i32
    %117 = tpu.memref_slice %arg6[%20, %c0_i32_78] : memref<21128x32xf32, #tpu.memory_space<any>> -> memref<1x32xf32, #tpu.memory_space<any>>
    %c4_i32_79 = arith.constant 4 : i32
    %c0_i32_80 = arith.constant 0 : i32
    %118 = tpu.memref_slice %arg22[%c4_i32_79, %c0_i32_80] : memref<16x32xf32, #tpu.memory_space<vmem>> -> memref<1x32xf32, #tpu.memory_space<vmem>>
    %119 = tpu.memref_slice %arg23[%c4_i32_77] : memref<16x!tpu.dma_semaphore, #tpu.memory_space<semaphore_mem>> -> memref<1x!tpu.dma_semaphore, #tpu.memory_space<semaphore_mem>>
    %120 = tpu.memref_squeeze %119 : memref<1x!tpu.dma_semaphore, #tpu.memory_space<semaphore_mem>> -> memref<!tpu.dma_semaphore, #tpu.memory_space<semaphore_mem>>
    tpu.wait_dma2 semaphore(%120 : memref<!tpu.dma_semaphore, #tpu.memory_space<semaphore_mem>>) src(%117 : memref<1x32xf32, #tpu.memory_space<any>>) dst(%118 : memref<1x32xf32, #tpu.memory_space<vmem>>)
    %c5_i32_81 = arith.constant 5 : i32
    %c0_i32_82 = arith.constant 0 : i32
    %121 = tpu.memref_slice %arg6[%25, %c0_i32_82] : memref<21128x32xf32, #tpu.memory_space<any>> -> memref<1x32xf32, #tpu.memory_space<any>>
    %c5_i32_83 = arith.constant 5 : i32
    %c0_i32_84 = arith.constant 0 : i32
    %122 = tpu.memref_slice %arg22[%c5_i32_83, %c0_i32_84] : memref<16x32xf32, #tpu.memory_space<vmem>> -> memref<1x32xf32, #tpu.memory_space<vmem>>
    %123 = tpu.memref_slice %arg23[%c5_i32_81] : memref<16x!tpu.dma_semaphore, #tpu.memory_space<semaphore_mem>> -> memref<1x!tpu.dma_semaphore, #tpu.memory_space<semaphore_mem>>
    %124 = tpu.memref_squeeze %123 : memref<1x!tpu.dma_semaphore, #tpu.memory_space<semaphore_mem>> -> memref<!tpu.dma_semaphore, #tpu.memory_space<semaphore_mem>>
    tpu.wait_dma2 semaphore(%124 : memref<!tpu.dma_semaphore, #tpu.memory_space<semaphore_mem>>) src(%121 : memref<1x32xf32, #tpu.memory_space<any>>) dst(%122 : memref<1x32xf32, #tpu.memory_space<vmem>>)
    %c6_i32_85 = arith.constant 6 : i32
    %c0_i32_86 = arith.constant 0 : i32
    %125 = tpu.memref_slice %arg6[%30, %c0_i32_86] : memref<21128x32xf32, #tpu.memory_space<any>> -> memref<1x32xf32, #tpu.memory_space<any>>
    %c6_i32_87 = arith.constant 6 : i32
    %c0_i32_88 = arith.constant 0 : i32
    %126 = tpu.memref_slice %arg22[%c6_i32_87, %c0_i32_88] : memref<16x32xf32, #tpu.memory_space<vmem>> -> memref<1x32xf32, #tpu.memory_space<vmem>>
    %127 = tpu.memref_slice %arg23[%c6_i32_85] : memref<16x!tpu.dma_semaphore, #tpu.memory_space<semaphore_mem>> -> memref<1x!tpu.dma_semaphore, #tpu.memory_space<semaphore_mem>>
    %128 = tpu.memref_squeeze %127 : memref<1x!tpu.dma_semaphore, #tpu.memory_space<semaphore_mem>> -> memref<!tpu.dma_semaphore, #tpu.memory_space<semaphore_mem>>
    tpu.wait_dma2 semaphore(%128 : memref<!tpu.dma_semaphore, #tpu.memory_space<semaphore_mem>>) src(%125 : memref<1x32xf32, #tpu.memory_space<any>>) dst(%126 : memref<1x32xf32, #tpu.memory_space<vmem>>)
    %c7_i32_89 = arith.constant 7 : i32
    %c0_i32_90 = arith.constant 0 : i32
    %129 = tpu.memref_slice %arg6[%35, %c0_i32_90] : memref<21128x32xf32, #tpu.memory_space<any>> -> memref<1x32xf32, #tpu.memory_space<any>>
    %c7_i32_91 = arith.constant 7 : i32
    %c0_i32_92 = arith.constant 0 : i32
    %130 = tpu.memref_slice %arg22[%c7_i32_91, %c0_i32_92] : memref<16x32xf32, #tpu.memory_space<vmem>> -> memref<1x32xf32, #tpu.memory_space<vmem>>
    %131 = tpu.memref_slice %arg23[%c7_i32_89] : memref<16x!tpu.dma_semaphore, #tpu.memory_space<semaphore_mem>> -> memref<1x!tpu.dma_semaphore, #tpu.memory_space<semaphore_mem>>
    %132 = tpu.memref_squeeze %131 : memref<1x!tpu.dma_semaphore, #tpu.memory_space<semaphore_mem>> -> memref<!tpu.dma_semaphore, #tpu.memory_space<semaphore_mem>>
    tpu.wait_dma2 semaphore(%132 : memref<!tpu.dma_semaphore, #tpu.memory_space<semaphore_mem>>) src(%129 : memref<1x32xf32, #tpu.memory_space<any>>) dst(%130 : memref<1x32xf32, #tpu.memory_space<vmem>>)
    %c8_i32_93 = arith.constant 8 : i32
    %c0_i32_94 = arith.constant 0 : i32
    %133 = tpu.memref_slice %arg6[%40, %c0_i32_94] : memref<21128x32xf32, #tpu.memory_space<any>> -> memref<1x32xf32, #tpu.memory_space<any>>
    %c8_i32_95 = arith.constant 8 : i32
    %c0_i32_96 = arith.constant 0 : i32
    %134 = tpu.memref_slice %arg22[%c8_i32_95, %c0_i32_96] : memref<16x32xf32, #tpu.memory_space<vmem>> -> memref<1x32xf32, #tpu.memory_space<vmem>>
    %135 = tpu.memref_slice %arg23[%c8_i32_93] : memref<16x!tpu.dma_semaphore, #tpu.memory_space<semaphore_mem>> -> memref<1x!tpu.dma_semaphore, #tpu.memory_space<semaphore_mem>>
    %136 = tpu.memref_squeeze %135 : memref<1x!tpu.dma_semaphore, #tpu.memory_space<semaphore_mem>> -> memref<!tpu.dma_semaphore, #tpu.memory_space<semaphore_mem>>
    tpu.wait_dma2 semaphore(%136 : memref<!tpu.dma_semaphore, #tpu.memory_space<semaphore_mem>>) src(%133 : memref<1x32xf32, #tpu.memory_space<any>>) dst(%134 : memref<1x32xf32, #tpu.memory_space<vmem>>)
    %c9_i32_97 = arith.constant 9 : i32
    %c0_i32_98 = arith.constant 0 : i32
    %137 = tpu.memref_slice %arg6[%45, %c0_i32_98] : memref<21128x32xf32, #tpu.memory_space<any>> -> memref<1x32xf32, #tpu.memory_space<any>>
    %c9_i32_99 = arith.constant 9 : i32
    %c0_i32_100 = arith.constant 0 : i32
    %138 = tpu.memref_slice %arg22[%c9_i32_99, %c0_i32_100] : memref<16x32xf32, #tpu.memory_space<vmem>> -> memref<1x32xf32, #tpu.memory_space<vmem>>
    %139 = tpu.memref_slice %arg23[%c9_i32_97] : memref<16x!tpu.dma_semaphore, #tpu.memory_space<semaphore_mem>> -> memref<1x!tpu.dma_semaphore, #tpu.memory_space<semaphore_mem>>
    %140 = tpu.memref_squeeze %139 : memref<1x!tpu.dma_semaphore, #tpu.memory_space<semaphore_mem>> -> memref<!tpu.dma_semaphore, #tpu.memory_space<semaphore_mem>>
    tpu.wait_dma2 semaphore(%140 : memref<!tpu.dma_semaphore, #tpu.memory_space<semaphore_mem>>) src(%137 : memref<1x32xf32, #tpu.memory_space<any>>) dst(%138 : memref<1x32xf32, #tpu.memory_space<vmem>>)
    %c10_i32_101 = arith.constant 10 : i32
    %c0_i32_102 = arith.constant 0 : i32
    %141 = tpu.memref_slice %arg6[%50, %c0_i32_102] : memref<21128x32xf32, #tpu.memory_space<any>> -> memref<1x32xf32, #tpu.memory_space<any>>
    %c10_i32_103 = arith.constant 10 : i32
    %c0_i32_104 = arith.constant 0 : i32
    %142 = tpu.memref_slice %arg22[%c10_i32_103, %c0_i32_104] : memref<16x32xf32, #tpu.memory_space<vmem>> -> memref<1x32xf32, #tpu.memory_space<vmem>>
    %143 = tpu.memref_slice %arg23[%c10_i32_101] : memref<16x!tpu.dma_semaphore, #tpu.memory_space<semaphore_mem>> -> memref<1x!tpu.dma_semaphore, #tpu.memory_space<semaphore_mem>>
    %144 = tpu.memref_squeeze %143 : memref<1x!tpu.dma_semaphore, #tpu.memory_space<semaphore_mem>> -> memref<!tpu.dma_semaphore, #tpu.memory_space<semaphore_mem>>
    tpu.wait_dma2 semaphore(%144 : memref<!tpu.dma_semaphore, #tpu.memory_space<semaphore_mem>>) src(%141 : memref<1x32xf32, #tpu.memory_space<any>>) dst(%142 : memref<1x32xf32, #tpu.memory_space<vmem>>)
    %c11_i32_105 = arith.constant 11 : i32
    %c0_i32_106 = arith.constant 0 : i32
    %145 = tpu.memref_slice %arg6[%55, %c0_i32_106] : memref<21128x32xf32, #tpu.memory_space<any>> -> memref<1x32xf32, #tpu.memory_space<any>>
    %c11_i32_107 = arith.constant 11 : i32
    %c0_i32_108 = arith.constant 0 : i32
    %146 = tpu.memref_slice %arg22[%c11_i32_107, %c0_i32_108] : memref<16x32xf32, #tpu.memory_space<vmem>> -> memref<1x32xf32, #tpu.memory_space<vmem>>
    %147 = tpu.memref_slice %arg23[%c11_i32_105] : memref<16x!tpu.dma_semaphore, #tpu.memory_space<semaphore_mem>> -> memref<1x!tpu.dma_semaphore, #tpu.memory_space<semaphore_mem>>
    %148 = tpu.memref_squeeze %147 : memref<1x!tpu.dma_semaphore, #tpu.memory_space<semaphore_mem>> -> memref<!tpu.dma_semaphore, #tpu.memory_space<semaphore_mem>>
    tpu.wait_dma2 semaphore(%148 : memref<!tpu.dma_semaphore, #tpu.memory_space<semaphore_mem>>) src(%145 : memref<1x32xf32, #tpu.memory_space<any>>) dst(%146 : memref<1x32xf32, #tpu.memory_space<vmem>>)
    %c12_i32_109 = arith.constant 12 : i32
    %c0_i32_110 = arith.constant 0 : i32
    %149 = tpu.memref_slice %arg6[%60, %c0_i32_110] : memref<21128x32xf32, #tpu.memory_space<any>> -> memref<1x32xf32, #tpu.memory_space<any>>
    %c12_i32_111 = arith.constant 12 : i32
    %c0_i32_112 = arith.constant 0 : i32
    %150 = tpu.memref_slice %arg22[%c12_i32_111, %c0_i32_112] : memref<16x32xf32, #tpu.memory_space<vmem>> -> memref<1x32xf32, #tpu.memory_space<vmem>>
    %151 = tpu.memref_slice %arg23[%c12_i32_109] : memref<16x!tpu.dma_semaphore, #tpu.memory_space<semaphore_mem>> -> memref<1x!tpu.dma_semaphore, #tpu.memory_space<semaphore_mem>>
    %152 = tpu.memref_squeeze %151 : memref<1x!tpu.dma_semaphore, #tpu.memory_space<semaphore_mem>> -> memref<!tpu.dma_semaphore, #tpu.memory_space<semaphore_mem>>
    tpu.wait_dma2 semaphore(%152 : memref<!tpu.dma_semaphore, #tpu.memory_space<semaphore_mem>>) src(%149 : memref<1x32xf32, #tpu.memory_space<any>>) dst(%150 : memref<1x32xf32, #tpu.memory_space<vmem>>)
    %c13_i32_113 = arith.constant 13 : i32
    %c0_i32_114 = arith.constant 0 : i32
    %153 = tpu.memref_slice %arg6[%65, %c0_i32_114] : memref<21128x32xf32, #tpu.memory_space<any>> -> memref<1x32xf32, #tpu.memory_space<any>>
    %c13_i32_115 = arith.constant 13 : i32
    %c0_i32_116 = arith.constant 0 : i32
    %154 = tpu.memref_slice %arg22[%c13_i32_115, %c0_i32_116] : memref<16x32xf32, #tpu.memory_space<vmem>> -> memref<1x32xf32, #tpu.memory_space<vmem>>
    %155 = tpu.memref_slice %arg23[%c13_i32_113] : memref<16x!tpu.dma_semaphore, #tpu.memory_space<semaphore_mem>> -> memref<1x!tpu.dma_semaphore, #tpu.memory_space<semaphore_mem>>
    %156 = tpu.memref_squeeze %155 : memref<1x!tpu.dma_semaphore, #tpu.memory_space<semaphore_mem>> -> memref<!tpu.dma_semaphore, #tpu.memory_space<semaphore_mem>>
    tpu.wait_dma2 semaphore(%156 : memref<!tpu.dma_semaphore, #tpu.memory_space<semaphore_mem>>) src(%153 : memref<1x32xf32, #tpu.memory_space<any>>) dst(%154 : memref<1x32xf32, #tpu.memory_space<vmem>>)
    %c14_i32_117 = arith.constant 14 : i32
    %c0_i32_118 = arith.constant 0 : i32
    %157 = tpu.memref_slice %arg6[%70, %c0_i32_118] : memref<21128x32xf32, #tpu.memory_space<any>> -> memref<1x32xf32, #tpu.memory_space<any>>
    %c14_i32_119 = arith.constant 14 : i32
    %c0_i32_120 = arith.constant 0 : i32
    %158 = tpu.memref_slice %arg22[%c14_i32_119, %c0_i32_120] : memref<16x32xf32, #tpu.memory_space<vmem>> -> memref<1x32xf32, #tpu.memory_space<vmem>>
    %159 = tpu.memref_slice %arg23[%c14_i32_117] : memref<16x!tpu.dma_semaphore, #tpu.memory_space<semaphore_mem>> -> memref<1x!tpu.dma_semaphore, #tpu.memory_space<semaphore_mem>>
    %160 = tpu.memref_squeeze %159 : memref<1x!tpu.dma_semaphore, #tpu.memory_space<semaphore_mem>> -> memref<!tpu.dma_semaphore, #tpu.memory_space<semaphore_mem>>
    tpu.wait_dma2 semaphore(%160 : memref<!tpu.dma_semaphore, #tpu.memory_space<semaphore_mem>>) src(%157 : memref<1x32xf32, #tpu.memory_space<any>>) dst(%158 : memref<1x32xf32, #tpu.memory_space<vmem>>)
    %c15_i32_121 = arith.constant 15 : i32
    %c0_i32_122 = arith.constant 0 : i32
    %161 = tpu.memref_slice %arg6[%75, %c0_i32_122] : memref<21128x32xf32, #tpu.memory_space<any>> -> memref<1x32xf32, #tpu.memory_space<any>>
    %c15_i32_123 = arith.constant 15 : i32
    %c0_i32_124 = arith.constant 0 : i32
    %162 = tpu.memref_slice %arg22[%c15_i32_123, %c0_i32_124] : memref<16x32xf32, #tpu.memory_space<vmem>> -> memref<1x32xf32, #tpu.memory_space<vmem>>
    %163 = tpu.memref_slice %arg23[%c15_i32_121] : memref<16x!tpu.dma_semaphore, #tpu.memory_space<semaphore_mem>> -> memref<1x!tpu.dma_semaphore, #tpu.memory_space<semaphore_mem>>
    %164 = tpu.memref_squeeze %163 : memref<1x!tpu.dma_semaphore, #tpu.memory_space<semaphore_mem>> -> memref<!tpu.dma_semaphore, #tpu.memory_space<semaphore_mem>>
    tpu.wait_dma2 semaphore(%164 : memref<!tpu.dma_semaphore, #tpu.memory_space<semaphore_mem>>) src(%161 : memref<1x32xf32, #tpu.memory_space<any>>) dst(%162 : memref<1x32xf32, #tpu.memory_space<vmem>>)
    %c0_125 = arith.constant 0 : index
    %c0_126 = arith.constant 0 : index
    %165 = vector.load %arg22[%c0_125, %c0_126] : memref<16x32xf32, #tpu.memory_space<vmem>>, vector<16x32xf32>
    %166 = arith.addf %165, %91 : vector<16x32xf32>
    %c0_127 = arith.constant 0 : index
    %c0_128 = arith.constant 0 : index
    %167 = vector.load %arg7[%c0_127, %c0_128] : memref<1x32xf32, #tpu.memory_space<vmem>>, vector<1x32xf32>
    %c0_129 = arith.constant 0 : index
    %c0_130 = arith.constant 0 : index
    %168 = vector.load %arg8[%c0_129, %c0_130] : memref<1x32xf32, #tpu.memory_space<vmem>>, vector<1x32xf32>
    %cst_131 = arith.constant dense<0.000000e+00> : vector<16xf32>
    %169 = vector.multi_reduction <add>, %166, %cst_131 [1] : vector<16x32xf32> to vector<16xf32>
    %170 = vector.shape_cast %169 : vector<16xf32> to vector<16x1xf32>
    %cst_132 = arith.constant 3.200000e+01 : f32
    %171 = vector.broadcast %cst_132 : f32 to vector<16x1xf32>
    %172 = arith.divf %170, %171 : vector<16x1xf32>
    %173 = vector.broadcast %172 : vector<16x1xf32> to vector<16x32xf32>
    %174 = arith.subf %166, %173 : vector<16x32xf32>
    %175 = arith.mulf %174, %174 : vector<16x32xf32>
    %cst_133 = arith.constant dense<0.000000e+00> : vector<16xf32>
    %176 = vector.multi_reduction <add>, %175, %cst_133 [1] : vector<16x32xf32> to vector<16xf32>
    %177 = vector.shape_cast %176 : vector<16xf32> to vector<16x1xf32>
    %cst_134 = arith.constant 3.200000e+01 : f32
    %178 = vector.broadcast %cst_134 : f32 to vector<16x1xf32>
    %179 = arith.divf %177, %178 : vector<16x1xf32>
    %cst_135 = arith.constant 9.99999996E-13 : f32
    %180 = vector.broadcast %cst_135 : f32 to vector<16x1xf32>
    %181 = arith.addf %179, %180 : vector<16x1xf32>
    %182 = math.rsqrt %181 : vector<16x1xf32>
    %183 = vector.broadcast %182 : vector<16x1xf32> to vector<16x32xf32>
    %184 = arith.mulf %174, %183 : vector<16x32xf32>
    %185 = vector.broadcast %167 : vector<1x32xf32> to vector<16x32xf32>
    %186 = arith.mulf %184, %185 : vector<16x32xf32>
    %187 = vector.broadcast %168 : vector<1x32xf32> to vector<16x32xf32>
    %188 = arith.addf %186, %187 : vector<16x32xf32>
    %c0_136 = arith.constant 0 : index
    %c0_137 = arith.constant 0 : index
    %c0_138 = arith.constant 0 : index
    %189 = vector.load %arg9[%c0_136, %c0_137, %c0_138] : memref<4x32x96xf32, #tpu.memory_space<vmem>>, vector<1x32x96xf32>
    %190 = vector.shape_cast %189 : vector<1x32x96xf32> to vector<32x96xf32>
    %cst_139 = arith.constant dense<0.000000e+00> : vector<16x96xf32>
    %191 = tpu.matmul %188, %190, %cst_139 {dimension_numbers = #tpu.dot_dimension_numbers<[1], [0], [0], [1], [0, 0, 1, 1], [], []>} : vector<16x32xf32>, vector<32x96xf32>, vector<16x96xf32> -> vector<16x96xf32>
    %c0_140 = arith.constant 0 : index
    %c0_141 = arith.constant 0 : index
    %c0_142 = arith.constant 0 : index
    %192 = vector.load %arg10[%c0_140, %c0_141, %c0_142] : memref<4x1x96xf32, #tpu.memory_space<vmem>>, vector<1x1x96xf32>
    %193 = vector.shape_cast %192 : vector<1x1x96xf32> to vector<1x96xf32>
    %194 = vector.broadcast %193 : vector<1x96xf32> to vector<16x96xf32>
    %195 = arith.addf %191, %194 : vector<16x96xf32>
    %196 = vector.extract_strided_slice %195 {offsets = [0, 0], sizes = [16, 8], strides = [1, 1]} : vector<16x96xf32> to vector<16x8xf32>
    %197 = vector.extract_strided_slice %195 {offsets = [0, 8], sizes = [16, 8], strides = [1, 1]} : vector<16x96xf32> to vector<16x8xf32>
    %198 = vector.extract_strided_slice %195 {offsets = [0, 16], sizes = [16, 8], strides = [1, 1]} : vector<16x96xf32> to vector<16x8xf32>
    %199 = vector.extract_strided_slice %195 {offsets = [0, 24], sizes = [16, 8], strides = [1, 1]} : vector<16x96xf32> to vector<16x8xf32>
    %200 = vector.shape_cast %196 : vector<16x8xf32> to vector<1x16x8xf32>
    %201 = vector.shape_cast %197 : vector<16x8xf32> to vector<1x16x8xf32>
    %202 = vector.shape_cast %198 : vector<16x8xf32> to vector<1x16x8xf32>
    %203 = vector.shape_cast %199 : vector<16x8xf32> to vector<1x16x8xf32>
    %204 = tpu.concatenate %200, %201, %202, %203 in 0 : vector<1x16x8xf32>, vector<1x16x8xf32>, vector<1x16x8xf32>, vector<1x16x8xf32> -> vector<4x16x8xf32>
    %205 = vector.shape_cast %204 : vector<4x16x8xf32> to vector<4x2x8x8xf32>
    %206 = vector.shape_cast %205 : vector<4x2x8x8xf32> to vector<8x8x8xf32>
    %207 = vector.extract_strided_slice %195 {offsets = [0, 32], sizes = [16, 8], strides = [1, 1]} : vector<16x96xf32> to vector<16x8xf32>
    %208 = vector.extract_strided_slice %195 {offsets = [0, 40], sizes = [16, 8], strides = [1, 1]} : vector<16x96xf32> to vector<16x8xf32>
    %209 = vector.extract_strided_slice %195 {offsets = [0, 48], sizes = [16, 8], strides = [1, 1]} : vector<16x96xf32> to vector<16x8xf32>
    %210 = vector.extract_strided_slice %195 {offsets = [0, 56], sizes = [16, 8], strides = [1, 1]} : vector<16x96xf32> to vector<16x8xf32>
    %211 = vector.shape_cast %207 : vector<16x8xf32> to vector<1x16x8xf32>
    %212 = vector.shape_cast %208 : vector<16x8xf32> to vector<1x16x8xf32>
    %213 = vector.shape_cast %209 : vector<16x8xf32> to vector<1x16x8xf32>
    %214 = vector.shape_cast %210 : vector<16x8xf32> to vector<1x16x8xf32>
    %215 = tpu.concatenate %211, %212, %213, %214 in 0 : vector<1x16x8xf32>, vector<1x16x8xf32>, vector<1x16x8xf32>, vector<1x16x8xf32> -> vector<4x16x8xf32>
    %216 = vector.shape_cast %215 : vector<4x16x8xf32> to vector<4x2x8x8xf32>
    %217 = vector.shape_cast %216 : vector<4x2x8x8xf32> to vector<8x8x8xf32>
    %218 = vector.extract_strided_slice %195 {offsets = [0, 64], sizes = [16, 8], strides = [1, 1]} : vector<16x96xf32> to vector<16x8xf32>
    %219 = vector.extract_strided_slice %195 {offsets = [0, 72], sizes = [16, 8], strides = [1, 1]} : vector<16x96xf32> to vector<16x8xf32>
    %220 = vector.extract_strided_slice %195 {offsets = [0, 80], sizes = [16, 8], strides = [1, 1]} : vector<16x96xf32> to vector<16x8xf32>
    %221 = vector.extract_strided_slice %195 {offsets = [0, 88], sizes = [16, 8], strides = [1, 1]} : vector<16x96xf32> to vector<16x8xf32>
    %222 = vector.shape_cast %218 : vector<16x8xf32> to vector<1x16x8xf32>
    %223 = vector.shape_cast %219 : vector<16x8xf32> to vector<1x16x8xf32>
    %224 = vector.shape_cast %220 : vector<16x8xf32> to vector<1x16x8xf32>
    %225 = vector.shape_cast %221 : vector<16x8xf32> to vector<1x16x8xf32>
    %226 = tpu.concatenate %222, %223, %224, %225 in 0 : vector<1x16x8xf32>, vector<1x16x8xf32>, vector<1x16x8xf32>, vector<1x16x8xf32> -> vector<4x16x8xf32>
    %227 = vector.shape_cast %226 : vector<4x16x8xf32> to vector<4x2x8x8xf32>
    %228 = vector.shape_cast %227 : vector<4x2x8x8xf32> to vector<8x8x8xf32>
    "tpu.trace_start"() <{level = 10 : i32, message = "gqd,gkd->gqk"}> : () -> ()
    %cst_143 = arith.constant dense<0.000000e+00> : vector<8x8x8xf32>
    %229 = tpu.matmul %206, %217, %cst_143 {dimension_numbers = #tpu.dot_dimension_numbers<[2], [2], [1], [1], [0, 0, 0, 1, 1, 1], [0], [0]>} : vector<8x8x8xf32>, vector<8x8x8xf32>, vector<8x8x8xf32> -> vector<8x8x8xf32>
    "tpu.trace_stop"() : () -> ()
    %cst_144 = arith.constant 0.353553385 : f32
    %230 = vector.broadcast %cst_144 : f32 to vector<8x8x8xf32>
    %231 = arith.mulf %229, %230 : vector<8x8x8xf32>
    %232 = vector.broadcast %100 : vector<8x1x8xf32> to vector<8x8x8xf32>
    %233 = arith.addf %231, %232 : vector<8x8x8xf32>
    %cst_145 = arith.constant dense<0xFF800000> : vector<8x8xf32>
    %234 = vector.multi_reduction <maximumf>, %233, %cst_145 [2] : vector<8x8x8xf32> to vector<8x8xf32>
    %235 = vector.shape_cast %234 : vector<8x8xf32> to vector<8x8x1xf32>
    %236 = vector.broadcast %235 : vector<8x8x1xf32> to vector<8x8x8xf32>
    %237 = arith.subf %233, %236 : vector<8x8x8xf32>
    %238 = math.exp %237 : vector<8x8x8xf32>
    %cst_146 = arith.constant dense<0.000000e+00> : vector<8x8xf32>
    %239 = vector.multi_reduction <add>, %238, %cst_146 [2] : vector<8x8x8xf32> to vector<8x8xf32>
    %240 = vector.shape_cast %239 : vector<8x8xf32> to vector<8x8x1xf32>
    %241 = tpu.reciprocal %240 {approx = true} : vector<8x8x1xf32> -> vector<8x8x1xf32>
    %242 = vector.broadcast %241 : vector<8x8x1xf32> to vector<8x8x8xf32>
    %243 = arith.mulf %238, %242 : vector<8x8x8xf32>
    "tpu.trace_start"() <{level = 10 : i32, message = "gqk,gkd->gqd"}> : () -> ()
    %cst_147 = arith.constant dense<0.000000e+00> : vector<8x8x8xf32>
    %244 = tpu.matmul %243, %228, %cst_147 {dimension_numbers = #tpu.dot_dimension_numbers<[2], [1], [1], [2], [0, 0, 0, 1, 1, 2], [0], [0]>} : vector<8x8x8xf32>, vector<8x8x8xf32>, vector<8x8x8xf32> -> vector<8x8x8xf32>
    "tpu.trace_stop"() : () -> ()
    %245 = vector.shape_cast %244 : vector<8x8x8xf32> to vector<4x2x8x8xf32>
    %246 = vector.shape_cast %245 : vector<4x2x8x8xf32> to vector<4x16x8xf32>
    %c0_148 = arith.constant 0 : index
    %c0_149 = arith.constant 0 : index
    %c0_150 = arith.constant 0 : index
    %c0_151 = arith.constant 0 : index
    %247 = vector.load %arg11[%c0_148, %c0_149, %c0_150, %c0_151] : memref<4x4x8x32xf32, #tpu.memory_space<vmem>>, vector<1x4x8x32xf32>
    %248 = vector.shape_cast %247 : vector<1x4x8x32xf32> to vector<4x8x32xf32>
    "tpu.trace_start"() <{level = 10 : i32, message = "hnd,hdk->hnk"}> : () -> ()
    %cst_152 = arith.constant dense<0.000000e+00> : vector<4x16x32xf32>
    %249 = tpu.matmul %246, %248, %cst_152 {dimension_numbers = #tpu.dot_dimension_numbers<[2], [1], [1], [2], [0, 0, 0, 1, 1, 2], [0], [0]>} : vector<4x16x8xf32>, vector<4x8x32xf32>, vector<4x16x32xf32> -> vector<4x16x32xf32>
    "tpu.trace_stop"() : () -> ()
    %cst_153 = arith.constant dense<0.000000e+00> : vector<16x32xf32>
    %250 = vector.multi_reduction <add>, %249, %cst_153 [0] : vector<4x16x32xf32> to vector<16x32xf32>
    %c0_154 = arith.constant 0 : index
    %c0_155 = arith.constant 0 : index
    %c0_156 = arith.constant 0 : index
    %251 = vector.load %arg12[%c0_154, %c0_155, %c0_156] : memref<4x1x32xf32, #tpu.memory_space<vmem>>, vector<1x1x32xf32>
    %252 = vector.shape_cast %251 : vector<1x1x32xf32> to vector<1x32xf32>
    %253 = vector.broadcast %252 : vector<1x32xf32> to vector<16x32xf32>
    %254 = arith.addf %250, %253 : vector<16x32xf32>
    %255 = arith.addf %254, %188 : vector<16x32xf32>
    %c0_157 = arith.constant 0 : index
    %c0_158 = arith.constant 0 : index
    %c0_159 = arith.constant 0 : index
    %256 = vector.load %arg13[%c0_157, %c0_158, %c0_159] : memref<4x1x32xf32, #tpu.memory_space<vmem>>, vector<1x1x32xf32>
    %257 = vector.shape_cast %256 : vector<1x1x32xf32> to vector<1x32xf32>
    %c0_160 = arith.constant 0 : index
    %c0_161 = arith.constant 0 : index
    %c0_162 = arith.constant 0 : index
    %258 = vector.load %arg14[%c0_160, %c0_161, %c0_162] : memref<4x1x32xf32, #tpu.memory_space<vmem>>, vector<1x1x32xf32>
    %259 = vector.shape_cast %258 : vector<1x1x32xf32> to vector<1x32xf32>
    %cst_163 = arith.constant dense<0.000000e+00> : vector<16xf32>
    %260 = vector.multi_reduction <add>, %255, %cst_163 [1] : vector<16x32xf32> to vector<16xf32>
    %261 = vector.shape_cast %260 : vector<16xf32> to vector<16x1xf32>
    %cst_164 = arith.constant 3.200000e+01 : f32
    %262 = vector.broadcast %cst_164 : f32 to vector<16x1xf32>
    %263 = arith.divf %261, %262 : vector<16x1xf32>
    %264 = vector.broadcast %263 : vector<16x1xf32> to vector<16x32xf32>
    %265 = arith.subf %255, %264 : vector<16x32xf32>
    %266 = arith.mulf %265, %265 : vector<16x32xf32>
    %cst_165 = arith.constant dense<0.000000e+00> : vector<16xf32>
    %267 = vector.multi_reduction <add>, %266, %cst_165 [1] : vector<16x32xf32> to vector<16xf32>
    %268 = vector.shape_cast %267 : vector<16xf32> to vector<16x1xf32>
    %cst_166 = arith.constant 3.200000e+01 : f32
    %269 = vector.broadcast %cst_166 : f32 to vector<16x1xf32>
    %270 = arith.divf %268, %269 : vector<16x1xf32>
    %cst_167 = arith.constant 9.99999996E-13 : f32
    %271 = vector.broadcast %cst_167 : f32 to vector<16x1xf32>
    %272 = arith.addf %270, %271 : vector<16x1xf32>
    %273 = math.rsqrt %272 : vector<16x1xf32>
    %274 = vector.broadcast %273 : vector<16x1xf32> to vector<16x32xf32>
    %275 = arith.mulf %265, %274 : vector<16x32xf32>
    %276 = vector.broadcast %257 : vector<1x32xf32> to vector<16x32xf32>
    %277 = arith.mulf %275, %276 : vector<16x32xf32>
    %278 = vector.broadcast %259 : vector<1x32xf32> to vector<16x32xf32>
    %279 = arith.addf %277, %278 : vector<16x32xf32>
    %c0_168 = arith.constant 0 : index
    %c0_169 = arith.constant 0 : index
    %c0_170 = arith.constant 0 : index
    %280 = vector.load %arg15[%c0_168, %c0_169, %c0_170] : memref<4x32x128xf32, #tpu.memory_space<vmem>>, vector<1x32x128xf32>
    %281 = vector.shape_cast %280 : vector<1x32x128xf32> to vector<32x128xf32>
    %cst_171 = arith.constant dense<0.000000e+00> : vector<16x128xf32>
    %282 = tpu.matmul %279, %281, %cst_171 {dimension_numbers = #tpu.dot_dimension_numbers<[1], [0], [0], [1], [0, 0, 1, 1], [], []>} : vector<16x32xf32>, vector<32x128xf32>, vector<16x128xf32> -> vector<16x128xf32>
    %c0_172 = arith.constant 0 : index
    %c0_173 = arith.constant 0 : index
    %c0_174 = arith.constant 0 : index
    %283 = vector.load %arg16[%c0_172, %c0_173, %c0_174] : memref<4x1x128xf32, #tpu.memory_space<vmem>>, vector<1x1x128xf32>
    %284 = vector.shape_cast %283 : vector<1x1x128xf32> to vector<1x128xf32>
    %285 = vector.broadcast %284 : vector<1x128xf32> to vector<16x128xf32>
    %286 = arith.addf %282, %285 : vector<16x128xf32>
    %cst_175 = arith.constant 5.000000e-01 : f32
    %287 = vector.broadcast %cst_175 : f32 to vector<16x128xf32>
    %288 = arith.mulf %287, %286 : vector<16x128xf32>
    %cst_176 = arith.constant 0.707106769 : f32
    %289 = vector.broadcast %cst_176 : f32 to vector<16x128xf32>
    %290 = arith.mulf %286, %289 : vector<16x128xf32>
    %291 = math.absf %290 : vector<16x128xf32>
    %cst_177 = arith.constant 0.327591091 : f32
    %292 = vector.broadcast %cst_177 : f32 to vector<16x128xf32>
    %293 = arith.mulf %292, %291 : vector<16x128xf32>
    %cst_178 = arith.constant 1.000000e+00 : f32
    %294 = vector.broadcast %cst_178 : f32 to vector<16x128xf32>
    %295 = arith.addf %294, %293 : vector<16x128xf32>
    %cst_179 = arith.constant 1.000000e+00 : f32
    %296 = vector.broadcast %cst_179 : f32 to vector<16x128xf32>
    %297 = arith.divf %296, %295 : vector<16x128xf32>
    %cst_180 = arith.constant 1.06140542 : f32
    %298 = vector.broadcast %cst_180 : f32 to vector<16x128xf32>
    %299 = arith.mulf %298, %297 : vector<16x128xf32>
    %cst_181 = arith.constant -1.45315206 : f32
    %300 = vector.broadcast %cst_181 : f32 to vector<16x128xf32>
    %301 = arith.addf %299, %300 : vector<16x128xf32>
    %302 = arith.mulf %301, %297 : vector<16x128xf32>
    %cst_182 = arith.constant 1.42141378 : f32
    %303 = vector.broadcast %cst_182 : f32 to vector<16x128xf32>
    %304 = arith.addf %302, %303 : vector<16x128xf32>
    %305 = arith.mulf %304, %297 : vector<16x128xf32>
    %cst_183 = arith.constant -0.284496725 : f32
    %306 = vector.broadcast %cst_183 : f32 to vector<16x128xf32>
    %307 = arith.addf %305, %306 : vector<16x128xf32>
    %308 = arith.mulf %307, %297 : vector<16x128xf32>
    %cst_184 = arith.constant 0.254829586 : f32
    %309 = vector.broadcast %cst_184 : f32 to vector<16x128xf32>
    %310 = arith.addf %308, %309 : vector<16x128xf32>
    %311 = arith.mulf %310, %297 : vector<16x128xf32>
    %cst_185 = arith.constant 0.000000e+00 : f32
    %312 = vector.broadcast %cst_185 : f32 to vector<16x128xf32>
    %313 = arith.subf %312, %291 : vector<16x128xf32>
    %314 = arith.mulf %313, %291 : vector<16x128xf32>
    %315 = math.exp %314 : vector<16x128xf32>
    %316 = arith.mulf %311, %315 : vector<16x128xf32>
    %cst_186 = arith.constant 1.000000e+00 : f32
    %317 = vector.broadcast %cst_186 : f32 to vector<16x128xf32>
    %318 = arith.subf %317, %316 : vector<16x128xf32>
    %cst_187 = arith.constant 0.000000e+00 : f32
    %319 = vector.broadcast %cst_187 : f32 to vector<16x128xf32>
    %320 = arith.cmpf olt, %290, %319 : vector<16x128xf32>
    %cst_188 = arith.constant 0.000000e+00 : f32
    %321 = vector.broadcast %cst_188 : f32 to vector<16x128xf32>
    %322 = arith.subf %321, %318 : vector<16x128xf32>
    %323 = arith.select %320, %322, %318 : vector<16x128xi1>, vector<16x128xf32>
    %cst_189 = arith.constant 1.000000e+00 : f32
    %324 = vector.broadcast %cst_189 : f32 to vector<16x128xf32>
    %325 = arith.addf %324, %323 : vector<16x128xf32>
    %326 = arith.mulf %288, %325 : vector<16x128xf32>
    %c0_190 = arith.constant 0 : index
    %c0_191 = arith.constant 0 : index
    %c0_192 = arith.constant 0 : index
    %327 = vector.load %arg17[%c0_190, %c0_191, %c0_192] : memref<4x128x32xf32, #tpu.memory_space<vmem>>, vector<1x128x32xf32>
    %328 = vector.shape_cast %327 : vector<1x128x32xf32> to vector<128x32xf32>
    %cst_193 = arith.constant dense<0.000000e+00> : vector<16x32xf32>
    %329 = tpu.matmul %326, %328, %cst_193 {dimension_numbers = #tpu.dot_dimension_numbers<[1], [0], [0], [1], [0, 0, 1, 1], [], []>} : vector<16x128xf32>, vector<128x32xf32>, vector<16x32xf32> -> vector<16x32xf32>
    %c0_194 = arith.constant 0 : index
    %c0_195 = arith.constant 0 : index
    %c0_196 = arith.constant 0 : index
    %330 = vector.load %arg18[%c0_194, %c0_195, %c0_196] : memref<4x1x32xf32, #tpu.memory_space<vmem>>, vector<1x1x32xf32>
    %331 = vector.shape_cast %330 : vector<1x1x32xf32> to vector<1x32xf32>
    %332 = vector.broadcast %331 : vector<1x32xf32> to vector<16x32xf32>
    %333 = arith.addf %329, %332 : vector<16x32xf32>
    %334 = arith.addf %333, %279 : vector<16x32xf32>
    %c0_197 = arith.constant 0 : index
    %c0_198 = arith.constant 0 : index
    %c0_199 = arith.constant 0 : index
    %335 = vector.load %arg19[%c0_197, %c0_198, %c0_199] : memref<4x1x32xf32, #tpu.memory_space<vmem>>, vector<1x1x32xf32>
    %336 = vector.shape_cast %335 : vector<1x1x32xf32> to vector<1x32xf32>
    %c0_200 = arith.constant 0 : index
    %c0_201 = arith.constant 0 : index
    %c0_202 = arith.constant 0 : index
    %337 = vector.load %arg20[%c0_200, %c0_201, %c0_202] : memref<4x1x32xf32, #tpu.memory_space<vmem>>, vector<1x1x32xf32>
    %338 = vector.shape_cast %337 : vector<1x1x32xf32> to vector<1x32xf32>
    %cst_203 = arith.constant dense<0.000000e+00> : vector<16xf32>
    %339 = vector.multi_reduction <add>, %334, %cst_203 [1] : vector<16x32xf32> to vector<16xf32>
    %340 = vector.shape_cast %339 : vector<16xf32> to vector<16x1xf32>
    %cst_204 = arith.constant 3.200000e+01 : f32
    %341 = vector.broadcast %cst_204 : f32 to vector<16x1xf32>
    %342 = arith.divf %340, %341 : vector<16x1xf32>
    %343 = vector.broadcast %342 : vector<16x1xf32> to vector<16x32xf32>
    %344 = arith.subf %334, %343 : vector<16x32xf32>
    %345 = arith.mulf %344, %344 : vector<16x32xf32>
    %cst_205 = arith.constant dense<0.000000e+00> : vector<16xf32>
    %346 = vector.multi_reduction <add>, %345, %cst_205 [1] : vector<16x32xf32> to vector<16xf32>
    %347 = vector.shape_cast %346 : vector<16xf32> to vector<16x1xf32>
    %cst_206 = arith.constant 3.200000e+01 : f32
    %348 = vector.broadcast %cst_206 : f32 to vector<16x1xf32>
    %349 = arith.divf %347, %348 : vector<16x1xf32>
    %cst_207 = arith.constant 9.99999996E-13 : f32
    %350 = vector.broadcast %cst_207 : f32 to vector<16x1xf32>
    %351 = arith.addf %349, %350 : vector<16x1xf32>
    %352 = math.rsqrt %351 : vector<16x1xf32>
    %353 = vector.broadcast %352 : vector<16x1xf32> to vector<16x32xf32>
    %354 = arith.mulf %344, %353 : vector<16x32xf32>
    %355 = vector.broadcast %336 : vector<1x32xf32> to vector<16x32xf32>
    %356 = arith.mulf %354, %355 : vector<16x32xf32>
    %357 = vector.broadcast %338 : vector<1x32xf32> to vector<16x32xf32>
    %358 = arith.addf %356, %357 : vector<16x32xf32>
    %c1_208 = arith.constant 1 : index
    %c0_209 = arith.constant 0 : index
    %c0_210 = arith.constant 0 : index
    %359 = vector.load %arg9[%c1_208, %c0_209, %c0_210] : memref<4x32x96xf32, #tpu.memory_space<vmem>>, vector<1x32x96xf32>
    %360 = vector.shape_cast %359 : vector<1x32x96xf32> to vector<32x96xf32>
    %cst_211 = arith.constant dense<0.000000e+00> : vector<16x96xf32>
    %361 = tpu.matmul %358, %360, %cst_211 {dimension_numbers = #tpu.dot_dimension_numbers<[1], [0], [0], [1], [0, 0, 1, 1], [], []>} : vector<16x32xf32>, vector<32x96xf32>, vector<16x96xf32> -> vector<16x96xf32>
    %c1_212 = arith.constant 1 : index
    %c0_213 = arith.constant 0 : index
    %c0_214 = arith.constant 0 : index
    %362 = vector.load %arg10[%c1_212, %c0_213, %c0_214] : memref<4x1x96xf32, #tpu.memory_space<vmem>>, vector<1x1x96xf32>
    %363 = vector.shape_cast %362 : vector<1x1x96xf32> to vector<1x96xf32>
    %364 = vector.broadcast %363 : vector<1x96xf32> to vector<16x96xf32>
    %365 = arith.addf %361, %364 : vector<16x96xf32>
    %366 = vector.extract_strided_slice %365 {offsets = [0, 0], sizes = [16, 8], strides = [1, 1]} : vector<16x96xf32> to vector<16x8xf32>
    %367 = vector.extract_strided_slice %365 {offsets = [0, 8], sizes = [16, 8], strides = [1, 1]} : vector<16x96xf32> to vector<16x8xf32>
    %368 = vector.extract_strided_slice %365 {offsets = [0, 16], sizes = [16, 8], strides = [1, 1]} : vector<16x96xf32> to vector<16x8xf32>
    %369 = vector.extract_strided_slice %365 {offsets = [0, 24], sizes = [16, 8], strides = [1, 1]} : vector<16x96xf32> to vector<16x8xf32>
    %370 = vector.shape_cast %366 : vector<16x8xf32> to vector<1x16x8xf32>
    %371 = vector.shape_cast %367 : vector<16x8xf32> to vector<1x16x8xf32>
    %372 = vector.shape_cast %368 : vector<16x8xf32> to vector<1x16x8xf32>
    %373 = vector.shape_cast %369 : vector<16x8xf32> to vector<1x16x8xf32>
    %374 = tpu.concatenate %370, %371, %372, %373 in 0 : vector<1x16x8xf32>, vector<1x16x8xf32>, vector<1x16x8xf32>, vector<1x16x8xf32> -> vector<4x16x8xf32>
    %375 = vector.shape_cast %374 : vector<4x16x8xf32> to vector<4x2x8x8xf32>
    %376 = vector.shape_cast %375 : vector<4x2x8x8xf32> to vector<8x8x8xf32>
    %377 = vector.extract_strided_slice %365 {offsets = [0, 32], sizes = [16, 8], strides = [1, 1]} : vector<16x96xf32> to vector<16x8xf32>
    %378 = vector.extract_strided_slice %365 {offsets = [0, 40], sizes = [16, 8], strides = [1, 1]} : vector<16x96xf32> to vector<16x8xf32>
    %379 = vector.extract_strided_slice %365 {offsets = [0, 48], sizes = [16, 8], strides = [1, 1]} : vector<16x96xf32> to vector<16x8xf32>
    %380 = vector.extract_strided_slice %365 {offsets = [0, 56], sizes = [16, 8], strides = [1, 1]} : vector<16x96xf32> to vector<16x8xf32>
    %381 = vector.shape_cast %377 : vector<16x8xf32> to vector<1x16x8xf32>
    %382 = vector.shape_cast %378 : vector<16x8xf32> to vector<1x16x8xf32>
    %383 = vector.shape_cast %379 : vector<16x8xf32> to vector<1x16x8xf32>
    %384 = vector.shape_cast %380 : vector<16x8xf32> to vector<1x16x8xf32>
    %385 = tpu.concatenate %381, %382, %383, %384 in 0 : vector<1x16x8xf32>, vector<1x16x8xf32>, vector<1x16x8xf32>, vector<1x16x8xf32> -> vector<4x16x8xf32>
    %386 = vector.shape_cast %385 : vector<4x16x8xf32> to vector<4x2x8x8xf32>
    %387 = vector.shape_cast %386 : vector<4x2x8x8xf32> to vector<8x8x8xf32>
    %388 = vector.extract_strided_slice %365 {offsets = [0, 64], sizes = [16, 8], strides = [1, 1]} : vector<16x96xf32> to vector<16x8xf32>
    %389 = vector.extract_strided_slice %365 {offsets = [0, 72], sizes = [16, 8], strides = [1, 1]} : vector<16x96xf32> to vector<16x8xf32>
    %390 = vector.extract_strided_slice %365 {offsets = [0, 80], sizes = [16, 8], strides = [1, 1]} : vector<16x96xf32> to vector<16x8xf32>
    %391 = vector.extract_strided_slice %365 {offsets = [0, 88], sizes = [16, 8], strides = [1, 1]} : vector<16x96xf32> to vector<16x8xf32>
    %392 = vector.shape_cast %388 : vector<16x8xf32> to vector<1x16x8xf32>
    %393 = vector.shape_cast %389 : vector<16x8xf32> to vector<1x16x8xf32>
    %394 = vector.shape_cast %390 : vector<16x8xf32> to vector<1x16x8xf32>
    %395 = vector.shape_cast %391 : vector<16x8xf32> to vector<1x16x8xf32>
    %396 = tpu.concatenate %392, %393, %394, %395 in 0 : vector<1x16x8xf32>, vector<1x16x8xf32>, vector<1x16x8xf32>, vector<1x16x8xf32> -> vector<4x16x8xf32>
    %397 = vector.shape_cast %396 : vector<4x16x8xf32> to vector<4x2x8x8xf32>
    %398 = vector.shape_cast %397 : vector<4x2x8x8xf32> to vector<8x8x8xf32>
    "tpu.trace_start"() <{level = 10 : i32, message = "gqd,gkd->gqk"}> : () -> ()
    %cst_215 = arith.constant dense<0.000000e+00> : vector<8x8x8xf32>
    %399 = tpu.matmul %376, %387, %cst_215 {dimension_numbers = #tpu.dot_dimension_numbers<[2], [2], [1], [1], [0, 0, 0, 1, 1, 1], [0], [0]>} : vector<8x8x8xf32>, vector<8x8x8xf32>, vector<8x8x8xf32> -> vector<8x8x8xf32>
    "tpu.trace_stop"() : () -> ()
    %cst_216 = arith.constant 0.353553385 : f32
    %400 = vector.broadcast %cst_216 : f32 to vector<8x8x8xf32>
    %401 = arith.mulf %399, %400 : vector<8x8x8xf32>
    %402 = vector.broadcast %100 : vector<8x1x8xf32> to vector<8x8x8xf32>
    %403 = arith.addf %401, %402 : vector<8x8x8xf32>
    %cst_217 = arith.constant dense<0xFF800000> : vector<8x8xf32>
    %404 = vector.multi_reduction <maximumf>, %403, %cst_217 [2] : vector<8x8x8xf32> to vector<8x8xf32>
    %405 = vector.shape_cast %404 : vector<8x8xf32> to vector<8x8x1xf32>
    %406 = vector.broadcast %405 : vector<8x8x1xf32> to vector<8x8x8xf32>
    %407 = arith.subf %403, %406 : vector<8x8x8xf32>
    %408 = math.exp %407 : vector<8x8x8xf32>
    %cst_218 = arith.constant dense<0.000000e+00> : vector<8x8xf32>
    %409 = vector.multi_reduction <add>, %408, %cst_218 [2] : vector<8x8x8xf32> to vector<8x8xf32>
    %410 = vector.shape_cast %409 : vector<8x8xf32> to vector<8x8x1xf32>
    %411 = tpu.reciprocal %410 {approx = true} : vector<8x8x1xf32> -> vector<8x8x1xf32>
    %412 = vector.broadcast %411 : vector<8x8x1xf32> to vector<8x8x8xf32>
    %413 = arith.mulf %408, %412 : vector<8x8x8xf32>
    "tpu.trace_start"() <{level = 10 : i32, message = "gqk,gkd->gqd"}> : () -> ()
    %cst_219 = arith.constant dense<0.000000e+00> : vector<8x8x8xf32>
    %414 = tpu.matmul %413, %398, %cst_219 {dimension_numbers = #tpu.dot_dimension_numbers<[2], [1], [1], [2], [0, 0, 0, 1, 1, 2], [0], [0]>} : vector<8x8x8xf32>, vector<8x8x8xf32>, vector<8x8x8xf32> -> vector<8x8x8xf32>
    "tpu.trace_stop"() : () -> ()
    %415 = vector.shape_cast %414 : vector<8x8x8xf32> to vector<4x2x8x8xf32>
    %416 = vector.shape_cast %415 : vector<4x2x8x8xf32> to vector<4x16x8xf32>
    %c1_220 = arith.constant 1 : index
    %c0_221 = arith.constant 0 : index
    %c0_222 = arith.constant 0 : index
    %c0_223 = arith.constant 0 : index
    %417 = vector.load %arg11[%c1_220, %c0_221, %c0_222, %c0_223] : memref<4x4x8x32xf32, #tpu.memory_space<vmem>>, vector<1x4x8x32xf32>
    %418 = vector.shape_cast %417 : vector<1x4x8x32xf32> to vector<4x8x32xf32>
    "tpu.trace_start"() <{level = 10 : i32, message = "hnd,hdk->hnk"}> : () -> ()
    %cst_224 = arith.constant dense<0.000000e+00> : vector<4x16x32xf32>
    %419 = tpu.matmul %416, %418, %cst_224 {dimension_numbers = #tpu.dot_dimension_numbers<[2], [1], [1], [2], [0, 0, 0, 1, 1, 2], [0], [0]>} : vector<4x16x8xf32>, vector<4x8x32xf32>, vector<4x16x32xf32> -> vector<4x16x32xf32>
    "tpu.trace_stop"() : () -> ()
    %cst_225 = arith.constant dense<0.000000e+00> : vector<16x32xf32>
    %420 = vector.multi_reduction <add>, %419, %cst_225 [0] : vector<4x16x32xf32> to vector<16x32xf32>
    %c1_226 = arith.constant 1 : index
    %c0_227 = arith.constant 0 : index
    %c0_228 = arith.constant 0 : index
    %421 = vector.load %arg12[%c1_226, %c0_227, %c0_228] : memref<4x1x32xf32, #tpu.memory_space<vmem>>, vector<1x1x32xf32>
    %422 = vector.shape_cast %421 : vector<1x1x32xf32> to vector<1x32xf32>
    %423 = vector.broadcast %422 : vector<1x32xf32> to vector<16x32xf32>
    %424 = arith.addf %420, %423 : vector<16x32xf32>
    %425 = arith.addf %424, %358 : vector<16x32xf32>
    %c1_229 = arith.constant 1 : index
    %c0_230 = arith.constant 0 : index
    %c0_231 = arith.constant 0 : index
    %426 = vector.load %arg13[%c1_229, %c0_230, %c0_231] : memref<4x1x32xf32, #tpu.memory_space<vmem>>, vector<1x1x32xf32>
    %427 = vector.shape_cast %426 : vector<1x1x32xf32> to vector<1x32xf32>
    %c1_232 = arith.constant 1 : index
    %c0_233 = arith.constant 0 : index
    %c0_234 = arith.constant 0 : index
    %428 = vector.load %arg14[%c1_232, %c0_233, %c0_234] : memref<4x1x32xf32, #tpu.memory_space<vmem>>, vector<1x1x32xf32>
    %429 = vector.shape_cast %428 : vector<1x1x32xf32> to vector<1x32xf32>
    %cst_235 = arith.constant dense<0.000000e+00> : vector<16xf32>
    %430 = vector.multi_reduction <add>, %425, %cst_235 [1] : vector<16x32xf32> to vector<16xf32>
    %431 = vector.shape_cast %430 : vector<16xf32> to vector<16x1xf32>
    %cst_236 = arith.constant 3.200000e+01 : f32
    %432 = vector.broadcast %cst_236 : f32 to vector<16x1xf32>
    %433 = arith.divf %431, %432 : vector<16x1xf32>
    %434 = vector.broadcast %433 : vector<16x1xf32> to vector<16x32xf32>
    %435 = arith.subf %425, %434 : vector<16x32xf32>
    %436 = arith.mulf %435, %435 : vector<16x32xf32>
    %cst_237 = arith.constant dense<0.000000e+00> : vector<16xf32>
    %437 = vector.multi_reduction <add>, %436, %cst_237 [1] : vector<16x32xf32> to vector<16xf32>
    %438 = vector.shape_cast %437 : vector<16xf32> to vector<16x1xf32>
    %cst_238 = arith.constant 3.200000e+01 : f32
    %439 = vector.broadcast %cst_238 : f32 to vector<16x1xf32>
    %440 = arith.divf %438, %439 : vector<16x1xf32>
    %cst_239 = arith.constant 9.99999996E-13 : f32
    %441 = vector.broadcast %cst_239 : f32 to vector<16x1xf32>
    %442 = arith.addf %440, %441 : vector<16x1xf32>
    %443 = math.rsqrt %442 : vector<16x1xf32>
    %444 = vector.broadcast %443 : vector<16x1xf32> to vector<16x32xf32>
    %445 = arith.mulf %435, %444 : vector<16x32xf32>
    %446 = vector.broadcast %427 : vector<1x32xf32> to vector<16x32xf32>
    %447 = arith.mulf %445, %446 : vector<16x32xf32>
    %448 = vector.broadcast %429 : vector<1x32xf32> to vector<16x32xf32>
    %449 = arith.addf %447, %448 : vector<16x32xf32>
    %c1_240 = arith.constant 1 : index
    %c0_241 = arith.constant 0 : index
    %c0_242 = arith.constant 0 : index
    %450 = vector.load %arg15[%c1_240, %c0_241, %c0_242] : memref<4x32x128xf32, #tpu.memory_space<vmem>>, vector<1x32x128xf32>
    %451 = vector.shape_cast %450 : vector<1x32x128xf32> to vector<32x128xf32>
    %cst_243 = arith.constant dense<0.000000e+00> : vector<16x128xf32>
    %452 = tpu.matmul %449, %451, %cst_243 {dimension_numbers = #tpu.dot_dimension_numbers<[1], [0], [0], [1], [0, 0, 1, 1], [], []>} : vector<16x32xf32>, vector<32x128xf32>, vector<16x128xf32> -> vector<16x128xf32>
    %c1_244 = arith.constant 1 : index
    %c0_245 = arith.constant 0 : index
    %c0_246 = arith.constant 0 : index
    %453 = vector.load %arg16[%c1_244, %c0_245, %c0_246] : memref<4x1x128xf32, #tpu.memory_space<vmem>>, vector<1x1x128xf32>
    %454 = vector.shape_cast %453 : vector<1x1x128xf32> to vector<1x128xf32>
    %455 = vector.broadcast %454 : vector<1x128xf32> to vector<16x128xf32>
    %456 = arith.addf %452, %455 : vector<16x128xf32>
    %cst_247 = arith.constant 5.000000e-01 : f32
    %457 = vector.broadcast %cst_247 : f32 to vector<16x128xf32>
    %458 = arith.mulf %457, %456 : vector<16x128xf32>
    %cst_248 = arith.constant 0.707106769 : f32
    %459 = vector.broadcast %cst_248 : f32 to vector<16x128xf32>
    %460 = arith.mulf %456, %459 : vector<16x128xf32>
    %461 = math.absf %460 : vector<16x128xf32>
    %cst_249 = arith.constant 0.327591091 : f32
    %462 = vector.broadcast %cst_249 : f32 to vector<16x128xf32>
    %463 = arith.mulf %462, %461 : vector<16x128xf32>
    %cst_250 = arith.constant 1.000000e+00 : f32
    %464 = vector.broadcast %cst_250 : f32 to vector<16x128xf32>
    %465 = arith.addf %464, %463 : vector<16x128xf32>
    %cst_251 = arith.constant 1.000000e+00 : f32
    %466 = vector.broadcast %cst_251 : f32 to vector<16x128xf32>
    %467 = arith.divf %466, %465 : vector<16x128xf32>
    %cst_252 = arith.constant 1.06140542 : f32
    %468 = vector.broadcast %cst_252 : f32 to vector<16x128xf32>
    %469 = arith.mulf %468, %467 : vector<16x128xf32>
    %cst_253 = arith.constant -1.45315206 : f32
    %470 = vector.broadcast %cst_253 : f32 to vector<16x128xf32>
    %471 = arith.addf %469, %470 : vector<16x128xf32>
    %472 = arith.mulf %471, %467 : vector<16x128xf32>
    %cst_254 = arith.constant 1.42141378 : f32
    %473 = vector.broadcast %cst_254 : f32 to vector<16x128xf32>
    %474 = arith.addf %472, %473 : vector<16x128xf32>
    %475 = arith.mulf %474, %467 : vector<16x128xf32>
    %cst_255 = arith.constant -0.284496725 : f32
    %476 = vector.broadcast %cst_255 : f32 to vector<16x128xf32>
    %477 = arith.addf %475, %476 : vector<16x128xf32>
    %478 = arith.mulf %477, %467 : vector<16x128xf32>
    %cst_256 = arith.constant 0.254829586 : f32
    %479 = vector.broadcast %cst_256 : f32 to vector<16x128xf32>
    %480 = arith.addf %478, %479 : vector<16x128xf32>
    %481 = arith.mulf %480, %467 : vector<16x128xf32>
    %cst_257 = arith.constant 0.000000e+00 : f32
    %482 = vector.broadcast %cst_257 : f32 to vector<16x128xf32>
    %483 = arith.subf %482, %461 : vector<16x128xf32>
    %484 = arith.mulf %483, %461 : vector<16x128xf32>
    %485 = math.exp %484 : vector<16x128xf32>
    %486 = arith.mulf %481, %485 : vector<16x128xf32>
    %cst_258 = arith.constant 1.000000e+00 : f32
    %487 = vector.broadcast %cst_258 : f32 to vector<16x128xf32>
    %488 = arith.subf %487, %486 : vector<16x128xf32>
    %cst_259 = arith.constant 0.000000e+00 : f32
    %489 = vector.broadcast %cst_259 : f32 to vector<16x128xf32>
    %490 = arith.cmpf olt, %460, %489 : vector<16x128xf32>
    %cst_260 = arith.constant 0.000000e+00 : f32
    %491 = vector.broadcast %cst_260 : f32 to vector<16x128xf32>
    %492 = arith.subf %491, %488 : vector<16x128xf32>
    %493 = arith.select %490, %492, %488 : vector<16x128xi1>, vector<16x128xf32>
    %cst_261 = arith.constant 1.000000e+00 : f32
    %494 = vector.broadcast %cst_261 : f32 to vector<16x128xf32>
    %495 = arith.addf %494, %493 : vector<16x128xf32>
    %496 = arith.mulf %458, %495 : vector<16x128xf32>
    %c1_262 = arith.constant 1 : index
    %c0_263 = arith.constant 0 : index
    %c0_264 = arith.constant 0 : index
    %497 = vector.load %arg17[%c1_262, %c0_263, %c0_264] : memref<4x128x32xf32, #tpu.memory_space<vmem>>, vector<1x128x32xf32>
    %498 = vector.shape_cast %497 : vector<1x128x32xf32> to vector<128x32xf32>
    %cst_265 = arith.constant dense<0.000000e+00> : vector<16x32xf32>
    %499 = tpu.matmul %496, %498, %cst_265 {dimension_numbers = #tpu.dot_dimension_numbers<[1], [0], [0], [1], [0, 0, 1, 1], [], []>} : vector<16x128xf32>, vector<128x32xf32>, vector<16x32xf32> -> vector<16x32xf32>
    %c1_266 = arith.constant 1 : index
    %c0_267 = arith.constant 0 : index
    %c0_268 = arith.constant 0 : index
    %500 = vector.load %arg18[%c1_266, %c0_267, %c0_268] : memref<4x1x32xf32, #tpu.memory_space<vmem>>, vector<1x1x32xf32>
    %501 = vector.shape_cast %500 : vector<1x1x32xf32> to vector<1x32xf32>
    %502 = vector.broadcast %501 : vector<1x32xf32> to vector<16x32xf32>
    %503 = arith.addf %499, %502 : vector<16x32xf32>
    %504 = arith.addf %503, %449 : vector<16x32xf32>
    %c1_269 = arith.constant 1 : index
    %c0_270 = arith.constant 0 : index
    %c0_271 = arith.constant 0 : index
    %505 = vector.load %arg19[%c1_269, %c0_270, %c0_271] : memref<4x1x32xf32, #tpu.memory_space<vmem>>, vector<1x1x32xf32>
    %506 = vector.shape_cast %505 : vector<1x1x32xf32> to vector<1x32xf32>
    %c1_272 = arith.constant 1 : index
    %c0_273 = arith.constant 0 : index
    %c0_274 = arith.constant 0 : index
    %507 = vector.load %arg20[%c1_272, %c0_273, %c0_274] : memref<4x1x32xf32, #tpu.memory_space<vmem>>, vector<1x1x32xf32>
    %508 = vector.shape_cast %507 : vector<1x1x32xf32> to vector<1x32xf32>
    %cst_275 = arith.constant dense<0.000000e+00> : vector<16xf32>
    %509 = vector.multi_reduction <add>, %504, %cst_275 [1] : vector<16x32xf32> to vector<16xf32>
    %510 = vector.shape_cast %509 : vector<16xf32> to vector<16x1xf32>
    %cst_276 = arith.constant 3.200000e+01 : f32
    %511 = vector.broadcast %cst_276 : f32 to vector<16x1xf32>
    %512 = arith.divf %510, %511 : vector<16x1xf32>
    %513 = vector.broadcast %512 : vector<16x1xf32> to vector<16x32xf32>
    %514 = arith.subf %504, %513 : vector<16x32xf32>
    %515 = arith.mulf %514, %514 : vector<16x32xf32>
    %cst_277 = arith.constant dense<0.000000e+00> : vector<16xf32>
    %516 = vector.multi_reduction <add>, %515, %cst_277 [1] : vector<16x32xf32> to vector<16xf32>
    %517 = vector.shape_cast %516 : vector<16xf32> to vector<16x1xf32>
    %cst_278 = arith.constant 3.200000e+01 : f32
    %518 = vector.broadcast %cst_278 : f32 to vector<16x1xf32>
    %519 = arith.divf %517, %518 : vector<16x1xf32>
    %cst_279 = arith.constant 9.99999996E-13 : f32
    %520 = vector.broadcast %cst_279 : f32 to vector<16x1xf32>
    %521 = arith.addf %519, %520 : vector<16x1xf32>
    %522 = math.rsqrt %521 : vector<16x1xf32>
    %523 = vector.broadcast %522 : vector<16x1xf32> to vector<16x32xf32>
    %524 = arith.mulf %514, %523 : vector<16x32xf32>
    %525 = vector.broadcast %506 : vector<1x32xf32> to vector<16x32xf32>
    %526 = arith.mulf %524, %525 : vector<16x32xf32>
    %527 = vector.broadcast %508 : vector<1x32xf32> to vector<16x32xf32>
    %528 = arith.addf %526, %527 : vector<16x32xf32>
    %529 = vector.shape_cast %528 : vector<16x32xf32> to vector<2x8x32xf32>
    %530 = tpu.iota {dimensions = array<i32: 0>} : vector<16x8xi32>
    %531 = vector.shape_cast %530 : vector<16x8xi32> to vector<1x16x8xi32>
    %c0_280 = arith.constant 0 : index
    %c0_281 = arith.constant 0 : index
    %c0_282 = arith.constant 0 : index
    %532 = vector.load %arg2[%c0_280, %c0_281, %c0_282] : memref<2x1x8xi32, #tpu.memory_space<vmem>>, vector<2x1x8xi32>
    %533 = vector.broadcast %531 : vector<1x16x8xi32> to vector<2x16x8xi32>
    %534 = vector.broadcast %532 : vector<2x1x8xi32> to vector<2x16x8xi32>
    %535 = arith.cmpi eq, %533, %534 : vector<2x16x8xi32>
    %cst_283 = arith.constant 1.000000e+00 : f32
    %cst_284 = arith.constant 0.000000e+00 : f32
    %536 = vector.broadcast %cst_283 : f32 to vector<2x16x8xf32>
    %537 = vector.broadcast %cst_284 : f32 to vector<2x16x8xf32>
    %538 = arith.select %535, %536, %537 : vector<2x16x8xi1>, vector<2x16x8xf32>
    "tpu.trace_start"() <{level = 10 : i32, message = "bes,bsh->beh"}> : () -> ()
    %cst_285 = arith.constant dense<0.000000e+00> : vector<2x16x32xf32>
    %539 = tpu.matmul %538, %529, %cst_285 {dimension_numbers = #tpu.dot_dimension_numbers<[2], [1], [1], [2], [0, 0, 0, 1, 1, 2], [0], [0]>} : vector<2x16x8xf32>, vector<2x8x32xf32>, vector<2x16x32xf32> -> vector<2x16x32xf32>
    "tpu.trace_stop"() : () -> ()
    %cst_286 = arith.constant dense<0.000000e+00> : vector<2x16xf32>
    %540 = vector.multi_reduction <add>, %538, %cst_286 [2] : vector<2x16x8xf32> to vector<2x16xf32>
    %541 = vector.shape_cast %540 : vector<2x16xf32> to vector<2x16x1xf32>
    %cst_287 = arith.constant 9.99999997E-7 : f32
    %542 = vector.broadcast %cst_287 : f32 to vector<2x16x1xf32>
    %543 = arith.addf %541, %542 : vector<2x16x1xf32>
    %544 = tpu.reciprocal %543 {approx = true} : vector<2x16x1xf32> -> vector<2x16x1xf32>
    %545 = vector.broadcast %544 : vector<2x16x1xf32> to vector<2x16x32xf32>
    %546 = arith.mulf %539, %545 : vector<2x16x32xf32>
    %547 = vector.shape_cast %546 : vector<2x16x32xf32> to vector<32x32xf32>
    %548 = tpu.iota {dimensions = array<i32: 1>} : vector<1x16xi32>
    %c15_i32_288 = arith.constant 15 : i32
    %549 = vector.broadcast %c15_i32_288 : i32 to vector<1x16xi32>
    %550 = arith.cmpi slt, %548, %549 : vector<1x16xi32>
    %cst_289 = arith.constant 0.000000e+00 : f32
    %cst_290 = arith.constant -1.000000e+04 : f32
    %551 = vector.broadcast %cst_289 : f32 to vector<1x16xf32>
    %552 = vector.broadcast %cst_290 : f32 to vector<1x16xf32>
    %553 = arith.select %550, %551, %552 : vector<1x16xi1>, vector<1x16xf32>
    %554 = vector.shape_cast %553 : vector<1x16xf32> to vector<1x1x16xf32>
    %555 = vector.shape_cast %554 : vector<1x1x16xf32> to vector<1x1x16xf32>
    %556 = vector.broadcast %555 : vector<1x1x16xf32> to vector<8x1x16xf32>
    %c2_291 = arith.constant 2 : index
    %c0_292 = arith.constant 0 : index
    %c0_293 = arith.constant 0 : index
    %557 = vector.load %arg9[%c2_291, %c0_292, %c0_293] : memref<4x32x96xf32, #tpu.memory_space<vmem>>, vector<1x32x96xf32>
    %558 = vector.shape_cast %557 : vector<1x32x96xf32> to vector<32x96xf32>
    %cst_294 = arith.constant dense<0.000000e+00> : vector<32x96xf32>
    %559 = tpu.matmul %547, %558, %cst_294 {dimension_numbers = #tpu.dot_dimension_numbers<[1], [0], [0], [1], [0, 0, 1, 1], [], []>} : vector<32x32xf32>, vector<32x96xf32>, vector<32x96xf32> -> vector<32x96xf32>
    %c2_295 = arith.constant 2 : index
    %c0_296 = arith.constant 0 : index
    %c0_297 = arith.constant 0 : index
    %560 = vector.load %arg10[%c2_295, %c0_296, %c0_297] : memref<4x1x96xf32, #tpu.memory_space<vmem>>, vector<1x1x96xf32>
    %561 = vector.shape_cast %560 : vector<1x1x96xf32> to vector<1x96xf32>
    %562 = vector.broadcast %561 : vector<1x96xf32> to vector<32x96xf32>
    %563 = arith.addf %559, %562 : vector<32x96xf32>
    %564 = vector.extract_strided_slice %563 {offsets = [0, 0], sizes = [32, 8], strides = [1, 1]} : vector<32x96xf32> to vector<32x8xf32>
    %565 = vector.extract_strided_slice %563 {offsets = [0, 8], sizes = [32, 8], strides = [1, 1]} : vector<32x96xf32> to vector<32x8xf32>
    %566 = vector.extract_strided_slice %563 {offsets = [0, 16], sizes = [32, 8], strides = [1, 1]} : vector<32x96xf32> to vector<32x8xf32>
    %567 = vector.extract_strided_slice %563 {offsets = [0, 24], sizes = [32, 8], strides = [1, 1]} : vector<32x96xf32> to vector<32x8xf32>
    %568 = vector.shape_cast %564 : vector<32x8xf32> to vector<1x32x8xf32>
    %569 = vector.shape_cast %565 : vector<32x8xf32> to vector<1x32x8xf32>
    %570 = vector.shape_cast %566 : vector<32x8xf32> to vector<1x32x8xf32>
    %571 = vector.shape_cast %567 : vector<32x8xf32> to vector<1x32x8xf32>
    %572 = tpu.concatenate %568, %569, %570, %571 in 0 : vector<1x32x8xf32>, vector<1x32x8xf32>, vector<1x32x8xf32>, vector<1x32x8xf32> -> vector<4x32x8xf32>
    %573 = vector.shape_cast %572 : vector<4x32x8xf32> to vector<4x2x16x8xf32>
    %574 = vector.shape_cast %573 : vector<4x2x16x8xf32> to vector<8x16x8xf32>
    %575 = vector.extract_strided_slice %563 {offsets = [0, 32], sizes = [32, 8], strides = [1, 1]} : vector<32x96xf32> to vector<32x8xf32>
    %576 = vector.extract_strided_slice %563 {offsets = [0, 40], sizes = [32, 8], strides = [1, 1]} : vector<32x96xf32> to vector<32x8xf32>
    %577 = vector.extract_strided_slice %563 {offsets = [0, 48], sizes = [32, 8], strides = [1, 1]} : vector<32x96xf32> to vector<32x8xf32>
    %578 = vector.extract_strided_slice %563 {offsets = [0, 56], sizes = [32, 8], strides = [1, 1]} : vector<32x96xf32> to vector<32x8xf32>
    %579 = vector.shape_cast %575 : vector<32x8xf32> to vector<1x32x8xf32>
    %580 = vector.shape_cast %576 : vector<32x8xf32> to vector<1x32x8xf32>
    %581 = vector.shape_cast %577 : vector<32x8xf32> to vector<1x32x8xf32>
    %582 = vector.shape_cast %578 : vector<32x8xf32> to vector<1x32x8xf32>
    %583 = tpu.concatenate %579, %580, %581, %582 in 0 : vector<1x32x8xf32>, vector<1x32x8xf32>, vector<1x32x8xf32>, vector<1x32x8xf32> -> vector<4x32x8xf32>
    %584 = vector.shape_cast %583 : vector<4x32x8xf32> to vector<4x2x16x8xf32>
    %585 = vector.shape_cast %584 : vector<4x2x16x8xf32> to vector<8x16x8xf32>
    %586 = vector.extract_strided_slice %563 {offsets = [0, 64], sizes = [32, 8], strides = [1, 1]} : vector<32x96xf32> to vector<32x8xf32>
    %587 = vector.extract_strided_slice %563 {offsets = [0, 72], sizes = [32, 8], strides = [1, 1]} : vector<32x96xf32> to vector<32x8xf32>
    %588 = vector.extract_strided_slice %563 {offsets = [0, 80], sizes = [32, 8], strides = [1, 1]} : vector<32x96xf32> to vector<32x8xf32>
    %589 = vector.extract_strided_slice %563 {offsets = [0, 88], sizes = [32, 8], strides = [1, 1]} : vector<32x96xf32> to vector<32x8xf32>
    %590 = vector.shape_cast %586 : vector<32x8xf32> to vector<1x32x8xf32>
    %591 = vector.shape_cast %587 : vector<32x8xf32> to vector<1x32x8xf32>
    %592 = vector.shape_cast %588 : vector<32x8xf32> to vector<1x32x8xf32>
    %593 = vector.shape_cast %589 : vector<32x8xf32> to vector<1x32x8xf32>
    %594 = tpu.concatenate %590, %591, %592, %593 in 0 : vector<1x32x8xf32>, vector<1x32x8xf32>, vector<1x32x8xf32>, vector<1x32x8xf32> -> vector<4x32x8xf32>
    %595 = vector.shape_cast %594 : vector<4x32x8xf32> to vector<4x2x16x8xf32>
    %596 = vector.shape_cast %595 : vector<4x2x16x8xf32> to vector<8x16x8xf32>
    "tpu.trace_start"() <{level = 10 : i32, message = "gqd,gkd->gqk"}> : () -> ()
    %cst_298 = arith.constant dense<0.000000e+00> : vector<8x16x16xf32>
    %597 = tpu.matmul %574, %585, %cst_298 {dimension_numbers = #tpu.dot_dimension_numbers<[2], [2], [1], [1], [0, 0, 0, 1, 1, 1], [0], [0]>} : vector<8x16x8xf32>, vector<8x16x8xf32>, vector<8x16x16xf32> -> vector<8x16x16xf32>
    "tpu.trace_stop"() : () -> ()
    %cst_299 = arith.constant 0.353553385 : f32
    %598 = vector.broadcast %cst_299 : f32 to vector<8x16x16xf32>
    %599 = arith.mulf %597, %598 : vector<8x16x16xf32>
    %600 = vector.broadcast %556 : vector<8x1x16xf32> to vector<8x16x16xf32>
    %601 = arith.addf %599, %600 : vector<8x16x16xf32>
    %cst_300 = arith.constant dense<0xFF800000> : vector<8x16xf32>
    %602 = vector.multi_reduction <maximumf>, %601, %cst_300 [2] : vector<8x16x16xf32> to vector<8x16xf32>
    %603 = vector.shape_cast %602 : vector<8x16xf32> to vector<8x16x1xf32>
    %604 = vector.broadcast %603 : vector<8x16x1xf32> to vector<8x16x16xf32>
    %605 = arith.subf %601, %604 : vector<8x16x16xf32>
    %606 = math.exp %605 : vector<8x16x16xf32>
    %cst_301 = arith.constant dense<0.000000e+00> : vector<8x16xf32>
    %607 = vector.multi_reduction <add>, %606, %cst_301 [2] : vector<8x16x16xf32> to vector<8x16xf32>
    %608 = vector.shape_cast %607 : vector<8x16xf32> to vector<8x16x1xf32>
    %609 = tpu.reciprocal %608 {approx = true} : vector<8x16x1xf32> -> vector<8x16x1xf32>
    %610 = vector.broadcast %609 : vector<8x16x1xf32> to vector<8x16x16xf32>
    %611 = arith.mulf %606, %610 : vector<8x16x16xf32>
    "tpu.trace_start"() <{level = 10 : i32, message = "gqk,gkd->gqd"}> : () -> ()
    %cst_302 = arith.constant dense<0.000000e+00> : vector<8x16x8xf32>
    %612 = tpu.matmul %611, %596, %cst_302 {dimension_numbers = #tpu.dot_dimension_numbers<[2], [1], [1], [2], [0, 0, 0, 1, 1, 2], [0], [0]>} : vector<8x16x16xf32>, vector<8x16x8xf32>, vector<8x16x8xf32> -> vector<8x16x8xf32>
    "tpu.trace_stop"() : () -> ()
    %613 = vector.shape_cast %612 : vector<8x16x8xf32> to vector<4x2x16x8xf32>
    %614 = vector.shape_cast %613 : vector<4x2x16x8xf32> to vector<4x32x8xf32>
    %c2_303 = arith.constant 2 : index
    %c0_304 = arith.constant 0 : index
    %c0_305 = arith.constant 0 : index
    %c0_306 = arith.constant 0 : index
    %615 = vector.load %arg11[%c2_303, %c0_304, %c0_305, %c0_306] : memref<4x4x8x32xf32, #tpu.memory_space<vmem>>, vector<1x4x8x32xf32>
    %616 = vector.shape_cast %615 : vector<1x4x8x32xf32> to vector<4x8x32xf32>
    "tpu.trace_start"() <{level = 10 : i32, message = "hnd,hdk->hnk"}> : () -> ()
    %cst_307 = arith.constant dense<0.000000e+00> : vector<4x32x32xf32>
    %617 = tpu.matmul %614, %616, %cst_307 {dimension_numbers = #tpu.dot_dimension_numbers<[2], [1], [1], [2], [0, 0, 0, 1, 1, 2], [0], [0]>} : vector<4x32x8xf32>, vector<4x8x32xf32>, vector<4x32x32xf32> -> vector<4x32x32xf32>
    "tpu.trace_stop"() : () -> ()
    %cst_308 = arith.constant dense<0.000000e+00> : vector<32x32xf32>
    %618 = vector.multi_reduction <add>, %617, %cst_308 [0] : vector<4x32x32xf32> to vector<32x32xf32>
    %c2_309 = arith.constant 2 : index
    %c0_310 = arith.constant 0 : index
    %c0_311 = arith.constant 0 : index
    %619 = vector.load %arg12[%c2_309, %c0_310, %c0_311] : memref<4x1x32xf32, #tpu.memory_space<vmem>>, vector<1x1x32xf32>
    %620 = vector.shape_cast %619 : vector<1x1x32xf32> to vector<1x32xf32>
    %621 = vector.broadcast %620 : vector<1x32xf32> to vector<32x32xf32>
    %622 = arith.addf %618, %621 : vector<32x32xf32>
    %623 = arith.addf %622, %547 : vector<32x32xf32>
    %c2_312 = arith.constant 2 : index
    %c0_313 = arith.constant 0 : index
    %c0_314 = arith.constant 0 : index
    %624 = vector.load %arg13[%c2_312, %c0_313, %c0_314] : memref<4x1x32xf32, #tpu.memory_space<vmem>>, vector<1x1x32xf32>
    %625 = vector.shape_cast %624 : vector<1x1x32xf32> to vector<1x32xf32>
    %c2_315 = arith.constant 2 : index
    %c0_316 = arith.constant 0 : index
    %c0_317 = arith.constant 0 : index
    %626 = vector.load %arg14[%c2_315, %c0_316, %c0_317] : memref<4x1x32xf32, #tpu.memory_space<vmem>>, vector<1x1x32xf32>
    %627 = vector.shape_cast %626 : vector<1x1x32xf32> to vector<1x32xf32>
    %cst_318 = arith.constant dense<0.000000e+00> : vector<32xf32>
    %628 = vector.multi_reduction <add>, %623, %cst_318 [1] : vector<32x32xf32> to vector<32xf32>
    %629 = vector.shape_cast %628 : vector<32xf32> to vector<32x1xf32>
    %cst_319 = arith.constant 3.200000e+01 : f32
    %630 = vector.broadcast %cst_319 : f32 to vector<32x1xf32>
    %631 = arith.divf %629, %630 : vector<32x1xf32>
    %632 = vector.broadcast %631 : vector<32x1xf32> to vector<32x32xf32>
    %633 = arith.subf %623, %632 : vector<32x32xf32>
    %634 = arith.mulf %633, %633 : vector<32x32xf32>
    %cst_320 = arith.constant dense<0.000000e+00> : vector<32xf32>
    %635 = vector.multi_reduction <add>, %634, %cst_320 [1] : vector<32x32xf32> to vector<32xf32>
    %636 = vector.shape_cast %635 : vector<32xf32> to vector<32x1xf32>
    %cst_321 = arith.constant 3.200000e+01 : f32
    %637 = vector.broadcast %cst_321 : f32 to vector<32x1xf32>
    %638 = arith.divf %636, %637 : vector<32x1xf32>
    %cst_322 = arith.constant 9.99999974E-6 : f32
    %639 = vector.broadcast %cst_322 : f32 to vector<32x1xf32>
    %640 = arith.addf %638, %639 : vector<32x1xf32>
    %641 = math.rsqrt %640 : vector<32x1xf32>
    %642 = vector.broadcast %641 : vector<32x1xf32> to vector<32x32xf32>
    %643 = arith.mulf %633, %642 : vector<32x32xf32>
    %644 = vector.broadcast %625 : vector<1x32xf32> to vector<32x32xf32>
    %645 = arith.mulf %643, %644 : vector<32x32xf32>
    %646 = vector.broadcast %627 : vector<1x32xf32> to vector<32x32xf32>
    %647 = arith.addf %645, %646 : vector<32x32xf32>
    %c2_323 = arith.constant 2 : index
    %c0_324 = arith.constant 0 : index
    %c0_325 = arith.constant 0 : index
    %648 = vector.load %arg15[%c2_323, %c0_324, %c0_325] : memref<4x32x128xf32, #tpu.memory_space<vmem>>, vector<1x32x128xf32>
    %649 = vector.shape_cast %648 : vector<1x32x128xf32> to vector<32x128xf32>
    %cst_326 = arith.constant dense<0.000000e+00> : vector<32x128xf32>
    %650 = tpu.matmul %647, %649, %cst_326 {dimension_numbers = #tpu.dot_dimension_numbers<[1], [0], [0], [1], [0, 0, 1, 1], [], []>} : vector<32x32xf32>, vector<32x128xf32>, vector<32x128xf32> -> vector<32x128xf32>
    %c2_327 = arith.constant 2 : index
    %c0_328 = arith.constant 0 : index
    %c0_329 = arith.constant 0 : index
    %651 = vector.load %arg16[%c2_327, %c0_328, %c0_329] : memref<4x1x128xf32, #tpu.memory_space<vmem>>, vector<1x1x128xf32>
    %652 = vector.shape_cast %651 : vector<1x1x128xf32> to vector<1x128xf32>
    %653 = vector.broadcast %652 : vector<1x128xf32> to vector<32x128xf32>
    %654 = arith.addf %650, %653 : vector<32x128xf32>
    %cst_330 = arith.constant 5.000000e-01 : f32
    %655 = vector.broadcast %cst_330 : f32 to vector<32x128xf32>
    %656 = arith.mulf %655, %654 : vector<32x128xf32>
    %cst_331 = arith.constant 0.707106769 : f32
    %657 = vector.broadcast %cst_331 : f32 to vector<32x128xf32>
    %658 = arith.mulf %654, %657 : vector<32x128xf32>
    %659 = math.absf %658 : vector<32x128xf32>
    %cst_332 = arith.constant 0.327591091 : f32
    %660 = vector.broadcast %cst_332 : f32 to vector<32x128xf32>
    %661 = arith.mulf %660, %659 : vector<32x128xf32>
    %cst_333 = arith.constant 1.000000e+00 : f32
    %662 = vector.broadcast %cst_333 : f32 to vector<32x128xf32>
    %663 = arith.addf %662, %661 : vector<32x128xf32>
    %cst_334 = arith.constant 1.000000e+00 : f32
    %664 = vector.broadcast %cst_334 : f32 to vector<32x128xf32>
    %665 = arith.divf %664, %663 : vector<32x128xf32>
    %cst_335 = arith.constant 1.06140542 : f32
    %666 = vector.broadcast %cst_335 : f32 to vector<32x128xf32>
    %667 = arith.mulf %666, %665 : vector<32x128xf32>
    %cst_336 = arith.constant -1.45315206 : f32
    %668 = vector.broadcast %cst_336 : f32 to vector<32x128xf32>
    %669 = arith.addf %667, %668 : vector<32x128xf32>
    %670 = arith.mulf %669, %665 : vector<32x128xf32>
    %cst_337 = arith.constant 1.42141378 : f32
    %671 = vector.broadcast %cst_337 : f32 to vector<32x128xf32>
    %672 = arith.addf %670, %671 : vector<32x128xf32>
    %673 = arith.mulf %672, %665 : vector<32x128xf32>
    %cst_338 = arith.constant -0.284496725 : f32
    %674 = vector.broadcast %cst_338 : f32 to vector<32x128xf32>
    %675 = arith.addf %673, %674 : vector<32x128xf32>
    %676 = arith.mulf %675, %665 : vector<32x128xf32>
    %cst_339 = arith.constant 0.254829586 : f32
    %677 = vector.broadcast %cst_339 : f32 to vector<32x128xf32>
    %678 = arith.addf %676, %677 : vector<32x128xf32>
    %679 = arith.mulf %678, %665 : vector<32x128xf32>
    %cst_340 = arith.constant 0.000000e+00 : f32
    %680 = vector.broadcast %cst_340 : f32 to vector<32x128xf32>
    %681 = arith.subf %680, %659 : vector<32x128xf32>
    %682 = arith.mulf %681, %659 : vector<32x128xf32>
    %683 = math.exp %682 : vector<32x128xf32>
    %684 = arith.mulf %679, %683 : vector<32x128xf32>
    %cst_341 = arith.constant 1.000000e+00 : f32
    %685 = vector.broadcast %cst_341 : f32 to vector<32x128xf32>
    %686 = arith.subf %685, %684 : vector<32x128xf32>
    %cst_342 = arith.constant 0.000000e+00 : f32
    %687 = vector.broadcast %cst_342 : f32 to vector<32x128xf32>
    %688 = arith.cmpf olt, %658, %687 : vector<32x128xf32>
    %cst_343 = arith.constant 0.000000e+00 : f32
    %689 = vector.broadcast %cst_343 : f32 to vector<32x128xf32>
    %690 = arith.subf %689, %686 : vector<32x128xf32>
    %691 = arith.select %688, %690, %686 : vector<32x128xi1>, vector<32x128xf32>
    %cst_344 = arith.constant 1.000000e+00 : f32
    %692 = vector.broadcast %cst_344 : f32 to vector<32x128xf32>
    %693 = arith.addf %692, %691 : vector<32x128xf32>
    %694 = arith.mulf %656, %693 : vector<32x128xf32>
    %c2_345 = arith.constant 2 : index
    %c0_346 = arith.constant 0 : index
    %c0_347 = arith.constant 0 : index
    %695 = vector.load %arg17[%c2_345, %c0_346, %c0_347] : memref<4x128x32xf32, #tpu.memory_space<vmem>>, vector<1x128x32xf32>
    %696 = vector.shape_cast %695 : vector<1x128x32xf32> to vector<128x32xf32>
    %cst_348 = arith.constant dense<0.000000e+00> : vector<32x32xf32>
    %697 = tpu.matmul %694, %696, %cst_348 {dimension_numbers = #tpu.dot_dimension_numbers<[1], [0], [0], [1], [0, 0, 1, 1], [], []>} : vector<32x128xf32>, vector<128x32xf32>, vector<32x32xf32> -> vector<32x32xf32>
    %c2_349 = arith.constant 2 : index
    %c0_350 = arith.constant 0 : index
    %c0_351 = arith.constant 0 : index
    %698 = vector.load %arg18[%c2_349, %c0_350, %c0_351] : memref<4x1x32xf32, #tpu.memory_space<vmem>>, vector<1x1x32xf32>
    %699 = vector.shape_cast %698 : vector<1x1x32xf32> to vector<1x32xf32>
    %700 = vector.broadcast %699 : vector<1x32xf32> to vector<32x32xf32>
    %701 = arith.addf %697, %700 : vector<32x32xf32>
    %702 = arith.addf %701, %647 : vector<32x32xf32>
    %c2_352 = arith.constant 2 : index
    %c0_353 = arith.constant 0 : index
    %c0_354 = arith.constant 0 : index
    %703 = vector.load %arg19[%c2_352, %c0_353, %c0_354] : memref<4x1x32xf32, #tpu.memory_space<vmem>>, vector<1x1x32xf32>
    %704 = vector.shape_cast %703 : vector<1x1x32xf32> to vector<1x32xf32>
    %c2_355 = arith.constant 2 : index
    %c0_356 = arith.constant 0 : index
    %c0_357 = arith.constant 0 : index
    %705 = vector.load %arg20[%c2_355, %c0_356, %c0_357] : memref<4x1x32xf32, #tpu.memory_space<vmem>>, vector<1x1x32xf32>
    %706 = vector.shape_cast %705 : vector<1x1x32xf32> to vector<1x32xf32>
    %cst_358 = arith.constant dense<0.000000e+00> : vector<32xf32>
    %707 = vector.multi_reduction <add>, %702, %cst_358 [1] : vector<32x32xf32> to vector<32xf32>
    %708 = vector.shape_cast %707 : vector<32xf32> to vector<32x1xf32>
    %cst_359 = arith.constant 3.200000e+01 : f32
    %709 = vector.broadcast %cst_359 : f32 to vector<32x1xf32>
    %710 = arith.divf %708, %709 : vector<32x1xf32>
    %711 = vector.broadcast %710 : vector<32x1xf32> to vector<32x32xf32>
    %712 = arith.subf %702, %711 : vector<32x32xf32>
    %713 = arith.mulf %712, %712 : vector<32x32xf32>
    %cst_360 = arith.constant dense<0.000000e+00> : vector<32xf32>
    %714 = vector.multi_reduction <add>, %713, %cst_360 [1] : vector<32x32xf32> to vector<32xf32>
    %715 = vector.shape_cast %714 : vector<32xf32> to vector<32x1xf32>
    %cst_361 = arith.constant 3.200000e+01 : f32
    %716 = vector.broadcast %cst_361 : f32 to vector<32x1xf32>
    %717 = arith.divf %715, %716 : vector<32x1xf32>
    %cst_362 = arith.constant 9.99999974E-6 : f32
    %718 = vector.broadcast %cst_362 : f32 to vector<32x1xf32>
    %719 = arith.addf %717, %718 : vector<32x1xf32>
    %720 = math.rsqrt %719 : vector<32x1xf32>
    %721 = vector.broadcast %720 : vector<32x1xf32> to vector<32x32xf32>
    %722 = arith.mulf %712, %721 : vector<32x32xf32>
    %723 = vector.broadcast %704 : vector<1x32xf32> to vector<32x32xf32>
    %724 = arith.mulf %722, %723 : vector<32x32xf32>
    %725 = vector.broadcast %706 : vector<1x32xf32> to vector<32x32xf32>
    %726 = arith.addf %724, %725 : vector<32x32xf32>
    %c3_363 = arith.constant 3 : index
    %c0_364 = arith.constant 0 : index
    %c0_365 = arith.constant 0 : index
    %727 = vector.load %arg9[%c3_363, %c0_364, %c0_365] : memref<4x32x96xf32, #tpu.memory_space<vmem>>, vector<1x32x96xf32>
    %728 = vector.shape_cast %727 : vector<1x32x96xf32> to vector<32x96xf32>
    %cst_366 = arith.constant dense<0.000000e+00> : vector<32x96xf32>
    %729 = tpu.matmul %726, %728, %cst_366 {dimension_numbers = #tpu.dot_dimension_numbers<[1], [0], [0], [1], [0, 0, 1, 1], [], []>} : vector<32x32xf32>, vector<32x96xf32>, vector<32x96xf32> -> vector<32x96xf32>
    %c3_367 = arith.constant 3 : index
    %c0_368 = arith.constant 0 : index
    %c0_369 = arith.constant 0 : index
    %730 = vector.load %arg10[%c3_367, %c0_368, %c0_369] : memref<4x1x96xf32, #tpu.memory_space<vmem>>, vector<1x1x96xf32>
    %731 = vector.shape_cast %730 : vector<1x1x96xf32> to vector<1x96xf32>
    %732 = vector.broadcast %731 : vector<1x96xf32> to vector<32x96xf32>
    %733 = arith.addf %729, %732 : vector<32x96xf32>
    %734 = vector.extract_strided_slice %733 {offsets = [0, 0], sizes = [32, 8], strides = [1, 1]} : vector<32x96xf32> to vector<32x8xf32>
    %735 = vector.extract_strided_slice %733 {offsets = [0, 8], sizes = [32, 8], strides = [1, 1]} : vector<32x96xf32> to vector<32x8xf32>
    %736 = vector.extract_strided_slice %733 {offsets = [0, 16], sizes = [32, 8], strides = [1, 1]} : vector<32x96xf32> to vector<32x8xf32>
    %737 = vector.extract_strided_slice %733 {offsets = [0, 24], sizes = [32, 8], strides = [1, 1]} : vector<32x96xf32> to vector<32x8xf32>
    %738 = vector.shape_cast %734 : vector<32x8xf32> to vector<1x32x8xf32>
    %739 = vector.shape_cast %735 : vector<32x8xf32> to vector<1x32x8xf32>
    %740 = vector.shape_cast %736 : vector<32x8xf32> to vector<1x32x8xf32>
    %741 = vector.shape_cast %737 : vector<32x8xf32> to vector<1x32x8xf32>
    %742 = tpu.concatenate %738, %739, %740, %741 in 0 : vector<1x32x8xf32>, vector<1x32x8xf32>, vector<1x32x8xf32>, vector<1x32x8xf32> -> vector<4x32x8xf32>
    %743 = vector.shape_cast %742 : vector<4x32x8xf32> to vector<4x2x16x8xf32>
    %744 = vector.shape_cast %743 : vector<4x2x16x8xf32> to vector<8x16x8xf32>
    %745 = vector.extract_strided_slice %733 {offsets = [0, 32], sizes = [32, 8], strides = [1, 1]} : vector<32x96xf32> to vector<32x8xf32>
    %746 = vector.extract_strided_slice %733 {offsets = [0, 40], sizes = [32, 8], strides = [1, 1]} : vector<32x96xf32> to vector<32x8xf32>
    %747 = vector.extract_strided_slice %733 {offsets = [0, 48], sizes = [32, 8], strides = [1, 1]} : vector<32x96xf32> to vector<32x8xf32>
    %748 = vector.extract_strided_slice %733 {offsets = [0, 56], sizes = [32, 8], strides = [1, 1]} : vector<32x96xf32> to vector<32x8xf32>
    %749 = vector.shape_cast %745 : vector<32x8xf32> to vector<1x32x8xf32>
    %750 = vector.shape_cast %746 : vector<32x8xf32> to vector<1x32x8xf32>
    %751 = vector.shape_cast %747 : vector<32x8xf32> to vector<1x32x8xf32>
    %752 = vector.shape_cast %748 : vector<32x8xf32> to vector<1x32x8xf32>
    %753 = tpu.concatenate %749, %750, %751, %752 in 0 : vector<1x32x8xf32>, vector<1x32x8xf32>, vector<1x32x8xf32>, vector<1x32x8xf32> -> vector<4x32x8xf32>
    %754 = vector.shape_cast %753 : vector<4x32x8xf32> to vector<4x2x16x8xf32>
    %755 = vector.shape_cast %754 : vector<4x2x16x8xf32> to vector<8x16x8xf32>
    %756 = vector.extract_strided_slice %733 {offsets = [0, 64], sizes = [32, 8], strides = [1, 1]} : vector<32x96xf32> to vector<32x8xf32>
    %757 = vector.extract_strided_slice %733 {offsets = [0, 72], sizes = [32, 8], strides = [1, 1]} : vector<32x96xf32> to vector<32x8xf32>
    %758 = vector.extract_strided_slice %733 {offsets = [0, 80], sizes = [32, 8], strides = [1, 1]} : vector<32x96xf32> to vector<32x8xf32>
    %759 = vector.extract_strided_slice %733 {offsets = [0, 88], sizes = [32, 8], strides = [1, 1]} : vector<32x96xf32> to vector<32x8xf32>
    %760 = vector.shape_cast %756 : vector<32x8xf32> to vector<1x32x8xf32>
    %761 = vector.shape_cast %757 : vector<32x8xf32> to vector<1x32x8xf32>
    %762 = vector.shape_cast %758 : vector<32x8xf32> to vector<1x32x8xf32>
    %763 = vector.shape_cast %759 : vector<32x8xf32> to vector<1x32x8xf32>
    %764 = tpu.concatenate %760, %761, %762, %763 in 0 : vector<1x32x8xf32>, vector<1x32x8xf32>, vector<1x32x8xf32>, vector<1x32x8xf32> -> vector<4x32x8xf32>
    %765 = vector.shape_cast %764 : vector<4x32x8xf32> to vector<4x2x16x8xf32>
    %766 = vector.shape_cast %765 : vector<4x2x16x8xf32> to vector<8x16x8xf32>
    "tpu.trace_start"() <{level = 10 : i32, message = "gqd,gkd->gqk"}> : () -> ()
    %cst_370 = arith.constant dense<0.000000e+00> : vector<8x16x16xf32>
    %767 = tpu.matmul %744, %755, %cst_370 {dimension_numbers = #tpu.dot_dimension_numbers<[2], [2], [1], [1], [0, 0, 0, 1, 1, 1], [0], [0]>} : vector<8x16x8xf32>, vector<8x16x8xf32>, vector<8x16x16xf32> -> vector<8x16x16xf32>
    "tpu.trace_stop"() : () -> ()
    %cst_371 = arith.constant 0.353553385 : f32
    %768 = vector.broadcast %cst_371 : f32 to vector<8x16x16xf32>
    %769 = arith.mulf %767, %768 : vector<8x16x16xf32>
    %770 = vector.broadcast %556 : vector<8x1x16xf32> to vector<8x16x16xf32>
    %771 = arith.addf %769, %770 : vector<8x16x16xf32>
    %cst_372 = arith.constant dense<0xFF800000> : vector<8x16xf32>
    %772 = vector.multi_reduction <maximumf>, %771, %cst_372 [2] : vector<8x16x16xf32> to vector<8x16xf32>
    %773 = vector.shape_cast %772 : vector<8x16xf32> to vector<8x16x1xf32>
    %774 = vector.broadcast %773 : vector<8x16x1xf32> to vector<8x16x16xf32>
    %775 = arith.subf %771, %774 : vector<8x16x16xf32>
    %776 = math.exp %775 : vector<8x16x16xf32>
    %cst_373 = arith.constant dense<0.000000e+00> : vector<8x16xf32>
    %777 = vector.multi_reduction <add>, %776, %cst_373 [2] : vector<8x16x16xf32> to vector<8x16xf32>
    %778 = vector.shape_cast %777 : vector<8x16xf32> to vector<8x16x1xf32>
    %779 = tpu.reciprocal %778 {approx = true} : vector<8x16x1xf32> -> vector<8x16x1xf32>
    %780 = vector.broadcast %779 : vector<8x16x1xf32> to vector<8x16x16xf32>
    %781 = arith.mulf %776, %780 : vector<8x16x16xf32>
    "tpu.trace_start"() <{level = 10 : i32, message = "gqk,gkd->gqd"}> : () -> ()
    %cst_374 = arith.constant dense<0.000000e+00> : vector<8x16x8xf32>
    %782 = tpu.matmul %781, %766, %cst_374 {dimension_numbers = #tpu.dot_dimension_numbers<[2], [1], [1], [2], [0, 0, 0, 1, 1, 2], [0], [0]>} : vector<8x16x16xf32>, vector<8x16x8xf32>, vector<8x16x8xf32> -> vector<8x16x8xf32>
    "tpu.trace_stop"() : () -> ()
    %783 = vector.shape_cast %782 : vector<8x16x8xf32> to vector<4x2x16x8xf32>
    %784 = vector.shape_cast %783 : vector<4x2x16x8xf32> to vector<4x32x8xf32>
    %c3_375 = arith.constant 3 : index
    %c0_376 = arith.constant 0 : index
    %c0_377 = arith.constant 0 : index
    %c0_378 = arith.constant 0 : index
    %785 = vector.load %arg11[%c3_375, %c0_376, %c0_377, %c0_378] : memref<4x4x8x32xf32, #tpu.memory_space<vmem>>, vector<1x4x8x32xf32>
    %786 = vector.shape_cast %785 : vector<1x4x8x32xf32> to vector<4x8x32xf32>
    "tpu.trace_start"() <{level = 10 : i32, message = "hnd,hdk->hnk"}> : () -> ()
    %cst_379 = arith.constant dense<0.000000e+00> : vector<4x32x32xf32>
    %787 = tpu.matmul %784, %786, %cst_379 {dimension_numbers = #tpu.dot_dimension_numbers<[2], [1], [1], [2], [0, 0, 0, 1, 1, 2], [0], [0]>} : vector<4x32x8xf32>, vector<4x8x32xf32>, vector<4x32x32xf32> -> vector<4x32x32xf32>
    "tpu.trace_stop"() : () -> ()
    %cst_380 = arith.constant dense<0.000000e+00> : vector<32x32xf32>
    %788 = vector.multi_reduction <add>, %787, %cst_380 [0] : vector<4x32x32xf32> to vector<32x32xf32>
    %c3_381 = arith.constant 3 : index
    %c0_382 = arith.constant 0 : index
    %c0_383 = arith.constant 0 : index
    %789 = vector.load %arg12[%c3_381, %c0_382, %c0_383] : memref<4x1x32xf32, #tpu.memory_space<vmem>>, vector<1x1x32xf32>
    %790 = vector.shape_cast %789 : vector<1x1x32xf32> to vector<1x32xf32>
    %791 = vector.broadcast %790 : vector<1x32xf32> to vector<32x32xf32>
    %792 = arith.addf %788, %791 : vector<32x32xf32>
    %793 = arith.addf %792, %726 : vector<32x32xf32>
    %c3_384 = arith.constant 3 : index
    %c0_385 = arith.constant 0 : index
    %c0_386 = arith.constant 0 : index
    %794 = vector.load %arg13[%c3_384, %c0_385, %c0_386] : memref<4x1x32xf32, #tpu.memory_space<vmem>>, vector<1x1x32xf32>
    %795 = vector.shape_cast %794 : vector<1x1x32xf32> to vector<1x32xf32>
    %c3_387 = arith.constant 3 : index
    %c0_388 = arith.constant 0 : index
    %c0_389 = arith.constant 0 : index
    %796 = vector.load %arg14[%c3_387, %c0_388, %c0_389] : memref<4x1x32xf32, #tpu.memory_space<vmem>>, vector<1x1x32xf32>
    %797 = vector.shape_cast %796 : vector<1x1x32xf32> to vector<1x32xf32>
    %cst_390 = arith.constant dense<0.000000e+00> : vector<32xf32>
    %798 = vector.multi_reduction <add>, %793, %cst_390 [1] : vector<32x32xf32> to vector<32xf32>
    %799 = vector.shape_cast %798 : vector<32xf32> to vector<32x1xf32>
    %cst_391 = arith.constant 3.200000e+01 : f32
    %800 = vector.broadcast %cst_391 : f32 to vector<32x1xf32>
    %801 = arith.divf %799, %800 : vector<32x1xf32>
    %802 = vector.broadcast %801 : vector<32x1xf32> to vector<32x32xf32>
    %803 = arith.subf %793, %802 : vector<32x32xf32>
    %804 = arith.mulf %803, %803 : vector<32x32xf32>
    %cst_392 = arith.constant dense<0.000000e+00> : vector<32xf32>
    %805 = vector.multi_reduction <add>, %804, %cst_392 [1] : vector<32x32xf32> to vector<32xf32>
    %806 = vector.shape_cast %805 : vector<32xf32> to vector<32x1xf32>
    %cst_393 = arith.constant 3.200000e+01 : f32
    %807 = vector.broadcast %cst_393 : f32 to vector<32x1xf32>
    %808 = arith.divf %806, %807 : vector<32x1xf32>
    %cst_394 = arith.constant 9.99999974E-6 : f32
    %809 = vector.broadcast %cst_394 : f32 to vector<32x1xf32>
    %810 = arith.addf %808, %809 : vector<32x1xf32>
    %811 = math.rsqrt %810 : vector<32x1xf32>
    %812 = vector.broadcast %811 : vector<32x1xf32> to vector<32x32xf32>
    %813 = arith.mulf %803, %812 : vector<32x32xf32>
    %814 = vector.broadcast %795 : vector<1x32xf32> to vector<32x32xf32>
    %815 = arith.mulf %813, %814 : vector<32x32xf32>
    %816 = vector.broadcast %797 : vector<1x32xf32> to vector<32x32xf32>
    %817 = arith.addf %815, %816 : vector<32x32xf32>
    %c3_395 = arith.constant 3 : index
    %c0_396 = arith.constant 0 : index
    %c0_397 = arith.constant 0 : index
    %818 = vector.load %arg15[%c3_395, %c0_396, %c0_397] : memref<4x32x128xf32, #tpu.memory_space<vmem>>, vector<1x32x128xf32>
    %819 = vector.shape_cast %818 : vector<1x32x128xf32> to vector<32x128xf32>
    %cst_398 = arith.constant dense<0.000000e+00> : vector<32x128xf32>
    %820 = tpu.matmul %817, %819, %cst_398 {dimension_numbers = #tpu.dot_dimension_numbers<[1], [0], [0], [1], [0, 0, 1, 1], [], []>} : vector<32x32xf32>, vector<32x128xf32>, vector<32x128xf32> -> vector<32x128xf32>
    %c3_399 = arith.constant 3 : index
    %c0_400 = arith.constant 0 : index
    %c0_401 = arith.constant 0 : index
    %821 = vector.load %arg16[%c3_399, %c0_400, %c0_401] : memref<4x1x128xf32, #tpu.memory_space<vmem>>, vector<1x1x128xf32>
    %822 = vector.shape_cast %821 : vector<1x1x128xf32> to vector<1x128xf32>
    %823 = vector.broadcast %822 : vector<1x128xf32> to vector<32x128xf32>
    %824 = arith.addf %820, %823 : vector<32x128xf32>
    %cst_402 = arith.constant 5.000000e-01 : f32
    %825 = vector.broadcast %cst_402 : f32 to vector<32x128xf32>
    %826 = arith.mulf %825, %824 : vector<32x128xf32>
    %cst_403 = arith.constant 0.707106769 : f32
    %827 = vector.broadcast %cst_403 : f32 to vector<32x128xf32>
    %828 = arith.mulf %824, %827 : vector<32x128xf32>
    %829 = math.absf %828 : vector<32x128xf32>
    %cst_404 = arith.constant 0.327591091 : f32
    %830 = vector.broadcast %cst_404 : f32 to vector<32x128xf32>
    %831 = arith.mulf %830, %829 : vector<32x128xf32>
    %cst_405 = arith.constant 1.000000e+00 : f32
    %832 = vector.broadcast %cst_405 : f32 to vector<32x128xf32>
    %833 = arith.addf %832, %831 : vector<32x128xf32>
    %cst_406 = arith.constant 1.000000e+00 : f32
    %834 = vector.broadcast %cst_406 : f32 to vector<32x128xf32>
    %835 = arith.divf %834, %833 : vector<32x128xf32>
    %cst_407 = arith.constant 1.06140542 : f32
    %836 = vector.broadcast %cst_407 : f32 to vector<32x128xf32>
    %837 = arith.mulf %836, %835 : vector<32x128xf32>
    %cst_408 = arith.constant -1.45315206 : f32
    %838 = vector.broadcast %cst_408 : f32 to vector<32x128xf32>
    %839 = arith.addf %837, %838 : vector<32x128xf32>
    %840 = arith.mulf %839, %835 : vector<32x128xf32>
    %cst_409 = arith.constant 1.42141378 : f32
    %841 = vector.broadcast %cst_409 : f32 to vector<32x128xf32>
    %842 = arith.addf %840, %841 : vector<32x128xf32>
    %843 = arith.mulf %842, %835 : vector<32x128xf32>
    %cst_410 = arith.constant -0.284496725 : f32
    %844 = vector.broadcast %cst_410 : f32 to vector<32x128xf32>
    %845 = arith.addf %843, %844 : vector<32x128xf32>
    %846 = arith.mulf %845, %835 : vector<32x128xf32>
    %cst_411 = arith.constant 0.254829586 : f32
    %847 = vector.broadcast %cst_411 : f32 to vector<32x128xf32>
    %848 = arith.addf %846, %847 : vector<32x128xf32>
    %849 = arith.mulf %848, %835 : vector<32x128xf32>
    %cst_412 = arith.constant 0.000000e+00 : f32
    %850 = vector.broadcast %cst_412 : f32 to vector<32x128xf32>
    %851 = arith.subf %850, %829 : vector<32x128xf32>
    %852 = arith.mulf %851, %829 : vector<32x128xf32>
    %853 = math.exp %852 : vector<32x128xf32>
    %854 = arith.mulf %849, %853 : vector<32x128xf32>
    %cst_413 = arith.constant 1.000000e+00 : f32
    %855 = vector.broadcast %cst_413 : f32 to vector<32x128xf32>
    %856 = arith.subf %855, %854 : vector<32x128xf32>
    %cst_414 = arith.constant 0.000000e+00 : f32
    %857 = vector.broadcast %cst_414 : f32 to vector<32x128xf32>
    %858 = arith.cmpf olt, %828, %857 : vector<32x128xf32>
    %cst_415 = arith.constant 0.000000e+00 : f32
    %859 = vector.broadcast %cst_415 : f32 to vector<32x128xf32>
    %860 = arith.subf %859, %856 : vector<32x128xf32>
    %861 = arith.select %858, %860, %856 : vector<32x128xi1>, vector<32x128xf32>
    %cst_416 = arith.constant 1.000000e+00 : f32
    %862 = vector.broadcast %cst_416 : f32 to vector<32x128xf32>
    %863 = arith.addf %862, %861 : vector<32x128xf32>
    %864 = arith.mulf %826, %863 : vector<32x128xf32>
    %c3_417 = arith.constant 3 : index
    %c0_418 = arith.constant 0 : index
    %c0_419 = arith.constant 0 : index
    %865 = vector.load %arg17[%c3_417, %c0_418, %c0_419] : memref<4x128x32xf32, #tpu.memory_space<vmem>>, vector<1x128x32xf32>
    %866 = vector.shape_cast %865 : vector<1x128x32xf32> to vector<128x32xf32>
    %cst_420 = arith.constant dense<0.000000e+00> : vector<32x32xf32>
    %867 = tpu.matmul %864, %866, %cst_420 {dimension_numbers = #tpu.dot_dimension_numbers<[1], [0], [0], [1], [0, 0, 1, 1], [], []>} : vector<32x128xf32>, vector<128x32xf32>, vector<32x32xf32> -> vector<32x32xf32>
    %c3_421 = arith.constant 3 : index
    %c0_422 = arith.constant 0 : index
    %c0_423 = arith.constant 0 : index
    %868 = vector.load %arg18[%c3_421, %c0_422, %c0_423] : memref<4x1x32xf32, #tpu.memory_space<vmem>>, vector<1x1x32xf32>
    %869 = vector.shape_cast %868 : vector<1x1x32xf32> to vector<1x32xf32>
    %870 = vector.broadcast %869 : vector<1x32xf32> to vector<32x32xf32>
    %871 = arith.addf %867, %870 : vector<32x32xf32>
    %872 = arith.addf %871, %817 : vector<32x32xf32>
    %c3_424 = arith.constant 3 : index
    %c0_425 = arith.constant 0 : index
    %c0_426 = arith.constant 0 : index
    %873 = vector.load %arg19[%c3_424, %c0_425, %c0_426] : memref<4x1x32xf32, #tpu.memory_space<vmem>>, vector<1x1x32xf32>
    %874 = vector.shape_cast %873 : vector<1x1x32xf32> to vector<1x32xf32>
    %c3_427 = arith.constant 3 : index
    %c0_428 = arith.constant 0 : index
    %c0_429 = arith.constant 0 : index
    %875 = vector.load %arg20[%c3_427, %c0_428, %c0_429] : memref<4x1x32xf32, #tpu.memory_space<vmem>>, vector<1x1x32xf32>
    %876 = vector.shape_cast %875 : vector<1x1x32xf32> to vector<1x32xf32>
    %cst_430 = arith.constant dense<0.000000e+00> : vector<32xf32>
    %877 = vector.multi_reduction <add>, %872, %cst_430 [1] : vector<32x32xf32> to vector<32xf32>
    %878 = vector.shape_cast %877 : vector<32xf32> to vector<32x1xf32>
    %cst_431 = arith.constant 3.200000e+01 : f32
    %879 = vector.broadcast %cst_431 : f32 to vector<32x1xf32>
    %880 = arith.divf %878, %879 : vector<32x1xf32>
    %881 = vector.broadcast %880 : vector<32x1xf32> to vector<32x32xf32>
    %882 = arith.subf %872, %881 : vector<32x32xf32>
    %883 = arith.mulf %882, %882 : vector<32x32xf32>
    %cst_432 = arith.constant dense<0.000000e+00> : vector<32xf32>
    %884 = vector.multi_reduction <add>, %883, %cst_432 [1] : vector<32x32xf32> to vector<32xf32>
    %885 = vector.shape_cast %884 : vector<32xf32> to vector<32x1xf32>
    %cst_433 = arith.constant 3.200000e+01 : f32
    %886 = vector.broadcast %cst_433 : f32 to vector<32x1xf32>
    %887 = arith.divf %885, %886 : vector<32x1xf32>
    %cst_434 = arith.constant 9.99999974E-6 : f32
    %888 = vector.broadcast %cst_434 : f32 to vector<32x1xf32>
    %889 = arith.addf %887, %888 : vector<32x1xf32>
    %890 = math.rsqrt %889 : vector<32x1xf32>
    %891 = vector.broadcast %890 : vector<32x1xf32> to vector<32x32xf32>
    %892 = arith.mulf %882, %891 : vector<32x32xf32>
    %893 = vector.broadcast %874 : vector<1x32xf32> to vector<32x32xf32>
    %894 = arith.mulf %892, %893 : vector<32x32xf32>
    %895 = vector.broadcast %876 : vector<1x32xf32> to vector<32x32xf32>
    %896 = arith.addf %894, %895 : vector<32x32xf32>
    %897 = vector.shape_cast %896 : vector<32x32xf32> to vector<2x16x32xf32>
    %898 = vector.extract_strided_slice %897 {offsets = [0, 0, 0], sizes = [2, 15, 32], strides = [1, 1, 1]} : vector<2x16x32xf32> to vector<2x15x32xf32>
    %cst_435 = arith.constant dense<0.000000e+00> : vector<2x32xf32>
    %899 = vector.multi_reduction <add>, %898, %cst_435 [1] : vector<2x15x32xf32> to vector<2x32xf32>
    %cst_436 = arith.constant 1.500000e+01 : f32
    %900 = vector.broadcast %cst_436 : f32 to vector<2x32xf32>
    %901 = arith.divf %899, %900 : vector<2x32xf32>
    %c0_437 = arith.constant 0 : index
    %c0_438 = arith.constant 0 : index
    %902 = vector.load %arg21[%c0_437, %c0_438] : memref<2x32xf32, #tpu.memory_space<vmem>>, vector<2x32xf32>
    tpu.vector_store %arg21[%c0_437, %c0_438], %901 {strides = array<i32>} : memref<2x32xf32, #tpu.memory_space<vmem>>, vector<2x32xf32>,
    return
  }
}

</mosaic_0001>

<bundles_post_ra>
// kernel: _forward.1
= control target key start
LH: loop header
LB: loop body
LE: loop exit
PB: predicated region body
PF: predicated region fallthrough
CT: control target
= control target key end

     0   :  { %s15657_s0 = inlined_call_operand.vmem [shape: s32[16], index: 0, kind: input, shape index: {}]   ;;  %s15658_s1 = inlined_call_operand.vmem [shape: s32[16,1], index: 1, kind: input, shape index: {}]   ;;  %s15659_s2 = inlined_call_operand.vmem [shape: s32[2,1,8], index: 2, kind: input, shape index: {}]   ;;  %s15660_s3 = inlined_call_operand.vmem [shape: f32[2,1,8], index: 3, kind: input, shape index: {}]   ;;  %s15661_s4 = inlined_call_operand.vmem [shape: f32[8,32], index: 4, kind: input, shape index: {}]   ;;  %s15662_s5 = inlined_call_operand.vmem [shape: f32[16,32], index: 5, kind: input, shape index: {}]   ;;  %s15663_s6 = inlined_call_operand.vmem [shape: f32[21128,32], index: 6, kind: input, shape index: {}]   ;;  %s15664_s7 = inlined_call_operand.vmem [shape: f32[1,32], index: 7, kind: input, shape index: {}]   ;;  %s15665_s8 = inlined_call_operand.vmem [shape: f32[1,32], index: 8, kind: input, shape index: {}]   ;;  %s15666_s9 = inlined_call_operand.vmem [shape: f32[4,32,96], index: 9, kind: input, shape index: {}]   ;;  %s15667_s10 = inlined_call_operand.vmem [shape: f32[4,1,96], index: 10, kind: input, shape index: {}]   ;;  %s15668_s11 = inlined_call_operand.vmem [shape: f32[4,4,8,32], index: 11, kind: input, shape index: {}]   ;;  %s15669_s12 = inlined_call_operand.vmem [shape: f32[4,1,32], index: 12, kind: input, shape index: {}]   ;;  %s15670_s13 = inlined_call_operand.vmem [shape: f32[4,1,32], index: 13, kind: input, shape index: {}]   ;;  %s15671_s14 = inlined_call_operand.vmem [shape: f32[4,1,32], index: 14, kind: input, shape index: {}]   ;;  %s15672_s15 = inlined_call_operand.vmem [shape: f32[4,32,128], index: 15, kind: input, shape index: {}]   ;;  %s15673_s16 = inlined_call_operand.vmem [shape: f32[4,1,128], index: 16, kind: input, shape index: {}]   ;;  %s15674_s17 = inlined_call_operand.vmem [shape: f32[4,128,32], index: 17, kind: input, shape index: {}]   ;;  %s15675_s18 = inlined_call_operand.vmem [shape: f32[4,1,32], index: 18, kind: input, shape index: {}]   ;;  %s15676_s19 = inlined_call_operand.vmem [shape: f32[4,1,32], index: 19, kind: input, shape index: {}]   ;;  %s15677_s20 = inlined_call_operand.vmem [shape: f32[4,1,32], index: 20, kind: input, shape index: {}]   ;;  %s15678_s21 = inlined_call_operand.hbm [shape: f32[2,32], index: 21, kind: output, shape index: {}]  }
   0x1   :  { %15683 = sst [smem:[#allocation42_spill]] %s15657_s0 }
   0x2   :  { %15684 = sst [smem:[#allocation43_spill]] %s15658_s1 }
   0x3   :  { %15685 = sst [smem:[#allocation44_spill]] %s15659_s2 }
   0x4   :  { %15686 = sst [smem:[#allocation45_spill]] %s15660_s3 }
   0x5   :  { %15687 = sst [smem:[#allocation46_spill]] %s15661_s4 }
   0x6   :  { %15688 = sst [smem:[#allocation47_spill]] %s15662_s5 }
   0x7   :  { %26 = vsyncpa [#allocation6], 0 }
   0x8   :  { %27 = vsyncpa [#allocation5], 0  ;;  %s15689_s26 = sld [smem:[#allocation42_spill]] }
   0xe   :  { %s34_s27 = sshll.u32 %s15689_s26, 4  ;;  %s35_s27 = int_to_ptr.vmem [resolvable:$true] %s34_s27 }
   0xf   :  { %s13532_s3 = scalar_lea.vmem %s35_s27, 16  ;;  %p13537_p1 = scmp.lt.s32.totalorder %s35_s27, %s35_s27 }
  0x10   :  { %p13533_p0 = scmp.ne.s32.totalorder %s35_s27, %s13532_s3  ;;  %p13538_p2 = scmp.lt.s32.totalorder %s13532_s3, %s13532_s3 }
  0x12   :  { %p13539_p3 = por %p13538_p2, %p13537_p1 }
  0x14   :  { %p13540_p4 = pnand %p13539_p3, %p13533_p0 }
  0x16   :  { %13543 = shalt.err (!%p13540_p4)
}
  0x17   :  { %s13602_s28 = smov [#allocation4]  }
  0x18   :  { %37 = dma.vmem_to_smem %s35_s27, 16, %s13602_s28, [#allocation6]  }
  0x19   :  { %13566 = dma.done.wait [#allocation6], 16  }
  0x1a   :  { %13567 = vsyncadd [#allocation6], 4294967280 }
  0x1b   :  { %79 = sfence }
  0x1c   :  { %s80_s29 = sld [smem:[#allocation4]] }
  0x22   :  { %s81_s30 = scalar_lea.vmem %s15663_s6, %s80_s29 }
  0x23   :  { %v99_v0 = vld [vmem:[%s81_s30] sm:$0x1] }
  0x24   :  { %100 = vst [vmem:[#allocation2] sm:$0x1] %v99_v0 }
  0x25   :  { %125 = vsyncadd [#allocation3], 16  ;;  %s11158_s5 = sld [smem:[#allocation4 + $0x1]] }
  0x2b   :  { %s127_s1 = scalar_lea.vmem %s15663_s6, %s11158_s5 }
  0x2c   :  { %v147_v1 = vld [vmem:[%s127_s1] sm:$0x1] }
  0x2d   :  { %148 = vst [vmem:[#allocation2 + $0x1] sm:$0x1] %v147_v1 }
  0x2e   :  { %173 = vsyncadd [#allocation3 + $0x1], 16  ;;  %s11159_s24 = sld [smem:[#allocation4 + $0x2]] }
  0x34   :  { %s175_s26 = scalar_lea.vmem %s15663_s6, %s11159_s24 }
  0x35   :  { %v195_v2 = vld [vmem:[%s175_s26] sm:$0x1] }
  0x36   :  { %196 = vst [vmem:[#allocation2 + $0x2] sm:$0x1] %v195_v2 }
  0x37   :  { %221 = vsyncadd [#allocation3 + $0x2], 16  ;;  %s11160_s27 = sld [smem:[#allocation4 + $0x3]] }
  0x3d   :  { %s223_s29 = scalar_lea.vmem %s15663_s6, %s11160_s27 }
  0x3e   :  { %v243_v3 = vld [vmem:[%s223_s29] sm:$0x1] }
  0x3f   :  { %244 = vst [vmem:[#allocation2 + $0x3] sm:$0x1] %v243_v3 }
  0x40   :  { %269 = vsyncadd [#allocation3 + $0x3], 16  ;;  %s11161_s0 = sld [smem:[#allocation4 + $0x4]] }
  0x46   :  { %s271_s5 = scalar_lea.vmem %s15663_s6, %s11161_s0 }
  0x47   :  { %v291_v4 = vld [vmem:[%s271_s5] sm:$0x1] }
  0x48   :  { %292 = vst [vmem:[#allocation2 + $0x4] sm:$0x1] %v291_v4 }
  0x49   :  { %317 = vsyncadd [#allocation3 + $0x4], 16  ;;  %s11162_s22 = sld [smem:[#allocation4 + $0x5]] }
  0x4f   :  { %s319_s24 = scalar_lea.vmem %s15663_s6, %s11162_s22 }
  0x50   :  { %v339_v5 = vld [vmem:[%s319_s24] sm:$0x1] }
  0x51   :  { %340 = vst [vmem:[#allocation2 + $0x5] sm:$0x1] %v339_v5 }
  0x52   :  { %365 = vsyncadd [#allocation3 + $0x5], 16  ;;  %s11163_s2 = sld [smem:[#allocation4 + $0x6]] }
  0x58   :  { %s367_s27 = scalar_lea.vmem %s15663_s6, %s11163_s2 }
  0x59   :  { %v387_v6 = vld [vmem:[%s367_s27] sm:$0x1] }
  0x5a   :  { %388 = vst [vmem:[#allocation2 + $0x6] sm:$0x1] %v387_v6 }
  0x5b   :  { %413 = vsyncadd [#allocation3 + $0x6], 16  ;;  %s11164_s3 = sld [smem:[#allocation4 + $0x7]] }
  0x61   :  { %s415_s0 = scalar_lea.vmem %s15663_s6, %s11164_s3 }
  0x62   :  { %v435_v7 = vld [vmem:[%s415_s0] sm:$0x1] }
  0x63   :  { %436 = vst [vmem:[#allocation2 + $0x7] sm:$0x1] %v435_v7 }
  0x64   :  { %461 = vsyncadd [#allocation3 + $0x7], 16  ;;  %s11165_s4 = sld [smem:[#allocation4 + $0x8]] }
  0x6a   :  { %s463_s22 = scalar_lea.vmem %s15663_s6, %s11165_s4 }
  0x6b   :  { %v483_v8 = vld [vmem:[%s463_s22] sm:$0x1] }
  0x6c   :  { %484 = vst [vmem:[#allocation2 + $0x8] sm:$0x1] %v483_v8 }
  0x6d   :  { %509 = vsyncadd [#allocation3 + $0x8], 16  ;;  %s11166_s23 = sld [smem:[#allocation4 + $0x9]] }
  0x73   :  { %s511_s2 = scalar_lea.vmem %s15663_s6, %s11166_s23 }
  0x74   :  { %v531_v9 = vld [vmem:[%s511_s2] sm:$0x1] }
  0x75   :  { %532 = vst [vmem:[#allocation2 + $0x9] sm:$0x1] %v531_v9 }
  0x76   :  { %557 = vsyncadd [#allocation3 + $0x9], 16  ;;  %s11167_s25 = sld [smem:[#allocation4 + $0xa]] }
  0x7c   :  { %s559_s3 = scalar_lea.vmem %s15663_s6, %s11167_s25 }
  0x7d   :  { %v579_v10 = vld [vmem:[%s559_s3] sm:$0x1] }
  0x7e   :  { %580 = vst [vmem:[#allocation2 + $0xa] sm:$0x1] %v579_v10 }
  0x7f   :  { %605 = vsyncadd [#allocation3 + $0xa], 16  ;;  %s11168_s28 = sld [smem:[#allocation4 + $0xb]] }
  0x85   :  { %s607_s4 = scalar_lea.vmem %s15663_s6, %s11168_s28 }
  0x86   :  { %v627_v11 = vld [vmem:[%s607_s4] sm:$0x1] }
  0x87   :  { %628 = vst [vmem:[#allocation2 + $0xb] sm:$0x1] %v627_v11 }
  0x88   :  { %653 = vsyncadd [#allocation3 + $0xb], 16  ;;  %s11169_s30 = sld [smem:[#allocation4 + $0xc]] }
  0x8e   :  { %s655_s23 = scalar_lea.vmem %s15663_s6, %s11169_s30 }
  0x8f   :  { %v675_v12 = vld [vmem:[%s655_s23] sm:$0x1] }
  0x90   :  { %676 = vst [vmem:[#allocation2 + $0xc] sm:$0x1] %v675_v12 }
  0x91   :  { %701 = vsyncadd [#allocation3 + $0xc], 16  ;;  %s11170_s1 = sld [smem:[#allocation4 + $0xd]] }
  0x97   :  { %s703_s25 = scalar_lea.vmem %s15663_s6, %s11170_s1 }
  0x98   :  { %v723_v13 = vld [vmem:[%s703_s25] sm:$0x1] }
  0x99   :  { %724 = vst [vmem:[#allocation2 + $0xd] sm:$0x1] %v723_v13 }
  0x9a   :  { %749 = vsyncadd [#allocation3 + $0xd], 16  ;;  %s11171_s26 = sld [smem:[#allocation4 + $0xe]] }
  0xa0   :  { %s751_s28 = scalar_lea.vmem %s15663_s6, %s11171_s26 }
  0xa1   :  { %v771_v14 = vld [vmem:[%s751_s28] sm:$0x1] }
  0xa2   :  { %772 = vst [vmem:[#allocation2 + $0xe] sm:$0x1] %v771_v14 }
  0xa3   :  { %797 = vsyncadd [#allocation3 + $0xe], 16  ;;  %s11172_s29 = sld [smem:[#allocation4 + $0xf]]  ;;  %s15690_s23 = sld [smem:[#allocation43_spill]] }
  0xa9   :  { %s799_s30 = scalar_lea.vmem %s15663_s6, %s11172_s29  ;;  %v848_v16 = vld [vmem:[%s15690_s23] sm:$0xff] }
  0xaa   :  { %v819_v15 = vld [vmem:[%s799_s30] sm:$0x1] }
  0xab   :  { %820 = vst [vmem:[#allocation2 + $0xf] sm:$0x1] %v819_v15 }
  0xac   :  { %845 = vsyncadd [#allocation3 + $0xf], 16  ;;  %v13603_v17 = vmov 0   ;;  %s15691_s2 = sld [smem:[#allocation47_spill]]  ;;  %v849_v21 = vld [vmem:[%s15690_s23 + $0x8] sm:$0xff]  ;;  %v846_v22 = vlaneseq  ;;  %vm863_vm0 = vcmask 130048  }
  0xad   :  { %13071 = vset.pattern.permute.xlu0 %v13603_v17  ;;  %v13604_v25 = vmov 0.0   ;;  %s15692_s29 = sld [smem:[#allocation45_spill]]  ;;  %s15693_s22 = sld [smem:[#allocation46_spill]] }
  0xae   :  { %851 = vperm.xlu0 %13071, %v848_v16   ;;  %v13787_v23 = vand.u32 127, %v846_v22 }
  0xb2   :  { %v860_v18 = vld [vmem:[%s15691_s2] sm:$0xff]  ;;  %v861_v19 = vld [vmem:[%s15691_s2 + $0x8] sm:$0xff]  ;;  %854 = vperm.xlu0 %13071, %v849_v21  }
  0xb3   :  { %v12704_v20 = vpack.c.bf16 %v861_v19, %v860_v18  ;;  %v945_v29 = vld [vmem:[%s15692_s29] sm:$0x1]  ;;  %v946_v30 = vld [vmem:[%s15692_s29 + $0x1] sm:$0x1] }
  0xb4   :  { %v947_v31 = vsub.f32 1.0, %v945_v29  ;;  %v948_v32 = vsub.f32 1.0, %v946_v30  ;;  %v862_v35 = vld [vmem:[%s15693_s22] sm:$0xff] }
  0xb5   :  { %12705 = vmatprep.subr.bf16.mxu1 %v12704_v20 }
  0xb6   :  { %12707 = vmatpush3.bf16.msra.mxu1 %v12704_v20  ;;  %v13801_v33 = vmul.f32 -10000.0, %v947_v31  ;;  %v13803_v34 = vmul.f32 -10000.0, %v948_v32 }
 0x12d   :  { %v852_v24 = vpop.permute.xlu0 %851 }
 0x12e   :  { %vm856_vm1 = vcmp.eq.s32.totalorder %v13787_v23, %v852_v24 }
 0x12f   :  { %v858_v26 = vsel %vm856_vm1, 1.0, %v13604_v25 }
 0x130   :  { %11957 = vmatprep.mubr.msk.f32.mxu1 %vm863_vm0, %v858_v26 }
 0x131   :  { %v855_v27 = vpop.permute.xlu0 %854 }
 0x132   :  { %vm857_vm2 = vcmp.eq.s32.totalorder %v13787_v23, %v855_v27 }
 0x133   :  { %v859_v28 = vsel %vm857_vm2, 1.0, %v13604_v25 }
 0x134   :  { %11958 = vmatmul.mubr.msk.f32.vlgmr.msra.gmra.mrb[0].mxu1 %vm863_vm0, %v859_v28 }
 0x207   :  { %v11959_v36 = vpop.f32.mrb[0].mxu1 }
 0x208   :  { %v942_v37 = vadd.f32 %v11959_v36, %v862_v35  ;;  %v936_v38 = vpop.f32.mrb[1].mxu1 }
 0x209   :  { %v937_v39 = vadd.f32 %v936_v38, %v862_v35 }
 0x20a   :  { %13568 = dma.done.wait [#allocation3], 16 }
 0x20b   :  { %13569 = vsyncadd [#allocation3], 4294967280 }
 0x20c   :  { %13570 = dma.done.wait [#allocation3 + $0x1], 16 }
 0x20d   :  { %13571 = vsyncadd [#allocation3 + $0x1], 4294967280 }
 0x20e   :  { %13572 = dma.done.wait [#allocation3 + $0x2], 16 }
 0x20f   :  { %13573 = vsyncadd [#allocation3 + $0x2], 4294967280 }
 0x210   :  { %13574 = dma.done.wait [#allocation3 + $0x3], 16 }
 0x211   :  { %13575 = vsyncadd [#allocation3 + $0x3], 4294967280 }
 0x212   :  { %13576 = dma.done.wait [#allocation3 + $0x4], 16 }
 0x213   :  { %13577 = vsyncadd [#allocation3 + $0x4], 4294967280 }
 0x214   :  { %13578 = dma.done.wait [#allocation3 + $0x5], 16 }
 0x215   :  { %13579 = vsyncadd [#allocation3 + $0x5], 4294967280 }
 0x216   :  { %13580 = dma.done.wait [#allocation3 + $0x6], 16 }
 0x217   :  { %13581 = vsyncadd [#allocation3 + $0x6], 4294967280 }
 0x218   :  { %13582 = dma.done.wait [#allocation3 + $0x7], 16 }
 0x219   :  { %13583 = vsyncadd [#allocation3 + $0x7], 4294967280 }
 0x21a   :  { %13584 = dma.done.wait [#allocation3 + $0x8], 16 }
 0x21b   :  { %13585 = vsyncadd [#allocation3 + $0x8], 4294967280 }
 0x21c   :  { %13586 = dma.done.wait [#allocation3 + $0x9], 16 }
 0x21d   :  { %13587 = vsyncadd [#allocation3 + $0x9], 4294967280 }
 0x21e   :  { %13588 = dma.done.wait [#allocation3 + $0xa], 16 }
 0x21f   :  { %13589 = vsyncadd [#allocation3 + $0xa], 4294967280 }
 0x220   :  { %13590 = dma.done.wait [#allocation3 + $0xb], 16 }
 0x221   :  { %13591 = vsyncadd [#allocation3 + $0xb], 4294967280 }
 0x222   :  { %13592 = dma.done.wait [#allocation3 + $0xc], 16 }
 0x223   :  { %13593 = vsyncadd [#allocation3 + $0xc], 4294967280 }
 0x224   :  { %13594 = dma.done.wait [#allocation3 + $0xd], 16 }
 0x225   :  { %13595 = vsyncadd [#allocation3 + $0xd], 4294967280 }
 0x226   :  { %13596 = dma.done.wait [#allocation3 + $0xe], 16 }
 0x227   :  { %13597 = vsyncadd [#allocation3 + $0xe], 4294967280 }
 0x228   :  { %13598 = dma.done.wait [#allocation3 + $0xf], 16 }
 0x229   :  { %13599 = vsyncadd [#allocation3 + $0xf], 4294967280  ;;  %11971 = vmatprep.subr.mxu0 %v13604_v25  ;;  %v984_v40 = vld [vmem:[#allocation2] sm:$0xff]  ;;  %vm990_vm3 = vcmask 261120   ;;  %v985_v41 = vld [vmem:[#allocation2 + $0x8] sm:$0xff]  ;;  %vm13605_vm4 = vmmov 0  }
 0x22a   :  { %v986_v42 = vadd.f32 %v984_v40, %v937_v39  ;;  %v987_v43 = vadd.f32 %v985_v41, %v942_v37  ;;  %v1034_v56 = vld [vmem:[%s15666_s9] sm:$0xff]  ;;  %v1035_v57 = vld [vmem:[%s15666_s9 + $0x8] sm:$0xff]  ;;  %v1036_v58 = vld [vmem:[%s15666_s9 + $0x10] sm:$0xff]  ;;  %11973 = vmatprep.mubr.msk.f32.mxu0 %vm13605_vm4, %v13604_v25  ;;  %s13607_s30 = smov 112   ;;  %s13608_s5 = smov 104   ;;  %vm1142_vm5 = vcmask 64512  }
 0x22b   :  { %v12708_v59 = vpack.c.bf16 %v1035_v57, %v1034_v56  ;;  %v1037_v60 = vld [vmem:[%s15666_s9 + $0x18] sm:$0xff]  ;;  %v11175_v5 = vld [vmem:[%s15664_s7] ss:$0 sm:$0xff]  ;;  %s13609_s22 = smov 96   ;;  %v13940_v38 = vshrl.u32 %v846_v22, 7  ;;  %s13610_s23 = smov 64   ;;  %vm14606_vm14 = vmpackc.low %vm1142_vm5, %vm1142_vm5 }
 0x22c   :  { %v991_v44 = vsel %vm990_vm3, %v986_v42, 0.0  ;;  %v994_v45 = vsel %vm990_vm3, %v987_v43, 0.0  ;;  %v12712_v61 = vpack.c.bf16 %v1037_v60, %v1036_v58  ;;  %v11176_v7 = vld [vmem:[%s15665_s8] ss:$0 sm:$0xff]  ;;  %s13606_s8 = smov 120   ;;  %s15694_s2 = sld [smem:[#allocation44_spill]] }
 0x22d   :  { %992 = vadd.xlane.f32.xlu0 %v991_v44  ;;  %12709 = vmatprep.subr.bf16.mxu1 %v12708_v59  ;;  %v11177_v14 = vld [vmem:[%s15667_s10] ss:$0 sm:$0xff]  ;;  %v1761_v39 = vsub.s32 0, %v13940_v38  ;;  %vm5492_vm15 = vcmp.lt.s32.totalorder %v13787_v23, 15 }
 0x22e   :  { %12711 = vmatpush3.bf16.msra.mxu1 %v12708_v59 }
 0x22f   :  { %12713 = vmatprep.subr.bf16.mxu1 %v12712_v61  ;;  %v13944_v40 = vrot.slane %v13801_v33, %v1761_v39 }
 0x231   :  { %995 = vadd.xlane.f32.xlu0 %v994_v45 }
 0x232   :  { %12715 = vmatpush3.bf16.msra.mxu1 %v12712_v61 }
 0x233   :  { %11981 = vmatprep.subr.mxu1 %v13604_v25 }
 0x2ba   :  { %v993_v46 = vpop.xlane.xlu0 %992 }
 0x2bb   :  { %v998_v47 = vmul.f32 0.03125, %v993_v46  ;;  %v13949_v46 = vrot.slane %v13803_v34, %v1761_v39 }
 0x2bd   :  { %v1000_v48 = vsub.f32 %v986_v42, %v998_v47 }
 0x2be   :  { %v996_v49 = vpop.xlane.xlu0 %995 }
 0x2bf   :  { %v999_v50 = vmul.f32 0.03125, %v996_v49  ;;  %v1002_v51 = vmul.f32 %v1000_v48, %v1000_v48 }
 0x2c1   :  { %v1001_v52 = vsub.f32 %v987_v43, %v999_v50  ;;  %v1004_v53 = vsel %vm990_vm3, %v1002_v51, 0.0 }
 0x2c2   :  { %1005 = vadd.xlane.f32.xlu1 %v1004_v53 }
 0x2c3   :  { %v1003_v54 = vmul.f32 %v1001_v52, %v1001_v52 }
 0x2c5   :  { %v1007_v55 = vsel %vm990_vm3, %v1003_v54, 0.0 }
 0x2c6   :  { %1008 = vadd.xlane.f32.xlu1 %v1007_v55 }
 0x34f   :  { %v1006_v62 = vpop.xlane.xlu1 %1005 }
 0x350   :  { %v1010_v63 = vmul.f32 0.03125, %v1006_v62 }
 0x352   :  { %v1012_v0 = vadd.f32 1e-12, %v1010_v63 }
 0x353   :  { %v1009_v1 = vpop.xlane.xlu1 %1008 }
 0x354   :  { %13232 = vrsqrt.f32 %v1012_v0  ;;  %v1011_v2 = vmul.f32 0.03125, %v1009_v1 }
 0x356   :  { %v1013_v3 = vadd.f32 1e-12, %v1011_v2 }
 0x358   :  { %13234 = vrsqrt.f32 %v1013_v3 }
 0x35e   :  { %v13233_v4 = vpop.eup %13232 }
 0x35f   :  { %v1016_v6 = vmul.f32 %v13233_v4, %v1000_v48 }
 0x361   :  { %v1024_v8 = vmul.f32 %v11175_v5, %v1016_v6 }
 0x362   :  { %v13235_v9 = vpop.eup %13234 }
 0x363   :  { %v1017_v10 = vmul.f32 %v13235_v9, %v1001_v52  ;;  %v13832_v11 = vadd.f32 %v11176_v7, %v1024_v8 }
 0x365   :  { %v1025_v12 = vmul.f32 %v11175_v5, %v1017_v10  ;;  %11968 = vmatprep.mubr.msk.f32.mxu1 %vm990_vm3, %v13832_v11 }
 0x367   :  { %v13836_v13 = vadd.f32 %v11176_v7, %v1025_v12 }
 0x369   :  { %11969 = vmatmul.mubr.msk.f32.vlgmr.msra.gmra.mrb[2].mxu1 %vm990_vm3, %v13836_v13 }
 0x36a   :  { %11983 = vmatprep.mubr.msk.f32.mxu1 %vm13605_vm4, %v13604_v25 }
 0x43c   :  { %v11970_v15 = vpop.f32.mrb[2].mxu1 }
 0x43d   :  { %v13847_v16 = vadd.f32 %v11970_v15, %v11177_v14  ;;  %v1117_v17 = vpop.f32.mrb[3].mxu1 }
 0x43e   :  { %v13849_v18 = vadd.f32 %v11177_v14, %v1117_v17 }
 0x43f   :  { %1130 = vrot.lane.b32.xlu1 %v13847_v16, %s13606_s8 }
 0x440   :  { %1128 = vrot.lane.b32.xlu0 %v13849_v18, %s13606_s8 }
 0x443   :  { %1132 = vrot.lane.b32.xlu1 %v13849_v18, %s13607_s30 }
 0x444   :  { %1136 = vrot.lane.b32.xlu0 %v13849_v18, %s13608_s5 }
 0x447   :  { %1134 = vrot.lane.b32.xlu1 %v13847_v16, %s13607_s30 }
 0x448   :  { %1140 = vrot.lane.b32.xlu0 %v13849_v18, %s13609_s22 }
 0x44b   :  { %1138 = vrot.lane.b32.xlu1 %v13847_v16, %s13608_s5 }
 0x44f   :  { %1217 = vrot.lane.b32.xlu1 %v13847_v16, %s13609_s22 }
 0x4b1   :  { %v13867_v19 = vpop.permute.xlu1 %1130 }
 0x4b2   :  { %1369 = vrot.lane.b32.xlu1 %v13867_v19, %s13609_s22  ;;  %v13871_v20 = vpop.permute.xlu0 %1128 }
 0x4b3   :  { %1293 = vrot.lane.b32.xlu0 %v13871_v20, %s13609_s22 }
 0x4b5   :  { %v13875_v21 = vpop.permute.xlu1 %1132 }
 0x4b6   :  { %v13877_v24 = vpop.permute.xlu0 %1136 }
 0x4b7   :  { %1445 = vrot.lane.b32.xlu0 %v13875_v21, %s13609_s22 }
 0x4b9   :  { %v13881_v26 = vpop.permute.xlu1 %1134 }
 0x4ba   :  { %1521 = vrot.lane.b32.xlu1 %v13881_v26, %s13609_s22  ;;  %v1141_v27 = vpop.permute.xlu0 %1140 }
 0x4bb   :  { %1597 = vrot.lane.b32.xlu0 %v13877_v24, %s13609_s22  ;;  %11972 = vmatpush3.xpose.msk.msra.mxu0 %vm1142_vm5, %v1141_v27 }
 0x4bc   :  { %11976 = vmatprep.subr.mxu0 %v13604_v25 }
 0x4bd   :  { %v13889_v28 = vpop.permute.xlu1 %1138 }
 0x4be   :  { %1673 = vrot.lane.b32.xlu1 %v13889_v28, %s13609_s22  ;;  %11974 = vmatmul.mubr.msk.f32.vlgmr.msra.gmra.mrb[0].mxu0 %vm1142_vm5, %v13849_v18 }
 0x4bf   :  { %11978 = vmatprep.mubr.msk.f32.mxu0 %vm13605_vm4, %v13604_v25 }
 0x4c1   :  { %v1218_v29 = vpop.permute.xlu1 %1217 }
 0x4c2   :  { %11977 = vmatpush3.xpose.msk.msra.mxu0 %vm1142_vm5, %v1218_v29 }
 0x4c3   :  { %11986 = vmatprep.subr.mxu0 %v13604_v25 }
 0x4c5   :  { %11979 = vmatmul.mubr.msk.f32.vlgmr.msra.gmra.mrb[2].mxu0 %vm1142_vm5, %v13847_v16 }
 0x4c6   :  { %11988 = vmatprep.mubr.msk.f32.mxu0 %vm13605_vm4, %v13604_v25 }
 0x524   :  { %v1370_v30 = vpop.permute.xlu1 %1369 }
 0x525   :  { %11987 = vmatpush3.xpose.msk.msra.mxu0 %vm1142_vm5, %v1370_v30  ;;  %v1294_v31 = vpop.permute.xlu0 %1293 }
 0x526   :  { %11982 = vmatpush3.xpose.msk.msra.mxu1 %vm1142_vm5, %v1294_v31  ;;  %11996 = vmatprep.subr.mxu0 %v13604_v25 }
 0x527   :  { %11991 = vmatprep.subr.mxu1 %v13604_v25 }
 0x528   :  { %11989 = vmatmul.mubr.msk.f32.vlgmr.msra.gmra.mrb[4].mxu0 %vm1142_vm5, %v13867_v19 }
 0x529   :  { %11984 = vmatmul.mubr.msk.f32.vlgmr.msra.gmra.mrb[4].mxu1 %vm1142_vm5, %v13871_v20  ;;  %v1446_v32 = vpop.permute.xlu0 %1445  ;;  %11998 = vmatprep.mubr.msk.f32.mxu0 %vm13605_vm4, %v13604_v25 }
 0x52a   :  { %11992 = vmatpush3.xpose.msk.msra.mxu1 %vm1142_vm5, %v1446_v32  ;;  %11993 = vmatprep.mubr.msk.f32.mxu1 %vm13605_vm4, %v13604_v25 }
 0x52b   :  { %12001 = vmatprep.subr.mxu1 %v13604_v25 }
 0x52c   :  { %v1522_v35 = vpop.permute.xlu1 %1521 }
 0x52d   :  { %11994 = vmatmul.mubr.msk.f32.vlgmr.msra.gmra.mrb[6].mxu1 %vm1142_vm5, %v13875_v21  ;;  %11997 = vmatpush3.xpose.msk.msra.mxu0 %vm1142_vm5, %v1522_v35  ;;  %v1598_v36 = vpop.permute.xlu0 %1597 }
 0x52e   :  { %12002 = vmatpush3.xpose.msk.msra.mxu1 %vm1142_vm5, %v1598_v36  ;;  %12003 = vmatprep.mubr.msk.f32.mxu1 %vm13605_vm4, %v13604_v25 }
 0x52f   :  { %12006 = vmatprep.subr.mxu0 %v13604_v25  ;;  %12011 = vmatprep.subr.mxu1 %v13604_v25 }
 0x530   :  { %v1674_v37 = vpop.permute.xlu1 %1673  ;;  %11999 = vmatmul.mubr.msk.f32.vlgmr.msra.gmra.mrb[6].mxu0 %vm1142_vm5, %v13881_v26 }
 0x531   :  { %12004 = vmatmul.mubr.msk.f32.vlgmr.msra.gmra.mrb[8].mxu1 %vm1142_vm5, %v13877_v24  ;;  %12007 = vmatpush3.xpose.msk.msra.mxu0 %vm1142_vm5, %v1674_v37 }
 0x532   :  { %12008 = vmatprep.mubr.msk.f32.mxu0 %vm13605_vm4, %v13604_v25  ;;  %12016 = vmatprep.subr.mxu0 %v13604_v25 }
 0x533   :  { %12013 = vmatprep.mubr.msk.f32.mxu1 %vm13605_vm4, %v13604_v25 }
 0x534   :  { %12009 = vmatmul.mubr.msk.f32.vlgmr.msra.gmra.mrb[8].mxu0 %vm1142_vm5, %v13889_v28 }
 0x535   :  { %12018 = vmatprep.mubr.msk.f32.mxu0 %vm13605_vm4, %v13604_v25 }
 0x591   :  { %v1213_v41 = vpop.f32.mrb[0].mxu0 }
 0x592   :  { %v1749_v42 = vmul.f32 0.35355338, %v1213_v41  ;;  %v11975_v43 = vpop.f32.mrb[1].mxu0 }
 0x594   :  { %v1769_v44 = vadd.f32 %v13944_v40, %v1749_v42 }
 0x596   :  { %v1777_v45 = vsel %vm1142_vm5, %v1769_v44, -inf }
 0x597   :  { %1778 = vmax.xlane.f32.xlu0 %v1777_v45 }
 0x598   :  { %v1289_v47 = vpop.f32.mrb[2].mxu0 }
 0x599   :  { %v1750_v48 = vmul.f32 0.35355338, %v1289_v47  ;;  %v11980_v22 = vpop.f32.mrb[3].mxu0 }
 0x59b   :  { %v1770_v49 = vadd.f32 %v13949_v46, %v1750_v48 }
 0x59d   :  { %v1780_v50 = vsel %vm1142_vm5, %v1770_v49, -inf }
 0x59e   :  { %1781 = vmax.xlane.f32.xlu1 %v1780_v50 }
 0x5fb   :  { %v1441_v33 = vpop.f32.mrb[4].mxu0 }
 0x5fc   :  { %v1752_v51 = vmul.f32 0.35355338, %v1441_v33  ;;  %v1365_v52 = vpop.f32.mrb[4].mxu1  ;;  %v11990_v53 = vpop.f32.mrb[5].mxu0 }
 0x5fd   :  { %v1751_v54 = vmul.f32 0.35355338, %v1365_v52  ;;  %v11985_v55 = vpop.f32.mrb[5].mxu1 }
 0x5fe   :  { %v1772_v56 = vadd.f32 %v13949_v46, %v1752_v51 }
 0x5ff   :  { %v1771_v58 = vadd.f32 %v13944_v40, %v1751_v54 }
 0x600   :  { %v1517_v57 = vpop.f32.mrb[6].mxu1  ;;  %v1786_v34 = vsel %vm1142_vm5, %v1772_v56, -inf }
 0x601   :  { %v1753_v59 = vmul.f32 0.35355338, %v1517_v57  ;;  %1787 = vmax.xlane.f32.xlu0 %v1786_v34  ;;  %v11995_v60 = vpop.f32.mrb[7].mxu1  ;;  %v1783_v1 = vsel %vm1142_vm5, %v1771_v58, -inf }
 0x603   :  { %v1593_v61 = vpop.f32.mrb[6].mxu0  ;;  %v1773_v2 = vadd.f32 %v13944_v40, %v1753_v59 }
 0x604   :  { %v1754_v62 = vmul.f32 0.35355338, %v1593_v61  ;;  %v12000_v63 = vpop.f32.mrb[7].mxu0  ;;  %v1669_v0 = vpop.f32.mrb[8].mxu1 }
 0x605   :  { %v1755_v3 = vmul.f32 0.35355338, %v1669_v0  ;;  %1784 = vmax.xlane.f32.xlu0 %v1783_v1  ;;  %v12005_v4 = vpop.f32.mrb[9].mxu1  ;;  %v1789_v10 = vsel %vm1142_vm5, %v1773_v2, -inf }
 0x606   :  { %v1774_v5 = vadd.f32 %v13949_v46, %v1754_v62 }
 0x607   :  { %v1745_v6 = vpop.f32.mrb[8].mxu0  ;;  %v1775_v12 = vadd.f32 %v13944_v40, %v1755_v3 }
 0x608   :  { %v1756_v7 = vmul.f32 0.35355338, %v1745_v6  ;;  %v12010_v8 = vpop.f32.mrb[9].mxu0  ;;  %v1792_v9 = vsel %vm1142_vm5, %v1774_v5, -inf }
 0x609   :  { %1793 = vmax.xlane.f32.xlu1 %v1792_v9  ;;  %1790 = vmax.xlane.f32.xlu0 %v1789_v10  ;;  %v1795_v17 = vsel %vm1142_vm5, %v1775_v12, -inf }
 0x60a   :  { %v1776_v14 = vadd.f32 %v13949_v46, %v1756_v7 }
 0x60c   :  { %v1798_v15 = vsel %vm1142_vm5, %v1776_v14, -inf }
 0x60d   :  { %1799 = vmax.xlane.f32.xlu1 %v1798_v15  ;;  %1796 = vmax.xlane.f32.xlu0 %v1795_v17 }
 0x61e   :  { %1941 = vrot.lane.b32.xlu1 %v13847_v16, %s13610_s23 }
 0x622   :  { %2017 = vrot.lane.b32.xlu1 %v13871_v20, %s13610_s23 }
 0x623   :  { %1865 = vrot.lane.b32.xlu0 %v13849_v18, %s13610_s23 }
 0x624   :  { %v1779_v27 = vpop.xlane.xlu0 %1778 }
 0x625   :  { %v1801_v29 = vsub.f32 %v1769_v44, %v1779_v27 }
 0x626   :  { %2093 = vrot.lane.b32.xlu1 %v13867_v19, %s13610_s23 }
 0x627   :  { %2169 = vrot.lane.b32.xlu0 %v13875_v21, %s13610_s23  ;;  %v1809_v30 = vmul.f32 1.442695, %v1801_v29 }
 0x629   :  { %13236 = vpow2.f32 %v1809_v30 }
 0x62a   :  { %2245 = vrot.lane.b32.xlu1 %v13881_v26, %s13610_s23 }
 0x62b   :  { %v1782_v31 = vpop.xlane.xlu1 %1781 }
 0x62c   :  { %v1802_v16 = vsub.f32 %v1770_v49, %v1782_v31 }
 0x62e   :  { %v1811_v32 = vmul.f32 1.442695, %v1802_v16 }
 0x630   :  { %13238 = vpow2.f32 %v1811_v32 }
 0x633   :  { %v13977_v20 = vpop.eup %13236 }
 0x634   :  { %v1825_v18 = vsel %vm1142_vm5, %v13977_v20, 0.0 }
 0x63a   :  { %v13981_v19 = vpop.eup %13238 }
 0x63b   :  { %v1828_v21 = vsel %vm1142_vm5, %v13981_v19, 0.0 }
 0x646   :  { %1826 = vadd.xlane.f32.xlu0 %v1825_v18 }
 0x64e   :  { %1829 = vadd.xlane.f32.xlu1 %v1828_v21 }
 0x68e   :  { %v1788_v26 = vpop.xlane.xlu0 %1787 }
 0x68f   :  { %v1804_v35 = vsub.f32 %v1772_v56, %v1788_v26  ;;  %v2473_v26 = vld [vmem:[%s15668_s11] sm:$0xff] }
 0x691   :  { %v1815_v36 = vmul.f32 1.442695, %v1804_v35 }
 0x692   :  { %v1785_v37 = vpop.xlane.xlu0 %1784 }
 0x693   :  { %13240 = vpow2.f32 %v1815_v36  ;;  %v1803_v39 = vsub.f32 %v1771_v58, %v1785_v37 }
 0x695   :  { %v1813_v41 = vmul.f32 1.442695, %v1803_v39 }
 0x696   :  { %v1794_v42 = vpop.xlane.xlu1 %1793  ;;  %v1791_v43 = vpop.xlane.xlu0 %1790 }
 0x697   :  { %13242 = vpow2.f32 %v1813_v41  ;;  %v1806_v44 = vsub.f32 %v1774_v5, %v1794_v42  ;;  %v1805_v45 = vsub.f32 %v1773_v2, %v1791_v43  ;;  %v2474_v42 = vld [vmem:[%s15668_s11 + $0x8] sm:$0xff]  ;;  %v2475_v43 = vld [vmem:[%s15668_s11 + $0x10] sm:$0xff] }
 0x699   :  { %v1819_v47 = vmul.f32 1.442695, %v1806_v44  ;;  %v1817_v48 = vmul.f32 1.442695, %v1805_v45  ;;  %v2476_v44 = vld [vmem:[%s15668_s11 + $0x18] sm:$0xff] }
 0x69a   :  { %v1800_v22 = vpop.xlane.xlu1 %1799  ;;  %v1797_v49 = vpop.xlane.xlu0 %1796 }
 0x69b   :  { %13244 = vpow2.f32 %v1819_v47  ;;  %v1808_v50 = vsub.f32 %v1776_v14, %v1800_v22  ;;  %v1807_v33 = vsub.f32 %v1775_v12, %v1797_v49 }
 0x69c   :  { %13246 = vpow2.f32 %v1817_v48 }
 0x69d   :  { %v13241_v51 = vpop.eup %13240  ;;  %v1823_v52 = vmul.f32 1.442695, %v1808_v50  ;;  %v1821_v53 = vmul.f32 1.442695, %v1807_v33 }
 0x69e   :  { %v1942_v54 = vpop.permute.xlu1 %1941  ;;  %v1866_v55 = vpop.permute.xlu0 %1865  ;;  %v1834_v56 = vsel %vm1142_vm5, %v13241_v51, 0.0 }
 0x69f   :  { %13248 = vpow2.f32 %v1823_v52  ;;  %12017 = vmatpush3.msra.mxu0 %v1942_v54  ;;  %1835 = vadd.xlane.f32.xlu1 %v1834_v56 }
 0x6a0   :  { %13250 = vpow2.f32 %v1821_v53  ;;  %12012 = vmatpush3.msra.mxu1 %v1866_v55  ;;  %12026 = vmatprep.subr.mxu0 %v13604_v25 }
 0x6a1   :  { %v13243_v57 = vpop.eup %13242  ;;  %12021 = vmatprep.subr.mxu1 %v13604_v25 }
 0x6a2   :  { %v1831_v34 = vsel %vm1142_vm5, %v13243_v57, 0.0  ;;  %v2018_v2 = vpop.permute.xlu1 %2017  ;;  %v2170_v3 = vpop.permute.xlu0 %2169 }
 0x6a3   :  { %1832 = vadd.xlane.f32.xlu0 %v1831_v34 }
 0x6a5   :  { %v13245_v58 = vpop.eup %13244 }
 0x6a6   :  { %v13247_v59 = vpop.eup %13246  ;;  %v1840_v60 = vsel %vm1142_vm5, %v13245_v58, 0.0  ;;  %v2094_v4 = vpop.permute.xlu1 %2093 }
 0x6a7   :  { %1841 = vadd.xlane.f32.xlu1 %v1840_v60  ;;  %v1837_v61 = vsel %vm1142_vm5, %v13247_v59, 0.0 }
 0x6a8   :  { %1838 = vadd.xlane.f32.xlu0 %v1837_v61 }
 0x6a9   :  { %v13991_v62 = vpop.eup %13248 }
 0x6aa   :  { %v13993_v63 = vpop.eup %13250  ;;  %v1846_v0 = vsel %vm1142_vm5, %v13991_v62, 0.0  ;;  %v2246_v6 = vpop.permute.xlu1 %2245 }
 0x6ab   :  { %1847 = vadd.xlane.f32.xlu1 %v1846_v0  ;;  %v1843_v1 = vsel %vm1142_vm5, %v13993_v63, 0.0 }
 0x6ac   :  { %1844 = vadd.xlane.f32.xlu0 %v1843_v1 }
 0x6bc   :  { %2397 = vrot.lane.b32.xlu1 %v13889_v28, %s13610_s23 }
 0x6c2   :  { %2321 = vrot.lane.b32.xlu0 %v13877_v24, %s13610_s23 }
 0x6d3   :  { %v1827_v5 = vpop.xlane.xlu0 %1826 }
 0x6d4   :  { %13252 = vrcp.f32 %v1827_v5 }
 0x6db   :  { %v1830_v7 = vpop.xlane.xlu1 %1829 }
 0x6dc   :  { %13254 = vrcp.f32 %v1830_v7 }
 0x6de   :  { %v13253_v8 = vpop.eup %13252 }
 0x6df   :  { %v1857_v9 = vmul.f32 %v13253_v8, %v13977_v20 }
 0x6e1   :  { %12014 = vmatmul.mubr.msk.f32.vlgmr.msra.gmra.mrb[10].mxu1 %vm1142_vm5, %v1857_v9 }
 0x6e2   :  { %12022 = vmatpush3.msra.mxu1 %v2018_v2  ;;  %12023 = vmatprep.mubr.msk.f32.mxu1 %vm13605_vm4, %v13604_v25 }
 0x6e3   :  { %12031 = vmatprep.subr.mxu1 %v13604_v25 }
 0x6e6   :  { %v13255_v24 = vpop.eup %13254 }
 0x6e7   :  { %v1858_v28 = vmul.f32 %v13255_v24, %v13981_v19 }
 0x6e9   :  { %12019 = vmatmul.mubr.msk.f32.vlgmr.msra.gmra.mrb[10].mxu0 %vm1142_vm5, %v1858_v28 }
 0x6ea   :  { %12027 = vmatpush3.msra.mxu0 %v2094_v4  ;;  %12028 = vmatprep.mubr.msk.f32.mxu0 %vm13605_vm4, %v13604_v25 }
 0x6eb   :  { %12036 = vmatprep.subr.mxu0 %v13604_v25 }
 0x72c   :  { %v1836_v10 = vpop.xlane.xlu1 %1835 }
 0x72d   :  { %13256 = vrcp.f32 %v1836_v10 }
 0x730   :  { %v1833_v12 = vpop.xlane.xlu0 %1832 }
 0x731   :  { %13258 = vrcp.f32 %v1833_v12  ;;  %v11212_v12 = vld [vmem:[%s15669_s12] ss:$0 sm:$0xff] }
 0x734   :  { %v1842_v14 = vpop.xlane.xlu1 %1841 }
 0x735   :  { %13260 = vrcp.f32 %v1842_v14  ;;  %v1839_v15 = vpop.xlane.xlu0 %1838 }
 0x736   :  { %13262 = vrcp.f32 %v1839_v15 }
 0x737   :  { %v13257_v17 = vpop.eup %13256 }
 0x738   :  { %v1848_v27 = vpop.xlane.xlu1 %1847  ;;  %v1860_v29 = vmul.f32 %v13257_v17, %v13241_v51 }
 0x739   :  { %13264 = vrcp.f32 %v1848_v27  ;;  %v1845_v30 = vpop.xlane.xlu0 %1844 }
 0x73a   :  { %13266 = vrcp.f32 %v1845_v30  ;;  %12029 = vmatmul.mubr.msk.f32.vlgmr.msra.gmra.mrb[12].mxu0 %vm1142_vm5, %v1860_v29 }
 0x73b   :  { %v13259_v31 = vpop.eup %13258  ;;  %12037 = vmatpush3.msra.mxu0 %v2246_v6  ;;  %12038 = vmatprep.mubr.msk.f32.mxu0 %vm13605_vm4, %v13604_v25 }
 0x73c   :  { %v1859_v16 = vmul.f32 %v13259_v31, %v13243_v57  ;;  %12046 = vmatprep.subr.mxu0 %v13604_v25  ;;  %v2398_v21 = vpop.permute.xlu1 %2397 }
 0x73d   :  { %v2322_v36 = vpop.permute.xlu0 %2321 }
 0x73e   :  { %12024 = vmatmul.mubr.msk.f32.vlgmr.msra.gmra.mrb[12].mxu1 %vm1142_vm5, %v1859_v16 }
 0x73f   :  { %v13261_v32 = vpop.eup %13260  ;;  %12032 = vmatpush3.msra.mxu1 %v2170_v3  ;;  %12033 = vmatprep.mubr.msk.f32.mxu1 %vm13605_vm4, %v13604_v25 }
 0x740   :  { %v13263_v20 = vpop.eup %13262  ;;  %12041 = vmatprep.subr.mxu1 %v13604_v25  ;;  %v1862_v18 = vmul.f32 %v13261_v32, %v13245_v58 }
 0x741   :  { %v1861_v19 = vmul.f32 %v13263_v20, %v13247_v59 }
 0x742   :  { %12039 = vmatmul.mubr.msk.f32.vlgmr.msra.gmra.mrb[14].mxu0 %vm1142_vm5, %v1862_v18 }
 0x743   :  { %v13265_v35 = vpop.eup %13264  ;;  %12034 = vmatmul.mubr.msk.f32.vlgmr.msra.gmra.mrb[14].mxu1 %vm1142_vm5, %v1861_v19  ;;  %12047 = vmatpush3.msra.mxu0 %v2398_v21 }
 0x744   :  { %v13267_v37 = vpop.eup %13266  ;;  %12042 = vmatpush3.msra.mxu1 %v2322_v36  ;;  %12043 = vmatprep.mubr.msk.f32.mxu1 %vm13605_vm4, %v13604_v25  ;;  %v1864_v39 = vmul.f32 %v13265_v35, %v13991_v62 }
 0x745   :  { %12048 = vmatprep.mubr.msk.f32.mxu0 %vm13605_vm4, %v13604_v25  ;;  %v1863_v41 = vmul.f32 %v13267_v37, %v13993_v63  ;;  %12051 = vmatprep.subr.mxu1 %v2473_v26 }
 0x746   :  { %12049 = vmatmul.mubr.msk.f32.vlgmr.msra.gmra.mrb[16].mxu0 %vm1142_vm5, %v1864_v39  ;;  %12056 = vmatprep.subr.mxu0 %v2474_v42 }
 0x747   :  { %12044 = vmatmul.mubr.msk.f32.vlgmr.msra.gmra.mrb[16].mxu1 %vm1142_vm5, %v1863_v41  ;;  %12057 = vmatpush3.msra.mxu0 %v2474_v42  ;;  %v2871_v42 = vld [vmem:[%s15672_s15 + $0x8] sm:$0xff] }
 0x748   :  { %12052 = vmatpush3.msra.mxu1 %v2473_v26  ;;  %12066 = vmatprep.subr.mxu0 %v2476_v44 }
 0x749   :  { %12061 = vmatprep.subr.mxu1 %v2475_v43 }
 0x7b4   :  { %v1937_v45 = vpop.f32.mrb[10].mxu1 }
 0x7b5   :  { %v12015_v47 = vpop.f32.mrb[11].mxu1  ;;  %12053 = vmatprep.mubr.msk.f32.mxu1 %vm1142_vm5, %v1937_v45  ;;  %v2873_v45 = vld [vmem:[%s15672_s15 + $0x18] sm:$0xff] }
 0x7bc   :  { %v2013_v48 = vpop.f32.mrb[10].mxu0 }
 0x7bd   :  { %v12020_v22 = vpop.f32.mrb[11].mxu0  ;;  %12054 = vmatmul.mubr.msk.f32.vlgmr.msra.gmra.mrb[18].mxu1 %vm1142_vm5, %v2013_v48 }
 0x7be   :  { %12062 = vmatpush3.msra.mxu1 %v2475_v43  ;;  %v2872_v43 = vld [vmem:[%s15672_s15 + $0x10] sm:$0xff] }
 0x7bf   :  { %v12720_v47 = vpack.c.bf16 %v2873_v45, %v2872_v43 }
 0x80d   :  { %v2165_v49 = vpop.f32.mrb[12].mxu0 }
 0x80e   :  { %v12030_v50 = vpop.f32.mrb[13].mxu0 }
 0x811   :  { %v2089_v33 = vpop.f32.mrb[12].mxu1 }
 0x812   :  { %v12025_v51 = vpop.f32.mrb[13].mxu1  ;;  %12058 = vmatprep.mubr.msk.f32.mxu0 %vm1142_vm5, %v2089_v33 }
 0x813   :  { %12059 = vmatmul.mubr.msk.f32.vlgmr.msra.gmra.mrb[18].mxu0 %vm1142_vm5, %v2165_v49 }
 0x814   :  { %12067 = vmatpush3.msra.mxu0 %v2476_v44 }
 0x815   :  { %v2317_v52 = vpop.f32.mrb[14].mxu0 }
 0x816   :  { %v2241_v53 = vpop.f32.mrb[14].mxu1  ;;  %v12040_v54 = vpop.f32.mrb[15].mxu0 }
 0x817   :  { %v12035_v55 = vpop.f32.mrb[15].mxu1  ;;  %12063 = vmatprep.mubr.msk.f32.mxu1 %vm1142_vm5, %v2241_v53  ;;  %v11213_v53 = vld [vmem:[%s15670_s13] ss:$0 sm:$0xff] }
 0x818   :  { %12064 = vmatmul.mubr.msk.f32.vlgmr.msra.gmra.mrb[20].mxu1 %vm1142_vm5, %v2317_v52  ;;  %v11214_v55 = vld [vmem:[%s15671_s14] ss:$0 sm:$0xff] }
 0x819   :  { %v2469_v56 = vpop.f32.mrb[16].mxu0 }
 0x81a   :  { %v2393_v57 = vpop.f32.mrb[16].mxu1  ;;  %v12050_v34 = vpop.f32.mrb[17].mxu0 }
 0x81b   :  { %v12045_v58 = vpop.f32.mrb[17].mxu1  ;;  %12068 = vmatprep.mubr.msk.f32.mxu0 %vm1142_vm5, %v2393_v57 }
 0x81c   :  { %12069 = vmatmul.mubr.msk.f32.vlgmr.msra.gmra.mrb[20].mxu0 %vm1142_vm5, %v2469_v56 }
 0x890   :  { %v12055_v59 = vpop.f32.mrb[18].mxu1 }
 0x891   :  { %v2549_v60 = vpop.f32.mrb[19].mxu1  ;;  %v2808_v62 = vsel %vm990_vm3, %v12055_v59, 0.0 }
 0x892   :  { %v2801_v1 = vsel %vm990_vm3, %v2549_v60, 0.0 }
 0x8e6   :  { %v12060_v61 = vpop.f32.mrb[18].mxu0 }
 0x8e7   :  { %v2809_v63 = vsel %vm990_vm3, %v12060_v61, 0.0  ;;  %v2630_v0 = vpop.f32.mrb[19].mxu0  ;;  %v3016_v61 = vld [vmem:[%s15674_s17] sm:$0xff] }
 0x8e8   :  { %v2810_v2 = vadd.f32 %v2809_v63, %v2808_v62  ;;  %v2802_v3 = vsel %vm990_vm3, %v2630_v0, 0.0  ;;  %v3017_v62 = vld [vmem:[%s15674_s17 + $0x8] sm:$0xff]  ;;  %v3018_v0 = vld [vmem:[%s15674_s17 + $0x10] sm:$0xff] }
 0x8e9   :  { %v2803_v4 = vadd.f32 %v2802_v3, %v2801_v1  ;;  %v12724_v63 = vpack.c.bf16 %v3017_v62, %v3016_v61  ;;  %v3019_v1 = vld [vmem:[%s15674_s17 + $0x18] sm:$0xff]  ;;  %v3020_v3 = vld [vmem:[%s15674_s17 + $0x20] sm:$0xff] }
 0x8eb   :  { %v12065_v5 = vpop.f32.mrb[20].mxu1  ;;  %12725 = vmatprep.subr.bf16.mxu0 %v12724_v63 }
 0x8ec   :  { %v2811_v6 = vsel %vm990_vm3, %v12065_v5, 0.0  ;;  %v2711_v7 = vpop.f32.mrb[21].mxu1  ;;  %12727 = vmatpush3.bf16.msra.mxu0 %v12724_v63 }
 0x8ed   :  { %v2812_v8 = vadd.f32 %v2811_v6, %v2810_v2  ;;  %v2804_v9 = vsel %vm990_vm3, %v2711_v7, 0.0  ;;  %v12728_v2 = vpack.c.bf16 %v3019_v1, %v3018_v0  ;;  %v3022_v6 = vld [vmem:[%s15674_s17 + $0x30] sm:$0xff]  ;;  %v3023_v7 = vld [vmem:[%s15674_s17 + $0x38] sm:$0xff] }
 0x8ee   :  { %v2805_v24 = vadd.f32 %v2804_v9, %v2803_v4  ;;  %v3021_v4 = vld [vmem:[%s15674_s17 + $0x28] sm:$0xff]  ;;  %v3024_v9 = vld [vmem:[%s15674_s17 + $0x40] sm:$0xff] }
 0x8ef   :  { %v12070_v28 = vpop.f32.mrb[20].mxu0  ;;  %12729 = vmatprep.subr.bf16.mxu0 %v12728_v2  ;;  %v12732_v5 = vpack.c.bf16 %v3021_v4, %v3020_v3 }
 0x8f0   :  { %v2813_v10 = vsel %vm990_vm3, %v12070_v28, 0.0  ;;  %v2792_v14 = vpop.f32.mrb[21].mxu0  ;;  %12731 = vmatpush3.bf16.msra.mxu0 %v12728_v2 }
 0x8f1   :  { %v2814_v15 = vadd.f32 %v2813_v10, %v2812_v8  ;;  %v2806_v17 = vsel %vm990_vm3, %v2792_v14, 0.0  ;;  %12733 = vmatprep.subr.bf16.mxu0 %v12732_v5  ;;  %v12736_v8 = vpack.c.bf16 %v3023_v7, %v3022_v6  ;;  %v3026_v10 = vld [vmem:[%s15674_s17 + $0x50] sm:$0xff] }
 0x8f2   :  { %v2807_v27 = vadd.f32 %v2806_v17, %v2805_v24  ;;  %v3025_v24 = vld [vmem:[%s15674_s17 + $0x48] sm:$0xff] }
 0x8f3   :  { %v2823_v29 = vadd.f32 %v11212_v12, %v2814_v15  ;;  %v12740_v28 = vpack.c.bf16 %v3025_v24, %v3024_v9  ;;  %v3028_v15 = vld [vmem:[%s15674_s17 + $0x60] sm:$0xff]  ;;  %v3029_v17 = vld [vmem:[%s15674_s17 + $0x68] sm:$0xff] }
 0x8f4   :  { %v2822_v30 = vadd.f32 %v11212_v12, %v2807_v27  ;;  %12735 = vmatpush3.bf16.msra.mxu0 %v12732_v5  ;;  %v3027_v12 = vld [vmem:[%s15674_s17 + $0x58] sm:$0xff]  ;;  %v12748_v27 = vpack.c.bf16 %v3029_v17, %v3028_v15 }
 0x8f5   :  { %v2825_v31 = vadd.f32 %v2823_v29, %v13836_v13  ;;  %12737 = vmatprep.subr.bf16.mxu0 %v12736_v8  ;;  %v12744_v14 = vpack.c.bf16 %v3027_v12, %v3026_v10  ;;  %v3030_v29 = vld [vmem:[%s15674_s17 + $0x70] sm:$0xff] }
 0x8f6   :  { %v2824_v16 = vadd.f32 %v2822_v30, %v13832_v11  ;;  %v2870_v11 = vld [vmem:[%s15672_s15] sm:$0xff]  ;;  %v3031_v30 = vld [vmem:[%s15674_s17 + $0x78] sm:$0xff] }
 0x8f7   :  { %v2831_v32 = vsel %vm990_vm3, %v2825_v31, 0.0  ;;  %v12716_v44 = vpack.c.bf16 %v2871_v42, %v2870_v11 }
 0x8f8   :  { %2832 = vadd.xlane.f32.xlu1 %v2831_v32  ;;  %v2828_v20 = vsel %vm990_vm3, %v2824_v16, 0.0  ;;  %12739 = vmatpush3.bf16.msra.mxu0 %v12736_v8 }
 0x8f9   :  { %2829 = vadd.xlane.f32.xlu0 %v2828_v20  ;;  %12717 = vmatprep.subr.bf16.mxu1 %v12716_v44 }
 0x8fa   :  { %12719 = vmatpush3.bf16.msra.mxu1 %v12716_v44  ;;  %12741 = vmatprep.subr.bf16.mxu0 %v12740_v28 }
 0x8fb   :  { %12721 = vmatprep.subr.bf16.mxu1 %v12720_v47 }
 0x8fc   :  { %12743 = vmatpush3.bf16.msra.mxu0 %v12740_v28 }
 0x8fd   :  { %12745 = vmatprep.subr.bf16.mxu0 %v12744_v14 }
 0x8fe   :  { %12723 = vmatpush3.bf16.msra.mxu1 %v12720_v47 }
 0x900   :  { %12747 = vmatpush3.bf16.msra.mxu0 %v12744_v14 }
 0x901   :  { %12749 = vmatprep.subr.bf16.mxu0 %v12748_v27 }
 0x904   :  { %12751 = vmatpush3.bf16.msra.mxu0 %v12748_v27 }
 0x985   :  { %v2833_v18 = vpop.xlane.xlu1 %2832 }
 0x986   :  { %v2835_v19 = vmul.f32 0.03125, %v2833_v18  ;;  %v2830_v21 = vpop.xlane.xlu0 %2829 }
 0x987   :  { %v2834_v26 = vmul.f32 0.03125, %v2830_v21 }
 0x988   :  { %v2837_v35 = vsub.f32 %v2825_v31, %v2835_v19  ;;  %v12752_v31 = vpack.c.bf16 %v3031_v30, %v3030_v29  ;;  %v11218_v30 = vld [vmem:[%s15675_s18] ss:$0 sm:$0xff] }
 0x989   :  { %v2836_v36 = vsub.f32 %v2824_v16, %v2834_v26  ;;  %v11215_v16 = vld [vmem:[%s15673_s16] ss:$0 sm:$0xff] }
 0x98a   :  { %v2839_v41 = vmul.f32 %v2837_v35, %v2837_v35  ;;  %12753 = vmatprep.subr.bf16.mxu0 %v12752_v31 }
 0x98b   :  { %v2838_v37 = vmul.f32 %v2836_v36, %v2836_v36  ;;  %12755 = vmatpush3.bf16.msra.mxu0 %v12752_v31 }
 0x98c   :  { %v2843_v13 = vsel %vm990_vm3, %v2839_v41, 0.0  ;;  %12153 = vmatprep.subr.mxu0 %v13604_v25 }
 0x98d   :  { %v2840_v39 = vsel %vm990_vm3, %v2838_v37, 0.0 }
 0x98e   :  { %2841 = vadd.xlane.f32.xlu0 %v2840_v39 }
 0x992   :  { %2844 = vadd.xlane.f32.xlu0 %v2843_v13 }
 0xa1b   :  { %v2842_v48 = vpop.xlane.xlu0 %2841 }
 0xa1c   :  { %v2846_v22 = vmul.f32 0.03125, %v2842_v48 }
 0xa1e   :  { %v2848_v49 = vadd.f32 1e-12, %v2846_v22 }
 0xa1f   :  { %v2845_v50 = vpop.xlane.xlu0 %2844 }
 0xa20   :  { %13268 = vrsqrt.f32 %v2848_v49  ;;  %v2847_v33 = vmul.f32 0.03125, %v2845_v50 }
 0xa22   :  { %v2849_v51 = vadd.f32 1e-12, %v2847_v33 }
 0xa24   :  { %13270 = vrsqrt.f32 %v2849_v51 }
 0xa2a   :  { %v13269_v52 = vpop.eup %13268 }
 0xa2b   :  { %v2852_v54 = vmul.f32 %v13269_v52, %v2836_v36 }
 0xa2d   :  { %v2860_v56 = vmul.f32 %v11213_v53, %v2852_v54 }
 0xa2e   :  { %v13271_v57 = vpop.eup %13270 }
 0xa2f   :  { %v2853_v34 = vmul.f32 %v13271_v57, %v2837_v35  ;;  %v14086_v58 = vadd.f32 %v11214_v55, %v2860_v56 }
 0xa31   :  { %v2861_v59 = vmul.f32 %v11213_v53, %v2853_v34  ;;  %12079 = vmatprep.mubr.msk.f32.mxu1 %vm990_vm3, %v14086_v58 }
 0xa33   :  { %v14090_v60 = vadd.f32 %v11214_v55, %v2861_v59 }
 0xa35   :  { %12080 = vmatmul.mubr.msk.f32.vlgmr.msra.gmra.mrb[22].mxu1 %vm990_vm3, %v14090_v60 }
 0xb08   :  { %v12081_v32 = vpop.f32.mrb[22].mxu1 }
 0xb09   :  { %v2959_v20 = vadd.f32 %v12081_v32, %v11215_v16  ;;  %v2953_v18 = vpop.f32.mrb[23].mxu1 }
 0xb0a   :  { %v2954_v19 = vadd.f32 %v11215_v16, %v2953_v18 }
 0xb0b   :  { %v2965_v21 = vmul.f32 0.70710677, %v2959_v20  ;;  %v2963_v17 = vmul.f32 0.5, %v2959_v20 }
 0xb0c   :  { %v2964_v26 = vmul.f32 0.70710677, %v2954_v19  ;;  %v2962_v14 = vmul.f32 0.5, %v2954_v19 }
 0xb0d   :  { %v2967_v35 = vand.u32 2147483647, %v2965_v21  ;;  %vm3007_vm6 = vcmp.lt.f32.partialorder %v2965_v21, 0.0 }
 0xb0e   :  { %v2966_v36 = vand.u32 2147483647, %v2964_v26  ;;  %vm3006_vm7 = vcmp.lt.f32.partialorder %v2964_v26, 0.0 }
 0xb0f   :  { %v2969_v37 = vmul.f32 0.3275911, %v2967_v35  ;;  %v2995_v11 = vsub.f32 0.0, %v2967_v35 }
 0xb10   :  { %v2968_v39 = vmul.f32 0.3275911, %v2966_v36  ;;  %v2994_v42 = vsub.f32 0.0, %v2966_v36 }
 0xb11   :  { %v2971_v41 = vadd.f32 1.0, %v2969_v37  ;;  %v2997_v44 = vmul.f32 %v2995_v11, %v2967_v35 }
 0xb12   :  { %v2970_v13 = vadd.f32 1.0, %v2968_v39  ;;  %v2996_v48 = vmul.f32 %v2994_v42, %v2966_v36 }
 0xb13   :  { %13272 = vrcp.f32 %v2971_v41  ;;  %v3000_v50 = vmul.f32 1.442695, %v2997_v44  ;;  %v11222_v44 = vld [vmem:[%s15666_s9 + $0x28] sm:$0xff] }
 0xb14   :  { %13274 = vrcp.f32 %v2970_v13  ;;  %v2998_v52 = vmul.f32 1.442695, %v2996_v48  ;;  %v11224_v48 = vld [vmem:[%s15666_s9 + $0x38] sm:$0xff] }
 0xb15   :  { %13276 = vpow2.f32 %v3000_v50 }
 0xb16   :  { %13278 = vpow2.f32 %v2998_v52 }
 0xb1d   :  { %v13273_v43 = vpop.eup %13272 }
 0xb1e   :  { %v13275_v45 = vpop.eup %13274  ;;  %v2977_v47 = vmul.f32 1.0614054, %v13273_v43 }
 0xb1f   :  { %v2976_v22 = vmul.f32 1.0614054, %v13275_v45  ;;  %v13277_v2 = vpop.eup %13276 }
 0xb20   :  { %v2979_v49 = vadd.f32 -1.4531521, %v2977_v47  ;;  %v13279_v4 = vpop.eup %13278 }
 0xb21   :  { %v2978_v33 = vadd.f32 -1.4531521, %v2976_v22 }
 0xb22   :  { %v2981_v51 = vmul.f32 %v13273_v43, %v2979_v49 }
 0xb23   :  { %v2980_v53 = vmul.f32 %v13275_v45, %v2978_v33 }
 0xb24   :  { %v2983_v54 = vadd.f32 1.4214138, %v2981_v51 }
 0xb25   :  { %v2982_v55 = vadd.f32 1.4214138, %v2980_v53 }
 0xb26   :  { %v2985_v56 = vmul.f32 %v13273_v43, %v2983_v54 }
 0xb27   :  { %v2984_v57 = vmul.f32 %v13275_v45, %v2982_v55  ;;  %v11219_v55 = vld [vmem:[%s15676_s19] ss:$0 sm:$0xff] }
 0xb28   :  { %v2987_v34 = vadd.f32 -0.28449672, %v2985_v56 }
 0xb29   :  { %v2986_v59 = vadd.f32 -0.28449672, %v2984_v57 }
 0xb2a   :  { %v2989_v61 = vmul.f32 %v13273_v43, %v2987_v34 }
 0xb2b   :  { %v2988_v62 = vmul.f32 %v13275_v45, %v2986_v59  ;;  %v11220_v59 = vld [vmem:[%s15677_s20] ss:$0 sm:$0xff] }
 0xb2c   :  { %v2991_v63 = vadd.f32 0.2548296, %v2989_v61 }
 0xb2d   :  { %v2990_v0 = vadd.f32 0.2548296, %v2988_v62 }
 0xb2e   :  { %v2993_v1 = vmul.f32 %v13273_v43, %v2991_v63 }
 0xb2f   :  { %v2992_v3 = vmul.f32 %v13275_v45, %v2990_v0  ;;  %v11223_v45 = vld [vmem:[%s15666_s9 + $0x30] sm:$0xff] }
 0xb30   :  { %v3003_v5 = vmul.f32 %v13277_v2, %v2993_v1  ;;  %v12760_v22 = vpack.c.bf16 %v11224_v48, %v11223_v45  ;;  %v11226_v1 = vld [vmem:[%s15667_s10 + $0x1] ss:$0 sm:$0xff] }
 0xb31   :  { %v3002_v6 = vmul.f32 %v13279_v4, %v2992_v3 }
 0xb32   :  { %v3005_v7 = vsub.f32 1.0, %v3003_v5 }
 0xb33   :  { %v3004_v8 = vsub.f32 1.0, %v3002_v6 }
 0xb34   :  { %v3009_v9 = vsub.f32 0.0, %v3005_v7 }
 0xb35   :  { %v3008_v24 = vsub.f32 0.0, %v3004_v8 }
 0xb36   :  { %v3011_v28 = vsel %vm3007_vm6, %v3009_v9, %v3005_v7 }
 0xb37   :  { %v3013_v10 = vadd.f32 1.0, %v3011_v28  ;;  %v3010_v12 = vsel %vm3006_vm7, %v3008_v24, %v3004_v8 }
 0xb38   :  { %v3012_v15 = vadd.f32 1.0, %v3010_v12 }
 0xb39   :  { %v3015_v29 = vmul.f32 %v3013_v10, %v2963_v17 }
 0xb3a   :  { %v3014_v27 = vmul.f32 %v3012_v15, %v2962_v14 }
 0xb3c   :  { %12114 = vmatprep.mubr.f32.mxu0 %v3014_v27 }
 0xb3d   :  { %12115 = vmatmul.mubr.f32.vlgmr.msra.gmra.mrb[22].mxu0 %v3015_v29 }
 0xb3e   :  { %12155 = vmatprep.mubr.msk.f32.mxu0 %vm13605_vm4, %v13604_v25 }
 0xc10   :  { %v12116_v31 = vpop.f32.mrb[22].mxu0 }
 0xc11   :  { %v3111_v16 = vadd.f32 %v12116_v31, %v11218_v30  ;;  %v3105_v32 = vpop.f32.mrb[23].mxu0 }
 0xc12   :  { %v3106_v18 = vadd.f32 %v11218_v30, %v3105_v32 }
 0xc13   :  { %v3115_v21 = vadd.f32 %v3111_v16, %v14090_v60 }
 0xc14   :  { %v3114_v19 = vadd.f32 %v3106_v18, %v14086_v58  ;;  %v11221_v58 = vld [vmem:[%s15666_s9 + $0x20] sm:$0xff] }
 0xc15   :  { %v3121_v20 = vsel %vm990_vm3, %v3115_v21, 0.0  ;;  %v12756_v47 = vpack.c.bf16 %v11222_v44, %v11221_v58 }
 0xc16   :  { %3122 = vadd.xlane.f32.xlu1 %v3121_v20  ;;  %v3118_v26 = vsel %vm990_vm3, %v3114_v19, 0.0 }
 0xc17   :  { %3119 = vadd.xlane.f32.xlu0 %v3118_v26  ;;  %12757 = vmatprep.subr.bf16.mxu1 %v12756_v47 }
 0xc18   :  { %12759 = vmatpush3.bf16.msra.mxu1 %v12756_v47 }
 0xc19   :  { %12761 = vmatprep.subr.bf16.mxu1 %v12760_v22 }
 0xc1c   :  { %12763 = vmatpush3.bf16.msra.mxu1 %v12760_v22 }
 0xc1d   :  { %12128 = vmatprep.subr.mxu1 %v13604_v25 }
 0xca3   :  { %v3123_v35 = vpop.xlane.xlu1 %3122 }
 0xca4   :  { %v3125_v36 = vmul.f32 0.03125, %v3123_v35  ;;  %v3120_v37 = vpop.xlane.xlu0 %3119 }
 0xca5   :  { %v3124_v39 = vmul.f32 0.03125, %v3120_v37 }
 0xca6   :  { %v3127_v41 = vsub.f32 %v3115_v21, %v3125_v36 }
 0xca7   :  { %v3126_v13 = vsub.f32 %v3114_v19, %v3124_v39 }
 0xca8   :  { %v3129_v11 = vmul.f32 %v3127_v41, %v3127_v41 }
 0xca9   :  { %v3128_v42 = vmul.f32 %v3126_v13, %v3126_v13 }
 0xcaa   :  { %v3133_v43 = vsel %vm990_vm3, %v3129_v11, 0.0 }
 0xcab   :  { %3134 = vadd.xlane.f32.xlu1 %v3133_v43  ;;  %v3130_v60 = vsel %vm990_vm3, %v3128_v42, 0.0 }
 0xcac   :  { %3131 = vadd.xlane.f32.xlu0 %v3130_v60 }
 0xd38   :  { %v3135_v49 = vpop.xlane.xlu1 %3134 }
 0xd39   :  { %v3137_v50 = vmul.f32 0.03125, %v3135_v49  ;;  %v3132_v33 = vpop.xlane.xlu0 %3131 }
 0xd3a   :  { %v3136_v51 = vmul.f32 0.03125, %v3132_v33 }
 0xd3b   :  { %v3139_v52 = vadd.f32 1e-12, %v3137_v50 }
 0xd3c   :  { %v3138_v53 = vadd.f32 1e-12, %v3136_v51 }
 0xd3d   :  { %13280 = vrsqrt.f32 %v3139_v52 }
 0xd3e   :  { %13282 = vrsqrt.f32 %v3138_v53 }
 0xd47   :  { %v13281_v54 = vpop.eup %13280 }
 0xd48   :  { %v13283_v56 = vpop.eup %13282  ;;  %v3143_v57 = vmul.f32 %v13281_v54, %v3127_v41 }
 0xd49   :  { %v3142_v34 = vmul.f32 %v13283_v56, %v3126_v13 }
 0xd4a   :  { %v3151_v61 = vmul.f32 %v11219_v55, %v3143_v57 }
 0xd4b   :  { %v3150_v62 = vmul.f32 %v11219_v55, %v3142_v34 }
 0xd4c   :  { %v14178_v0 = vadd.f32 %v11220_v59, %v3151_v61 }
 0xd4d   :  { %v14176_v63 = vadd.f32 %v11220_v59, %v3150_v62 }
 0xd4f   :  { %12125 = vmatprep.mubr.msk.f32.mxu1 %vm990_vm3, %v14176_v63 }
 0xd50   :  { %12126 = vmatmul.mubr.msk.f32.vlgmr.msra.gmra.mrb[24].mxu1 %vm990_vm3, %v14178_v0 }
 0xd51   :  { %12130 = vmatprep.mubr.msk.f32.mxu1 %vm13605_vm4, %v13604_v25 }
 0xe23   :  { %v12127_v2 = vpop.f32.mrb[24].mxu1 }
 0xe24   :  { %v14189_v3 = vadd.f32 %v12127_v2, %v11226_v1  ;;  %v3245_v4 = vpop.f32.mrb[25].mxu1 }
 0xe25   :  { %v14191_v5 = vadd.f32 %v11226_v1, %v3245_v4 }
 0xe26   :  { %3258 = vrot.lane.b32.xlu1 %v14189_v3, %s13606_s8 }
 0xe27   :  { %3256 = vrot.lane.b32.xlu0 %v14191_v5, %s13606_s8 }
 0xe2a   :  { %3260 = vrot.lane.b32.xlu1 %v14191_v5, %s13607_s30 }
 0xe2b   :  { %3264 = vrot.lane.b32.xlu0 %v14191_v5, %s13608_s5 }
 0xe2e   :  { %3262 = vrot.lane.b32.xlu1 %v14189_v3, %s13607_s30 }
 0xe2f   :  { %3268 = vrot.lane.b32.xlu0 %v14191_v5, %s13609_s22 }
 0xe32   :  { %3266 = vrot.lane.b32.xlu1 %v14189_v3, %s13608_s5 }
 0xe36   :  { %3344 = vrot.lane.b32.xlu1 %v14189_v3, %s13609_s22 }
 0xe98   :  { %v14209_v6 = vpop.permute.xlu1 %3258 }
 0xe99   :  { %3496 = vrot.lane.b32.xlu1 %v14209_v6, %s13609_s22  ;;  %v14213_v7 = vpop.permute.xlu0 %3256 }
 0xe9a   :  { %3420 = vrot.lane.b32.xlu0 %v14213_v7, %s13609_s22 }
 0xe9c   :  { %v14217_v8 = vpop.permute.xlu1 %3260 }
 0xe9d   :  { %v14219_v9 = vpop.permute.xlu0 %3264 }
 0xe9e   :  { %3572 = vrot.lane.b32.xlu0 %v14217_v8, %s13609_s22 }
 0xea0   :  { %v14223_v24 = vpop.permute.xlu1 %3262 }
 0xea1   :  { %3648 = vrot.lane.b32.xlu1 %v14223_v24, %s13609_s22  ;;  %v3269_v28 = vpop.permute.xlu0 %3268 }
 0xea2   :  { %3724 = vrot.lane.b32.xlu0 %v14219_v9, %s13609_s22  ;;  %12129 = vmatpush3.xpose.msk.msra.mxu1 %vm1142_vm5, %v3269_v28 }
 0xea3   :  { %12133 = vmatprep.subr.mxu1 %v13604_v25 }
 0xea4   :  { %v14231_v10 = vpop.permute.xlu1 %3266 }
 0xea5   :  { %3800 = vrot.lane.b32.xlu1 %v14231_v10, %s13609_s22  ;;  %12131 = vmatmul.mubr.msk.f32.vlgmr.msra.gmra.mrb[26].mxu1 %vm1142_vm5, %v14191_v5 }
 0xea6   :  { %12135 = vmatprep.mubr.msk.f32.mxu1 %vm13605_vm4, %v13604_v25 }
 0xea8   :  { %v3345_v12 = vpop.permute.xlu1 %3344 }
 0xea9   :  { %12134 = vmatpush3.xpose.msk.msra.mxu1 %vm1142_vm5, %v3345_v12 }
 0xeaa   :  { %12138 = vmatprep.subr.mxu1 %v13604_v25 }
 0xeac   :  { %12136 = vmatmul.mubr.msk.f32.vlgmr.msra.gmra.mrb[28].mxu1 %vm1142_vm5, %v14189_v3 }
 0xead   :  { %12140 = vmatprep.mubr.msk.f32.mxu1 %vm13605_vm4, %v13604_v25 }
 0xf0b   :  { %v3497_v15 = vpop.permute.xlu1 %3496 }
 0xf0c   :  { %v3421_v14 = vpop.permute.xlu0 %3420 }
 0xf0d   :  { %12139 = vmatpush3.xpose.msk.msra.mxu1 %vm1142_vm5, %v3421_v14 }
 0xf0e   :  { %12143 = vmatprep.subr.mxu1 %v13604_v25 }
 0xf10   :  { %12141 = vmatmul.mubr.msk.f32.vlgmr.msra.gmra.mrb[30].mxu1 %vm1142_vm5, %v14213_v7  ;;  %v3573_v17 = vpop.permute.xlu0 %3572 }
 0xf11   :  { %12144 = vmatpush3.xpose.msk.msra.mxu1 %vm1142_vm5, %v3497_v15  ;;  %12145 = vmatprep.mubr.msk.f32.mxu1 %vm13605_vm4, %v13604_v25 }
 0xf12   :  { %12148 = vmatprep.subr.mxu1 %v13604_v25 }
 0xf13   :  { %v3649_v27 = vpop.permute.xlu1 %3648 }
 0xf14   :  { %12146 = vmatmul.mubr.msk.f32.vlgmr.msra.gmra.mrb[32].mxu1 %vm1142_vm5, %v14209_v6  ;;  %12154 = vmatpush3.xpose.msk.msra.mxu0 %vm1142_vm5, %v3649_v27  ;;  %v3725_v30 = vpop.permute.xlu0 %3724 }
 0xf15   :  { %12149 = vmatpush3.xpose.msk.msra.mxu1 %vm1142_vm5, %v3573_v17  ;;  %12163 = vmatprep.subr.mxu0 %v13604_v25 }
 0xf16   :  { %12150 = vmatprep.mubr.msk.f32.mxu1 %vm13605_vm4, %v13604_v25  ;;  %12158 = vmatprep.subr.mxu1 %v13604_v25 }
 0xf17   :  { %12156 = vmatmul.mubr.msk.f32.vlgmr.msra.gmra.mrb[24].mxu0 %vm1142_vm5, %v14223_v24  ;;  %v3801_v29 = vpop.permute.xlu1 %3800 }
 0xf18   :  { %12151 = vmatmul.mubr.msk.f32.vlgmr.msra.gmra.mrb[34].mxu1 %vm1142_vm5, %v14217_v8  ;;  %12164 = vmatpush3.xpose.msk.msra.mxu0 %vm1142_vm5, %v3801_v29 }
 0xf19   :  { %12159 = vmatpush3.xpose.msk.msra.mxu1 %vm1142_vm5, %v3725_v30  ;;  %12165 = vmatprep.mubr.msk.f32.mxu0 %vm13605_vm4, %v13604_v25 }
 0xf1a   :  { %12160 = vmatprep.mubr.msk.f32.mxu1 %vm13605_vm4, %v13604_v25  ;;  %12173 = vmatprep.subr.mxu0 %v13604_v25 }
 0xf1b   :  { %12166 = vmatmul.mubr.msk.f32.vlgmr.msra.gmra.mrb[26].mxu0 %vm1142_vm5, %v14231_v10  ;;  %12168 = vmatprep.subr.mxu1 %v13604_v25 }
 0xf1c   :  { %12161 = vmatmul.mubr.msk.f32.vlgmr.msra.gmra.mrb[36].mxu1 %vm1142_vm5, %v14219_v9  ;;  %12175 = vmatprep.mubr.msk.f32.mxu0 %vm13605_vm4, %v13604_v25 }
 0xf1d   :  { %12170 = vmatprep.mubr.msk.f32.mxu1 %vm13605_vm4, %v13604_v25 }
 0xf78   :  { %v3340_v31 = vpop.f32.mrb[26].mxu1 }
 0xf79   :  { %v3876_v16 = vmul.f32 0.35355338, %v3340_v31  ;;  %v12132_v32 = vpop.f32.mrb[27].mxu1 }
 0xf7b   :  { %v3884_v18 = vadd.f32 %v3876_v16, %v13944_v40 }
 0xf7d   :  { %v3892_v21 = vsel %vm1142_vm5, %v3884_v18, -inf }
 0xf7e   :  { %3893 = vmax.xlane.f32.xlu0 %v3892_v21 }
 0xf7f   :  { %v3416_v19 = vpop.f32.mrb[28].mxu1 }
 0xf80   :  { %v3877_v20 = vmul.f32 0.35355338, %v3416_v19  ;;  %v12137_v26 = vpop.f32.mrb[29].mxu1 }
 0xf82   :  { %v3885_v35 = vadd.f32 %v3877_v20, %v13949_v46 }
 0xf84   :  { %v3895_v36 = vsel %vm1142_vm5, %v3885_v35, -inf }
 0xf85   :  { %3896 = vmax.xlane.f32.xlu1 %v3895_v36 }
 0xfe3   :  { %v3492_v37 = vpop.f32.mrb[30].mxu1 }
 0xfe4   :  { %v3878_v39 = vmul.f32 0.35355338, %v3492_v37  ;;  %v12142_v41 = vpop.f32.mrb[31].mxu1 }
 0xfe6   :  { %v3886_v13 = vadd.f32 %v3878_v39, %v13944_v40 }
 0xfe7   :  { %v3568_v11 = vpop.f32.mrb[32].mxu1 }
 0xfe8   :  { %v3879_v42 = vmul.f32 0.35355338, %v3568_v11  ;;  %v12147_v43 = vpop.f32.mrb[33].mxu1  ;;  %v3898_v60 = vsel %vm1142_vm5, %v3886_v13, -inf }
 0xfe9   :  { %3899 = vmax.xlane.f32.xlu0 %v3898_v60 }
 0xfea   :  { %v3720_v58 = vpop.f32.mrb[24].mxu0  ;;  %v14288_v44 = vadd.f32 %v3879_v42, %v13949_v46 }
 0xfeb   :  { %v3881_v45 = vmul.f32 0.35355338, %v3720_v58  ;;  %v3644_v47 = vpop.f32.mrb[34].mxu1  ;;  %v12157_v48 = vpop.f32.mrb[25].mxu0 }
 0xfec   :  { %v3880_v22 = vmul.f32 0.35355338, %v3644_v47  ;;  %v12152_v49 = vpop.f32.mrb[35].mxu1  ;;  %v3901_v50 = vsel %vm1142_vm5, %v14288_v44, -inf }
 0xfed   :  { %3902 = vmax.xlane.f32.xlu0 %v3901_v50  ;;  %v3889_v33 = vadd.f32 %v3881_v45, %v13949_v46 }
 0xfee   :  { %v3872_v51 = vpop.f32.mrb[26].mxu0  ;;  %v3888_v52 = vadd.f32 %v3880_v22, %v13944_v40 }
 0xfef   :  { %v3883_v53 = vmul.f32 0.35355338, %v3872_v51  ;;  %v3796_v54 = vpop.f32.mrb[36].mxu1  ;;  %v12167_v55 = vpop.f32.mrb[27].mxu0  ;;  %v3907_v56 = vsel %vm1142_vm5, %v3889_v33, -inf }
 0xff0   :  { %v3882_v57 = vmul.f32 0.35355338, %v3796_v54  ;;  %3908 = vmax.xlane.f32.xlu1 %v3907_v56  ;;  %v12162_v34 = vpop.f32.mrb[37].mxu1  ;;  %v3904_v59 = vsel %vm1142_vm5, %v3888_v52, -inf }
 0xff1   :  { %3905 = vmax.xlane.f32.xlu0 %v3904_v59  ;;  %v3891_v61 = vadd.f32 %v3883_v53, %v13949_v46 }
 0xff2   :  { %v3890_v62 = vadd.f32 %v3882_v57, %v13944_v40 }
 0xff3   :  { %v3913_v1 = vsel %vm1142_vm5, %v3891_v61, -inf }
 0xff4   :  { %3914 = vmax.xlane.f32.xlu1 %v3913_v1  ;;  %v3910_v2 = vsel %vm1142_vm5, %v3890_v62, -inf }
 0xff5   :  { %3911 = vmax.xlane.f32.xlu0 %v3910_v2 }
0x1005   :  { %4056 = vrot.lane.b32.xlu1 %v14189_v3, %s13610_s23 }
0x1009   :  { %4132 = vrot.lane.b32.xlu1 %v14213_v7, %s13610_s23 }
0x100b   :  { %3980 = vrot.lane.b32.xlu0 %v14191_v5, %s13610_s23  ;;  %v3894_v40 = vpop.xlane.xlu0 %3893 }
0x100c   :  { %v3916_v46 = vsub.f32 %v3884_v18, %v3894_v40 }
0x100d   :  { %4208 = vrot.lane.b32.xlu1 %v14209_v6, %s13610_s23 }
0x100e   :  { %v3924_v4 = vmul.f32 1.442695, %v3916_v46 }
0x100f   :  { %4284 = vrot.lane.b32.xlu0 %v14217_v8, %s13610_s23 }
0x1010   :  { %13284 = vpow2.f32 %v3924_v4 }
0x1011   :  { %4360 = vrot.lane.b32.xlu1 %v14223_v24, %s13610_s23 }
0x1012   :  { %v3897_v28 = vpop.xlane.xlu1 %3896 }
0x1013   :  { %v3917_v3 = vsub.f32 %v3885_v35, %v3897_v28  ;;  %v11253_v28 = vld [vmem:[%s15668_s11 + $0x20] sm:$0xff] }
0x1015   :  { %v3926_v12 = vmul.f32 1.442695, %v3917_v3 }
0x1017   :  { %13286 = vpow2.f32 %v3926_v12 }
0x101a   :  { %v14312_v7 = vpop.eup %13284 }
0x101b   :  { %v3940_v5 = vsel %vm1142_vm5, %v14312_v7, 0.0 }
0x1021   :  { %v14316_v6 = vpop.eup %13286 }
0x1022   :  { %v3943_v8 = vsel %vm1142_vm5, %v14316_v6, 0.0 }
0x102e   :  { %3941 = vadd.xlane.f32.xlu0 %v3940_v5 }
0x1035   :  { %3944 = vadd.xlane.f32.xlu1 %v3943_v8 }
0x1076   :  { %v3900_v24 = vpop.xlane.xlu0 %3899 }
0x1077   :  { %v3918_v14 = vsub.f32 %v3886_v13, %v3900_v24 }
0x1079   :  { %v3928_v15 = vmul.f32 1.442695, %v3918_v14 }
0x107a   :  { %v3903_v17 = vpop.xlane.xlu0 %3902 }
0x107b   :  { %13288 = vpow2.f32 %v3928_v15  ;;  %v3919_v16 = vsub.f32 %v14288_v44, %v3903_v17 }
0x107d   :  { %v3909_v27 = vpop.xlane.xlu1 %3908  ;;  %v3930_v35 = vmul.f32 1.442695, %v3919_v16 }
0x107e   :  { %v3921_v29 = vsub.f32 %v3889_v33, %v3909_v27  ;;  %v3906_v30 = vpop.xlane.xlu0 %3905  ;;  %v11254_v27 = vld [vmem:[%s15668_s11 + $0x28] sm:$0xff] }
0x107f   :  { %v3920_v31 = vsub.f32 %v3888_v52, %v3906_v30  ;;  %v11256_v30 = vld [vmem:[%s15668_s11 + $0x38] sm:$0xff] }
0x1080   :  { %v3934_v32 = vmul.f32 1.442695, %v3921_v29  ;;  %v11255_v29 = vld [vmem:[%s15668_s11 + $0x30] sm:$0xff] }
0x1081   :  { %v3932_v18 = vmul.f32 1.442695, %v3920_v31  ;;  %v3915_v21 = vpop.xlane.xlu1 %3914 }
0x1082   :  { %13290 = vpow2.f32 %v3934_v32  ;;  %v3923_v19 = vsub.f32 %v3891_v61, %v3915_v21  ;;  %v3912_v20 = vpop.xlane.xlu0 %3911 }
0x1083   :  { %13292 = vpow2.f32 %v3932_v18  ;;  %v3922_v26 = vsub.f32 %v3890_v62, %v3912_v20 }
0x1084   :  { %v3938_v36 = vmul.f32 1.442695, %v3923_v19 }
0x1085   :  { %v13289_v37 = vpop.eup %13288  ;;  %v3936_v39 = vmul.f32 1.442695, %v3922_v26  ;;  %v4057_v41 = vpop.permute.xlu1 %4056 }
0x1086   :  { %13294 = vpow2.f32 %v3938_v36  ;;  %12174 = vmatpush3.msra.mxu0 %v4057_v41  ;;  %v3981_v13 = vpop.permute.xlu0 %3980  ;;  %v3946_v11 = vsel %vm1142_vm5, %v13289_v37, 0.0 }
0x1087   :  { %13296 = vpow2.f32 %v3936_v39  ;;  %3947 = vadd.xlane.f32.xlu0 %v3946_v11  ;;  %12169 = vmatpush3.msra.mxu1 %v3981_v13 }
0x1088   :  { %13298 = vpow2.f32 %v3930_v35  ;;  %12178 = vmatprep.subr.mxu1 %v13604_v25  ;;  %12183 = vmatprep.subr.mxu0 %v13604_v25 }
0x1089   :  { %v4133_v50 = vpop.permute.xlu1 %4132 }
0x108a   :  { %v4285_v33 = vpop.permute.xlu0 %4284 }
0x108c   :  { %v14324_v42 = vpop.eup %13290 }
0x108d   :  { %v13293_v43 = vpop.eup %13292  ;;  %v3955_v60 = vsel %vm1142_vm5, %v14324_v42, 0.0  ;;  %v4209_v51 = vpop.permute.xlu1 %4208 }
0x108e   :  { %3956 = vadd.xlane.f32.xlu1 %v3955_v60  ;;  %v3952_v58 = vsel %vm1142_vm5, %v13293_v43, 0.0 }
0x108f   :  { %3953 = vadd.xlane.f32.xlu0 %v3952_v58 }
0x1090   :  { %v14329_v44 = vpop.eup %13294 }
0x1091   :  { %v13297_v45 = vpop.eup %13296  ;;  %v3961_v47 = vsel %vm1142_vm5, %v14329_v44, 0.0  ;;  %v4361_v53 = vpop.permute.xlu1 %4360 }
0x1092   :  { %v13299_v48 = vpop.eup %13298  ;;  %3962 = vadd.xlane.f32.xlu1 %v3961_v47  ;;  %v3958_v22 = vsel %vm1142_vm5, %v13297_v45, 0.0 }
0x1093   :  { %3959 = vadd.xlane.f32.xlu0 %v3958_v22  ;;  %v3949_v49 = vsel %vm1142_vm5, %v13299_v48, 0.0 }
0x1096   :  { %3950 = vadd.xlane.f32.xlu1 %v3949_v49 }
0x10a7   :  { %4512 = vrot.lane.b32.xlu1 %v14231_v10, %s13610_s23 }
0x10a9   :  { %4436 = vrot.lane.b32.xlu0 %v14219_v9, %s13610_s23 }
0x10bb   :  { %v3942_v52 = vpop.xlane.xlu0 %3941 }
0x10bc   :  { %13300 = vrcp.f32 %v3942_v52 }
0x10c2   :  { %v3945_v54 = vpop.xlane.xlu1 %3944 }
0x10c3   :  { %13302 = vrcp.f32 %v3945_v54 }
0x10c6   :  { %v13301_v55 = vpop.eup %13300 }
0x10c7   :  { %v3972_v56 = vmul.f32 %v13301_v55, %v14312_v7 }
0x10c9   :  { %12171 = vmatmul.mubr.msk.f32.vlgmr.msra.gmra.mrb[38].mxu1 %vm1142_vm5, %v3972_v56 }
0x10ca   :  { %12179 = vmatpush3.msra.mxu1 %v4133_v50  ;;  %12180 = vmatprep.mubr.msk.f32.mxu1 %vm13605_vm4, %v13604_v25 }
0x10cb   :  { %12188 = vmatprep.subr.mxu1 %v13604_v25 }
0x10cd   :  { %v13303_v9 = vpop.eup %13302 }
0x10ce   :  { %v3973_v10 = vmul.f32 %v13303_v9, %v14316_v6 }
0x10d0   :  { %12176 = vmatmul.mubr.msk.f32.vlgmr.msra.gmra.mrb[28].mxu0 %vm1142_vm5, %v3973_v10  ;;  %v11266_v10 = vld [vmem:[%s15669_s12 + $0x1] ss:$0 sm:$0xff] }
0x10d1   :  { %12184 = vmatpush3.msra.mxu0 %v4209_v51  ;;  %12185 = vmatprep.mubr.msk.f32.mxu0 %vm13605_vm4, %v13604_v25 }
0x10d2   :  { %12193 = vmatprep.subr.mxu0 %v13604_v25 }
0x1114   :  { %v3948_v57 = vpop.xlane.xlu0 %3947 }
0x1115   :  { %13304 = vrcp.f32 %v3948_v57 }
0x111b   :  { %v3957_v34 = vpop.xlane.xlu1 %3956 }
0x111c   :  { %v3954_v59 = vpop.xlane.xlu0 %3953 }
0x111d   :  { %13306 = vrcp.f32 %v3954_v59 }
0x111f   :  { %v13305_v61 = vpop.eup %13304  ;;  %v3963_v62 = vpop.xlane.xlu1 %3962 }
0x1120   :  { %v3960_v1 = vpop.xlane.xlu0 %3959  ;;  %v3974_v2 = vmul.f32 %v13305_v61, %v13289_v37 }
0x1121   :  { %13308 = vrcp.f32 %v3960_v1 }
0x1122   :  { %12181 = vmatmul.mubr.msk.f32.vlgmr.msra.gmra.mrb[40].mxu1 %vm1142_vm5, %v3974_v2 }
0x1123   :  { %12189 = vmatpush3.msra.mxu1 %v4285_v33  ;;  %v3951_v40 = vpop.xlane.xlu1 %3950  ;;  %12190 = vmatprep.mubr.msk.f32.mxu1 %vm13605_vm4, %v13604_v25 }
0x1124   :  { %13310 = vrcp.f32 %v3951_v40  ;;  %12198 = vmatprep.subr.mxu1 %v13604_v25  ;;  %v4437_v3 = vpop.permute.xlu0 %4436 }
0x1125   :  { %13312 = vrcp.f32 %v3957_v34 }
0x1126   :  { %13314 = vrcp.f32 %v3963_v62 }
0x1127   :  { %v13307_v46 = vpop.eup %13306  ;;  %v4513_v15 = vpop.permute.xlu1 %4512 }
0x1128   :  { %v3976_v4 = vmul.f32 %v13307_v46, %v13293_v43 }
0x112a   :  { %12191 = vmatmul.mubr.msk.f32.vlgmr.msra.gmra.mrb[42].mxu1 %vm1142_vm5, %v3976_v4 }
0x112b   :  { %v13309_v12 = vpop.eup %13308  ;;  %12199 = vmatpush3.msra.mxu1 %v4437_v3  ;;  %12200 = vmatprep.mubr.msk.f32.mxu1 %vm13605_vm4, %v13604_v25 }
0x112c   :  { %v3978_v7 = vmul.f32 %v13309_v12, %v13297_v45  ;;  %12208 = vmatprep.subr.mxu1 %v11253_v28 }
0x112e   :  { %v13311_v5 = vpop.eup %13310  ;;  %12201 = vmatmul.mubr.msk.f32.vlgmr.msra.gmra.mrb[44].mxu1 %vm1142_vm5, %v3978_v7 }
0x112f   :  { %v3975_v6 = vmul.f32 %v13311_v5, %v13299_v48  ;;  %12209 = vmatpush3.msra.mxu1 %v11253_v28  ;;  %v13313_v8 = vpop.eup %13312 }
0x1130   :  { %v3977_v24 = vmul.f32 %v13313_v8, %v14324_v42  ;;  %v13315_v14 = vpop.eup %13314  ;;  %12218 = vmatprep.subr.mxu1 %v11255_v29 }
0x1131   :  { %12186 = vmatmul.mubr.msk.f32.vlgmr.msra.gmra.mrb[30].mxu0 %vm1142_vm5, %v3975_v6  ;;  %v3979_v17 = vmul.f32 %v13315_v14, %v14329_v44 }
0x1132   :  { %12194 = vmatpush3.msra.mxu0 %v4361_v53  ;;  %12195 = vmatprep.mubr.msk.f32.mxu0 %vm13605_vm4, %v13604_v25 }
0x1133   :  { %12203 = vmatprep.subr.mxu0 %v13604_v25 }
0x1135   :  { %12196 = vmatmul.mubr.msk.f32.vlgmr.msra.gmra.mrb[32].mxu0 %vm1142_vm5, %v3977_v24 }
0x1136   :  { %12204 = vmatpush3.msra.mxu0 %v4513_v15  ;;  %12205 = vmatprep.mubr.msk.f32.mxu0 %vm13605_vm4, %v13604_v25  ;;  %v11272_v15 = vld [vmem:[%s15672_s15 + $0x28] sm:$0xff] }
0x1137   :  { %12213 = vmatprep.subr.mxu0 %v11254_v27 }
0x1139   :  { %12206 = vmatmul.mubr.msk.f32.vlgmr.msra.gmra.mrb[34].mxu0 %vm1142_vm5, %v3979_v17  ;;  %v11273_v17 = vld [vmem:[%s15672_s15 + $0x30] sm:$0xff] }
0x113a   :  { %12214 = vmatpush3.msra.mxu0 %v11254_v27 }
0x113b   :  { %12223 = vmatprep.subr.mxu0 %v11256_v30 }
0x119c   :  { %v4052_v31 = vpop.f32.mrb[38].mxu1 }
0x119d   :  { %v12172_v16 = vpop.f32.mrb[39].mxu1  ;;  %12210 = vmatprep.mubr.msk.f32.mxu1 %vm1142_vm5, %v4052_v31 }
0x11a3   :  { %v4128_v32 = vpop.f32.mrb[28].mxu0 }
0x11a4   :  { %v12177_v18 = vpop.f32.mrb[29].mxu0  ;;  %12211 = vmatmul.mubr.msk.f32.vlgmr.msra.gmra.mrb[46].mxu1 %vm1142_vm5, %v4128_v32 }
0x11a5   :  { %12219 = vmatpush3.msra.mxu1 %v11255_v29  ;;  %v11274_v29 = vld [vmem:[%s15672_s15 + $0x38] sm:$0xff] }
0x11f5   :  { %v4204_v21 = vpop.f32.mrb[40].mxu1 }
0x11f6   :  { %v12182_v19 = vpop.f32.mrb[41].mxu1  ;;  %12215 = vmatprep.mubr.msk.f32.mxu0 %vm1142_vm5, %v4204_v21 }
0x11fd   :  { %v4356_v20 = vpop.f32.mrb[42].mxu1 }
0x11fe   :  { %v12192_v26 = vpop.f32.mrb[43].mxu1  ;;  %12220 = vmatprep.mubr.msk.f32.mxu1 %vm1142_vm5, %v4356_v20 }
0x11ff   :  { %v11269_v26 = vld [vmem:[%s15670_s13 + $0x1] ss:$0 sm:$0xff] }
0x1201   :  { %v4508_v35 = vpop.f32.mrb[44].mxu1 }
0x1202   :  { %v12202_v36 = vpop.f32.mrb[45].mxu1 }
0x1203   :  { %v11270_v36 = vld [vmem:[%s15671_s14 + $0x1] ss:$0 sm:$0xff] }
0x1204   :  { %v4280_v37 = vpop.f32.mrb[30].mxu0 }
0x1205   :  { %v12187_v39 = vpop.f32.mrb[31].mxu0  ;;  %12216 = vmatmul.mubr.msk.f32.vlgmr.msra.gmra.mrb[36].mxu0 %vm1142_vm5, %v4280_v37 }
0x1206   :  { %12225 = vmatprep.mubr.msk.f32.mxu0 %vm1142_vm5, %v4508_v35  ;;  %12224 = vmatpush3.msra.mxu0 %v11256_v30  ;;  %v12768_v30 = vpack.c.bf16 %v11274_v29, %v11273_v17 }
0x1208   :  { %v4432_v41 = vpop.f32.mrb[32].mxu0 }
0x1209   :  { %v12197_v13 = vpop.f32.mrb[33].mxu0  ;;  %12221 = vmatmul.mubr.msk.f32.vlgmr.msra.gmra.mrb[48].mxu1 %vm1142_vm5, %v4432_v41 }
0x120c   :  { %v4584_v11 = vpop.f32.mrb[34].mxu0 }
0x120d   :  { %v12207_v42 = vpop.f32.mrb[35].mxu0  ;;  %12226 = vmatmul.mubr.msk.f32.vlgmr.msra.gmra.mrb[38].mxu0 %vm1142_vm5, %v4584_v11 }
0x1277   :  { %v12212_v43 = vpop.f32.mrb[46].mxu1 }
0x1278   :  { %v4665_v60 = vpop.f32.mrb[47].mxu1  ;;  %v4924_v44 = vsel %vm990_vm3, %v12212_v43, 0.0  ;;  %v11279_v43 = vld [vmem:[%s15674_s17 + $0x80] sm:$0xff] }
0x1279   :  { %v4917_v48 = vsel %vm990_vm3, %v4665_v60, 0.0  ;;  %v11280_v60 = vld [vmem:[%s15674_s17 + $0x88] sm:$0xff] }
0x12d8   :  { %v12217_v58 = vpop.f32.mrb[36].mxu0 }
0x12d9   :  { %v4925_v45 = vsel %vm990_vm3, %v12217_v58, 0.0  ;;  %v4746_v47 = vpop.f32.mrb[37].mxu0  ;;  %v12772_v58 = vpack.c.bf16 %v11280_v60, %v11279_v43 }
0x12da   :  { %v4926_v22 = vadd.f32 %v4925_v45, %v4924_v44  ;;  %v4918_v49 = vsel %vm990_vm3, %v4746_v47, 0.0  ;;  %v11281_v44 = vld [vmem:[%s15674_s17 + $0x90] sm:$0xff]  ;;  %v11282_v45 = vld [vmem:[%s15674_s17 + $0x98] sm:$0xff] }
0x12db   :  { %v4919_v50 = vadd.f32 %v4918_v49, %v4917_v48  ;;  %12773 = vmatprep.subr.bf16.mxu0 %v12772_v58  ;;  %v12776_v47 = vpack.c.bf16 %v11282_v45, %v11281_v44  ;;  %v11283_v48 = vld [vmem:[%s15674_s17 + $0xa0] sm:$0xff] }
0x12dc   :  { %v12222_v33 = vpop.f32.mrb[48].mxu1  ;;  %12775 = vmatpush3.bf16.msra.mxu0 %v12772_v58 }
0x12dd   :  { %v4927_v51 = vsel %vm990_vm3, %v12222_v33, 0.0  ;;  %v4827_v52 = vpop.f32.mrb[49].mxu1  ;;  %12777 = vmatprep.subr.bf16.mxu0 %v12776_v47  ;;  %v11286_v33 = vld [vmem:[%s15674_s17 + $0xb8] sm:$0xff] }
0x12de   :  { %v4928_v53 = vadd.f32 %v4927_v51, %v4926_v22  ;;  %v4920_v54 = vsel %vm990_vm3, %v4827_v52, 0.0  ;;  %v11284_v22 = vld [vmem:[%s15674_s17 + $0xa8] sm:$0xff]  ;;  %v11287_v52 = vld [vmem:[%s15674_s17 + $0xc0] sm:$0xff] }
0x12df   :  { %v4921_v55 = vadd.f32 %v4920_v54, %v4919_v50  ;;  %v12780_v49 = vpack.c.bf16 %v11284_v22, %v11283_v48  ;;  %v11285_v50 = vld [vmem:[%s15674_s17 + $0xb0] sm:$0xff] }
0x12e0   :  { %v12227_v56 = vpop.f32.mrb[38].mxu0  ;;  %12779 = vmatpush3.bf16.msra.mxu0 %v12776_v47  ;;  %v12784_v51 = vpack.c.bf16 %v11286_v33, %v11285_v50 }
0x12e1   :  { %v4929_v9 = vsel %vm990_vm3, %v12227_v56, 0.0  ;;  %v4908_v57 = vpop.f32.mrb[39].mxu0  ;;  %12781 = vmatprep.subr.bf16.mxu0 %v12780_v49  ;;  %v11290_v56 = vld [vmem:[%s15674_s17 + $0xd8] sm:$0xff] }
0x12e2   :  { %v4930_v34 = vadd.f32 %v4929_v9, %v4928_v53  ;;  %v4922_v59 = vsel %vm990_vm3, %v4908_v57, 0.0  ;;  %v11288_v53 = vld [vmem:[%s15674_s17 + $0xc8] sm:$0xff] }
0x12e3   :  { %v4923_v61 = vadd.f32 %v4922_v59, %v4921_v55  ;;  %v12788_v54 = vpack.c.bf16 %v11288_v53, %v11287_v52  ;;  %v11289_v55 = vld [vmem:[%s15674_s17 + $0xd0] sm:$0xff]  ;;  %v11292_v57 = vld [vmem:[%s15674_s17 + $0xe8] sm:$0xff] }
0x12e4   :  { %v4940_v62 = vadd.f32 %v11266_v10, %v4930_v34  ;;  %12783 = vmatpush3.bf16.msra.mxu0 %v12780_v49  ;;  %v12792_v9 = vpack.c.bf16 %v11290_v56, %v11289_v55  ;;  %v11293_v59 = vld [vmem:[%s15674_s17 + $0xf0] sm:$0xff] }
0x12e5   :  { %v4939_v1 = vadd.f32 %v11266_v10, %v4923_v61  ;;  %12785 = vmatprep.subr.bf16.mxu0 %v12784_v51  ;;  %v11291_v10 = vld [vmem:[%s15674_s17 + $0xe0] sm:$0xff]  ;;  %v11294_v61 = vld [vmem:[%s15674_s17 + $0xf8] sm:$0xff] }
0x12e6   :  { %v4942_v2 = vadd.f32 %v4940_v62, %v14178_v0  ;;  %v12796_v34 = vpack.c.bf16 %v11292_v57, %v11291_v10  ;;  %v12800_v62 = vpack.c.bf16 %v11294_v61, %v11293_v59 }
0x12e7   :  { %v4941_v40 = vadd.f32 %v4939_v1, %v14176_v63  ;;  %v11271_v63 = vld [vmem:[%s15672_s15 + $0x20] sm:$0xff] }
0x12e8   :  { %v4950_v46 = vsel %vm990_vm3, %v4942_v2, 0.0  ;;  %v12764_v27 = vpack.c.bf16 %v11272_v15, %v11271_v63  ;;  %12787 = vmatpush3.bf16.msra.mxu0 %v12784_v51  ;;  %v11276_v1 = vld [vmem:[%s15673_s16 + $0x1] ss:$0 sm:$0xff] }
0x12e9   :  { %4951 = vadd.xlane.f32.xlu1 %v4950_v46  ;;  %v4947_v4 = vsel %vm990_vm3, %v4941_v40, 0.0  ;;  %12789 = vmatprep.subr.bf16.mxu0 %v12788_v54 }
0x12ea   :  { %4948 = vadd.xlane.f32.xlu0 %v4947_v4  ;;  %12765 = vmatprep.subr.bf16.mxu1 %v12764_v27 }
0x12eb   :  { %12767 = vmatpush3.bf16.msra.mxu1 %v12764_v27 }
0x12ec   :  { %12769 = vmatprep.subr.bf16.mxu1 %v12768_v30  ;;  %12791 = vmatpush3.bf16.msra.mxu0 %v12788_v54 }
0x12ed   :  { %12793 = vmatprep.subr.bf16.mxu0 %v12792_v9 }
0x12ef   :  { %12771 = vmatpush3.bf16.msra.mxu1 %v12768_v30 }
0x12f0   :  { %12795 = vmatpush3.bf16.msra.mxu0 %v12792_v9 }
0x12f1   :  { %12797 = vmatprep.subr.bf16.mxu0 %v12796_v34 }
0x12f4   :  { %12799 = vmatpush3.bf16.msra.mxu0 %v12796_v34  ;;  %v11296_v34 = vld [vmem:[%s15675_s18 + $0x1] ss:$0 sm:$0xff] }
0x12f5   :  { %12801 = vmatprep.subr.bf16.mxu0 %v12800_v62 }
0x12f8   :  { %12803 = vmatpush3.bf16.msra.mxu0 %v12800_v62 }
0x1376   :  { %v4952_v28 = vpop.xlane.xlu1 %4951 }
0x1377   :  { %v4954_v3 = vmul.f32 0.03125, %v4952_v28  ;;  %v4949_v12 = vpop.xlane.xlu0 %4948 }
0x1378   :  { %v4953_v7 = vmul.f32 0.03125, %v4949_v12 }
0x1379   :  { %v4956_v5 = vsub.f32 %v4942_v2, %v4954_v3 }
0x137a   :  { %v4955_v6 = vsub.f32 %v4941_v40, %v4953_v7 }
0x137b   :  { %v4958_v14 = vmul.f32 %v4956_v5, %v4956_v5 }
0x137c   :  { %v4957_v8 = vmul.f32 %v4955_v6, %v4955_v6 }
0x137d   :  { %v4962_v0 = vsel %vm990_vm3, %v4958_v14, 0.0 }
0x137e   :  { %v4959_v24 = vsel %vm990_vm3, %v4957_v8, 0.0 }
0x137f   :  { %4960 = vadd.xlane.f32.xlu0 %v4959_v24 }
0x1383   :  { %4963 = vadd.xlane.f32.xlu0 %v4962_v0 }
0x140c   :  { %v4961_v31 = vpop.xlane.xlu0 %4960 }
0x140d   :  { %v4965_v16 = vmul.f32 0.03125, %v4961_v31 }
0x140f   :  { %v4967_v32 = vadd.f32 1e-12, %v4965_v16 }
0x1410   :  { %v4964_v18 = vpop.xlane.xlu0 %4963 }
0x1411   :  { %13316 = vrsqrt.f32 %v4967_v32  ;;  %v4966_v21 = vmul.f32 0.03125, %v4964_v18 }
0x1413   :  { %v4968_v19 = vadd.f32 1e-12, %v4966_v21 }
0x1415   :  { %13318 = vrsqrt.f32 %v4968_v19 }
0x141b   :  { %v13317_v20 = vpop.eup %13316 }
0x141c   :  { %v4971_v35 = vmul.f32 %v13317_v20, %v4955_v6 }
0x141e   :  { %v4979_v37 = vmul.f32 %v11269_v26, %v4971_v35 }
0x141f   :  { %v13319_v39 = vpop.eup %13318 }
0x1420   :  { %v4972_v41 = vmul.f32 %v13319_v39, %v4956_v5  ;;  %v14422_v13 = vadd.f32 %v11270_v36, %v4979_v37 }
0x1422   :  { %v4980_v11 = vmul.f32 %v11269_v26, %v4972_v41  ;;  %12236 = vmatprep.mubr.msk.f32.mxu1 %vm990_vm3, %v14422_v13 }
0x1424   :  { %v14426_v42 = vadd.f32 %v11270_v36, %v4980_v11 }
0x1426   :  { %12237 = vmatmul.mubr.msk.f32.vlgmr.msra.gmra.mrb[50].mxu1 %vm990_vm3, %v14426_v42 }
0x14f9   :  { %v12238_v2 = vpop.f32.mrb[50].mxu1 }
0x14fa   :  { %v5080_v40 = vadd.f32 %v12238_v2, %v11276_v1  ;;  %v5074_v46 = vpop.f32.mrb[51].mxu1 }
0x14fb   :  { %v5075_v4 = vadd.f32 %v11276_v1, %v5074_v46 }
0x14fc   :  { %v5086_v28 = vmul.f32 0.70710677, %v5080_v40  ;;  %v5084_v9 = vmul.f32 0.5, %v5080_v40 }
0x14fd   :  { %v5085_v3 = vmul.f32 0.70710677, %v5075_v4  ;;  %v5083_v55 = vmul.f32 0.5, %v5075_v4 }
0x14fe   :  { %v5088_v12 = vand.u32 2147483647, %v5086_v28  ;;  %vm5128_vm8 = vcmp.lt.f32.partialorder %v5086_v28, 0.0 }
0x14ff   :  { %v5087_v7 = vand.u32 2147483647, %v5085_v3  ;;  %vm5127_vm9 = vcmp.lt.f32.partialorder %v5085_v3, 0.0 }
0x1500   :  { %v5090_v5 = vmul.f32 0.3275911, %v5088_v12  ;;  %v5116_v14 = vsub.f32 0.0, %v5088_v12 }
0x1501   :  { %v5089_v6 = vmul.f32 0.3275911, %v5087_v7  ;;  %v5115_v0 = vsub.f32 0.0, %v5087_v7 }
0x1502   :  { %v5092_v8 = vadd.f32 1.0, %v5090_v5  ;;  %v5118_v15 = vmul.f32 %v5116_v14, %v5088_v12 }
0x1503   :  { %v5091_v24 = vadd.f32 1.0, %v5089_v6  ;;  %v5117_v29 = vmul.f32 %v5115_v0, %v5087_v7  ;;  %v11301_v0 = vld [vmem:[%s15694_s2] ss:$0 sm:$0xff] }
0x1504   :  { %13320 = vrcp.f32 %v5092_v8  ;;  %v5121_v16 = vmul.f32 1.442695, %v5118_v15  ;;  %vm5298_vm10 = vcmp.eq.s32.totalorder %v13940_v38, %v11301_v0  ;;  %v11302_v15 = vld [vmem:[%s15694_s2 + $0x1] ss:$0 sm:$0xff] }
0x1505   :  { %13322 = vrcp.f32 %v5091_v24  ;;  %v5119_v21 = vmul.f32 1.442695, %v5117_v29  ;;  %vm5300_vm12 = vcmp.eq.s32.totalorder %v13940_v38, %v11302_v15 }
0x1506   :  { %13324 = vpow2.f32 %v5121_v16 }
0x1507   :  { %13326 = vpow2.f32 %v5119_v21 }
0x150e   :  { %v13321_v63 = vpop.eup %13320 }
0x150f   :  { %v13323_v17 = vpop.eup %13322  ;;  %v5098_v27 = vmul.f32 1.0614054, %v13321_v63 }
0x1510   :  { %v5097_v30 = vmul.f32 1.0614054, %v13323_v17  ;;  %v13325_v44 = vpop.eup %13324 }
0x1511   :  { %v5100_v31 = vadd.f32 -1.4531521, %v5098_v27  ;;  %v13327_v47 = vpop.eup %13326 }
0x1512   :  { %v5099_v32 = vadd.f32 -1.4531521, %v5097_v30  ;;  %v5304_v30 = vsel %vm5300_vm12, 1.0, %v13604_v25 }
0x1513   :  { %v5102_v18 = vmul.f32 %v13321_v63, %v5100_v31  ;;  %v5474_v16 = vsel %vm1142_vm5, %v5304_v30, 0.0 }
0x1514   :  { %v5101_v19 = vmul.f32 %v13323_v17, %v5099_v32 }
0x1515   :  { %v5104_v20 = vadd.f32 1.4214138, %v5102_v18 }
0x1516   :  { %v5103_v26 = vadd.f32 1.4214138, %v5101_v19 }
0x1517   :  { %v5106_v35 = vmul.f32 %v13321_v63, %v5104_v20 }
0x1518   :  { %v5105_v36 = vmul.f32 %v13323_v17, %v5103_v26 }
0x1519   :  { %v5108_v37 = vadd.f32 -0.28449672, %v5106_v35 }
0x151a   :  { %v5107_v39 = vadd.f32 -0.28449672, %v5105_v36 }
0x151b   :  { %v5110_v41 = vmul.f32 %v13321_v63, %v5108_v37 }
0x151c   :  { %v5109_v11 = vmul.f32 %v13323_v17, %v5107_v39 }
0x151d   :  { %v5112_v43 = vadd.f32 0.2548296, %v5110_v41  ;;  %v11300_v41 = vld [vmem:[%s15677_s20 + $0x1] ss:$0 sm:$0xff] }
0x151e   :  { %v5111_v60 = vadd.f32 0.2548296, %v5109_v11 }
0x151f   :  { %v5114_v58 = vmul.f32 %v13321_v63, %v5112_v43  ;;  %v5302_v63 = vsel %vm5298_vm10, 1.0, %v13604_v25  ;;  %vm10836_vm10 = vcmask 1041409  }
0x1520   :  { %v5113_v45 = vmul.f32 %v13323_v17, %v5111_v60  ;;  %12276 = vmatprep.mubr.msk.f32.mxu1 %vm1142_vm5, %v5302_v63  ;;  %v5468_v27 = vsel %vm1142_vm5, %v5302_v63, 0.0  ;;  %v11307_v60 = vld [vmem:[%s15666_s9 + $0x40] sm:$0xff] }
0x1521   :  { %v5124_v48 = vmul.f32 %v13325_v44, %v5114_v58  ;;  %v11308_v58 = vld [vmem:[%s15666_s9 + $0x48] sm:$0xff] }
0x1522   :  { %v5123_v22 = vmul.f32 %v13327_v47, %v5113_v45  ;;  %v12804_v47 = vpack.c.bf16 %v11308_v58, %v11307_v60 }
0x1523   :  { %v5126_v49 = vsub.f32 1.0, %v5124_v48  ;;  %v11309_v48 = vld [vmem:[%s15666_s9 + $0x50] sm:$0xff] }
0x1524   :  { %v5125_v50 = vsub.f32 1.0, %v5123_v22  ;;  %v11310_v22 = vld [vmem:[%s15666_s9 + $0x58] sm:$0xff] }
0x1525   :  { %v5130_v33 = vsub.f32 0.0, %v5126_v49 }
0x1526   :  { %v5129_v51 = vsub.f32 0.0, %v5125_v50 }
0x1527   :  { %v5132_v52 = vsel %vm5128_vm8, %v5130_v33, %v5126_v49  ;;  %v12808_v49 = vpack.c.bf16 %v11310_v22, %v11309_v48 }
0x1528   :  { %v5134_v53 = vadd.f32 1.0, %v5132_v52  ;;  %v5131_v54 = vsel %vm5127_vm9, %v5129_v51, %v5125_v50  ;;  %vm10813_vm9 = vcmask 260096  }
0x1529   :  { %v5133_v56 = vadd.f32 1.0, %v5131_v54 }
0x152a   :  { %v5136_v57 = vmul.f32 %v5134_v53, %v5084_v9 }
0x152b   :  { %v5135_v10 = vmul.f32 %v5133_v56, %v5083_v55 }
0x152d   :  { %12271 = vmatprep.mubr.f32.mxu0 %v5135_v10 }
0x152e   :  { %12272 = vmatmul.mubr.f32.vlgmr.msra.gmra.mrb[40].mxu0 %v5136_v57 }
0x1601   :  { %v12273_v59 = vpop.f32.mrb[40].mxu0 }
0x1602   :  { %v5234_v61 = vadd.f32 %v12273_v59, %v11296_v34  ;;  %v5228_v62 = vpop.f32.mrb[41].mxu0 }
0x1603   :  { %v5229_v1 = vadd.f32 %v11296_v34, %v5228_v62 }
0x1604   :  { %v5238_v2 = vadd.f32 %v5234_v61, %v14426_v42 }
0x1605   :  { %v5237_v46 = vadd.f32 %v5229_v1, %v14422_v13  ;;  %v5287_v13 = vadd.s32 8, %v13940_v38 }
0x1606   :  { %v5246_v4 = vsel %vm990_vm3, %v5238_v2, 0.0 }
0x1607   :  { %5247 = vadd.xlane.f32.xlu1 %v5246_v4  ;;  %v5243_v40 = vsel %vm990_vm3, %v5237_v46, 0.0  ;;  %vm5299_vm11 = vcmp.eq.s32.totalorder %v5287_v13, %v11301_v0  ;;  %vm5301_vm13 = vcmp.eq.s32.totalorder %v5287_v13, %v11302_v15 }
0x1608   :  { %5244 = vadd.xlane.f32.xlu0 %v5243_v40  ;;  %v5303_v17 = vsel %vm5299_vm11, 1.0, %v13604_v25  ;;  %v5305_v31 = vsel %vm5301_vm13, 1.0, %v13604_v25  ;;  %v11299_v25 = vld [vmem:[%s15676_s19 + $0x1] ss:$0 sm:$0xff]  ;;  %vm10839_vm11 = vcmask 254976  }
0x1609   :  { %v5471_v29 = vsel %vm1142_vm5, %v5303_v17, 0.0  ;;  %v5477_v32 = vsel %vm1142_vm5, %v5305_v31, 0.0 }
0x1694   :  { %v5248_v28 = vpop.xlane.xlu1 %5247 }
0x1695   :  { %v5250_v3 = vmul.f32 0.03125, %v5248_v28  ;;  %v5245_v12 = vpop.xlane.xlu0 %5244  ;;  %v11312_v28 = vld [vmem:[%s15667_s10 + $0x2] ss:$0 sm:$0xff] }
0x1696   :  { %v5249_v7 = vmul.f32 0.03125, %v5245_v12 }
0x1697   :  { %v5252_v5 = vsub.f32 %v5238_v2, %v5250_v3 }
0x1698   :  { %v5251_v6 = vsub.f32 %v5237_v46, %v5249_v7 }
0x1699   :  { %v5254_v8 = vmul.f32 %v5252_v5, %v5252_v5 }
0x169a   :  { %v5253_v24 = vmul.f32 %v5251_v6, %v5251_v6 }
0x169b   :  { %v5258_v14 = vsel %vm990_vm3, %v5254_v8, 0.0 }
0x169c   :  { %5259 = vadd.xlane.f32.xlu1 %v5258_v14  ;;  %v5255_v42 = vsel %vm990_vm3, %v5253_v24, 0.0 }
0x169d   :  { %5256 = vadd.xlane.f32.xlu0 %v5255_v42 }
0x16a0   :  { %5472 = vadd.xlane.f32.xlu1 %v5471_v29 }
0x16a1   :  { %5469 = vadd.xlane.f32.xlu0 %v5468_v27 }
0x16a4   :  { %5478 = vadd.xlane.f32.xlu1 %v5477_v32 }
0x16a5   :  { %5475 = vadd.xlane.f32.xlu0 %v5474_v16 }
0x1729   :  { %v5260_v38 = vpop.xlane.xlu1 %5259 }
0x172a   :  { %v5262_v18 = vmul.f32 0.03125, %v5260_v38  ;;  %v5257_v21 = vpop.xlane.xlu0 %5256 }
0x172b   :  { %v5261_v19 = vmul.f32 0.03125, %v5257_v21 }
0x172c   :  { %v5264_v20 = vadd.f32 1e-12, %v5262_v18 }
0x172d   :  { %v5263_v26 = vadd.f32 1e-12, %v5261_v19  ;;  %v5473_v33 = vpop.xlane.xlu1 %5472 }
0x172e   :  { %13328 = vrsqrt.f32 %v5264_v20  ;;  %v5470_v50 = vpop.xlane.xlu0 %5469  ;;  %v5481_v52 = vadd.f32 1e-06, %v5473_v33 }
0x172f   :  { %13330 = vrsqrt.f32 %v5263_v26  ;;  %v5480_v51 = vadd.f32 1e-06, %v5470_v50 }
0x1731   :  { %v5479_v54 = vpop.xlane.xlu1 %5478  ;;  %13332 = vrcp.f32 %v5480_v51 }
0x1732   :  { %v5476_v53 = vpop.xlane.xlu0 %5475  ;;  %13334 = vrcp.f32 %v5481_v52  ;;  %v5483_v56 = vadd.f32 1e-06, %v5479_v54 }
0x1733   :  { %v5482_v55 = vadd.f32 1e-06, %v5476_v53 }
0x1735   :  { %13336 = vrcp.f32 %v5482_v55 }
0x1736   :  { %13338 = vrcp.f32 %v5483_v56 }
0x1738   :  { %v13329_v35 = vpop.eup %13328 }
0x1739   :  { %v13331_v36 = vpop.eup %13330  ;;  %v5268_v37 = vmul.f32 %v13329_v35, %v5252_v5 }
0x173a   :  { %v5267_v39 = vmul.f32 %v13331_v36, %v5251_v6 }
0x173b   :  { %v5276_v43 = vmul.f32 %v11299_v25, %v5268_v37  ;;  %v13333_v9 = vpop.eup %13332 }
0x173c   :  { %v5275_v11 = vmul.f32 %v11299_v25, %v5267_v39  ;;  %v13335_v10 = vpop.eup %13334 }
0x173d   :  { %v5284_v45 = vadd.f32 %v11300_v41, %v5276_v43 }
0x173e   :  { %v5283_v44 = vadd.f32 %v11300_v41, %v5275_v11 }
0x173f   :  { %v13337_v61 = vpop.eup %13336 }
0x1740   :  { %12274 = vmatprep.subr.mxu1 %v5283_v44  ;;  %v13339_v1 = vpop.eup %13338 }
0x1741   :  { %12275 = vmatpush3.msra.mxu1 %v5283_v44 }
0x1742   :  { %12277 = vmatmul.mubr.msk.f32.vlgmr.msra.gmra.mrb[52].mxu1 %vm1142_vm5, %v5303_v17  ;;  %12279 = vmatprep.subr.mxu1 %v5284_v45 }
0x1743   :  { %12280 = vmatpush3.msra.mxu1 %v5284_v45  ;;  %12281 = vmatprep.mubr.msk.f32.mxu1 %vm1142_vm5, %v5304_v30 }
0x1744   :  { %12805 = vmatprep.subr.bf16.mxu1 %v12804_v47 }
0x1746   :  { %12282 = vmatmul.mubr.msk.f32.vlgmr.msra.gmra.mrb[54].mxu1 %vm1142_vm5, %v5305_v31 }
0x1747   :  { %12807 = vmatpush3.bf16.msra.mxu1 %v12804_v47 }
0x1748   :  { %12809 = vmatprep.subr.bf16.mxu1 %v12808_v49 }
0x174b   :  { %12811 = vmatpush3.bf16.msra.mxu1 %v12808_v49 }
0x1815   :  { %v12278_v57 = vpop.f32.mrb[52].mxu1 }
0x1816   :  { %v5378_v34 = vpop.f32.mrb[53].mxu1  ;;  %v14531_v62 = vmul.f32 %v13335_v10, %v12278_v57 }
0x1817   :  { %v14529_v59 = vmul.f32 %v13333_v9, %v5378_v34 }
0x1819   :  { %v12283_v2 = vpop.f32.mrb[54].mxu1  ;;  %12292 = vmatprep.mubr.msk.f32.mxu1 %vm990_vm3, %v14529_v59 }
0x181a   :  { %v5459_v46 = vpop.f32.mrb[55].mxu1  ;;  %12293 = vmatmul.mubr.msk.f32.vlgmr.msra.gmra.mrb[56].mxu1 %vm990_vm3, %v14531_v62  ;;  %v14539_v40 = vmul.f32 %v13339_v1, %v12283_v2 }
0x181b   :  { %v14537_v4 = vmul.f32 %v13337_v61, %v5459_v46 }
0x181d   :  { %12295 = vmatprep.mubr.msk.f32.mxu1 %vm990_vm3, %v14537_v4 }
0x181e   :  { %12296 = vmatmul.mubr.msk.f32.gmra.mrb[58].mxu1 %vm990_vm3, %v14539_v40 }
0x18ed   :  { %v12294_v3 = vpop.f32.mrb[56].mxu1 }
0x18ee   :  { %v14548_v12 = vadd.f32 %v12294_v3, %v11312_v28  ;;  %v5585_v7 = vpop.f32.mrb[57].mxu1 }
0x18ef   :  { %v5586_v5 = vadd.f32 %v11312_v28, %v5585_v7 }
0x18f0   :  { %5610 = vrot.lane.b32.xlu1 %v14548_v12, %s13606_s8 }
0x18f1   :  { %5608 = vrot.lane.b32.xlu0 %v5586_v5, %s13606_s8  ;;  %v12297_v6 = vpop.f32.mrb[58].mxu1  ;;  %12302 = vmatprep.mubr.msk.f32.mxu1 %vm1142_vm5, %v5586_v5  ;;  %v13072_v42 = vpack.i.bf16 %v14548_v12, %v5586_v5 }
0x18f2   :  { %v5601_v8 = vadd.f32 %v12297_v6, %v11312_v28  ;;  %v5595_v24 = vpop.f32.mrb[59].mxu1 }
0x18f3   :  { %v5596_v14 = vadd.f32 %v11312_v28, %v5595_v24 }
0x18f4   :  { %5614 = vrot.lane.b32.xlu1 %v5601_v8, %s13606_s8 }
0x18f5   :  { %5616 = vrot.lane.b32.xlu0 %v5586_v5, %s13607_s30  ;;  %v13077_v13 = vpack.i.bf16 %v5601_v8, %v5596_v14 }
0x18f8   :  { %5612 = vrot.lane.b32.xlu1 %v5596_v14, %s13606_s8 }
0x18f9   :  { %5620 = vrot.lane.b32.xlu0 %v5596_v14, %s13607_s30 }
0x18fc   :  { %5618 = vrot.lane.b32.xlu1 %v14548_v12, %s13607_s30 }
0x18fd   :  { %5624 = vrot.lane.b32.xlu0 %v5586_v5, %s13608_s5 }
0x1900   :  { %5622 = vrot.lane.b32.xlu1 %v5601_v8, %s13607_s30 }
0x1901   :  { %5628 = vrot.lane.b32.xlu0 %v5596_v14, %s13608_s5 }
0x1904   :  { %5626 = vrot.lane.b32.xlu1 %v14548_v12, %s13608_s5 }
0x1905   :  { %13073 = vrot.lane.b32.xlu0 %v13072_v42, %s13609_s22 }
0x1908   :  { %5630 = vrot.lane.b32.xlu1 %v5601_v8, %s13608_s5 }
0x190c   :  { %13078 = vrot.lane.b32.xlu1 %v13077_v13, %s13609_s22 }
0x1962   :  { %v5611_v0 = vpop.permute.xlu1 %5610 }
0x1963   :  { %v5609_v63 = vpop.permute.xlu0 %5608 }
0x1964   :  { %v13082_v15 = vpack.i.bf16 %v5611_v0, %v5609_v63 }
0x1966   :  { %v14569_v17 = vpop.permute.xlu1 %5614  ;;  %13083 = vrot.lane.b32.xlu0 %v13082_v15, %s13609_s22 }
0x1967   :  { %v5617_v27 = vpop.permute.xlu0 %5616 }
0x1968   :  { %12330 = vmatprep.mubr.msk.f32.mxu0 %vm1142_vm5, %v5617_v27 }
0x196a   :  { %v5613_v29 = vpop.permute.xlu1 %5612 }
0x196b   :  { %v13087_v30 = vpack.i.bf16 %v14569_v17, %v5613_v29  ;;  %v14574_v31 = vpop.permute.xlu0 %5620 }
0x196d   :  { %13088 = vrot.lane.b32.xlu1 %v13087_v30, %s13609_s22 }
0x196e   :  { %v14577_v16 = vpop.permute.xlu1 %5618 }
0x196f   :  { %v14580_v32 = vpack.i.bf16 %v14577_v16, %v5617_v27  ;;  %v14582_v38 = vpop.permute.xlu0 %5624  ;;  %v13611_v27 = vmov -10000.0  }
0x1971   :  { %13093 = vrot.lane.b32.xlu0 %v14580_v32, %s13609_s22 }
0x1972   :  { %v14586_v18 = vpop.permute.xlu1 %5622 }
0x1973   :  { %v14590_v21 = vpack.i.bf16 %v14586_v18, %v14574_v31  ;;  %v14592_v19 = vpop.permute.xlu0 %5628 }
0x1975   :  { %13098 = vrot.lane.b32.xlu1 %v14590_v21, %s13609_s22 }
0x1976   :  { %v14596_v20 = vpop.permute.xlu1 %5626 }
0x1977   :  { %v14600_v26 = vpack.i.bf16 %v14596_v20, %v14582_v38  ;;  %v13074_v35 = vpop.permute.xlu0 %13073 }
0x1978   :  { %v13076_v36 = vunpack.i.h.bf16 %v13074_v35  ;;  %v13075_v25 = vunpack.i.l.bf16 %v13074_v35 }
0x1979   :  { %13103 = vrot.lane.b32.xlu0 %v14600_v26, %s13609_s22 }
0x197a   :  { %v12812_v39 = vpack.c.bf16 %v13076_v36, %v13075_v25  ;;  %v14610_v41 = vpop.permute.xlu1 %5630 }
0x197b   :  { %v14614_v11 = vpack.i.bf16 %v14610_v41, %v14592_v19 }
0x197c   :  { %12814 = vmatprep.subr.msk.bf16.mxu1 %vm14606_vm14, %v12812_v39 }
0x197d   :  { %13113 = vrot.lane.b32.xlu0 %v13072_v42, %s13610_s23  ;;  %13108 = vrot.lane.b32.xlu1 %v14614_v11, %s13609_s22 }
0x197e   :  { %12817 = vmatpush3.bf16.xpose.msk.msra.mxu1 %vm14606_vm14, %v12812_v39  ;;  %v13079_v43 = vpop.permute.xlu1 %13078 }
0x197f   :  { %v13081_v60 = vunpack.i.h.bf16 %v13079_v43  ;;  %v13080_v58 = vunpack.i.l.bf16 %v13079_v43 }
0x1981   :  { %v12818_v44 = vpack.c.bf16 %v13081_v60, %v13080_v58  ;;  %13118 = vrot.lane.b32.xlu1 %v13077_v13, %s13610_s23 }
0x1983   :  { %12820 = vmatprep.subr.msk.bf16.mxu1 %vm14606_vm14, %v12818_v44 }
0x1985   :  { %12303 = vmatmul.mubr.msk.f32.vlgmr.msra.gmra.mrb[60].mxu1 %vm1142_vm5, %v14548_v12  ;;  %13123 = vrot.lane.b32.xlu1 %v13082_v15, %s13610_s23 }
0x1986   :  { %12823 = vmatpush3.bf16.xpose.msk.msra.mxu1 %vm14606_vm14, %v12818_v44  ;;  %12309 = vmatprep.mubr.msk.f32.mxu1 %vm1142_vm5, %v5596_v14 }
0x1989   :  { %13128 = vrot.lane.b32.xlu1 %v13087_v30, %s13610_s23 }
0x198d   :  { %12310 = vmatmul.mubr.msk.f32.vlgmr.msra.gmra.mrb[62].mxu1 %vm1142_vm5, %v5601_v8 }
0x198e   :  { %12316 = vmatprep.mubr.msk.f32.mxu1 %vm1142_vm5, %v5609_v63 }
0x19d8   :  { %v13084_v45 = vpop.permute.xlu0 %13083 }
0x19d9   :  { %v13086_v47 = vunpack.i.h.bf16 %v13084_v45  ;;  %v13085_v48 = vunpack.i.l.bf16 %v13084_v45 }
0x19db   :  { %v12824_v22 = vpack.c.bf16 %v13086_v47, %v13085_v48 }
0x19dd   :  { %12826 = vmatprep.subr.msk.bf16.mxu1 %vm14606_vm14, %v12824_v22 }
0x19de   :  { %12829 = vmatpush3.bf16.xpose.msk.msra.mxu1 %vm14606_vm14, %v12824_v22 }
0x19df   :  { %v13089_v49 = vpop.permute.xlu1 %13088 }
0x19e0   :  { %v13091_v50 = vunpack.i.h.bf16 %v13089_v49  ;;  %v13090_v33 = vunpack.i.l.bf16 %v13089_v49 }
0x19e2   :  { %v12830_v51 = vpack.c.bf16 %v13091_v50, %v13090_v33 }
0x19e3   :  { %v13094_v52 = vpop.permute.xlu0 %13093 }
0x19e4   :  { %v13096_v53 = vunpack.i.h.bf16 %v13094_v52  ;;  %v13095_v54 = vunpack.i.l.bf16 %v13094_v52  ;;  %12832 = vmatprep.subr.msk.bf16.mxu1 %vm14606_vm14, %v12830_v51 }
0x19e5   :  { %12317 = vmatmul.mubr.msk.f32.vlgmr.msra.gmra.mrb[64].mxu1 %vm1142_vm5, %v5611_v0 }
0x19e6   :  { %v12836_v55 = vpack.c.bf16 %v13096_v53, %v13095_v54  ;;  %12835 = vmatpush3.bf16.xpose.msk.msra.mxu1 %vm14606_vm14, %v12830_v51  ;;  %12323 = vmatprep.mubr.msk.f32.mxu1 %vm1142_vm5, %v5613_v29  ;;  %v14681_v29 = vsel %vm5492_vm15, 0.0, %v13611_v27 }
0x19e7   :  { %v13099_v56 = vpop.permute.xlu1 %13098 }
0x19e8   :  { %v13101_v9 = vunpack.i.h.bf16 %v13099_v56  ;;  %v13100_v10 = vunpack.i.l.bf16 %v13099_v56  ;;  %12838 = vmatprep.subr.msk.bf16.mxu0 %vm14606_vm14, %v12836_v55 }
0x19e9   :  { %12841 = vmatpush3.bf16.xpose.msk.msra.mxu0 %vm14606_vm14, %v12836_v55 }
0x19ea   :  { %v12842_v57 = vpack.c.bf16 %v13101_v9, %v13100_v10 }
0x19eb   :  { %v13104_v34 = vpop.permute.xlu0 %13103 }
0x19ec   :  { %v13106_v61 = vunpack.i.h.bf16 %v13104_v34  ;;  %v13105_v1 = vunpack.i.l.bf16 %v13104_v34  ;;  %12844 = vmatprep.subr.msk.bf16.mxu1 %vm14606_vm14, %v12842_v57 }
0x19ed   :  { %12324 = vmatmul.mubr.msk.f32.vlgmr.msra.gmra.mrb[66].mxu1 %vm1142_vm5, %v14569_v17 }
0x19ee   :  { %v12848_v2 = vpack.c.bf16 %v13106_v61, %v13105_v1  ;;  %12847 = vmatpush3.bf16.xpose.msk.msra.mxu1 %vm14606_vm14, %v12842_v57  ;;  %12337 = vmatprep.mubr.msk.f32.mxu1 %vm1142_vm5, %v14574_v31 }
0x19ef   :  { %v13109_v46 = vpop.permute.xlu1 %13108  ;;  %v13114_v28 = vpop.permute.xlu0 %13113 }
0x19f0   :  { %v13111_v3 = vunpack.i.h.bf16 %v13109_v46  ;;  %v13110_v12 = vunpack.i.l.bf16 %v13109_v46  ;;  %v13116_v7 = vunpack.i.h.bf16 %v13114_v28  ;;  %v13115_v5 = vunpack.i.l.bf16 %v13114_v28  ;;  %12331 = vmatmul.mubr.msk.f32.vlgmr.msra.gmra.mrb[42].mxu0 %vm1142_vm5, %v14577_v16  ;;  %12850 = vmatprep.subr.msk.bf16.mxu0 %vm14606_vm14, %v12848_v2 }
0x19f1   :  { %12853 = vmatpush3.bf16.xpose.msk.msra.mxu0 %vm14606_vm14, %v12848_v2  ;;  %12344 = vmatprep.mubr.msk.f32.mxu0 %vm1142_vm5, %v14582_v38 }
0x19f2   :  { %v12854_v6 = vpack.c.bf16 %v13111_v3, %v13110_v12  ;;  %v12860_v8 = vpack.c.bf16 %v13116_v7, %v13115_v5 }
0x19f3   :  { %v13119_v24 = vpop.permute.xlu1 %13118 }
0x19f4   :  { %v13121_v14 = vunpack.i.h.bf16 %v13119_v24  ;;  %v13120_v42 = vunpack.i.l.bf16 %v13119_v24  ;;  %12856 = vmatprep.subr.msk.bf16.mxu1 %vm14606_vm14, %v12854_v6  ;;  %12861 = vmatprep.subr.bf16.mxu0 %v12860_v8 }
0x19f5   :  { %12338 = vmatmul.mubr.msk.f32.vlgmr.msra.gmra.mrb[68].mxu1 %vm1142_vm5, %v14586_v18 }
0x19f6   :  { %12859 = vmatpush3.bf16.xpose.msk.msra.mxu1 %vm14606_vm14, %v12854_v6  ;;  %12351 = vmatprep.mubr.msk.f32.mxu1 %vm1142_vm5, %v14592_v19  ;;  %v14675_v15 = vpack.c.bf16 %v13121_v14, %v13120_v42 }
0x19f7   :  { %v13124_v13 = vpop.permute.xlu1 %13123 }
0x19f8   :  { %v13126_v0 = vunpack.i.h.bf16 %v13124_v13  ;;  %v13125_v63 = vunpack.i.l.bf16 %v13124_v13  ;;  %12345 = vmatmul.mubr.msk.f32.vlgmr.msra.gmra.mrb[44].mxu0 %vm1142_vm5, %v14596_v20 }
0x19f9   :  { %12863 = vmatpush3.bf16.msra.mxu0 %v12860_v8 }
0x19fa   :  { %12865 = vmatprep.subr.bf16.mxu0 %v14675_v15  ;;  %v12868_v17 = vpack.c.bf16 %v13126_v0, %v13125_v63 }
0x19fc   :  { %12869 = vmatprep.subr.bf16.mxu1 %v12868_v17 }
0x19fd   :  { %12352 = vmatmul.mubr.msk.f32.vlgmr.msra.gmra.mrb[70].mxu1 %vm1142_vm5, %v14610_v41 }
0x19fe   :  { %12871 = vmatpush3.bf16.msra.mxu1 %v12868_v17 }
0x1a58   :  { %v12304_v30 = vpop.f32.mrb[60].mxu1 }
0x1a59   :  { %v6329_v31 = vmul.f32 0.35355338, %v12304_v30  ;;  %v5710_v16 = vpop.f32.mrb[61].mxu1 }
0x1a5a   :  { %v6328_v38 = vmul.f32 0.35355338, %v5710_v16 }
0x1a5b   :  { %v14684_v18 = vadd.f32 %v6329_v31, %v14681_v29 }
0x1a5c   :  { %v14687_v19 = vadd.f32 %v6328_v38, %v14681_v29 }
0x1a5d   :  { %v6363_v20 = vsel %vm863_vm0, %v14684_v18, -inf }
0x1a5e   :  { %6364 = vmax.xlane.f32.xlu1 %v6363_v20  ;;  %v6360_v23 = vsel %vm863_vm0, %v14687_v19, -inf }
0x1a5f   :  { %6361 = vmax.xlane.f32.xlu0 %v6360_v23 }
0x1a60   :  { %v12311_v35 = vpop.f32.mrb[62].mxu1 }
0x1a61   :  { %v6331_v36 = vmul.f32 0.35355338, %v12311_v35  ;;  %v5797_v25 = vpop.f32.mrb[63].mxu1 }
0x1a62   :  { %v6330_v39 = vmul.f32 0.35355338, %v5797_v25 }
0x1a63   :  { %v14694_v41 = vadd.f32 %v6331_v36, %v14681_v29 }
0x1a64   :  { %v14697_v43 = vadd.f32 %v6330_v39, %v14681_v29 }
0x1a65   :  { %v6369_v60 = vsel %vm863_vm0, %v14694_v41, -inf }
0x1a66   :  { %6370 = vmax.xlane.f32.xlu0 %v6369_v60  ;;  %v6366_v58 = vsel %vm863_vm0, %v14697_v43, -inf }
0x1a6a   :  { %6367 = vmax.xlane.f32.xlu0 %v6366_v58  ;;  %v14767_v58 = vpop.permute.xlu1 %13128 }
0x1ab8   :  { %v12318_v44 = vpop.f32.mrb[64].mxu1 }
0x1ab9   :  { %v6333_v45 = vmul.f32 0.35355338, %v12318_v44  ;;  %v5884_v47 = vpop.f32.mrb[65].mxu1 }
0x1aba   :  { %v6332_v48 = vmul.f32 0.35355338, %v5884_v47 }
0x1abb   :  { %v14704_v22 = vadd.f32 %v6333_v45, %v14681_v29 }
0x1abc   :  { %v14707_v49 = vadd.f32 %v6332_v48, %v14681_v29 }
0x1abd   :  { %v6375_v50 = vsel %vm863_vm0, %v14704_v22, -inf }
0x1abe   :  { %6376 = vmax.xlane.f32.xlu1 %v6375_v50  ;;  %v6372_v33 = vsel %vm863_vm0, %v14707_v49, -inf }
0x1abf   :  { %6373 = vmax.xlane.f32.xlu0 %v6372_v33 }
0x1ac0   :  { %v12325_v51 = vpop.f32.mrb[66].mxu1 }
0x1ac1   :  { %v6335_v52 = vmul.f32 0.35355338, %v12325_v51  ;;  %v5971_v53 = vpop.f32.mrb[67].mxu1 }
0x1ac2   :  { %v6334_v54 = vmul.f32 0.35355338, %v5971_v53 }
0x1ac3   :  { %v14714_v55 = vadd.f32 %v6335_v52, %v14681_v29  ;;  %v12332_v56 = vpop.f32.mrb[42].mxu0 }
0x1ac4   :  { %v6337_v9 = vmul.f32 0.35355338, %v12332_v56  ;;  %v6058_v10 = vpop.f32.mrb[43].mxu0  ;;  %v14717_v57 = vadd.f32 %v6334_v54, %v14681_v29 }
0x1ac5   :  { %v6336_v34 = vmul.f32 0.35355338, %v6058_v10  ;;  %v6381_v61 = vsel %vm863_vm0, %v14714_v55, -inf }
0x1ac6   :  { %v14722_v1 = vadd.f32 %v6337_v9, %v14681_v29  ;;  %6382 = vmax.xlane.f32.xlu0 %v6381_v61  ;;  %v6378_v7 = vsel %vm863_vm0, %v14717_v57, -inf }
0x1ac7   :  { %v14725_v2 = vadd.f32 %v6336_v34, %v14681_v29 }
0x1ac8   :  { %v12339_v46 = vpop.f32.mrb[68].mxu1  ;;  %v6387_v28 = vsel %vm863_vm0, %v14722_v1, -inf }
0x1ac9   :  { %v6339_v3 = vmul.f32 0.35355338, %v12339_v46  ;;  %6388 = vmax.xlane.f32.xlu1 %v6387_v28  ;;  %v6145_v12 = vpop.f32.mrb[69].mxu1  ;;  %v6384_v42 = vsel %vm863_vm0, %v14725_v2, -inf }
0x1aca   :  { %v6338_v5 = vmul.f32 0.35355338, %v6145_v12  ;;  %6379 = vmax.xlane.f32.xlu0 %v6378_v7 }
0x1acb   :  { %v14732_v6 = vadd.f32 %v6339_v3, %v14681_v29  ;;  %v12346_v8 = vpop.f32.mrb[44].mxu0 }
0x1acc   :  { %v6341_v24 = vmul.f32 0.35355338, %v12346_v8  ;;  %v6232_v14 = vpop.f32.mrb[45].mxu0  ;;  %v14737_v13 = vadd.f32 %v6338_v5, %v14681_v29 }
0x1acd   :  { %v6340_v0 = vmul.f32 0.35355338, %v6232_v14  ;;  %6385 = vmax.xlane.f32.xlu1 %v6384_v42  ;;  %v6393_v63 = vsel %vm863_vm0, %v14732_v6, -inf }
0x1ace   :  { %v14742_v17 = vadd.f32 %v6341_v24, %v14681_v29  ;;  %6394 = vmax.xlane.f32.xlu0 %v6393_v63  ;;  %v6390_v20 = vsel %vm863_vm0, %v14737_v13, -inf }
0x1acf   :  { %v14745_v27 = vadd.f32 %v6340_v0, %v14681_v29 }
0x1ad0   :  { %v12353_v30 = vpop.f32.mrb[70].mxu1  ;;  %v6399_v31 = vsel %vm863_vm0, %v14742_v17, -inf }
0x1ad1   :  { %v6343_v16 = vmul.f32 0.35355338, %v12353_v30  ;;  %6400 = vmax.xlane.f32.xlu1 %v6399_v31  ;;  %v6319_v38 = vpop.f32.mrb[71].mxu1  ;;  %v6396_v25 = vsel %vm863_vm0, %v14745_v27, -inf }
0x1ad2   :  { %v6342_v23 = vmul.f32 0.35355338, %v6319_v38  ;;  %6391 = vmax.xlane.f32.xlu0 %v6390_v20 }
0x1ad3   :  { %v14752_v35 = vadd.f32 %v6343_v16, %v14681_v29 }
0x1ad4   :  { %v14755_v36 = vadd.f32 %v6342_v23, %v14681_v29 }
0x1ad5   :  { %6397 = vmax.xlane.f32.xlu1 %v6396_v25  ;;  %v6405_v60 = vsel %vm863_vm0, %v14752_v35, -inf }
0x1ad6   :  { %v6402_v39 = vsel %vm863_vm0, %v14755_v36, -inf }
0x1ad7   :  { %6403 = vmax.xlane.f32.xlu0 %v6402_v39 }
0x1ad9   :  { %6406 = vmax.xlane.f32.xlu1 %v6405_v60 }
0x1aea   :  { %13138 = vrot.lane.b32.xlu1 %v14590_v21, %s13610_s23 }
0x1aeb   :  { %v6365_v45 = vpop.xlane.xlu1 %6364 }
0x1aec   :  { %v6362_v44 = vpop.xlane.xlu0 %6361  ;;  %v6409_v50 = vsub.f32 %v14684_v18, %v6365_v45 }
0x1aed   :  { %13133 = vrot.lane.b32.xlu0 %v14580_v32, %s13610_s23  ;;  %v6408_v48 = vsub.f32 %v14687_v19, %v6362_v44 }
0x1aee   :  { %v6426_v53 = vmul.f32 1.442695, %v6409_v50 }
0x1aef   :  { %v6424_v33 = vmul.f32 1.442695, %v6408_v48 }
0x1af1   :  { %13340 = vpow2.f32 %v6424_v33 }
0x1af2   :  { %13342 = vpow2.f32 %v6426_v53 }
0x1af3   :  { %v6371_v47 = vpop.xlane.xlu0 %6370 }
0x1af4   :  { %v6411_v51 = vsub.f32 %v14694_v41, %v6371_v47 }
0x1af6   :  { %v6430_v54 = vmul.f32 1.442695, %v6411_v51 }
0x1af7   :  { %v6368_v52 = vpop.xlane.xlu0 %6367 }
0x1af8   :  { %v6410_v21 = vsub.f32 %v14697_v43, %v6368_v52  ;;  %13344 = vpow2.f32 %v6430_v54 }
0x1afa   :  { %v6428_v32 = vmul.f32 1.442695, %v6410_v21 }
0x1afb   :  { %v14773_v56 = vpop.eup %13340 }
0x1afc   :  { %13346 = vpow2.f32 %v6428_v32  ;;  %v14775_v9 = vpop.eup %13342  ;;  %v6456_v18 = vsel %vm863_vm0, %v14773_v56, 0.0 }
0x1afd   :  { %v6459_v41 = vsel %vm863_vm0, %v14775_v9, 0.0 }
0x1b02   :  { %v14779_v19 = vpop.eup %13344 }
0x1b03   :  { %v6465_v43 = vsel %vm863_vm0, %v14779_v19, 0.0 }
0x1b06   :  { %v14785_v10 = vpop.eup %13346 }
0x1b07   :  { %v6462_v34 = vsel %vm863_vm0, %v14785_v10, 0.0 }
0x1b0c   :  { %6457 = vadd.xlane.f32.xlu0 %v6456_v18 }
0x1b0e   :  { %6460 = vadd.xlane.f32.xlu1 %v6459_v41 }
0x1b10   :  { %6466 = vadd.xlane.f32.xlu0 %v6465_v43 }
0x1b14   :  { %6463 = vadd.xlane.f32.xlu0 %v6462_v34 }
0x1b4b   :  { %v6377_v61 = vpop.xlane.xlu1 %6376 }
0x1b4c   :  { %v6413_v46 = vsub.f32 %v14704_v22, %v6377_v61  ;;  %v6374_v3 = vpop.xlane.xlu0 %6373 }
0x1b4d   :  { %v6412_v5 = vsub.f32 %v14707_v49, %v6374_v3 }
0x1b4e   :  { %v6434_v28 = vmul.f32 1.442695, %v6413_v46 }
0x1b4f   :  { %v6432_v63 = vmul.f32 1.442695, %v6412_v5 }
0x1b50   :  { %13348 = vpow2.f32 %v6434_v28 }
0x1b53   :  { %v6383_v12 = vpop.xlane.xlu0 %6382 }
0x1b54   :  { %v6415_v7 = vsub.f32 %v14714_v55, %v6383_v12 }
0x1b56   :  { %v6438_v8 = vmul.f32 1.442695, %v6415_v7  ;;  %v6389_v24 = vpop.xlane.xlu1 %6388 }
0x1b57   :  { %v6417_v14 = vsub.f32 %v14722_v1, %v6389_v24  ;;  %v6380_v42 = vpop.xlane.xlu0 %6379 }
0x1b58   :  { %13350 = vpow2.f32 %v6438_v8  ;;  %v6414_v0 = vsub.f32 %v14717_v57, %v6380_v42 }
0x1b59   :  { %v6442_v30 = vmul.f32 1.442695, %v6417_v14 }
0x1b5a   :  { %v14794_v31 = vpop.eup %13348  ;;  %v6436_v22 = vmul.f32 1.442695, %v6414_v0  ;;  %v6386_v16 = vpop.xlane.xlu1 %6385 }
0x1b5b   :  { %13352 = vpow2.f32 %v6442_v30  ;;  %v6416_v38 = vsub.f32 %v14725_v2, %v6386_v16  ;;  %v6395_v55 = vpop.xlane.xlu0 %6394  ;;  %v6471_v49 = vsel %vm863_vm0, %v14794_v31, 0.0 }
0x1b5c   :  { %13354 = vpow2.f32 %v6436_v22  ;;  %v6419_v1 = vsub.f32 %v14732_v6, %v6395_v55  ;;  %6472 = vadd.xlane.f32.xlu1 %v6471_v49 }
0x1b5d   :  { %13356 = vpow2.f32 %v6432_v63  ;;  %v6440_v20 = vmul.f32 1.442695, %v6416_v38 }
0x1b5e   :  { %v6446_v57 = vmul.f32 1.442695, %v6419_v1  ;;  %v6401_v23 = vpop.xlane.xlu1 %6400 }
0x1b5f   :  { %v6421_v25 = vsub.f32 %v14742_v17, %v6401_v23  ;;  %v6392_v39 = vpop.xlane.xlu0 %6391 }
0x1b60   :  { %13358 = vpow2.f32 %v6446_v57  ;;  %v6418_v60 = vsub.f32 %v14737_v13, %v6392_v39  ;;  %v13130_v57 = vunpack.i.l.bf16 %v14767_v58 }
0x1b61   :  { %13360 = vpow2.f32 %v6440_v20  ;;  %v6450_v2 = vmul.f32 1.442695, %v6421_v25  ;;  %v13131_v20 = vunpack.i.h.bf16 %v14767_v58 }
0x1b62   :  { %v14802_v44 = vpop.eup %13350  ;;  %v6444_v45 = vmul.f32 1.442695, %v6418_v60  ;;  %v6398_v47 = vpop.xlane.xlu1 %6397 }
0x1b63   :  { %v6420_v48 = vsub.f32 %v14745_v27, %v6398_v47  ;;  %v6477_v6 = vsel %vm863_vm0, %v14802_v44, 0.0  ;;  %v12872_v25 = vpack.c.bf16 %v13131_v20, %v13130_v57 }
0x1b64   :  { %13362 = vpow2.f32 %v6444_v45  ;;  %6478 = vadd.xlane.f32.xlu0 %v6477_v6  ;;  %v6404_v50 = vpop.xlane.xlu0 %6403 }
0x1b65   :  { %v14807_v33 = vpop.eup %13352  ;;  %13364 = vpow2.f32 %v6450_v2  ;;  %v6448_v17 = vmul.f32 1.442695, %v6420_v48  ;;  %v6422_v13 = vsub.f32 %v14755_v36, %v6404_v50 }
0x1b66   :  { %v14810_v51 = vpop.eup %13354  ;;  %v6407_v52 = vpop.xlane.xlu1 %6406  ;;  %v6483_v53 = vsel %vm863_vm0, %v14807_v33, 0.0 }
0x1b67   :  { %v14814_v54 = vpop.eup %13356  ;;  %v6452_v27 = vmul.f32 1.442695, %v6422_v13  ;;  %v6423_v21 = vsub.f32 %v14752_v35, %v6407_v52  ;;  %6484 = vadd.xlane.f32.xlu1 %v6483_v53  ;;  %v6474_v32 = vsel %vm863_vm0, %v14810_v51, 0.0  ;;  %13366 = vpow2.f32 %v6448_v17 }
0x1b68   :  { %6475 = vadd.xlane.f32.xlu0 %v6474_v32  ;;  %v13134_v18 = vpop.permute.xlu0 %13133  ;;  %v6468_v61 = vsel %vm863_vm0, %v14814_v54, 0.0 }
0x1b69   :  { %13368 = vpow2.f32 %v6452_v27  ;;  %v6454_v36 = vmul.f32 1.442695, %v6423_v21  ;;  %v13136_v41 = vunpack.i.h.bf16 %v13134_v18  ;;  %v13135_v43 = vunpack.i.l.bf16 %v13134_v18 }
0x1b6a   :  { %v14819_v34 = vpop.eup %13358  ;;  %v13139_v22 = vpop.permute.xlu1 %13138 }
0x1b6b   :  { %v14823_v46 = vpop.eup %13360  ;;  %6469 = vadd.xlane.f32.xlu1 %v6468_v61  ;;  %v6489_v35 = vsel %vm863_vm0, %v14819_v34, 0.0  ;;  %v14827_v28 = vpack.c.bf16 %v13136_v41, %v13135_v43  ;;  %13370 = vpow2.f32 %v6454_v36  ;;  %v13141_v2 = vunpack.i.h.bf16 %v13139_v22 }
0x1b6c   :  { %6490 = vadd.xlane.f32.xlu0 %v6489_v35  ;;  %v6480_v12 = vsel %vm863_vm0, %v14823_v46, 0.0  ;;  %v13140_v45 = vunpack.i.l.bf16 %v13139_v22 }
0x1b6d   :  { %12877 = vmatprep.subr.bf16.mxu1 %v14827_v28 }
0x1b6e   :  { %v14829_v3 = vpop.eup %13362 }
0x1b6f   :  { %v14834_v7 = vpop.eup %13364  ;;  %6481 = vadd.xlane.f32.xlu1 %v6480_v12  ;;  %v6486_v5 = vsel %vm863_vm0, %v14829_v3, 0.0 }
0x1b70   :  { %6487 = vadd.xlane.f32.xlu0 %v6486_v5  ;;  %v6495_v24 = vsel %vm863_vm0, %v14834_v7, 0.0 }
0x1b71   :  { %v14838_v8 = vpop.eup %13366 }
0x1b72   :  { %v6492_v0 = vsel %vm863_vm0, %v14838_v8, 0.0 }
0x1b73   :  { %v14842_v14 = vpop.eup %13368  ;;  %6496 = vadd.xlane.f32.xlu1 %v6495_v24 }
0x1b74   :  { %v6498_v42 = vsel %vm863_vm0, %v14842_v14, 0.0 }
0x1b75   :  { %6499 = vadd.xlane.f32.xlu0 %v6498_v42  ;;  %v14848_v63 = vpop.eup %13370 }
0x1b76   :  { %v6501_v30 = vsel %vm863_vm0, %v14848_v63, 0.0 }
0x1b77   :  { %6493 = vadd.xlane.f32.xlu1 %v6492_v0 }
0x1b7b   :  { %6502 = vadd.xlane.f32.xlu1 %v6501_v30 }
0x1b8b   :  { %13143 = vrot.lane.b32.xlu0 %v14600_v26, %s13610_s23 }
0x1b8c   :  { %13148 = vrot.lane.b32.xlu1 %v14614_v11, %s13610_s23 }
0x1b99   :  { %v6458_v16 = vpop.xlane.xlu0 %6457 }
0x1b9a   :  { %13372 = vrcp.f32 %v6458_v16 }
0x1b9b   :  { %v6461_v38 = vpop.xlane.xlu1 %6460 }
0x1b9c   :  { %13374 = vrcp.f32 %v6461_v38 }
0x1b9d   :  { %v6467_v55 = vpop.xlane.xlu0 %6466 }
0x1b9e   :  { %13376 = vrcp.f32 %v6467_v55 }
0x1ba1   :  { %v6464_v49 = vpop.xlane.xlu0 %6463 }
0x1ba2   :  { %13378 = vrcp.f32 %v6464_v49 }
0x1ba4   :  { %v13373_v1 = vpop.eup %13372 }
0x1ba5   :  { %v6520_v23 = vmul.f32 %v13373_v1, %v14773_v56  ;;  %v12880_v56 = vpack.c.bf16 %v13141_v2, %v13140_v45 }
0x1ba6   :  { %v13375_v26 = vpop.eup %13374 }
0x1ba7   :  { %12358 = vmatprep.mubr.msk.f32.mxu0 %vm863_vm0, %v6520_v23  ;;  %v6521_v11 = vmul.f32 %v13375_v26, %v14775_v9 }
0x1ba8   :  { %v13377_v39 = vpop.eup %13376 }
0x1ba9   :  { %12359 = vmatmul.mubr.msk.f32.vlgmr.msra.gmra.mrb[46].mxu0 %vm863_vm0, %v6521_v11  ;;  %v6523_v58 = vmul.f32 %v13377_v39, %v14779_v19 }
0x1baa   :  { %12867 = vmatpush3.bf16.msra.mxu0 %v14675_v15 }
0x1bab   :  { %12873 = vmatprep.subr.bf16.mxu0 %v12872_v25 }
0x1bac   :  { %v13379_v60 = vpop.eup %13378 }
0x1bad   :  { %v6522_v47 = vmul.f32 %v13379_v60, %v14785_v10 }
0x1baf   :  { %12365 = vmatprep.mubr.msk.f32.mxu0 %vm863_vm0, %v6522_v47 }
0x1bb0   :  { %12366 = vmatmul.mubr.msk.f32.vlgmr.msra.gmra.mrb[48].mxu0 %vm863_vm0, %v6523_v58 }
0x1bb1   :  { %12875 = vmatpush3.bf16.msra.mxu0 %v12872_v25 }
0x1bb2   :  { %12881 = vmatprep.subr.bf16.mxu0 %v12880_v56 }
0x1be9   :  { %v6473_v9 = vpop.xlane.xlu1 %6472 }
0x1bf1   :  { %v6479_v48 = vpop.xlane.xlu0 %6478 }
0x1bf2   :  { %13380 = vrcp.f32 %v6479_v48 }
0x1bf4   :  { %v6485_v6 = vpop.xlane.xlu1 %6484 }
0x1bf5   :  { %v6476_v15 = vpop.xlane.xlu0 %6475 }
0x1bf6   :  { %13382 = vrcp.f32 %v6476_v15 }
0x1bf7   :  { %13384 = vrcp.f32 %v6473_v9 }
0x1bf8   :  { %v6470_v50 = vpop.xlane.xlu1 %6469 }
0x1bf9   :  { %13386 = vrcp.f32 %v6470_v50  ;;  %v6491_v17 = vpop.xlane.xlu0 %6490 }
0x1bfa   :  { %13388 = vrcp.f32 %v6485_v6 }
0x1bfb   :  { %13390 = vrcp.f32 %v6491_v17 }
0x1bfc   :  { %v6482_v19 = vpop.xlane.xlu1 %6481  ;;  %v13381_v13 = vpop.eup %13380 }
0x1bfd   :  { %13392 = vrcp.f32 %v6482_v19  ;;  %v6488_v10 = vpop.xlane.xlu0 %6487  ;;  %v6527_v18 = vmul.f32 %v13381_v13, %v14802_v44 }
0x1bfe   :  { %13394 = vrcp.f32 %v6488_v10 }
0x1c00   :  { %v13383_v52 = vpop.eup %13382  ;;  %v6497_v53 = vpop.xlane.xlu1 %6496 }
0x1c01   :  { %v6526_v27 = vmul.f32 %v13383_v52, %v14810_v51  ;;  %v13385_v21 = vpop.eup %13384 }
0x1c02   :  { %v6500_v32 = vpop.xlane.xlu0 %6499  ;;  %v6525_v35 = vmul.f32 %v13385_v21, %v14794_v31 }
0x1c03   :  { %v13387_v36 = vpop.eup %13386  ;;  %13396 = vrcp.f32 %v6500_v32  ;;  %12379 = vmatprep.mubr.msk.f32.mxu0 %vm863_vm0, %v6526_v27 }
0x1c04   :  { %13398 = vrcp.f32 %v6497_v53  ;;  %v6494_v41 = vpop.xlane.xlu1 %6493  ;;  %12380 = vmatmul.mubr.msk.f32.vlgmr.msra.gmra.mrb[50].mxu0 %vm863_vm0, %v6527_v18  ;;  %v6524_v43 = vmul.f32 %v13387_v36, %v14814_v54  ;;  %v13389_v61 = vpop.eup %13388 }
0x1c05   :  { %13400 = vrcp.f32 %v6494_v41  ;;  %12883 = vmatpush3.bf16.msra.mxu0 %v12880_v56  ;;  %v13391_v51 = vpop.eup %13390  ;;  %v6529_v22 = vmul.f32 %v13389_v61, %v14807_v33 }
0x1c06   :  { %12372 = vmatprep.mubr.msk.f32.mxu1 %vm863_vm0, %v6524_v43  ;;  %v13144_v12 = vpop.permute.xlu0 %13143  ;;  %v6531_v16 = vmul.f32 %v13391_v51, %v14819_v34 }
0x1c07   :  { %v13393_v44 = vpop.eup %13392  ;;  %v13146_v5 = vunpack.i.h.bf16 %v13144_v12  ;;  %v13145_v24 = vunpack.i.l.bf16 %v13144_v12  ;;  %12373 = vmatmul.mubr.msk.f32.vlgmr.msra.gmra.mrb[72].mxu1 %vm863_vm0, %v6525_v35 }
0x1c08   :  { %v13395_v42 = vpop.eup %13394  ;;  %12879 = vmatpush3.bf16.msra.mxu1 %v14827_v28  ;;  %v6503_v0 = vpop.xlane.xlu1 %6502  ;;  %v6528_v54 = vmul.f32 %v13393_v44, %v14823_v46  ;;  %v11365_v28 = vld [vmem:[%s15668_s11 + $0x40] sm:$0xff] }
0x1c09   :  { %v12884_v30 = vpack.c.bf16 %v13146_v5, %v13145_v24  ;;  %13402 = vrcp.f32 %v6503_v0  ;;  %v6530_v31 = vmul.f32 %v13395_v42, %v14829_v3 }
0x1c0a   :  { %12386 = vmatprep.mubr.msk.f32.mxu1 %vm863_vm0, %v6528_v54 }
0x1c0b   :  { %12387 = vmatmul.mubr.msk.f32.vlgmr.msra.gmra.mrb[74].mxu1 %vm863_vm0, %v6529_v22  ;;  %12393 = vmatprep.mubr.msk.f32.mxu0 %vm863_vm0, %v6530_v31 }
0x1c0c   :  { %12885 = vmatprep.subr.bf16.mxu1 %v12884_v30  ;;  %v13149_v46 = vpop.permute.xlu1 %13148  ;;  %12394 = vmatmul.mubr.msk.f32.vlgmr.msra.gmra.mrb[52].mxu0 %vm863_vm0, %v6531_v16 }
0x1c0d   :  { %v13397_v38 = vpop.eup %13396  ;;  %v13151_v33 = vunpack.i.h.bf16 %v13149_v46  ;;  %v13150_v55 = vunpack.i.l.bf16 %v13149_v46  ;;  %12887 = vmatpush3.bf16.msra.mxu1 %v12884_v30 }
0x1c0e   :  { %v13399_v3 = vpop.eup %13398  ;;  %v6534_v49 = vmul.f32 %v13397_v38, %v14842_v14  ;;  %12410 = vmatprep.subr.mxu1 %v11365_v28  ;;  %v11366_v14 = vld [vmem:[%s15668_s11 + $0x48] sm:$0xff] }
0x1c0f   :  { %v13401_v34 = vpop.eup %13400  ;;  %v12888_v1 = vpack.c.bf16 %v13151_v33, %v13150_v55  ;;  %v6533_v57 = vmul.f32 %v13399_v3, %v14834_v7  ;;  %v11367_v7 = vld [vmem:[%s15668_s11 + $0x50] sm:$0xff] }
0x1c10   :  { %12407 = vmatprep.mubr.msk.f32.mxu0 %vm863_vm0, %v6534_v49  ;;  %v6532_v20 = vmul.f32 %v13401_v34, %v14838_v8  ;;  %v11368_v8 = vld [vmem:[%s15668_s11 + $0x58] sm:$0xff] }
0x1c11   :  { %12889 = vmatprep.subr.bf16.mxu0 %v12888_v1 }
0x1c12   :  { %12400 = vmatprep.mubr.msk.f32.mxu1 %vm863_vm0, %v6532_v20  ;;  %12891 = vmatpush3.bf16.msra.mxu0 %v12888_v1  ;;  %v11386_v1 = vld [vmem:[%s15669_s12 + $0x2] ss:$0 sm:$0xff] }
0x1c13   :  { %v13403_v23 = vpop.eup %13402  ;;  %12401 = vmatmul.mubr.msk.f32.vlgmr.msra.gmra.mrb[76].mxu1 %vm863_vm0, %v6533_v57  ;;  %12418 = vmatprep.subr.mxu0 %v11366_v14 }
0x1c14   :  { %v6535_v26 = vmul.f32 %v13403_v23, %v14848_v63  ;;  %12411 = vmatpush3.msra.mxu1 %v11365_v28 }
0x1c15   :  { %12426 = vmatprep.subr.mxu1 %v11367_v7 }
0x1c16   :  { %12408 = vmatmul.mubr.msk.f32.vlgmr.msra.gmra.mrb[54].mxu0 %vm863_vm0, %v6535_v26 }
0x1c17   :  { %12419 = vmatpush3.msra.mxu0 %v11366_v14 }
0x1c18   :  { %12434 = vmatprep.subr.mxu0 %v11368_v8 }
0x1c7c   :  { %v12360_v63 = vpop.f32.mrb[46].mxu0 }
0x1c7d   :  { %v6614_v11 = vpop.f32.mrb[47].mxu0 }
0x1c7e   :  { %12412 = vmatprep.mubr.msk.f32.mxu1 %vm1142_vm5, %v6614_v11 }
0x1c7f   :  { %12413 = vmatmul.mubr.msk.f32.vlgmr.msra.gmra.mrb[78].mxu1 %vm1142_vm5, %v12360_v63 }
0x1c80   :  { %12427 = vmatpush3.msra.mxu1 %v11367_v7 }
0x1c83   :  { %v12367_v25 = vpop.f32.mrb[48].mxu0 }
0x1c84   :  { %v6701_v39 = vpop.f32.mrb[49].mxu0 }
0x1c85   :  { %12415 = vmatprep.mubr.msk.f32.mxu1 %vm1142_vm5, %v6701_v39 }
0x1c86   :  { %12416 = vmatmul.mubr.msk.f32.gmra.mrb[80].mxu1 %vm1142_vm5, %v12367_v25 }
0x1cd7   :  { %v12381_v60 = vpop.f32.mrb[50].mxu0 }
0x1cd8   :  { %v6875_v2 = vpop.f32.mrb[51].mxu0 }
0x1cda   :  { %v12374_v45 = vpop.f32.mrb[72].mxu1 }
0x1cdb   :  { %v6788_v47 = vpop.f32.mrb[73].mxu1 }
0x1cdc   :  { %12420 = vmatprep.mubr.msk.f32.mxu0 %vm1142_vm5, %v6788_v47 }
0x1cdd   :  { %12421 = vmatmul.mubr.msk.f32.vlgmr.msra.gmra.mrb[56].mxu0 %vm1142_vm5, %v12374_v45 }
0x1cde   :  { %v12388_v58 = vpop.f32.mrb[74].mxu1  ;;  %12423 = vmatprep.mubr.msk.f32.mxu0 %vm1142_vm5, %v6875_v2  ;;  %12435 = vmatpush3.msra.mxu0 %v11368_v8 }
0x1cdf   :  { %v6962_v56 = vpop.f32.mrb[75].mxu1  ;;  %v12395_v9 = vpop.f32.mrb[52].mxu0 }
0x1ce0   :  { %v7049_v48 = vpop.f32.mrb[53].mxu0  ;;  %12428 = vmatprep.mubr.msk.f32.mxu1 %vm1142_vm5, %v6962_v56 }
0x1ce1   :  { %12424 = vmatmul.mubr.msk.f32.gmra.mrb[58].mxu0 %vm1142_vm5, %v12381_v60  ;;  %12429 = vmatmul.mubr.msk.f32.vlgmr.msra.gmra.mrb[82].mxu1 %vm1142_vm5, %v12388_v58 }
0x1ce2   :  { %12431 = vmatprep.mubr.msk.f32.mxu1 %vm1142_vm5, %v7049_v48 }
0x1ce5   :  { %12432 = vmatmul.mubr.msk.f32.gmra.mrb[84].mxu1 %vm1142_vm5, %v12395_v9 }
0x1ce6   :  { %v12402_v6 = vpop.f32.mrb[76].mxu1 }
0x1ce7   :  { %v7136_v15 = vpop.f32.mrb[77].mxu1 }
0x1ce8   :  { %12436 = vmatprep.mubr.msk.f32.mxu0 %vm1142_vm5, %v7136_v15 }
0x1ce9   :  { %v12409_v50 = vpop.f32.mrb[54].mxu0  ;;  %12437 = vmatmul.mubr.msk.f32.vlgmr.msra.gmra.mrb[60].mxu0 %vm1142_vm5, %v12402_v6 }
0x1cea   :  { %v7223_v17 = vpop.f32.mrb[55].mxu0 }
0x1ceb   :  { %12439 = vmatprep.mubr.msk.f32.mxu0 %vm1142_vm5, %v7223_v17 }
0x1ced   :  { %12440 = vmatmul.mubr.msk.f32.gmra.mrb[62].mxu0 %vm1142_vm5, %v12409_v50 }
0x1d52   :  { %v12414_v19 = vpop.f32.mrb[78].mxu1 }
0x1d53   :  { %v7315_v10 = vpop.f32.mrb[79].mxu1  ;;  %v7632_v27 = vsel %vm990_vm3, %v12414_v19, 0.0 }
0x1d54   :  { %v7625_v18 = vsel %vm990_vm3, %v7315_v10, 0.0 }
0x1d59   :  { %v12417_v13 = vpop.f32.mrb[80].mxu1 }
0x1d5a   :  { %v7325_v52 = vpop.f32.mrb[81].mxu1  ;;  %v7646_v51 = vsel %vm990_vm3, %v12417_v13, 0.0 }
0x1d5b   :  { %v7639_v12 = vsel %vm990_vm3, %v7325_v52, 0.0 }
0x1db0   :  { %v12422_v53 = vpop.f32.mrb[56].mxu0 }
0x1db1   :  { %v7633_v21 = vsel %vm990_vm3, %v12422_v53, 0.0  ;;  %v7412_v32 = vpop.f32.mrb[57].mxu0 }
0x1db2   :  { %v7634_v36 = vadd.f32 %v7633_v21, %v7632_v27  ;;  %v7626_v41 = vsel %vm990_vm3, %v7412_v32, 0.0 }
0x1db3   :  { %v7627_v43 = vadd.f32 %v7626_v41, %v7625_v18 }
0x1db4   :  { %v12425_v61 = vpop.f32.mrb[58].mxu0  ;;  %v12430_v35 = vpop.f32.mrb[82].mxu1 }
0x1db5   :  { %v7647_v44 = vsel %vm990_vm3, %v12425_v61, 0.0  ;;  %v7635_v5 = vsel %vm990_vm3, %v12430_v35, 0.0  ;;  %v7422_v24 = vpop.f32.mrb[59].mxu0  ;;  %v7509_v42 = vpop.f32.mrb[83].mxu1 }
0x1db6   :  { %v7648_v0 = vadd.f32 %v7647_v44, %v7646_v51  ;;  %v7636_v54 = vadd.f32 %v7635_v5, %v7634_v36  ;;  %v7640_v30 = vsel %vm990_vm3, %v7422_v24, 0.0  ;;  %v7628_v22 = vsel %vm990_vm3, %v7509_v42, 0.0  ;;  %v11392_v44 = vld [vmem:[%s15672_s15 + $0x48] sm:$0xff]  ;;  %v11393_v24 = vld [vmem:[%s15672_s15 + $0x50] sm:$0xff]  ;;  %v11394_v42 = vld [vmem:[%s15672_s15 + $0x58] sm:$0xff] }
0x1db7   :  { %v7641_v31 = vadd.f32 %v7640_v30, %v7639_v12  ;;  %v7629_v16 = vadd.f32 %v7628_v22, %v7627_v43  ;;  %v11391_v12 = vld [vmem:[%s15672_s15 + $0x40] sm:$0xff] }
0x1db8   :  { %v12433_v28 = vpop.f32.mrb[84].mxu1  ;;  %v12892_v5 = vpack.c.bf16 %v11392_v44, %v11391_v12 }
0x1db9   :  { %v7649_v46 = vsel %vm990_vm3, %v12433_v28, 0.0  ;;  %v7519_v38 = vpop.f32.mrb[85].mxu1 }
0x1dba   :  { %v7650_v33 = vadd.f32 %v7649_v46, %v7648_v0  ;;  %v7642_v55 = vsel %vm990_vm3, %v7519_v38, 0.0  ;;  %12893 = vmatprep.subr.bf16.mxu1 %v12892_v5  ;;  %v12896_v0 = vpack.c.bf16 %v11394_v42, %v11393_v24 }
0x1dbb   :  { %v7643_v3 = vadd.f32 %v7642_v55, %v7641_v31  ;;  %12895 = vmatpush3.bf16.msra.mxu1 %v12892_v5 }
0x1dbc   :  { %v12438_v49 = vpop.f32.mrb[60].mxu0  ;;  %12897 = vmatprep.subr.bf16.mxu1 %v12896_v0 }
0x1dbd   :  { %v7637_v34 = vsel %vm990_vm3, %v12438_v49, 0.0  ;;  %v7606_v20 = vpop.f32.mrb[61].mxu0 }
0x1dbe   :  { %v7638_v57 = vadd.f32 %v7637_v34, %v7636_v54  ;;  %v7630_v23 = vsel %vm990_vm3, %v7606_v20, 0.0 }
0x1dbf   :  { %v7631_v26 = vadd.f32 %v7630_v23, %v7629_v16  ;;  %12899 = vmatpush3.bf16.msra.mxu1 %v12896_v0 }
0x1dc0   :  { %v7662_v14 = vadd.f32 %v11386_v1, %v7638_v57  ;;  %v12441_v7 = vpop.f32.mrb[62].mxu0 }
0x1dc1   :  { %v7661_v8 = vadd.f32 %v11386_v1, %v7631_v26  ;;  %v7651_v63 = vsel %vm990_vm3, %v12441_v7, 0.0  ;;  %v7616_v11 = vpop.f32.mrb[63].mxu0  ;;  %v11390_v26 = vld [vmem:[%s15671_s14 + $0x2] ss:$0 sm:$0xff] }
0x1dc2   :  { %v7652_v25 = vadd.f32 %v7651_v63, %v7650_v33  ;;  %v7644_v39 = vsel %vm990_vm3, %v7616_v11, 0.0  ;;  %v7666_v60 = vadd.f32 %v7662_v14, %v14531_v62 }
0x1dc3   :  { %v7645_v2 = vadd.f32 %v7644_v39, %v7643_v3  ;;  %v7665_v45 = vadd.f32 %v7661_v8, %v14529_v59 }
0x1dc4   :  { %v7676_v47 = vsel %vm990_vm3, %v7666_v60, 0.0  ;;  %v7664_v58 = vadd.f32 %v11386_v1, %v7652_v25 }
0x1dc5   :  { %v7663_v56 = vadd.f32 %v11386_v1, %v7645_v2  ;;  %7677 = vadd.xlane.f32.xlu1 %v7676_v47  ;;  %v7673_v9 = vsel %vm990_vm3, %v7665_v45, 0.0  ;;  %v11389_v1 = vld [vmem:[%s15670_s13 + $0x2] ss:$0 sm:$0xff] }
0x1dc6   :  { %7674 = vadd.xlane.f32.xlu0 %v7673_v9  ;;  %v7668_v15 = vadd.f32 %v7664_v58, %v14539_v40  ;;  %v11402_v9 = vld [vmem:[%s15674_s17 + $0x108] sm:$0xff] }
0x1dc7   :  { %v7667_v48 = vadd.f32 %v7663_v56, %v14537_v4  ;;  %v11401_v56 = vld [vmem:[%s15674_s17 + $0x100] sm:$0xff] }
0x1dc8   :  { %v7682_v62 = vsel %vm990_vm3, %v7668_v15, 0.0 }
0x1dc9   :  { %v7679_v6 = vsel %vm990_vm3, %v7667_v48, 0.0 }
0x1dca   :  { %7680 = vadd.xlane.f32.xlu0 %v7679_v6  ;;  %v11403_v6 = vld [vmem:[%s15674_s17 + $0x110] sm:$0xff] }
0x1dce   :  { %7683 = vadd.xlane.f32.xlu0 %v7682_v62 }
0x1e52   :  { %v7678_v50 = vpop.xlane.xlu1 %7677 }
0x1e53   :  { %v7686_v59 = vmul.f32 0.03125, %v7678_v50  ;;  %v7675_v17 = vpop.xlane.xlu0 %7674  ;;  %v11405_v50 = vld [vmem:[%s15674_s17 + $0x120] sm:$0xff] }
0x1e54   :  { %v7685_v19 = vmul.f32 0.03125, %v7675_v17 }
0x1e55   :  { %v7690_v10 = vsub.f32 %v7666_v60, %v7686_v59  ;;  %v11406_v59 = vld [vmem:[%s15674_s17 + $0x128] sm:$0xff] }
0x1e56   :  { %v7689_v13 = vsub.f32 %v7665_v45, %v7685_v19  ;;  %v12908_v17 = vpack.c.bf16 %v11406_v59, %v11405_v50  ;;  %v11407_v19 = vld [vmem:[%s15674_s17 + $0x130] sm:$0xff] }
0x1e57   :  { %v7681_v52 = vpop.xlane.xlu0 %7680  ;;  %v7694_v53 = vmul.f32 %v7690_v10, %v7690_v10 }
0x1e58   :  { %v7687_v27 = vmul.f32 0.03125, %v7681_v52  ;;  %v7693_v21 = vmul.f32 %v7689_v13, %v7689_v13  ;;  %v11409_v52 = vld [vmem:[%s15674_s17 + $0x140] sm:$0xff] }
0x1e59   :  { %v7700_v4 = vsel %vm990_vm3, %v7694_v53, 0.0  ;;  %v11410_v53 = vld [vmem:[%s15674_s17 + $0x148] sm:$0xff] }
0x1e5a   :  { %v7691_v32 = vsub.f32 %v7667_v48, %v7687_v27  ;;  %7701 = vadd.xlane.f32.xlu1 %v7700_v4  ;;  %v7697_v40 = vsel %vm990_vm3, %v7693_v21, 0.0  ;;  %v12900_v48 = vpack.c.bf16 %v11402_v9, %v11401_v56  ;;  %v12916_v27 = vpack.c.bf16 %v11410_v53, %v11409_v52  ;;  %v11411_v21 = vld [vmem:[%s15674_s17 + $0x150] sm:$0xff]  ;;  %v11412_v4 = vld [vmem:[%s15674_s17 + $0x158] sm:$0xff] }
0x1e5b   :  { %7698 = vadd.xlane.f32.xlu0 %v7697_v40  ;;  %v7684_v18 = vpop.xlane.xlu0 %7683  ;;  %v11413_v40 = vld [vmem:[%s15674_s17 + $0x160] sm:$0xff] }
0x1e5c   :  { %v7688_v36 = vmul.f32 0.03125, %v7684_v18  ;;  %v7695_v41 = vmul.f32 %v7691_v32, %v7691_v32  ;;  %12901 = vmatprep.subr.bf16.mxu0 %v12900_v48  ;;  %v11414_v18 = vld [vmem:[%s15674_s17 + $0x168] sm:$0xff] }
0x1e5d   :  { %12903 = vmatpush3.bf16.msra.mxu0 %v12900_v48 }
0x1e5e   :  { %v7692_v43 = vsub.f32 %v7668_v15, %v7688_v36  ;;  %v7703_v61 = vsel %vm990_vm3, %v7695_v41, 0.0  ;;  %v11404_v15 = vld [vmem:[%s15674_s17 + $0x118] sm:$0xff]  ;;  %v12924_v36 = vpack.c.bf16 %v11414_v18, %v11413_v40  ;;  %v11415_v41 = vld [vmem:[%s15674_s17 + $0x170] sm:$0xff] }
0x1e5f   :  { %7704 = vadd.xlane.f32.xlu0 %v7703_v61  ;;  %v12904_v62 = vpack.c.bf16 %v11404_v15, %v11403_v6 }
0x1e60   :  { %v7696_v35 = vmul.f32 %v7692_v43, %v7692_v43 }
0x1e61   :  { %12905 = vmatprep.subr.bf16.mxu0 %v12904_v62 }
0x1e62   :  { %v7706_v51 = vsel %vm990_vm3, %v7696_v35, 0.0  ;;  %12907 = vmatpush3.bf16.msra.mxu0 %v12904_v62  ;;  %v11396_v35 = vld [vmem:[%s15673_s16 + $0x2] ss:$0 sm:$0xff] }
0x1e63   :  { %7707 = vadd.xlane.f32.xlu1 %v7706_v51  ;;  %12909 = vmatprep.subr.bf16.mxu0 %v12908_v17 }
0x1e66   :  { %12911 = vmatpush3.bf16.msra.mxu0 %v12908_v17 }
0x1ee7   :  { %v7702_v54 = vpop.xlane.xlu1 %7701 }
0x1ee8   :  { %v7710_v30 = vmul.f32 0.03125, %v7702_v54  ;;  %v7699_v22 = vpop.xlane.xlu0 %7698 }
0x1ee9   :  { %v7709_v31 = vmul.f32 0.03125, %v7699_v22 }
0x1eea   :  { %v7714_v16 = vadd.f32 1e-05, %v7710_v30 }
0x1eeb   :  { %v7713_v28 = vadd.f32 1e-05, %v7709_v31 }
0x1eec   :  { %13404 = vrsqrt.f32 %v7714_v16  ;;  %v7705_v46 = vpop.xlane.xlu0 %7704 }
0x1eed   :  { %13406 = vrsqrt.f32 %v7713_v28  ;;  %v7711_v38 = vmul.f32 0.03125, %v7705_v46 }
0x1eef   :  { %v7715_v33 = vadd.f32 1e-05, %v7711_v38 }
0x1ef0   :  { %v7708_v55 = vpop.xlane.xlu1 %7707 }
0x1ef1   :  { %13408 = vrsqrt.f32 %v7715_v33  ;;  %v7712_v3 = vmul.f32 0.03125, %v7708_v55 }
0x1ef3   :  { %v7716_v49 = vadd.f32 1e-05, %v7712_v3 }
0x1ef5   :  { %13410 = vrsqrt.f32 %v7716_v49 }
0x1ef6   :  { %v13405_v34 = vpop.eup %13404 }
0x1ef7   :  { %v13407_v20 = vpop.eup %13406  ;;  %v7722_v57 = vmul.f32 %v13405_v34, %v7690_v10  ;;  %v11408_v10 = vld [vmem:[%s15674_s17 + $0x138] sm:$0xff] }
0x1ef8   :  { %v7721_v23 = vmul.f32 %v13407_v20, %v7689_v13  ;;  %v12912_v13 = vpack.c.bf16 %v11408_v10, %v11407_v19 }
0x1ef9   :  { %v7732_v14 = vmul.f32 %v11389_v1, %v7722_v57 }
0x1efa   :  { %v7731_v7 = vmul.f32 %v11389_v1, %v7721_v23  ;;  %12913 = vmatprep.subr.bf16.mxu0 %v12912_v13 }
0x1efb   :  { %v13409_v8 = vpop.eup %13408  ;;  %v14971_v25 = vadd.f32 %v11390_v26, %v7732_v14  ;;  %12915 = vmatpush3.bf16.msra.mxu0 %v12912_v13 }
0x1efc   :  { %v14969_v63 = vadd.f32 %v11390_v26, %v7731_v7  ;;  %v7723_v11 = vmul.f32 %v13409_v8, %v7691_v32  ;;  %12917 = vmatprep.subr.bf16.mxu0 %v12916_v27  ;;  %v12920_v32 = vpack.c.bf16 %v11412_v4, %v11411_v21 }
0x1efe   :  { %12450 = vmatprep.mubr.msk.f32.mxu1 %vm990_vm3, %v14969_v63  ;;  %v7733_v39 = vmul.f32 %v11389_v1, %v7723_v11 }
0x1eff   :  { %v13411_v60 = vpop.eup %13410  ;;  %12451 = vmatmul.mubr.msk.f32.vlgmr.msra.gmra.mrb[86].mxu1 %vm990_vm3, %v14971_v25  ;;  %12919 = vmatpush3.bf16.msra.mxu0 %v12916_v27 }
0x1f00   :  { %v14977_v2 = vadd.f32 %v11390_v26, %v7733_v39  ;;  %v7724_v45 = vmul.f32 %v13411_v60, %v7692_v43  ;;  %12921 = vmatprep.subr.bf16.mxu0 %v12920_v32  ;;  %v11416_v43 = vld [vmem:[%s15674_s17 + $0x178] sm:$0xff] }
0x1f01   :  { %v12928_v61 = vpack.c.bf16 %v11416_v43, %v11415_v41 }
0x1f02   :  { %12453 = vmatprep.mubr.msk.f32.mxu1 %vm990_vm3, %v14977_v2  ;;  %v7734_v47 = vmul.f32 %v11389_v1, %v7724_v45 }
0x1f03   :  { %12923 = vmatpush3.bf16.msra.mxu0 %v12920_v32 }
0x1f04   :  { %v14981_v58 = vadd.f32 %v11390_v26, %v7734_v47  ;;  %12925 = vmatprep.subr.bf16.mxu0 %v12924_v36 }
0x1f06   :  { %12454 = vmatmul.mubr.msk.f32.gmra.mrb[88].mxu1 %vm990_vm3, %v14981_v58 }
0x1f07   :  { %12927 = vmatpush3.bf16.msra.mxu0 %v12924_v36 }
0x1f08   :  { %12929 = vmatprep.subr.bf16.mxu0 %v12928_v61 }
0x1f0b   :  { %12931 = vmatpush3.bf16.msra.mxu0 %v12928_v61 }
0x1fd2   :  { %v12452_v51 = vpop.f32.mrb[86].mxu1 }
0x1fd3   :  { %v15036_v12 = vadd.f32 %v12452_v51, %v11396_v35  ;;  %v7836_v44 = vpop.f32.mrb[87].mxu1 }
0x1fd4   :  { %v15038_v5 = vadd.f32 %v11396_v35, %v7836_v44 }
0x1fd5   :  { %v15041_v24 = vmul.f32 0.70710677, %v15036_v12 }
0x1fd6   :  { %v15044_v42 = vmul.f32 0.70710677, %v15038_v5 }
0x1fd7   :  { %v7864_v0 = vand.u32 2147483647, %v15041_v24  ;;  %vm7944_vm1 = vcmp.lt.f32.partialorder %v15041_v24, 0.0 }
0x1fd8   :  { %v7863_v54 = vand.u32 2147483647, %v15044_v42  ;;  %vm7943_vm2 = vcmp.lt.f32.partialorder %v15044_v42, 0.0 }
0x1fd9   :  { %v7868_v30 = vmul.f32 0.3275911, %v7864_v0  ;;  %v12455_v22 = vpop.f32.mrb[88].mxu1  ;;  %v7920_v23 = vsub.f32 0.0, %v7864_v0 }
0x1fda   :  { %v7867_v31 = vmul.f32 0.3275911, %v7863_v54  ;;  %v15048_v16 = vadd.f32 %v12455_v22, %v11396_v35  ;;  %v7846_v28 = vpop.f32.mrb[89].mxu1  ;;  %v7919_v14 = vsub.f32 0.0, %v7863_v54 }
0x1fdb   :  { %v7872_v46 = vadd.f32 1.0, %v7868_v30  ;;  %v15050_v38 = vadd.f32 %v11396_v35, %v7846_v28  ;;  %v7924_v8 = vmul.f32 %v7920_v23, %v7864_v0 }
0x1fdc   :  { %v7871_v33 = vadd.f32 1.0, %v7867_v31  ;;  %v15053_v55 = vmul.f32 0.70710677, %v15048_v16  ;;  %v7923_v60 = vmul.f32 %v7919_v14, %v7863_v54 }
0x1fdd   :  { %13412 = vrcp.f32 %v7872_v46  ;;  %v15056_v3 = vmul.f32 0.70710677, %v15050_v38  ;;  %v7929_v9 = vmul.f32 1.442695, %v7924_v8 }
0x1fde   :  { %13414 = vrcp.f32 %v7871_v33  ;;  %v7866_v49 = vand.u32 2147483647, %v15053_v55  ;;  %v7927_v62 = vmul.f32 1.442695, %v7923_v60  ;;  %vm7946_vm4 = vcmp.lt.f32.partialorder %v15053_v55, 0.0 }
0x1fdf   :  { %v7865_v34 = vand.u32 2147483647, %v15056_v3  ;;  %vm7945_vm6 = vcmp.lt.f32.partialorder %v15056_v3, 0.0  ;;  %v11418_v55 = vld [vmem:[%s15675_s18 + $0x2] ss:$0 sm:$0xff] }
0x1fe0   :  { %v7870_v1 = vmul.f32 0.3275911, %v7866_v49  ;;  %v7922_v56 = vsub.f32 0.0, %v7866_v49 }
0x1fe1   :  { %v7869_v20 = vmul.f32 0.3275911, %v7865_v34  ;;  %v7921_v48 = vsub.f32 0.0, %v7865_v34 }
0x1fe2   :  { %v7874_v57 = vadd.f32 1.0, %v7870_v1  ;;  %v7926_v19 = vmul.f32 %v7922_v56, %v7866_v49 }
0x1fe3   :  { %v7873_v26 = vadd.f32 1.0, %v7869_v20  ;;  %v7925_v13 = vmul.f32 %v7921_v48, %v7865_v34 }
0x1fe4   :  { %13416 = vrcp.f32 %v7874_v57  ;;  %v7933_v18 = vmul.f32 1.442695, %v7926_v19 }
0x1fe5   :  { %13418 = vrcp.f32 %v7873_v26  ;;  %v7931_v41 = vmul.f32 1.442695, %v7925_v13 }
0x1fe6   :  { %13420 = vpow2.f32 %v7929_v9 }
0x1fe7   :  { %v13413_v7 = vpop.eup %13412  ;;  %13422 = vpow2.f32 %v7927_v62 }
0x1fe8   :  { %v13415_v11 = vpop.eup %13414  ;;  %v7884_v39 = vmul.f32 1.0614054, %v13413_v7  ;;  %13424 = vpow2.f32 %v7933_v18 }
0x1fe9   :  { %v7883_v45 = vmul.f32 1.0614054, %v13415_v11  ;;  %13426 = vpow2.f32 %v7931_v41 }
0x1fea   :  { %v7888_v47 = vadd.f32 -1.4531521, %v7884_v39 }
0x1feb   :  { %v7887_v6 = vadd.f32 -1.4531521, %v7883_v45 }
0x1fec   :  { %v7892_v15 = vmul.f32 %v13413_v7, %v7888_v47 }
0x1fed   :  { %v7891_v50 = vmul.f32 %v13415_v11, %v7887_v6 }
0x1fee   :  { %v13417_v59 = vpop.eup %13416  ;;  %v7896_v17 = vadd.f32 1.4214138, %v7892_v15 }
0x1fef   :  { %v13419_v10 = vpop.eup %13418  ;;  %v7895_v52 = vadd.f32 1.4214138, %v7891_v50  ;;  %v7886_v53 = vmul.f32 1.0614054, %v13417_v59 }
0x1ff0   :  { %v7900_v27 = vmul.f32 %v13413_v7, %v7896_v17  ;;  %v7885_v21 = vmul.f32 1.0614054, %v13419_v10  ;;  %v13421_v33 = vpop.eup %13420  ;;  %v7855_v17 = vmul.f32 0.5, %v15038_v5  ;;  %v7857_v5 = vmul.f32 0.5, %v15050_v38 }
0x1ff1   :  { %v7899_v4 = vmul.f32 %v13415_v11, %v7895_v52  ;;  %v7890_v32 = vadd.f32 -1.4531521, %v7886_v53  ;;  %v13423_v1 = vpop.eup %13422  ;;  %v7856_v52 = vmul.f32 0.5, %v15036_v12  ;;  %v7858_v12 = vmul.f32 0.5, %v15048_v16 }
0x1ff2   :  { %v7904_v40 = vadd.f32 -0.28449672, %v7900_v27  ;;  %v7889_v36 = vadd.f32 -1.4531521, %v7885_v21 }
0x1ff3   :  { %v7903_v43 = vadd.f32 -0.28449672, %v7899_v4  ;;  %v7894_v61 = vmul.f32 %v13417_v59, %v7890_v32 }
0x1ff4   :  { %v7908_v35 = vmul.f32 %v13413_v7, %v7904_v40  ;;  %v7893_v51 = vmul.f32 %v13419_v10, %v7889_v36 }
0x1ff5   :  { %v7907_v44 = vmul.f32 %v13415_v11, %v7903_v43  ;;  %v7898_v0 = vadd.f32 1.4214138, %v7894_v61 }
0x1ff6   :  { %v7912_v54 = vadd.f32 0.2548296, %v7908_v35  ;;  %v7897_v30 = vadd.f32 1.4214138, %v7893_v51 }
0x1ff7   :  { %v7911_v22 = vadd.f32 0.2548296, %v7907_v44  ;;  %v7902_v31 = vmul.f32 %v13417_v59, %v7898_v0 }
0x1ff8   :  { %v7916_v28 = vmul.f32 %v13413_v7, %v7912_v54  ;;  %v7901_v46 = vmul.f32 %v13419_v10, %v7897_v30  ;;  %v13425_v7 = vpop.eup %13424 }
0x1ff9   :  { %v7915_v49 = vmul.f32 %v13415_v11, %v7911_v22  ;;  %v7906_v34 = vadd.f32 -0.28449672, %v7902_v31  ;;  %v13427_v6 = vpop.eup %13426 }
0x1ffa   :  { %v7936_v20 = vmul.f32 %v13421_v33, %v7916_v28  ;;  %v7905_v57 = vadd.f32 -0.28449672, %v7901_v46 }
0x1ffb   :  { %v7935_v23 = vmul.f32 %v13423_v1, %v7915_v49  ;;  %v7910_v26 = vmul.f32 %v13417_v59, %v7906_v34 }
0x1ffc   :  { %v7940_v14 = vsub.f32 1.0, %v7936_v20  ;;  %v7909_v8 = vmul.f32 %v13419_v10, %v7905_v57 }
0x1ffd   :  { %v7939_v39 = vsub.f32 1.0, %v7935_v23  ;;  %v7914_v60 = vadd.f32 0.2548296, %v7910_v26 }
0x1ffe   :  { %v7948_v45 = vsub.f32 0.0, %v7940_v14  ;;  %v7913_v47 = vadd.f32 0.2548296, %v7909_v8 }
0x1fff   :  { %v7947_v56 = vsub.f32 0.0, %v7939_v39  ;;  %v7918_v9 = vmul.f32 %v13417_v59, %v7914_v60 }
0x2000   :  { %v7952_v48 = vsel %vm7944_vm1, %v7948_v45, %v7940_v14  ;;  %v7917_v11 = vmul.f32 %v13419_v10, %v7913_v47 }
0x2001   :  { %v7956_v15 = vadd.f32 1.0, %v7952_v48  ;;  %v7951_v62 = vsel %vm7943_vm2, %v7947_v56, %v7939_v39  ;;  %v7938_v50 = vmul.f32 %v13425_v7, %v7918_v9  ;;  %v11423_v7 = vld [vmem:[%s15666_s9 + $0x60] sm:$0xff]  ;;  %v11424_v48 = vld [vmem:[%s15666_s9 + $0x68] sm:$0xff] }
0x2002   :  { %v7955_v19 = vadd.f32 1.0, %v7951_v62  ;;  %v7937_v13 = vmul.f32 %v13427_v6, %v7917_v11  ;;  %v12932_v11 = vpack.c.bf16 %v11424_v48, %v11423_v7  ;;  %v11425_v6 = vld [vmem:[%s15666_s9 + $0x70] sm:$0xff] }
0x2003   :  { %v7942_v53 = vsub.f32 1.0, %v7938_v50  ;;  %v7960_v21 = vmul.f32 %v7956_v15, %v7856_v52  ;;  %v11426_v15 = vld [vmem:[%s15666_s9 + $0x78] sm:$0xff] }
0x2004   :  { %v7959_v27 = vmul.f32 %v7955_v19, %v7855_v17  ;;  %v7941_v24 = vsub.f32 1.0, %v7937_v13  ;;  %12933 = vmatprep.subr.bf16.mxu1 %v12932_v11  ;;  %v12936_v62 = vpack.c.bf16 %v11426_v15, %v11425_v6 }
0x2005   :  { %v7950_v59 = vsub.f32 0.0, %v7942_v53  ;;  %12935 = vmatpush3.bf16.msra.mxu1 %v12932_v11 }
0x2006   :  { %12488 = vmatprep.mubr.f32.mxu0 %v7959_v27  ;;  %v7949_v42 = vsub.f32 0.0, %v7941_v24  ;;  %12937 = vmatprep.subr.bf16.mxu1 %v12936_v62 }
0x2007   :  { %12489 = vmatmul.mubr.f32.vlgmr.msra.gmra.mrb[64].mxu0 %v7960_v21  ;;  %v7954_v10 = vsel %vm7946_vm4, %v7950_v59, %v7942_v53 }
0x2008   :  { %v7953_v4 = vsel %vm7945_vm6, %v7949_v42, %v7941_v24  ;;  %v7958_v32 = vadd.f32 1.0, %v7954_v10 }
0x2009   :  { %v7957_v40 = vadd.f32 1.0, %v7953_v4  ;;  %12939 = vmatpush3.bf16.msra.mxu1 %v12936_v62 }
0x200a   :  { %v7962_v36 = vmul.f32 %v7958_v32, %v7858_v12  ;;  %v11421_v32 = vld [vmem:[%s15676_s19 + $0x2] ss:$0 sm:$0xff] }
0x200b   :  { %v7961_v18 = vmul.f32 %v7957_v40, %v7857_v5 }
0x200d   :  { %12491 = vmatprep.mubr.f32.mxu0 %v7961_v18  ;;  %v11422_v18 = vld [vmem:[%s15677_s20 + $0x2] ss:$0 sm:$0xff] }
0x200e   :  { %12492 = vmatmul.mubr.f32.gmra.mrb[66].mxu0 %v7962_v36 }
0x20da   :  { %v12490_v41 = vpop.f32.mrb[64].mxu0 }
0x20db   :  { %v8060_v43 = vadd.f32 %v12490_v41, %v11418_v55  ;;  %v8054_v3 = vpop.f32.mrb[65].mxu0 }
0x20dc   :  { %v8055_v61 = vadd.f32 %v11418_v55, %v8054_v3 }
0x20dd   :  { %v8074_v35 = vadd.f32 %v8060_v43, %v14971_v25 }
0x20de   :  { %v8073_v51 = vadd.f32 %v8055_v61, %v14969_v63 }
0x20df   :  { %v8084_v38 = vsel %vm990_vm3, %v8074_v35, 0.0 }
0x20e0   :  { %8085 = vadd.xlane.f32.xlu1 %v8084_v38  ;;  %v8081_v16 = vsel %vm990_vm3, %v8073_v51, 0.0 }
0x20e1   :  { %8082 = vadd.xlane.f32.xlu0 %v8081_v16  ;;  %v12493_v44 = vpop.f32.mrb[66].mxu0 }
0x20e2   :  { %v8070_v0 = vadd.f32 %v12493_v44, %v11418_v55  ;;  %v8064_v54 = vpop.f32.mrb[67].mxu0 }
0x20e3   :  { %v8065_v30 = vadd.f32 %v11418_v55, %v8064_v54  ;;  %v11428_v54 = vld [vmem:[%s15667_s10 + $0x3] ss:$0 sm:$0xff] }
0x20e4   :  { %v8076_v22 = vadd.f32 %v8070_v0, %v14981_v58 }
0x20e5   :  { %v8075_v31 = vadd.f32 %v8065_v30, %v14977_v2 }
0x20e6   :  { %v8090_v28 = vsel %vm990_vm3, %v8076_v22, 0.0 }
0x20e7   :  { %8091 = vadd.xlane.f32.xlu1 %v8090_v28  ;;  %v8087_v25 = vsel %vm990_vm3, %v8075_v31, 0.0 }
0x20e8   :  { %8088 = vadd.xlane.f32.xlu0 %v8087_v25 }
0x216d   :  { %v8086_v63 = vpop.xlane.xlu1 %8085 }
0x216e   :  { %v8094_v46 = vmul.f32 0.03125, %v8086_v63  ;;  %v8083_v33 = vpop.xlane.xlu0 %8082 }
0x216f   :  { %v8093_v49 = vmul.f32 0.03125, %v8083_v33 }
0x2170   :  { %v8098_v34 = vsub.f32 %v8074_v35, %v8094_v46 }
0x2171   :  { %v8097_v1 = vsub.f32 %v8073_v51, %v8093_v49 }
0x2172   :  { %v8102_v20 = vmul.f32 %v8098_v34, %v8098_v34 }
0x2173   :  { %v8101_v57 = vmul.f32 %v8097_v1, %v8097_v1 }
0x2174   :  { %v8092_v23 = vpop.xlane.xlu1 %8091  ;;  %v8108_v26 = vsel %vm990_vm3, %v8102_v20, 0.0 }
0x2175   :  { %v8096_v58 = vmul.f32 0.03125, %v8092_v23  ;;  %8109 = vadd.xlane.f32.xlu1 %v8108_v26  ;;  %v8089_v2 = vpop.xlane.xlu0 %8088  ;;  %v8105_v14 = vsel %vm990_vm3, %v8101_v57, 0.0 }
0x2176   :  { %v8095_v8 = vmul.f32 0.03125, %v8089_v2  ;;  %8106 = vadd.xlane.f32.xlu0 %v8105_v14 }
0x2177   :  { %v8100_v39 = vsub.f32 %v8076_v22, %v8096_v58 }
0x2178   :  { %v8099_v60 = vsub.f32 %v8075_v31, %v8095_v8 }
0x2179   :  { %v8104_v45 = vmul.f32 %v8100_v39, %v8100_v39 }
0x217a   :  { %v8103_v47 = vmul.f32 %v8099_v60, %v8099_v60 }
0x217b   :  { %v8114_v56 = vsel %vm990_vm3, %v8104_v45, 0.0 }
0x217c   :  { %8115 = vadd.xlane.f32.xlu1 %v8114_v56  ;;  %v8111_v9 = vsel %vm990_vm3, %v8103_v47, 0.0 }
0x217d   :  { %8112 = vadd.xlane.f32.xlu0 %v8111_v9 }
0x2202   :  { %v8110_v50 = vpop.xlane.xlu1 %8109 }
0x2203   :  { %v8118_v17 = vmul.f32 0.03125, %v8110_v50  ;;  %v8107_v19 = vpop.xlane.xlu0 %8106 }
0x2204   :  { %v8117_v13 = vmul.f32 0.03125, %v8107_v19 }
0x2205   :  { %v8122_v52 = vadd.f32 1e-05, %v8118_v17 }
0x2206   :  { %v8121_v53 = vadd.f32 1e-05, %v8117_v13 }
0x2207   :  { %13428 = vrsqrt.f32 %v8122_v52 }
0x2208   :  { %13430 = vrsqrt.f32 %v8121_v53 }
0x2209   :  { %v8116_v27 = vpop.xlane.xlu1 %8115 }
0x220a   :  { %v8120_v24 = vmul.f32 0.03125, %v8116_v27  ;;  %v8113_v21 = vpop.xlane.xlu0 %8112 }
0x220b   :  { %v8119_v59 = vmul.f32 0.03125, %v8113_v21 }
0x220c   :  { %v8124_v42 = vadd.f32 1e-05, %v8120_v24 }
0x220d   :  { %v8123_v10 = vadd.f32 1e-05, %v8119_v59 }
0x220e   :  { %13432 = vrsqrt.f32 %v8124_v42 }
0x220f   :  { %13434 = vrsqrt.f32 %v8123_v10 }
0x2211   :  { %v13429_v4 = vpop.eup %13428 }
0x2212   :  { %v13431_v5 = vpop.eup %13430  ;;  %v8130_v40 = vmul.f32 %v13429_v4, %v8098_v34 }
0x2213   :  { %v8129_v12 = vmul.f32 %v13431_v5, %v8097_v1 }
0x2214   :  { %v8140_v36 = vmul.f32 %v11421_v32, %v8130_v40 }
0x2215   :  { %v8139_v55 = vmul.f32 %v11421_v32, %v8129_v12 }
0x2216   :  { %v15103_v3 = vadd.f32 %v11422_v18, %v8140_v36 }
0x2217   :  { %v15101_v41 = vadd.f32 %v11422_v18, %v8139_v55 }
0x2218   :  { %v13433_v43 = vpop.eup %13432 }
0x2219   :  { %v13435_v61 = vpop.eup %13434  ;;  %12502 = vmatprep.mubr.msk.f32.mxu1 %vm990_vm3, %v15101_v41  ;;  %v8132_v35 = vmul.f32 %v13433_v43, %v8100_v39 }
0x221a   :  { %12503 = vmatmul.mubr.msk.f32.vlgmr.msra.gmra.mrb[90].mxu1 %vm990_vm3, %v15103_v3  ;;  %v8131_v51 = vmul.f32 %v13435_v61, %v8099_v60 }
0x221b   :  { %v8142_v38 = vmul.f32 %v11421_v32, %v8132_v35 }
0x221c   :  { %v8141_v16 = vmul.f32 %v11421_v32, %v8131_v51 }
0x221d   :  { %v15111_v0 = vadd.f32 %v11422_v18, %v8142_v38 }
0x221e   :  { %v15109_v44 = vadd.f32 %v11422_v18, %v8141_v16 }
0x2220   :  { %12505 = vmatprep.mubr.msk.f32.mxu1 %vm990_vm3, %v15109_v44 }
0x2221   :  { %12506 = vmatmul.mubr.msk.f32.gmra.mrb[92].mxu1 %vm990_vm3, %v15111_v0 }
0x22ed   :  { %v12504_v30 = vpop.f32.mrb[90].mxu1 }
0x22ee   :  { %v8250_v22 = vadd.f32 %v12504_v30, %v11428_v54  ;;  %v8244_v31 = vpop.f32.mrb[91].mxu1 }
0x22ef   :  { %v8245_v28 = vadd.f32 %v11428_v54, %v8244_v31 }
0x22f0   :  { %8269 = vrot.lane.b32.xlu1 %v8250_v22, %s13606_s8 }
0x22f1   :  { %8267 = vrot.lane.b32.xlu0 %v8245_v28, %s13606_s8  ;;  %12512 = vmatprep.mubr.msk.f32.mxu1 %vm1142_vm5, %v8245_v28  ;;  %v13152_v49 = vpack.i.bf16 %v8250_v22, %v8245_v28 }
0x22f4   :  { %v12507_v25 = vpop.f32.mrb[92].mxu1 }
0x22f5   :  { %v8260_v63 = vadd.f32 %v12507_v25, %v11428_v54  ;;  %8275 = vrot.lane.b32.xlu0 %v8245_v28, %s13607_s30  ;;  %v8254_v46 = vpop.f32.mrb[93].mxu1 }
0x22f6   :  { %v8255_v33 = vadd.f32 %v11428_v54, %v8254_v46 }
0x22f7   :  { %8273 = vrot.lane.b32.xlu1 %v8260_v63, %s13606_s8 }
0x22f8   :  { %v13157_v34 = vpack.i.bf16 %v8260_v63, %v8255_v33 }
0x22f9   :  { %8279 = vrot.lane.b32.xlu0 %v8255_v33, %s13607_s30 }
0x22fb   :  { %8271 = vrot.lane.b32.xlu1 %v8255_v33, %s13606_s8 }
0x22fd   :  { %8283 = vrot.lane.b32.xlu0 %v8245_v28, %s13608_s5 }
0x22ff   :  { %8277 = vrot.lane.b32.xlu1 %v8250_v22, %s13607_s30 }
0x2301   :  { %8287 = vrot.lane.b32.xlu0 %v8255_v33, %s13608_s5 }
0x2303   :  { %8281 = vrot.lane.b32.xlu1 %v8260_v63, %s13607_s30 }
0x2305   :  { %13153 = vrot.lane.b32.xlu0 %v13152_v49, %s13609_s22 }
0x2307   :  { %8285 = vrot.lane.b32.xlu1 %v8250_v22, %s13608_s5 }
0x230b   :  { %8289 = vrot.lane.b32.xlu1 %v8260_v63, %s13608_s5 }
0x230f   :  { %13158 = vrot.lane.b32.xlu1 %v13157_v34, %s13609_s22 }
0x2362   :  { %v8270_v1 = vpop.permute.xlu1 %8269 }
0x2363   :  { %v8268_v20 = vpop.permute.xlu0 %8267 }
0x2364   :  { %v13162_v57 = vpack.i.bf16 %v8270_v1, %v8268_v20 }
0x2366   :  { %13163 = vrot.lane.b32.xlu0 %v13162_v57, %s13609_s22 }
0x2367   :  { %v8276_v23 = vpop.permute.xlu0 %8275 }
0x2369   :  { %v15136_v26 = vpop.permute.xlu1 %8273 }
0x236b   :  { %v15138_v58 = vpop.permute.xlu0 %8279 }
0x236d   :  { %v8272_v2 = vpop.permute.xlu1 %8271 }
0x236e   :  { %v13167_v14 = vpack.i.bf16 %v15136_v26, %v8272_v2  ;;  %12533 = vmatprep.mubr.msk.f32.mxu0 %vm1142_vm5, %v8272_v2 }
0x236f   :  { %v15142_v8 = vpop.permute.xlu0 %8283 }
0x2370   :  { %13168 = vrot.lane.b32.xlu1 %v13167_v14, %s13609_s22 }
0x2371   :  { %v15145_v39 = vpop.permute.xlu1 %8277 }
0x2372   :  { %v15148_v60 = vpack.i.bf16 %v15145_v39, %v8276_v23 }
0x2373   :  { %v15150_v45 = vpop.permute.xlu0 %8287 }
0x2374   :  { %13173 = vrot.lane.b32.xlu0 %v15148_v60, %s13609_s22 }
0x2375   :  { %v15154_v47 = vpop.permute.xlu1 %8281 }
0x2376   :  { %v15158_v56 = vpack.i.bf16 %v15154_v47, %v15138_v58 }
0x2377   :  { %v13154_v9 = vpop.permute.xlu0 %13153 }
0x2378   :  { %v13156_v7 = vunpack.i.h.bf16 %v13154_v9  ;;  %v13155_v48 = vunpack.i.l.bf16 %v13154_v9  ;;  %13178 = vrot.lane.b32.xlu1 %v15158_v56, %s13609_s22 }
0x2379   :  { %v15162_v11 = vpop.permute.xlu1 %8285 }
0x237a   :  { %v12940_v6 = vpack.c.bf16 %v13156_v7, %v13155_v48  ;;  %v15166_v15 = vpack.i.bf16 %v15162_v11, %v15142_v8 }
0x237c   :  { %13183 = vrot.lane.b32.xlu0 %v15166_v15, %s13609_s22  ;;  %12942 = vmatprep.subr.msk.bf16.mxu1 %vm14606_vm14, %v12940_v6 }
0x237d   :  { %v15172_v62 = vpop.permute.xlu1 %8289  ;;  %12945 = vmatpush3.bf16.xpose.msk.msra.mxu1 %vm14606_vm14, %v12940_v6 }
0x237e   :  { %v15178_v50 = vpack.i.bf16 %v15172_v62, %v15150_v45 }
0x2380   :  { %13193 = vrot.lane.b32.xlu0 %v13152_v49, %s13610_s23  ;;  %13188 = vrot.lane.b32.xlu1 %v15178_v50, %s13609_s22 }
0x2381   :  { %v13159_v17 = vpop.permute.xlu1 %13158 }
0x2382   :  { %v13161_v19 = vunpack.i.h.bf16 %v13159_v17  ;;  %v13160_v13 = vunpack.i.l.bf16 %v13159_v17 }
0x2384   :  { %v12946_v52 = vpack.c.bf16 %v13161_v19, %v13160_v13  ;;  %13198 = vrot.lane.b32.xlu1 %v13157_v34, %s13610_s23  ;;  %12513 = vmatmul.mubr.msk.f32.vlgmr.msra.gmra.mrb[94].mxu1 %vm1142_vm5, %v8250_v22 }
0x2385   :  { %12519 = vmatprep.mubr.msk.f32.mxu1 %vm1142_vm5, %v8255_v33 }
0x2386   :  { %12948 = vmatprep.subr.msk.bf16.mxu1 %vm14606_vm14, %v12946_v52 }
0x2387   :  { %12951 = vmatpush3.bf16.xpose.msk.msra.mxu1 %vm14606_vm14, %v12946_v52 }
0x2388   :  { %13203 = vrot.lane.b32.xlu1 %v13162_v57, %s13610_s23 }
0x238c   :  { %13208 = vrot.lane.b32.xlu1 %v13167_v14, %s13610_s23 }
0x238e   :  { %12520 = vmatmul.mubr.msk.f32.vlgmr.msra.gmra.mrb[96].mxu1 %vm1142_vm5, %v8260_v63 }
0x238f   :  { %12526 = vmatprep.mubr.msk.f32.mxu1 %vm1142_vm5, %v8268_v20 }
0x23d8   :  { %v13164_v53 = vpop.permute.xlu0 %13163 }
0x23d9   :  { %v13166_v27 = vunpack.i.h.bf16 %v13164_v53  ;;  %v13165_v24 = vunpack.i.l.bf16 %v13164_v53 }
0x23db   :  { %v12952_v21 = vpack.c.bf16 %v13166_v27, %v13165_v24 }
0x23dd   :  { %12954 = vmatprep.subr.msk.bf16.mxu1 %vm14606_vm14, %v12952_v21 }
0x23de   :  { %12957 = vmatpush3.bf16.xpose.msk.msra.mxu1 %vm14606_vm14, %v12952_v21 }
0x23e2   :  { %v13169_v59 = vpop.permute.xlu1 %13168 }
0x23e3   :  { %v13171_v42 = vunpack.i.h.bf16 %v13169_v59  ;;  %v13170_v10 = vunpack.i.l.bf16 %v13169_v59 }
0x23e5   :  { %v12958_v4 = vpack.c.bf16 %v13171_v42, %v13170_v10  ;;  %12527 = vmatmul.mubr.msk.f32.vlgmr.msra.gmra.mrb[98].mxu1 %vm1142_vm5, %v8270_v1 }
0x23e6   :  { %v13174_v32 = vpop.permute.xlu0 %13173  ;;  %12540 = vmatprep.mubr.msk.f32.mxu1 %vm1142_vm5, %v8276_v23 }
0x23e7   :  { %v13176_v5 = vunpack.i.h.bf16 %v13174_v32  ;;  %v13175_v40 = vunpack.i.l.bf16 %v13174_v32  ;;  %12960 = vmatprep.subr.msk.bf16.mxu0 %vm14606_vm14, %v12958_v4 }
0x23e8   :  { %12963 = vmatpush3.bf16.xpose.msk.msra.mxu0 %vm14606_vm14, %v12958_v4 }
0x23e9   :  { %v12964_v12 = vpack.c.bf16 %v13176_v5, %v13175_v40 }
0x23ea   :  { %v13179_v18 = vpop.permute.xlu1 %13178 }
0x23eb   :  { %v13181_v36 = vunpack.i.h.bf16 %v13179_v18  ;;  %v13180_v55 = vunpack.i.l.bf16 %v13179_v18  ;;  %12966 = vmatprep.subr.msk.bf16.mxu1 %vm14606_vm14, %v12964_v12 }
0x23ec   :  { %12969 = vmatpush3.bf16.xpose.msk.msra.mxu1 %vm14606_vm14, %v12964_v12 }
0x23ed   :  { %v12970_v43 = vpack.c.bf16 %v13181_v36, %v13180_v55 }
0x23ee   :  { %v13184_v61 = vpop.permute.xlu0 %13183 }
0x23ef   :  { %v13186_v35 = vunpack.i.h.bf16 %v13184_v61  ;;  %v13185_v51 = vunpack.i.l.bf16 %v13184_v61  ;;  %12534 = vmatmul.mubr.msk.f32.vlgmr.msra.gmra.mrb[68].mxu0 %vm1142_vm5, %v15136_v26  ;;  %12972 = vmatprep.subr.msk.bf16.mxu0 %vm14606_vm14, %v12970_v43 }
0x23f0   :  { %12975 = vmatpush3.bf16.xpose.msk.msra.mxu0 %vm14606_vm14, %v12970_v43  ;;  %12547 = vmatprep.mubr.msk.f32.mxu0 %vm1142_vm5, %v15138_v58 }
0x23f1   :  { %v12976_v38 = vpack.c.bf16 %v13186_v35, %v13185_v51 }
0x23f2   :  { %v13189_v16 = vpop.permute.xlu1 %13188  ;;  %v13194_v54 = vpop.permute.xlu0 %13193 }
0x23f3   :  { %v13191_v30 = vunpack.i.h.bf16 %v13189_v16  ;;  %v13190_v22 = vunpack.i.l.bf16 %v13189_v16  ;;  %v13196_v31 = vunpack.i.h.bf16 %v13194_v54  ;;  %v13195_v28 = vunpack.i.l.bf16 %v13194_v54  ;;  %12541 = vmatmul.mubr.msk.f32.vlgmr.msra.gmra.mrb[100].mxu1 %vm1142_vm5, %v15145_v39  ;;  %12978 = vmatprep.subr.msk.bf16.mxu1 %vm14606_vm14, %v12976_v38 }
0x23f4   :  { %12981 = vmatpush3.bf16.xpose.msk.msra.mxu1 %vm14606_vm14, %v12976_v38  ;;  %12554 = vmatprep.mubr.msk.f32.mxu1 %vm1142_vm5, %v15142_v8 }
0x23f5   :  { %v12982_v25 = vpack.c.bf16 %v13191_v30, %v13190_v22  ;;  %v12988_v63 = vpack.c.bf16 %v13196_v31, %v13195_v28 }
0x23f6   :  { %v13199_v46 = vpop.permute.xlu1 %13198 }
0x23f7   :  { %v13201_v33 = vunpack.i.h.bf16 %v13199_v46  ;;  %v13200_v49 = vunpack.i.l.bf16 %v13199_v46  ;;  %12548 = vmatmul.mubr.msk.f32.vlgmr.msra.gmra.mrb[70].mxu0 %vm1142_vm5, %v15154_v47  ;;  %12984 = vmatprep.subr.msk.bf16.mxu0 %vm14606_vm14, %v12982_v25 }
0x23f8   :  { %12989 = vmatprep.subr.bf16.mxu1 %v12988_v63  ;;  %12987 = vmatpush3.bf16.xpose.msk.msra.mxu0 %vm14606_vm14, %v12982_v25 }
0x23f9   :  { %v12992_v34 = vpack.c.bf16 %v13201_v33, %v13200_v49  ;;  %12561 = vmatprep.mubr.msk.f32.mxu0 %vm1142_vm5, %v15150_v45 }
0x23fa   :  { %v13204_v1 = vpop.permute.xlu1 %13203 }
0x23fb   :  { %v13206_v20 = vunpack.i.h.bf16 %v13204_v1  ;;  %v13205_v57 = vunpack.i.l.bf16 %v13204_v1  ;;  %12555 = vmatmul.mubr.msk.f32.vlgmr.msra.gmra.mrb[102].mxu1 %vm1142_vm5, %v15162_v11  ;;  %12993 = vmatprep.subr.bf16.mxu0 %v12992_v34 }
0x23fc   :  { %12991 = vmatpush3.bf16.msra.mxu1 %v12988_v63 }
0x23fd   :  { %v15234_v23 = vpack.c.bf16 %v13206_v20, %v13205_v57 }
0x23fe   :  { %v13209_v26 = vpop.permute.xlu1 %13208 }
0x23ff   :  { %v13211_v58 = vunpack.i.h.bf16 %v13209_v26  ;;  %v13210_v2 = vunpack.i.l.bf16 %v13209_v26  ;;  %12562 = vmatmul.mubr.msk.f32.vlgmr.msra.gmra.mrb[72].mxu0 %vm1142_vm5, %v15172_v62  ;;  %12997 = vmatprep.subr.bf16.mxu1 %v15234_v23 }
0x2400   :  { %12995 = vmatpush3.bf16.msra.mxu0 %v12992_v34 }
0x2401   :  { %v15239_v37 = vpack.c.bf16 %v13211_v58, %v13210_v2 }
0x2403   :  { %13001 = vmatprep.subr.bf16.mxu0 %v15239_v37 }
0x2457   :  { %v12514_v14 = vpop.f32.mrb[94].mxu1 }
0x2458   :  { %v8988_v8 = vmul.f32 0.35355338, %v12514_v14  ;;  %v8369_v39 = vpop.f32.mrb[95].mxu1 }
0x2459   :  { %v8987_v45 = vmul.f32 0.35355338, %v8369_v39 }
0x245a   :  { %v15243_v47 = vadd.f32 %v8988_v8, %v14681_v29 }
0x245b   :  { %v15246_v9 = vadd.f32 %v8987_v45, %v14681_v29 }
0x245c   :  { %v9022_v7 = vsel %vm863_vm0, %v15243_v47, -inf }
0x245d   :  { %9023 = vmax.xlane.f32.xlu1 %v9022_v7  ;;  %v9019_v48 = vsel %vm863_vm0, %v15246_v9, -inf }
0x245e   :  { %9020 = vmax.xlane.f32.xlu0 %v9019_v48 }
0x2461   :  { %v12521_v11 = vpop.f32.mrb[96].mxu1 }
0x2462   :  { %v8990_v6 = vmul.f32 0.35355338, %v12521_v11  ;;  %v8456_v62 = vpop.f32.mrb[97].mxu1 }
0x2463   :  { %v8989_v17 = vmul.f32 0.35355338, %v8456_v62 }
0x2464   :  { %v15253_v19 = vadd.f32 %v8990_v6, %v14681_v29 }
0x2465   :  { %v15256_v13 = vadd.f32 %v8989_v17, %v14681_v29 }
0x2466   :  { %v9028_v52 = vsel %vm863_vm0, %v15253_v19, -inf }
0x2467   :  { %9029 = vmax.xlane.f32.xlu0 %v9028_v52  ;;  %v9025_v53 = vsel %vm863_vm0, %v15256_v13, -inf }
0x246b   :  { %9026 = vmax.xlane.f32.xlu0 %v9025_v53 }
0x24b8   :  { %v12528_v27 = vpop.f32.mrb[98].mxu1 }
0x24b9   :  { %v8992_v24 = vmul.f32 0.35355338, %v12528_v27  ;;  %v8543_v21 = vpop.f32.mrb[99].mxu1 }
0x24ba   :  { %v8991_v59 = vmul.f32 0.35355338, %v8543_v21 }
0x24bb   :  { %v15263_v42 = vadd.f32 %v8992_v24, %v14681_v29 }
0x24bc   :  { %v15266_v10 = vadd.f32 %v8991_v59, %v14681_v29 }
0x24bd   :  { %v9034_v4 = vsel %vm863_vm0, %v15263_v42, -inf }
0x24be   :  { %9035 = vmax.xlane.f32.xlu1 %v9034_v4  ;;  %v9031_v32 = vsel %vm863_vm0, %v15266_v10, -inf }
0x24bf   :  { %9032 = vmax.xlane.f32.xlu0 %v9031_v32 }
0x24c2   :  { %v12535_v5 = vpop.f32.mrb[68].mxu0 }
0x24c3   :  { %v8994_v40 = vmul.f32 0.35355338, %v12535_v5  ;;  %v8630_v12 = vpop.f32.mrb[69].mxu0 }
0x24c4   :  { %v8993_v18 = vmul.f32 0.35355338, %v8630_v12 }
0x24c5   :  { %v15273_v36 = vadd.f32 %v8994_v40, %v14681_v29 }
0x24c6   :  { %v12542_v55 = vpop.f32.mrb[100].mxu1  ;;  %v15276_v43 = vadd.f32 %v8993_v18, %v14681_v29 }
0x24c7   :  { %v8996_v61 = vmul.f32 0.35355338, %v12542_v55  ;;  %v8717_v35 = vpop.f32.mrb[101].mxu1  ;;  %v9040_v51 = vsel %vm863_vm0, %v15273_v36, -inf }
0x24c8   :  { %v8995_v38 = vmul.f32 0.35355338, %v8717_v35  ;;  %9041 = vmax.xlane.f32.xlu0 %v9040_v51  ;;  %v9037_v28 = vsel %vm863_vm0, %v15276_v43, -inf }
0x24c9   :  { %v15281_v16 = vadd.f32 %v8996_v61, %v14681_v29 }
0x24ca   :  { %v12549_v54 = vpop.f32.mrb[70].mxu0  ;;  %v15284_v30 = vadd.f32 %v8995_v38, %v14681_v29 }
0x24cb   :  { %v8998_v22 = vmul.f32 0.35355338, %v12549_v54  ;;  %v8804_v31 = vpop.f32.mrb[71].mxu0  ;;  %v9046_v25 = vsel %vm863_vm0, %v15281_v16, -inf }
0x24cc   :  { %v8997_v63 = vmul.f32 0.35355338, %v8804_v31  ;;  %9038 = vmax.xlane.f32.xlu0 %v9037_v28  ;;  %9047 = vmax.xlane.f32.xlu1 %v9046_v25  ;;  %v9043_v57 = vsel %vm863_vm0, %v15284_v30, -inf }
0x24cd   :  { %v15291_v46 = vadd.f32 %v8998_v22, %v14681_v29 }
0x24ce   :  { %v12556_v33 = vpop.f32.mrb[102].mxu1  ;;  %v15294_v49 = vadd.f32 %v8997_v63, %v14681_v29 }
0x24cf   :  { %v9000_v34 = vmul.f32 0.35355338, %v12556_v33  ;;  %v8891_v1 = vpop.f32.mrb[103].mxu1  ;;  %v9052_v20 = vsel %vm863_vm0, %v15291_v46, -inf }
0x24d0   :  { %v8999_v26 = vmul.f32 0.35355338, %v8891_v1  ;;  %9053 = vmax.xlane.f32.xlu0 %v9052_v20  ;;  %9044 = vmax.xlane.f32.xlu1 %v9043_v57  ;;  %v9049_v45 = vsel %vm863_vm0, %v15294_v49, -inf }
0x24d1   :  { %v15301_v58 = vadd.f32 %v9000_v34, %v14681_v29 }
0x24d2   :  { %v12563_v2 = vpop.f32.mrb[72].mxu0  ;;  %v15304_v14 = vadd.f32 %v8999_v26, %v14681_v29 }
0x24d3   :  { %v9002_v8 = vmul.f32 0.35355338, %v12563_v2  ;;  %v8978_v39 = vpop.f32.mrb[73].mxu0  ;;  %v9058_v7 = vsel %vm863_vm0, %v15301_v58, -inf }
0x24d4   :  { %v9001_v48 = vmul.f32 0.35355338, %v8978_v39  ;;  %9050 = vmax.xlane.f32.xlu0 %v9049_v45  ;;  %9059 = vmax.xlane.f32.xlu1 %v9058_v7  ;;  %v9055_v62 = vsel %vm863_vm0, %v15304_v14, -inf }
0x24d5   :  { %v15314_v6 = vadd.f32 %v9002_v8, %v14681_v29 }
0x24d6   :  { %v15311_v11 = vadd.f32 %v9001_v48, %v14681_v29 }
0x24d7   :  { %v9064_v52 = vsel %vm863_vm0, %v15314_v6, -inf }
0x24d8   :  { %9056 = vmax.xlane.f32.xlu1 %v9055_v62  ;;  %v9061_v17 = vsel %vm863_vm0, %v15311_v11, -inf }
0x24d9   :  { %9062 = vmax.xlane.f32.xlu0 %v9061_v17 }
0x24dc   :  { %9065 = vmax.xlane.f32.xlu1 %v9064_v52 }
0x24ea   :  { %v9024_v27 = vpop.xlane.xlu1 %9023 }
0x24eb   :  { %v9021_v29 = vpop.xlane.xlu0 %9020  ;;  %v9068_v21 = vsub.f32 %v15243_v47, %v9024_v27 }
0x24ec   :  { %v9067_v24 = vsub.f32 %v15246_v9, %v9021_v29 }
0x24ed   :  { %13218 = vrot.lane.b32.xlu1 %v15158_v56, %s13610_s23  ;;  %v9085_v5 = vmul.f32 1.442695, %v9068_v21 }
0x24ee   :  { %v9083_v59 = vmul.f32 1.442695, %v9067_v24 }
0x24ef   :  { %13213 = vrot.lane.b32.xlu0 %v15148_v60, %s13610_s23 }
0x24f0   :  { %13436 = vpow2.f32 %v9083_v59 }
0x24f1   :  { %13438 = vpow2.f32 %v9085_v5 }
0x24f4   :  { %v9030_v53 = vpop.xlane.xlu0 %9029 }
0x24f5   :  { %v9070_v4 = vsub.f32 %v15253_v19, %v9030_v53 }
0x24f7   :  { %v9089_v40 = vmul.f32 1.442695, %v9070_v4 }
0x24f8   :  { %v9027_v32 = vpop.xlane.xlu0 %9026 }
0x24f9   :  { %v9069_v12 = vsub.f32 %v15256_v13, %v9027_v32  ;;  %13440 = vpow2.f32 %v9089_v40 }
0x24fa   :  { %v15330_v60 = vpop.eup %13436 }
0x24fb   :  { %v9087_v56 = vmul.f32 1.442695, %v9069_v12  ;;  %v15332_v18 = vpop.eup %13438  ;;  %v9115_v47 = vsel %vm863_vm0, %v15330_v60, 0.0 }
0x24fc   :  { %v9118_v19 = vsel %vm863_vm0, %v15332_v18, 0.0 }
0x24fd   :  { %13442 = vpow2.f32 %v9087_v56 }
0x2503   :  { %v15336_v9 = vpop.eup %13440 }
0x2504   :  { %v9124_v13 = vsel %vm863_vm0, %v15336_v9, 0.0 }
0x2507   :  { %v15342_v55 = vpop.eup %13442 }
0x2508   :  { %v9121_v61 = vsel %vm863_vm0, %v15342_v55, 0.0 }
0x250e   :  { %9116 = vadd.xlane.f32.xlu0 %v9115_v47 }
0x2511   :  { %9119 = vadd.xlane.f32.xlu1 %v9118_v19 }
0x2512   :  { %9125 = vadd.xlane.f32.xlu0 %v9124_v13 }
0x2516   :  { %9122 = vadd.xlane.f32.xlu0 %v9121_v61 }
0x254b   :  { %v9036_v35 = vpop.xlane.xlu1 %9035 }
0x254c   :  { %v9072_v51 = vsub.f32 %v15263_v42, %v9036_v35  ;;  %v9033_v38 = vpop.xlane.xlu0 %9032 }
0x254d   :  { %v9071_v54 = vsub.f32 %v15266_v10, %v9033_v38 }
0x254e   :  { %v9093_v22 = vmul.f32 1.442695, %v9072_v51 }
0x254f   :  { %v9091_v31 = vmul.f32 1.442695, %v9071_v54 }
0x2550   :  { %13444 = vpow2.f32 %v9093_v22 }
0x2551   :  { %13446 = vpow2.f32 %v9091_v31 }
0x2555   :  { %v9042_v28 = vpop.xlane.xlu0 %9041 }
0x2556   :  { %v9074_v25 = vsub.f32 %v15273_v36, %v9042_v28 }
0x2558   :  { %v9097_v63 = vmul.f32 1.442695, %v9074_v25 }
0x2559   :  { %v9039_v33 = vpop.xlane.xlu0 %9038  ;;  %v9048_v34 = vpop.xlane.xlu1 %9047 }
0x255a   :  { %v15349_v1 = vpop.eup %13444  ;;  %13448 = vpow2.f32 %v9097_v63  ;;  %v9073_v20 = vsub.f32 %v15276_v43, %v9039_v33  ;;  %v9076_v42 = vsub.f32 %v15281_v16, %v9048_v34 }
0x255b   :  { %v9130_v10 = vsel %vm863_vm0, %v15349_v1, 0.0  ;;  %v15355_v57 = vpop.eup %13446 }
0x255c   :  { %v9095_v26 = vmul.f32 1.442695, %v9073_v20  ;;  %v9101_v2 = vmul.f32 1.442695, %v9076_v42  ;;  %9131 = vadd.xlane.f32.xlu1 %v9130_v10  ;;  %v9127_v43 = vsel %vm863_vm0, %v15355_v57, 0.0 }
0x255d   :  { %v9054_v8 = vpop.xlane.xlu0 %9053  ;;  %v9045_v36 = vpop.xlane.xlu1 %9044 }
0x255e   :  { %13450 = vpow2.f32 %v9095_v26  ;;  %v9078_v39 = vsub.f32 %v15291_v46, %v9054_v8  ;;  %v9075_v45 = vsub.f32 %v15284_v30, %v9045_v36 }
0x255f   :  { %13452 = vpow2.f32 %v9101_v2 }
0x2560   :  { %v9105_v16 = vmul.f32 1.442695, %v9078_v39  ;;  %v9099_v7 = vmul.f32 1.442695, %v9075_v45  ;;  %9128 = vadd.xlane.f32.xlu1 %v9127_v43 }
0x2561   :  { %v9051_v48 = vpop.xlane.xlu0 %9050  ;;  %v9060_v62 = vpop.xlane.xlu1 %9059 }
0x2562   :  { %13454 = vpow2.f32 %v9105_v16  ;;  %v9077_v17 = vsub.f32 %v15294_v49, %v9051_v48  ;;  %v9080_v52 = vsub.f32 %v15301_v58, %v9060_v62 }
0x2563   :  { %13456 = vpow2.f32 %v9099_v7 }
0x2564   :  { %v15363_v29 = vpop.eup %13448  ;;  %v9103_v46 = vmul.f32 1.442695, %v9077_v17  ;;  %v9109_v53 = vmul.f32 1.442695, %v9080_v52 }
0x2565   :  { %v9057_v30 = vpop.xlane.xlu1 %9056  ;;  %v9136_v27 = vsel %vm863_vm0, %v15363_v29, 0.0 }
0x2566   :  { %13458 = vpow2.f32 %v9103_v46  ;;  %v9079_v24 = vsub.f32 %v15304_v14, %v9057_v30  ;;  %9137 = vadd.xlane.f32.xlu0 %v9136_v27  ;;  %v9063_v21 = vpop.xlane.xlu0 %9062 }
0x2567   :  { %13460 = vpow2.f32 %v9109_v53  ;;  %v9081_v59 = vsub.f32 %v15311_v11, %v9063_v21 }
0x2568   :  { %v15369_v49 = vpop.eup %13450  ;;  %v9107_v58 = vmul.f32 1.442695, %v9079_v24 }
0x2569   :  { %v15371_v4 = vpop.eup %13452  ;;  %v9111_v32 = vmul.f32 1.442695, %v9081_v59  ;;  %v9066_v5 = vpop.xlane.xlu1 %9065  ;;  %v9133_v40 = vsel %vm863_vm0, %v15369_v49, 0.0 }
0x256a   :  { %13462 = vpow2.f32 %v9107_v58  ;;  %v9082_v12 = vsub.f32 %v15314_v6, %v9066_v5  ;;  %9134 = vadd.xlane.f32.xlu0 %v9133_v40  ;;  %v9142_v14 = vsel %vm863_vm0, %v15371_v4, 0.0  ;;  %v13214_v63 = vpop.permute.xlu0 %13213 }
0x256b   :  { %13464 = vpow2.f32 %v9111_v32  ;;  %9143 = vadd.xlane.f32.xlu1 %v9142_v14  ;;  %v13216_v8 = vunpack.i.h.bf16 %v13214_v63  ;;  %v13215_v36 = vunpack.i.l.bf16 %v13214_v63 }
0x256c   :  { %v15378_v11 = vpop.eup %13454  ;;  %v9113_v56 = vmul.f32 1.442695, %v9082_v12 }
0x256d   :  { %v15380_v47 = vpop.eup %13456  ;;  %v9148_v19 = vsel %vm863_vm0, %v15378_v11, 0.0  ;;  %v13219_v33 = vpop.permute.xlu1 %13218 }
0x256e   :  { %13466 = vpow2.f32 %v9113_v56  ;;  %9149 = vadd.xlane.f32.xlu0 %v9148_v19  ;;  %v9139_v13 = vsel %vm863_vm0, %v15380_v47, 0.0  ;;  %v13221_v16 = vunpack.i.h.bf16 %v13219_v33  ;;  %v13220_v7 = vunpack.i.l.bf16 %v13219_v33 }
0x256f   :  { %9140 = vadd.xlane.f32.xlu1 %v9139_v13 }
0x2570   :  { %v15386_v6 = vpop.eup %13458  ;;  %v13008_v62 = vpack.c.bf16 %v13221_v16, %v13220_v7 }
0x2571   :  { %v15388_v61 = vpop.eup %13460  ;;  %v9145_v35 = vsel %vm863_vm0, %v15386_v6, 0.0 }
0x2572   :  { %9146 = vadd.xlane.f32.xlu0 %v9145_v35  ;;  %v9154_v51 = vsel %vm863_vm0, %v15388_v61, 0.0 }
0x2573   :  { %9155 = vadd.xlane.f32.xlu1 %v9154_v51 }
0x2574   :  { %v15394_v38 = vpop.eup %13462 }
0x2575   :  { %v15396_v54 = vpop.eup %13464  ;;  %v9151_v22 = vsel %vm863_vm0, %v15394_v38, 0.0 }
0x2576   :  { %v9157_v31 = vsel %vm863_vm0, %v15396_v54, 0.0 }
0x2577   :  { %9152 = vadd.xlane.f32.xlu1 %v9151_v22  ;;  %9158 = vadd.xlane.f32.xlu0 %v9157_v31 }
0x2578   :  { %v15402_v28 = vpop.eup %13466 }
0x2579   :  { %v9160_v25 = vsel %vm863_vm0, %v15402_v28, 0.0 }
0x257b   :  { %9161 = vadd.xlane.f32.xlu1 %v9160_v25 }
0x258c   :  { %13228 = vrot.lane.b32.xlu1 %v15178_v50, %s13610_s23  ;;  %v13004_v50 = vpack.c.bf16 %v13216_v8, %v13215_v36 }
0x258d   :  { %13223 = vrot.lane.b32.xlu0 %v15166_v15, %s13610_s23 }
0x259b   :  { %v9117_v34 = vpop.xlane.xlu0 %9116 }
0x259c   :  { %13468 = vrcp.f32 %v9117_v34 }
0x259e   :  { %v9120_v20 = vpop.xlane.xlu1 %9119 }
0x259f   :  { %13470 = vrcp.f32 %v9120_v20  ;;  %v9126_v42 = vpop.xlane.xlu0 %9125 }
0x25a0   :  { %13472 = vrcp.f32 %v9126_v42 }
0x25a3   :  { %v9123_v10 = vpop.xlane.xlu0 %9122 }
0x25a4   :  { %13474 = vrcp.f32 %v9123_v10 }
0x25a6   :  { %v13469_v26 = vpop.eup %13468 }
0x25a7   :  { %v9179_v2 = vmul.f32 %v13469_v26, %v15330_v60 }
0x25a9   :  { %v13471_v39 = vpop.eup %13470  ;;  %12568 = vmatprep.mubr.msk.f32.mxu1 %vm863_vm0, %v9179_v2 }
0x25aa   :  { %v9180_v15 = vmul.f32 %v13471_v39, %v15332_v18  ;;  %v13473_v45 = vpop.eup %13472 }
0x25ab   :  { %v9182_v60 = vmul.f32 %v13473_v45, %v15336_v9 }
0x25ac   :  { %12569 = vmatmul.mubr.msk.f32.vlgmr.msra.gmra.mrb[104].mxu1 %vm863_vm0, %v9180_v15 }
0x25ad   :  { %12999 = vmatpush3.bf16.msra.mxu1 %v15234_v23 }
0x25ae   :  { %v13475_v43 = vpop.eup %13474  ;;  %13005 = vmatprep.subr.bf16.mxu1 %v13004_v50 }
0x25af   :  { %v9181_v48 = vmul.f32 %v13475_v43, %v15342_v55 }
0x25b1   :  { %12575 = vmatprep.mubr.msk.f32.mxu0 %vm863_vm0, %v9181_v48 }
0x25b2   :  { %12576 = vmatmul.mubr.msk.f32.vlgmr.msra.gmra.mrb[74].mxu0 %vm863_vm0, %v9182_v60 }
0x25b3   :  { %13003 = vmatpush3.bf16.msra.mxu0 %v15239_v37 }
0x25b4   :  { %13009 = vmatprep.subr.bf16.mxu0 %v13008_v62 }
0x25e9   :  { %v9132_v18 = vpop.xlane.xlu1 %9131 }
0x25ea   :  { %13476 = vrcp.f32 %v9132_v18 }
0x25ed   :  { %v9129_v17 = vpop.xlane.xlu1 %9128 }
0x25ee   :  { %13478 = vrcp.f32 %v9129_v17 }
0x25f3   :  { %v9138_v23 = vpop.xlane.xlu0 %9137 }
0x25f4   :  { %v13477_v52 = vpop.eup %13476  ;;  %13480 = vrcp.f32 %v9138_v23 }
0x25f5   :  { %v9184_v30 = vmul.f32 %v13477_v52, %v15349_v1 }
0x25f7   :  { %v9135_v46 = vpop.xlane.xlu0 %9134 }
0x25f8   :  { %v13479_v53 = vpop.eup %13478  ;;  %13482 = vrcp.f32 %v9135_v46  ;;  %v9144_v55 = vpop.xlane.xlu1 %9143 }
0x25f9   :  { %v9183_v9 = vmul.f32 %v13479_v53, %v15355_v57  ;;  %13484 = vrcp.f32 %v9144_v55 }
0x25fb   :  { %v9150_v27 = vpop.xlane.xlu0 %9149  ;;  %12582 = vmatprep.mubr.msk.f32.mxu1 %vm863_vm0, %v9183_v9 }
0x25fc   :  { %v9141_v37 = vpop.xlane.xlu1 %9140  ;;  %12583 = vmatmul.mubr.msk.f32.vlgmr.msra.gmra.mrb[106].mxu1 %vm863_vm0, %v9184_v30 }
0x25fd   :  { %13486 = vrcp.f32 %v9141_v37  ;;  %13007 = vmatpush3.bf16.msra.mxu1 %v13004_v50 }
0x25fe   :  { %13488 = vrcp.f32 %v9150_v27  ;;  %v13481_v59 = vpop.eup %13480 }
0x25ff   :  { %v9147_v24 = vpop.xlane.xlu0 %9146  ;;  %v9186_v5 = vmul.f32 %v13481_v59, %v15363_v29 }
0x2600   :  { %13490 = vrcp.f32 %v9147_v24  ;;  %v9156_v21 = vpop.xlane.xlu1 %9155 }
0x2601   :  { %13492 = vrcp.f32 %v9156_v21 }
0x2602   :  { %v13483_v58 = vpop.eup %13482 }
0x2603   :  { %v9185_v32 = vmul.f32 %v13483_v58, %v15369_v49  ;;  %v13485_v40 = vpop.eup %13484 }
0x2604   :  { %v9153_v57 = vpop.xlane.xlu1 %9152  ;;  %v9159_v1 = vpop.xlane.xlu0 %9158  ;;  %v9188_v51 = vmul.f32 %v13485_v40, %v15371_v4 }
0x2605   :  { %13494 = vrcp.f32 %v9153_v57  ;;  %12589 = vmatprep.mubr.msk.f32.mxu0 %vm863_vm0, %v9185_v32 }
0x2606   :  { %13496 = vrcp.f32 %v9159_v1  ;;  %12590 = vmatmul.mubr.msk.f32.vlgmr.msra.gmra.mrb[76].mxu0 %vm863_vm0, %v9186_v5 }
0x2607   :  { %v13487_v12 = vpop.eup %13486  ;;  %13011 = vmatpush3.bf16.msra.mxu0 %v13008_v62 }
0x2608   :  { %v9162_v14 = vpop.xlane.xlu1 %9161  ;;  %v13224_v56 = vpop.permute.xlu0 %13223  ;;  %v9187_v19 = vmul.f32 %v13487_v12, %v15380_v47  ;;  %v11481_v47 = vld [vmem:[%s15668_s11 + $0x60] sm:$0xff] }
0x2609   :  { %v13489_v13 = vpop.eup %13488  ;;  %13498 = vrcp.f32 %v9162_v14  ;;  %v13226_v49 = vunpack.i.h.bf16 %v13224_v56  ;;  %v13225_v35 = vunpack.i.l.bf16 %v13224_v56 }
0x260a   :  { %v13491_v29 = vpop.eup %13490  ;;  %12596 = vmatprep.mubr.msk.f32.mxu1 %vm863_vm0, %v9187_v19  ;;  %v9190_v63 = vmul.f32 %v13489_v13, %v15378_v11 }
0x260b   :  { %v13012_v22 = vpack.c.bf16 %v13226_v49, %v13225_v35  ;;  %12597 = vmatmul.mubr.msk.f32.vlgmr.msra.gmra.mrb[108].mxu1 %vm863_vm0, %v9188_v51  ;;  %v9189_v31 = vmul.f32 %v13491_v29, %v15386_v6  ;;  %v13493_v4 = vpop.eup %13492 }
0x260c   :  { %v13229_v25 = vpop.permute.xlu1 %13228  ;;  %v9192_v11 = vmul.f32 %v13493_v4, %v15388_v61  ;;  %v11483_v61 = vld [vmem:[%s15668_s11 + $0x70] sm:$0xff] }
0x260d   :  { %v13231_v33 = vunpack.i.h.bf16 %v13229_v25  ;;  %v13230_v34 = vunpack.i.l.bf16 %v13229_v25  ;;  %12603 = vmatprep.mubr.msk.f32.mxu0 %vm863_vm0, %v9189_v31  ;;  %13013 = vmatprep.subr.bf16.mxu1 %v13012_v22 }
0x260e   :  { %12604 = vmatmul.mubr.msk.f32.vlgmr.msra.gmra.mrb[78].mxu0 %vm863_vm0, %v9190_v63  ;;  %13015 = vmatpush3.bf16.msra.mxu1 %v13012_v22 }
0x260f   :  { %v13495_v20 = vpop.eup %13494  ;;  %v13016_v42 = vpack.c.bf16 %v13231_v33, %v13230_v34  ;;  %12620 = vmatprep.subr.mxu1 %v11481_v47 }
0x2610   :  { %v13497_v6 = vpop.eup %13496  ;;  %v9191_v10 = vmul.f32 %v13495_v20, %v15394_v38  ;;  %v11482_v38 = vld [vmem:[%s15668_s11 + $0x68] sm:$0xff] }
0x2611   :  { %13017 = vmatprep.subr.bf16.mxu0 %v13016_v42  ;;  %v9193_v26 = vmul.f32 %v13497_v6, %v15396_v54  ;;  %v11484_v54 = vld [vmem:[%s15668_s11 + $0x78] sm:$0xff] }
0x2612   :  { %12610 = vmatprep.mubr.msk.f32.mxu1 %vm863_vm0, %v9191_v10  ;;  %13019 = vmatpush3.bf16.msra.mxu0 %v13016_v42  ;;  %v11502_v42 = vld [vmem:[%s15669_s12 + $0x3] ss:$0 sm:$0xff] }
0x2613   :  { %v13499_v2 = vpop.eup %13498  ;;  %12611 = vmatmul.mubr.msk.f32.vlgmr.msra.gmra.mrb[110].mxu1 %vm863_vm0, %v9192_v11  ;;  %12617 = vmatprep.mubr.msk.f32.mxu0 %vm863_vm0, %v9193_v26 }
0x2614   :  { %v9194_v8 = vmul.f32 %v13499_v2, %v15402_v28  ;;  %12621 = vmatpush3.msra.mxu1 %v11481_v47  ;;  %12628 = vmatprep.subr.mxu0 %v11482_v38 }
0x2615   :  { %12636 = vmatprep.subr.mxu1 %v11483_v61 }
0x2616   :  { %12618 = vmatmul.mubr.msk.f32.vlgmr.msra.gmra.mrb[80].mxu0 %vm863_vm0, %v9194_v8 }
0x2617   :  { %12629 = vmatpush3.msra.mxu0 %v11482_v38 }
0x2618   :  { %12644 = vmatprep.subr.mxu0 %v11484_v54 }
0x267f   :  { %v12570_v28 = vpop.f32.mrb[104].mxu1 }
0x2680   :  { %v9273_v36 = vpop.f32.mrb[105].mxu1 }
0x2681   :  { %12622 = vmatprep.mubr.msk.f32.mxu1 %vm1142_vm5, %v9273_v36 }
0x2682   :  { %12623 = vmatmul.mubr.msk.f32.vlgmr.msra.gmra.mrb[112].mxu1 %vm1142_vm5, %v12570_v28 }
0x2683   :  { %12637 = vmatpush3.msra.mxu1 %v11483_v61 }
0x2685   :  { %v12577_v39 = vpop.f32.mrb[74].mxu0 }
0x2686   :  { %v9360_v15 = vpop.f32.mrb[75].mxu0 }
0x2687   :  { %12625 = vmatprep.mubr.msk.f32.mxu1 %vm1142_vm5, %v9360_v15 }
0x2688   :  { %12626 = vmatmul.mubr.msk.f32.gmra.mrb[114].mxu1 %vm1142_vm5, %v12577_v39 }
0x26cf   :  { %v12584_v50 = vpop.f32.mrb[106].mxu1 }
0x26d0   :  { %v9447_v45 = vpop.f32.mrb[107].mxu1 }
0x26d1   :  { %12630 = vmatprep.mubr.msk.f32.mxu0 %vm1142_vm5, %v9447_v45 }
0x26d2   :  { %12631 = vmatmul.mubr.msk.f32.vlgmr.msra.gmra.mrb[82].mxu0 %vm1142_vm5, %v12584_v50 }
0x26d3   :  { %12645 = vmatpush3.msra.mxu0 %v11484_v54 }
0x26d9   :  { %v12591_v43 = vpop.f32.mrb[76].mxu0 }
0x26da   :  { %v9534_v16 = vpop.f32.mrb[77].mxu0 }
0x26db   :  { %12633 = vmatprep.mubr.msk.f32.mxu0 %vm1142_vm5, %v9534_v16 }
0x26dc   :  { %12634 = vmatmul.mubr.msk.f32.gmra.mrb[84].mxu0 %vm1142_vm5, %v12591_v43 }
0x26de   :  { %v12598_v7 = vpop.f32.mrb[108].mxu1 }
0x26df   :  { %v9621_v48 = vpop.f32.mrb[109].mxu1 }
0x26e0   :  { %12638 = vmatprep.mubr.msk.f32.mxu1 %vm1142_vm5, %v9621_v48 }
0x26e1   :  { %12639 = vmatmul.mubr.msk.f32.vlgmr.msra.gmra.mrb[116].mxu1 %vm1142_vm5, %v12598_v7  ;;  %v12605_v60 = vpop.f32.mrb[78].mxu0 }
0x26e2   :  { %v9708_v62 = vpop.f32.mrb[79].mxu0 }
0x26e3   :  { %12641 = vmatprep.mubr.msk.f32.mxu1 %vm1142_vm5, %v9708_v62 }
0x26e5   :  { %12642 = vmatmul.mubr.msk.f32.gmra.mrb[118].mxu1 %vm1142_vm5, %v12605_v60 }
0x26e6   :  { %v12612_v18 = vpop.f32.mrb[110].mxu1 }
0x26e7   :  { %v9795_v17 = vpop.f32.mrb[111].mxu1 }
0x26e8   :  { %12646 = vmatprep.mubr.msk.f32.mxu0 %vm1142_vm5, %v9795_v17 }
0x26e9   :  { %v12619_v23 = vpop.f32.mrb[80].mxu0  ;;  %12647 = vmatmul.mubr.msk.f32.vlgmr.msra.gmra.mrb[86].mxu0 %vm1142_vm5, %v12612_v18 }
0x26ea   :  { %v9882_v52 = vpop.f32.mrb[81].mxu0 }
0x26eb   :  { %12649 = vmatprep.mubr.msk.f32.mxu0 %vm1142_vm5, %v9882_v52 }
0x26ed   :  { %12650 = vmatmul.mubr.msk.f32.gmra.mrb[88].mxu0 %vm1142_vm5, %v12619_v23 }
0x2755   :  { %v12624_v46 = vpop.f32.mrb[112].mxu1 }
0x2756   :  { %v9974_v53 = vpop.f32.mrb[113].mxu1  ;;  %v10291_v27 = vsel %vm990_vm3, %v12624_v46, 0.0 }
0x2757   :  { %v10284_v21 = vsel %vm990_vm3, %v9974_v53, 0.0 }
0x275b   :  { %v12627_v55 = vpop.f32.mrb[114].mxu1 }
0x275c   :  { %v9984_v9 = vpop.f32.mrb[115].mxu1  ;;  %v10305_v1 = vsel %vm990_vm3, %v12627_v55, 0.0 }
0x275d   :  { %v10298_v12 = vsel %vm990_vm3, %v9984_v9, 0.0 }
0x27a5   :  { %v12632_v30 = vpop.f32.mrb[82].mxu0 }
0x27a6   :  { %v10292_v37 = vsel %vm990_vm3, %v12632_v30, 0.0  ;;  %v10071_v24 = vpop.f32.mrb[83].mxu0 }
0x27a7   :  { %v10293_v59 = vadd.f32 %v10292_v37, %v10291_v27  ;;  %v10285_v58 = vsel %vm990_vm3, %v10071_v24, 0.0 }
0x27a8   :  { %v10286_v32 = vadd.f32 %v10285_v58, %v10284_v21 }
0x27af   :  { %v12635_v57 = vpop.f32.mrb[84].mxu0 }
0x27b0   :  { %v10306_v5 = vsel %vm990_vm3, %v12635_v57, 0.0  ;;  %v10081_v40 = vpop.f32.mrb[85].mxu0 }
0x27b1   :  { %v10307_v14 = vadd.f32 %v10306_v5, %v10305_v1  ;;  %v10299_v56 = vsel %vm990_vm3, %v10081_v40, 0.0  ;;  %v11507_v1 = vld [vmem:[%s15672_s15 + $0x60] sm:$0xff]  ;;  %v11508_v5 = vld [vmem:[%s15672_s15 + $0x68] sm:$0xff] }
0x27b2   :  { %v10300_v19 = vadd.f32 %v10299_v56, %v10298_v12  ;;  %v13020_v40 = vpack.c.bf16 %v11508_v5, %v11507_v1  ;;  %v11509_v12 = vld [vmem:[%s15672_s15 + $0x70] sm:$0xff] }
0x27b4   :  { %v12640_v13 = vpop.f32.mrb[116].mxu1  ;;  %13021 = vmatprep.subr.bf16.mxu1 %v13020_v40 }
0x27b5   :  { %v10294_v49 = vsel %vm990_vm3, %v12640_v13, 0.0  ;;  %v10168_v35 = vpop.f32.mrb[117].mxu1  ;;  %13023 = vmatpush3.bf16.msra.mxu1 %v13020_v40 }
0x27b6   :  { %v10295_v51 = vadd.f32 %v10294_v49, %v10293_v59  ;;  %v10287_v29 = vsel %vm990_vm3, %v10168_v35, 0.0 }
0x27b7   :  { %v10288_v22 = vadd.f32 %v10287_v29, %v10286_v32 }
0x27b8   :  { %v12643_v31 = vpop.f32.mrb[118].mxu1 }
0x27b9   :  { %v10308_v25 = vsel %vm990_vm3, %v12643_v31, 0.0  ;;  %v10178_v63 = vpop.f32.mrb[119].mxu1 }
0x27ba   :  { %v10309_v47 = vadd.f32 %v10308_v25, %v10307_v14  ;;  %v10301_v33 = vsel %vm990_vm3, %v10178_v63, 0.0  ;;  %v11510_v14 = vld [vmem:[%s15672_s15 + $0x78] sm:$0xff] }
0x27bb   :  { %v10302_v34 = vadd.f32 %v10301_v33, %v10300_v19  ;;  %v13024_v56 = vpack.c.bf16 %v11510_v14, %v11509_v12 }
0x27bc   :  { %v12648_v4 = vpop.f32.mrb[86].mxu0 }
0x27bd   :  { %v10296_v20 = vsel %vm990_vm3, %v12648_v4, 0.0  ;;  %v10265_v6 = vpop.f32.mrb[87].mxu0  ;;  %13025 = vmatprep.subr.bf16.mxu1 %v13024_v56  ;;  %v11505_v4 = vld [vmem:[%s15670_s13 + $0x3] ss:$0 sm:$0xff] }
0x27be   :  { %v10297_v10 = vadd.f32 %v10296_v20, %v10295_v51  ;;  %v10289_v11 = vsel %vm990_vm3, %v10265_v6, 0.0  ;;  %13027 = vmatpush3.bf16.msra.mxu1 %v13024_v56 }
0x27bf   :  { %v10290_v26 = vadd.f32 %v10289_v11, %v10288_v22 }
0x27c0   :  { %v10321_v2 = vadd.f32 %v11502_v42, %v10297_v10  ;;  %v12651_v8 = vpop.f32.mrb[88].mxu0  ;;  %v11506_v10 = vld [vmem:[%s15671_s14 + $0x3] ss:$0 sm:$0xff] }
0x27c1   :  { %v10320_v38 = vadd.f32 %v11502_v42, %v10290_v26  ;;  %v10310_v61 = vsel %vm990_vm3, %v12651_v8, 0.0  ;;  %v10275_v54 = vpop.f32.mrb[89].mxu0 }
0x27c2   :  { %v10311_v28 = vadd.f32 %v10310_v61, %v10309_v47  ;;  %v10303_v36 = vsel %vm990_vm3, %v10275_v54, 0.0  ;;  %v10325_v39 = vadd.f32 %v10321_v2, %v15103_v3 }
0x27c3   :  { %v10304_v15 = vadd.f32 %v10303_v36, %v10302_v34  ;;  %v10324_v50 = vadd.f32 %v10320_v38, %v15101_v41 }
0x27c4   :  { %v10335_v45 = vsel %vm990_vm3, %v10325_v39, 0.0  ;;  %v10323_v43 = vadd.f32 %v11502_v42, %v10311_v28 }
0x27c5   :  { %v10322_v16 = vadd.f32 %v11502_v42, %v10304_v15  ;;  %10336 = vadd.xlane.f32.xlu1 %v10335_v45  ;;  %v10332_v7 = vsel %vm990_vm3, %v10324_v50, 0.0  ;;  %v11517_v45 = vld [vmem:[%s15674_s17 + $0x180] sm:$0xff] }
0x27c6   :  { %10333 = vadd.xlane.f32.xlu0 %v10332_v7  ;;  %v10327_v62 = vadd.f32 %v10323_v43, %v15111_v0  ;;  %v11518_v43 = vld [vmem:[%s15674_s17 + $0x188] sm:$0xff]  ;;  %v11519_v7 = vld [vmem:[%s15674_s17 + $0x190] sm:$0xff] }
0x27c7   :  { %v10326_v48 = vadd.f32 %v10322_v16, %v15109_v44  ;;  %v13028_v16 = vpack.c.bf16 %v11518_v43, %v11517_v45 }
0x27c8   :  { %v10341_v3 = vsel %vm990_vm3, %v10327_v62, 0.0 }
0x27c9   :  { %v10338_v60 = vsel %vm990_vm3, %v10326_v48, 0.0  ;;  %13029 = vmatprep.subr.bf16.mxu0 %v13028_v16 }
0x27ca   :  { %10339 = vadd.xlane.f32.xlu0 %v10338_v60  ;;  %13031 = vmatpush3.bf16.msra.mxu0 %v13028_v16 }
0x27ce   :  { %10342 = vadd.xlane.f32.xlu0 %v10341_v3  ;;  %v11522_v3 = vld [vmem:[%s15674_s17 + $0x1a8] sm:$0xff] }
0x2852   :  { %v10337_v18 = vpop.xlane.xlu1 %10336 }
0x2853   :  { %v10345_v41 = vmul.f32 0.03125, %v10337_v18  ;;  %v10334_v17 = vpop.xlane.xlu0 %10333 }
0x2854   :  { %v10344_v23 = vmul.f32 0.03125, %v10334_v17  ;;  %v11524_v17 = vld [vmem:[%s15674_s17 + $0x1b8] sm:$0xff] }
0x2855   :  { %v10349_v52 = vsub.f32 %v10325_v39, %v10345_v41  ;;  %v11523_v41 = vld [vmem:[%s15674_s17 + $0x1b0] sm:$0xff] }
0x2856   :  { %v10348_v46 = vsub.f32 %v10324_v50, %v10344_v23  ;;  %v13040_v23 = vpack.c.bf16 %v11524_v17, %v11523_v41 }
0x2857   :  { %v10340_v53 = vpop.xlane.xlu0 %10339  ;;  %v10353_v55 = vmul.f32 %v10349_v52, %v10349_v52 }
0x2858   :  { %v10346_v9 = vmul.f32 0.03125, %v10340_v53  ;;  %v10352_v30 = vmul.f32 %v10348_v46, %v10348_v46 }
0x2859   :  { %v10359_v44 = vsel %vm990_vm3, %v10353_v55, 0.0  ;;  %v11527_v55 = vld [vmem:[%s15674_s17 + $0x1d0] sm:$0xff] }
0x285a   :  { %v10350_v27 = vsub.f32 %v10326_v48, %v10346_v9  ;;  %10360 = vadd.xlane.f32.xlu1 %v10359_v44  ;;  %v10356_v0 = vsel %vm990_vm3, %v10352_v30, 0.0  ;;  %v11520_v48 = vld [vmem:[%s15674_s17 + $0x198] sm:$0xff]  ;;  %v11529_v44 = vld [vmem:[%s15674_s17 + $0x1e0] sm:$0xff] }
0x285b   :  { %10357 = vadd.xlane.f32.xlu0 %v10356_v0  ;;  %v10343_v37 = vpop.xlane.xlu0 %10342  ;;  %v13032_v60 = vpack.c.bf16 %v11520_v48, %v11519_v7  ;;  %v11528_v9 = vld [vmem:[%s15674_s17 + $0x1d8] sm:$0xff] }
0x285c   :  { %v10347_v24 = vmul.f32 0.03125, %v10343_v37  ;;  %v10354_v21 = vmul.f32 %v10350_v27, %v10350_v27  ;;  %v13048_v30 = vpack.c.bf16 %v11528_v9, %v11527_v55  ;;  %v11531_v37 = vld [vmem:[%s15674_s17 + $0x1f0] sm:$0xff] }
0x285d   :  { %13033 = vmatprep.subr.bf16.mxu0 %v13032_v60 }
0x285e   :  { %v10351_v59 = vsub.f32 %v10327_v62, %v10347_v24  ;;  %v10362_v58 = vsel %vm990_vm3, %v10354_v21, 0.0  ;;  %13035 = vmatpush3.bf16.msra.mxu0 %v13032_v60  ;;  %v11521_v62 = vld [vmem:[%s15674_s17 + $0x1a0] sm:$0xff]  ;;  %v11532_v24 = vld [vmem:[%s15674_s17 + $0x1f8] sm:$0xff] }
0x285f   :  { %10363 = vadd.xlane.f32.xlu0 %v10362_v58  ;;  %v13036_v18 = vpack.c.bf16 %v11522_v3, %v11521_v62  ;;  %v13056_v21 = vpack.c.bf16 %v11532_v24, %v11531_v37 }
0x2860   :  { %v10355_v32 = vmul.f32 %v10351_v59, %v10351_v59 }
0x2861   :  { %13037 = vmatprep.subr.bf16.mxu0 %v13036_v18 }
0x2862   :  { %v10365_v57 = vsel %vm990_vm3, %v10355_v32, 0.0  ;;  %13039 = vmatpush3.bf16.msra.mxu0 %v13036_v18 }
0x2863   :  { %10366 = vadd.xlane.f32.xlu1 %v10365_v57  ;;  %13041 = vmatprep.subr.bf16.mxu0 %v13040_v23 }
0x2866   :  { %13043 = vmatpush3.bf16.msra.mxu0 %v13040_v23 }
0x28e7   :  { %v10361_v19 = vpop.xlane.xlu1 %10360 }
0x28e8   :  { %v10369_v13 = vmul.f32 0.03125, %v10361_v19  ;;  %v10358_v49 = vpop.xlane.xlu0 %10357 }
0x28e9   :  { %v10368_v35 = vmul.f32 0.03125, %v10358_v49 }
0x28ea   :  { %v10373_v51 = vadd.f32 1e-05, %v10369_v13 }
0x28eb   :  { %v10372_v29 = vadd.f32 1e-05, %v10368_v35 }
0x28ec   :  { %13500 = vrsqrt.f32 %v10373_v51  ;;  %v10364_v22 = vpop.xlane.xlu0 %10363 }
0x28ed   :  { %13502 = vrsqrt.f32 %v10372_v29  ;;  %v10370_v31 = vmul.f32 0.03125, %v10364_v22 }
0x28ef   :  { %v10374_v25 = vadd.f32 1e-05, %v10370_v31 }
0x28f0   :  { %v10367_v63 = vpop.xlane.xlu1 %10366 }
0x28f1   :  { %13504 = vrsqrt.f32 %v10374_v25  ;;  %v10371_v47 = vmul.f32 0.03125, %v10367_v63 }
0x28f3   :  { %v10375_v33 = vadd.f32 1e-05, %v10371_v47 }
0x28f5   :  { %13506 = vrsqrt.f32 %v10375_v33 }
0x28f6   :  { %v13501_v34 = vpop.eup %13500 }
0x28f7   :  { %v13503_v20 = vpop.eup %13502  ;;  %v10381_v42 = vmul.f32 %v13501_v34, %v10349_v52  ;;  %v11525_v52 = vld [vmem:[%s15674_s17 + $0x1c0] sm:$0xff] }
0x28f8   :  { %v10380_v6 = vmul.f32 %v13503_v20, %v10348_v46  ;;  %v11526_v46 = vld [vmem:[%s15674_s17 + $0x1c8] sm:$0xff] }
0x28f9   :  { %v10391_v11 = vmul.f32 %v11505_v4, %v10381_v42  ;;  %v13044_v53 = vpack.c.bf16 %v11526_v46, %v11525_v52 }
0x28fa   :  { %v10390_v26 = vmul.f32 %v11505_v4, %v10380_v6 }
0x28fb   :  { %v13505_v2 = vpop.eup %13504  ;;  %v15523_v61 = vadd.f32 %v11506_v10, %v10391_v11  ;;  %13045 = vmatprep.subr.bf16.mxu0 %v13044_v53 }
0x28fc   :  { %v15521_v8 = vadd.f32 %v11506_v10, %v10390_v26  ;;  %v10382_v38 = vmul.f32 %v13505_v2, %v10350_v27  ;;  %13047 = vmatpush3.bf16.msra.mxu0 %v13044_v53  ;;  %v11530_v27 = vld [vmem:[%s15674_s17 + $0x1e8] sm:$0xff] }
0x28fd   :  { %13049 = vmatprep.subr.bf16.mxu0 %v13048_v30  ;;  %v13052_v0 = vpack.c.bf16 %v11530_v27, %v11529_v44 }
0x28fe   :  { %12660 = vmatprep.mubr.msk.f32.mxu1 %vm990_vm3, %v15521_v8  ;;  %v10392_v54 = vmul.f32 %v11505_v4, %v10382_v38 }
0x28ff   :  { %v13507_v28 = vpop.eup %13506  ;;  %12661 = vmatmul.mubr.msk.f32.vlgmr.msra.gmra.mrb[120].mxu1 %vm990_vm3, %v15523_v61 }
0x2900   :  { %v15529_v36 = vadd.f32 %v11506_v10, %v10392_v54  ;;  %v10383_v39 = vmul.f32 %v13507_v28, %v10351_v59  ;;  %13051 = vmatpush3.bf16.msra.mxu0 %v13048_v30  ;;  %v11512_v59 = vld [vmem:[%s15673_s16 + $0x3] ss:$0 sm:$0xff] }
0x2901   :  { %13053 = vmatprep.subr.bf16.mxu0 %v13052_v0 }
0x2902   :  { %12663 = vmatprep.mubr.msk.f32.mxu1 %vm990_vm3, %v15529_v36  ;;  %v10393_v15 = vmul.f32 %v11505_v4, %v10383_v39 }
0x2904   :  { %v15533_v50 = vadd.f32 %v11506_v10, %v10393_v15  ;;  %13055 = vmatpush3.bf16.msra.mxu0 %v13052_v0 }
0x2905   :  { %13057 = vmatprep.subr.bf16.mxu0 %v13056_v21 }
0x2906   :  { %12664 = vmatmul.mubr.msk.f32.gmra.mrb[122].mxu1 %vm990_vm3, %v15533_v50 }
0x2908   :  { %13059 = vmatpush3.bf16.msra.mxu0 %v13056_v21 }
0x29d2   :  { %v12662_v58 = vpop.f32.mrb[120].mxu1 }
0x29d3   :  { %v15588_v32 = vadd.f32 %v12662_v58, %v11512_v59  ;;  %v10495_v57 = vpop.f32.mrb[121].mxu1 }
0x29d4   :  { %v15590_v1 = vadd.f32 %v11512_v59, %v10495_v57 }
0x29d5   :  { %v15593_v5 = vmul.f32 0.70710677, %v15588_v32 }
0x29d6   :  { %v15596_v40 = vmul.f32 0.70710677, %v15590_v1 }
0x29d7   :  { %v10523_v12 = vand.u32 2147483647, %v15593_v5  ;;  %vm10603_vm0 = vcmp.lt.f32.partialorder %v15593_v5, 0.0 }
0x29d8   :  { %v10522_v14 = vand.u32 2147483647, %v15596_v40  ;;  %vm10602_vm5 = vcmp.lt.f32.partialorder %v15596_v40, 0.0 }
0x29d9   :  { %v10527_v56 = vmul.f32 0.3275911, %v10523_v12  ;;  %v12665_v19 = vpop.f32.mrb[122].mxu1  ;;  %v10579_v20 = vsub.f32 0.0, %v10523_v12 }
0x29da   :  { %v10526_v13 = vmul.f32 0.3275911, %v10522_v14  ;;  %v15600_v49 = vadd.f32 %v12665_v19, %v11512_v59  ;;  %v10505_v35 = vpop.f32.mrb[123].mxu1  ;;  %v10578_v6 = vsub.f32 0.0, %v10522_v14 }
0x29db   :  { %v10531_v51 = vadd.f32 1.0, %v10527_v56  ;;  %v15602_v29 = vadd.f32 %v11512_v59, %v10505_v35  ;;  %v10583_v11 = vmul.f32 %v10579_v20, %v10523_v12 }
0x29dc   :  { %v10530_v22 = vadd.f32 1.0, %v10526_v13  ;;  %v15605_v31 = vmul.f32 0.70710677, %v15600_v49  ;;  %v10582_v38 = vmul.f32 %v10578_v6, %v10522_v14 }
0x29dd   :  { %13508 = vrcp.f32 %v10531_v51  ;;  %v15608_v25 = vmul.f32 0.70710677, %v15602_v29  ;;  %v10588_v15 = vmul.f32 1.442695, %v10583_v11 }
0x29de   :  { %13510 = vrcp.f32 %v10530_v22  ;;  %v10525_v63 = vand.u32 2147483647, %v15605_v31  ;;  %v10586_v7 = vmul.f32 1.442695, %v10582_v38  ;;  %vm10605_vm7 = vcmp.lt.f32.partialorder %v15605_v31, 0.0 }
0x29df   :  { %v10524_v47 = vand.u32 2147483647, %v15608_v25  ;;  %vm10604_vm8 = vcmp.lt.f32.partialorder %v15608_v25, 0.0  ;;  %v11534_v31 = vld [vmem:[%s15675_s18 + $0x3] ss:$0 sm:$0xff] }
0x29e0   :  { %v10529_v33 = vmul.f32 0.3275911, %v10525_v63  ;;  %v10581_v39 = vsub.f32 0.0, %v10525_v63 }
0x29e1   :  { %v10528_v34 = vmul.f32 0.3275911, %v10524_v47  ;;  %v10580_v45 = vsub.f32 0.0, %v10524_v47 }
0x29e2   :  { %v10533_v4 = vadd.f32 1.0, %v10529_v33  ;;  %v10585_v3 = vmul.f32 %v10581_v39, %v10525_v63 }
0x29e3   :  { %v10532_v42 = vadd.f32 1.0, %v10528_v34  ;;  %v10584_v41 = vmul.f32 %v10580_v45, %v10524_v47 }
0x29e4   :  { %13512 = vrcp.f32 %v10533_v4  ;;  %v10592_v30 = vmul.f32 1.442695, %v10585_v3  ;;  %v10515_v3 = vmul.f32 0.5, %v15588_v32  ;;  %v10517_v32 = vmul.f32 0.5, %v15600_v49 }
0x29e5   :  { %13514 = vrcp.f32 %v10532_v42  ;;  %v10590_v27 = vmul.f32 1.442695, %v10584_v41 }
0x29e6   :  { %13516 = vpow2.f32 %v10588_v15 }
0x29e7   :  { %v13509_v10 = vpop.eup %13508  ;;  %13518 = vpow2.f32 %v10586_v7  ;;  %v10514_v7 = vmul.f32 0.5, %v15590_v1  ;;  %v10516_v1 = vmul.f32 0.5, %v15602_v29 }
0x29e8   :  { %v13511_v26 = vpop.eup %13510  ;;  %v10543_v2 = vmul.f32 1.0614054, %v13509_v10  ;;  %13520 = vpow2.f32 %v10592_v30 }
0x29e9   :  { %v10542_v54 = vmul.f32 1.0614054, %v13511_v26  ;;  %13522 = vpow2.f32 %v10590_v27 }
0x29ea   :  { %v10547_v28 = vadd.f32 -1.4531521, %v10543_v2 }
0x29eb   :  { %v10546_v43 = vadd.f32 -1.4531521, %v10542_v54 }
0x29ec   :  { %v10551_v16 = vmul.f32 %v13509_v10, %v10547_v28 }
0x29ed   :  { %v10550_v48 = vmul.f32 %v13511_v26, %v10546_v43 }
0x29ee   :  { %v13513_v60 = vpop.eup %13512  ;;  %v10555_v62 = vadd.f32 1.4214138, %v10551_v16 }
0x29ef   :  { %v13515_v18 = vpop.eup %13514  ;;  %v10554_v17 = vadd.f32 1.4214138, %v10550_v48  ;;  %v10545_v23 = vmul.f32 1.0614054, %v13513_v60 }
0x29f0   :  { %v10559_v52 = vmul.f32 %v13509_v10, %v10555_v62  ;;  %v10544_v46 = vmul.f32 1.0614054, %v13515_v18  ;;  %v13517_v35 = vpop.eup %13516 }
0x29f1   :  { %v10558_v53 = vmul.f32 %v13511_v26, %v10554_v17  ;;  %v10549_v55 = vadd.f32 -1.4531521, %v10545_v23  ;;  %v13519_v63 = vpop.eup %13518 }
0x29f2   :  { %v10563_v9 = vadd.f32 -0.28449672, %v10559_v52  ;;  %v10548_v44 = vadd.f32 -1.4531521, %v10544_v46 }
0x29f3   :  { %v10562_v0 = vadd.f32 -0.28449672, %v10558_v53  ;;  %v10553_v37 = vmul.f32 %v13513_v60, %v10549_v55 }
0x29f4   :  { %v10567_v24 = vmul.f32 %v13509_v10, %v10563_v9  ;;  %v10552_v21 = vmul.f32 %v13515_v18, %v10548_v44 }
0x29f5   :  { %v10566_v59 = vmul.f32 %v13511_v26, %v10562_v0  ;;  %v10557_v58 = vadd.f32 1.4214138, %v10553_v37 }
0x29f6   :  { %v10571_v57 = vadd.f32 0.2548296, %v10567_v24  ;;  %v10556_v12 = vadd.f32 1.4214138, %v10552_v21 }
0x29f7   :  { %v10570_v14 = vadd.f32 0.2548296, %v10566_v59  ;;  %v10561_v56 = vmul.f32 %v13513_v60, %v10557_v58 }
0x29f8   :  { %v10575_v19 = vmul.f32 %v13509_v10, %v10571_v57  ;;  %v10560_v13 = vmul.f32 %v13515_v18, %v10556_v12  ;;  %v13521_v10 = vpop.eup %13520 }
0x29f9   :  { %v10574_v51 = vmul.f32 %v13511_v26, %v10570_v14  ;;  %v10565_v22 = vadd.f32 -0.28449672, %v10561_v56  ;;  %v13523_v15 = vpop.eup %13522 }
0x29fa   :  { %v10595_v47 = vmul.f32 %v13517_v35, %v10575_v19  ;;  %v10564_v33 = vadd.f32 -0.28449672, %v10560_v13 }
0x29fb   :  { %v10594_v34 = vmul.f32 %v13519_v63, %v10574_v51  ;;  %v10569_v4 = vmul.f32 %v13513_v60, %v10565_v22 }
0x29fc   :  { %v10599_v20 = vsub.f32 1.0, %v10595_v47  ;;  %v10568_v42 = vmul.f32 %v13515_v18, %v10564_v33 }
0x29fd   :  { %v10598_v6 = vsub.f32 1.0, %v10594_v34  ;;  %v10573_v11 = vadd.f32 0.2548296, %v10569_v4 }
0x29fe   :  { %v10607_v2 = vsub.f32 0.0, %v10599_v20  ;;  %v10572_v38 = vadd.f32 0.2548296, %v10568_v42 }
0x29ff   :  { %v10606_v54 = vsub.f32 0.0, %v10598_v6  ;;  %v10577_v28 = vmul.f32 %v13513_v60, %v10573_v11 }
0x2a00   :  { %v10611_v39 = vsel %vm10603_vm0, %v10607_v2, %v10599_v20  ;;  %v10576_v26 = vmul.f32 %v13515_v18, %v10572_v38 }
0x2a01   :  { %v10615_v45 = vadd.f32 1.0, %v10611_v39  ;;  %v10610_v43 = vsel %vm10602_vm5, %v10606_v54, %v10598_v6  ;;  %v10597_v16 = vmul.f32 %v13521_v10, %v10577_v28 }
0x2a02   :  { %v10614_v48 = vadd.f32 1.0, %v10610_v43  ;;  %v10596_v62 = vmul.f32 %v13523_v15, %v10576_v26 }
0x2a03   :  { %v10601_v41 = vsub.f32 1.0, %v10597_v16  ;;  %v10619_v23 = vmul.f32 %v10615_v45, %v10515_v3 }
0x2a04   :  { %v10618_v17 = vmul.f32 %v10614_v48, %v10514_v7  ;;  %v10600_v5 = vsub.f32 1.0, %v10596_v62 }
0x2a05   :  { %v10609_v60 = vsub.f32 0.0, %v10601_v41 }
0x2a06   :  { %12698 = vmatprep.mubr.f32.mxu0 %v10618_v17  ;;  %v10608_v40 = vsub.f32 0.0, %v10600_v5 }
0x2a07   :  { %12699 = vmatmul.mubr.f32.vlgmr.msra.gmra.mrb[90].mxu0 %v10619_v23  ;;  %v10613_v18 = vsel %vm10605_vm7, %v10609_v60, %v10601_v41  ;;  %v11537_v41 = vld [vmem:[%s15676_s19 + $0x3] ss:$0 sm:$0xff]  ;;  %s13612_s19 = smov [#allocation7]  }
0x2a08   :  { %v10612_v52 = vsel %vm10604_vm8, %v10608_v40, %v10600_v5  ;;  %v10617_v46 = vadd.f32 1.0, %v10613_v18  ;;  %v11538_v23 = vld [vmem:[%s15677_s20 + $0x3] ss:$0 sm:$0xff]  ;;  %s10847_s20 = sshll.u32 %s13612_s19, 4  ;;  %s10848_s20 = int_to_ptr.vmem [resolvable:$true] %s10847_s20 }
0x2a09   :  { %v10616_v53 = vadd.f32 1.0, %v10612_v52  ;;  %s13544_s24 = scalar_lea.vmem %s10848_s20, 32  ;;  %p13549_p6 = scmp.lt.s32.totalorder %s10848_s20, %s10848_s20 }
0x2a0a   :  { %v10621_v9 = vmul.f32 %v10617_v46, %v10517_v32  ;;  %p13545_p5 = scmp.ne.s32.totalorder %s10848_s20, %s13544_s24  ;;  %p13550_p7 = scmp.lt.s32.totalorder %s13544_s24, %s13544_s24 }
0x2a0b   :  { %v10620_v55 = vmul.f32 %v10616_v53, %v10516_v1 }
0x2a0c   :  { %p13551_p8 = por %p13550_p7, %p13549_p6 }
0x2a0d   :  { %12701 = vmatprep.mubr.f32.mxu0 %v10620_v55 }
0x2a0e   :  { %12702 = vmatmul.mubr.f32.gmra.mrb[92].mxu0 %v10621_v9  ;;  %p13552_p9 = pnand %p13551_p8, %p13545_p5 }
0x2ada   :  { %v12700_v30 = vpop.f32.mrb[90].mxu0 }
0x2adb   :  { %v10719_v44 = vadd.f32 %v12700_v30, %v11534_v31  ;;  %v10713_v25 = vpop.f32.mrb[91].mxu0 }
0x2adc   :  { %v10714_v27 = vadd.f32 %v11534_v31, %v10713_v25 }
0x2add   :  { %v10733_v0 = vadd.f32 %v10719_v44, %v15523_v61 }
0x2ade   :  { %v10732_v37 = vadd.f32 %v10714_v27, %v15521_v8 }
0x2adf   :  { %v10743_v29 = vsel %vm990_vm3, %v10733_v0, 0.0 }
0x2ae0   :  { %10744 = vadd.xlane.f32.xlu1 %v10743_v29  ;;  %v10740_v49 = vsel %vm990_vm3, %v10732_v37, 0.0 }
0x2ae1   :  { %10741 = vadd.xlane.f32.xlu0 %v10740_v49  ;;  %v12703_v24 = vpop.f32.mrb[92].mxu0 }
0x2ae2   :  { %v10729_v21 = vadd.f32 %v12703_v24, %v11534_v31  ;;  %v10723_v59 = vpop.f32.mrb[93].mxu0 }
0x2ae3   :  { %v10724_v58 = vadd.f32 %v11534_v31, %v10723_v59 }
0x2ae4   :  { %v10735_v57 = vadd.f32 %v10729_v21, %v15533_v50 }
0x2ae5   :  { %v10734_v12 = vadd.f32 %v10724_v58, %v15529_v36 }
0x2ae6   :  { %v10749_v14 = vsel %vm990_vm3, %v10735_v57, 0.0 }
0x2ae7   :  { %10750 = vadd.xlane.f32.xlu1 %v10749_v14  ;;  %v10746_v61 = vsel %vm990_vm3, %v10734_v12, 0.0 }
0x2ae8   :  { %10747 = vadd.xlane.f32.xlu0 %v10746_v61 }
0x2b6d   :  { %v10745_v8 = vpop.xlane.xlu1 %10744 }
0x2b6e   :  { %v10753_v56 = vmul.f32 0.03125, %v10745_v8  ;;  %v10742_v19 = vpop.xlane.xlu0 %10741 }
0x2b6f   :  { %v10752_v13 = vmul.f32 0.03125, %v10742_v19 }
0x2b70   :  { %v10757_v35 = vsub.f32 %v10733_v0, %v10753_v56 }
0x2b71   :  { %v10756_v51 = vsub.f32 %v10732_v37, %v10752_v13 }
0x2b72   :  { %v10761_v22 = vmul.f32 %v10757_v35, %v10757_v35 }
0x2b73   :  { %v10760_v63 = vmul.f32 %v10756_v51, %v10756_v51 }
0x2b74   :  { %v10751_v47 = vpop.xlane.xlu1 %10750  ;;  %v10767_v33 = vsel %vm990_vm3, %v10761_v22, 0.0 }
0x2b75   :  { %v10755_v50 = vmul.f32 0.03125, %v10751_v47  ;;  %10768 = vadd.xlane.f32.xlu1 %v10767_v33  ;;  %v10748_v36 = vpop.xlane.xlu0 %10747  ;;  %v10764_v34 = vsel %vm990_vm3, %v10760_v63, 0.0 }
0x2b76   :  { %v10754_v4 = vmul.f32 0.03125, %v10748_v36  ;;  %10765 = vadd.xlane.f32.xlu0 %v10764_v34 }
0x2b77   :  { %v10759_v20 = vsub.f32 %v10735_v57, %v10755_v50 }
0x2b78   :  { %v10758_v42 = vsub.f32 %v10734_v12, %v10754_v4 }
0x2b79   :  { %v10763_v6 = vmul.f32 %v10759_v20, %v10759_v20 }
0x2b7a   :  { %v10762_v11 = vmul.f32 %v10758_v42, %v10758_v42 }
0x2b7b   :  { %v10773_v2 = vsel %vm990_vm3, %v10763_v6, 0.0 }
0x2b7c   :  { %10774 = vadd.xlane.f32.xlu1 %v10773_v2  ;;  %v10770_v38 = vsel %vm990_vm3, %v10762_v11, 0.0 }
0x2b7d   :  { %10771 = vadd.xlane.f32.xlu0 %v10770_v38 }
0x2c02   :  { %v10769_v54 = vpop.xlane.xlu1 %10768 }
0x2c03   :  { %v10777_v28 = vmul.f32 0.03125, %v10769_v54  ;;  %v10766_v10 = vpop.xlane.xlu0 %10765 }
0x2c04   :  { %v10776_v39 = vmul.f32 0.03125, %v10766_v10 }
0x2c05   :  { %v10781_v26 = vadd.f32 1e-05, %v10777_v28 }
0x2c06   :  { %v10780_v15 = vadd.f32 1e-05, %v10776_v39 }
0x2c07   :  { %13524 = vrsqrt.f32 %v10781_v26 }
0x2c08   :  { %13526 = vrsqrt.f32 %v10780_v15 }
0x2c09   :  { %v10775_v45 = vpop.xlane.xlu1 %10774 }
0x2c0a   :  { %v10779_v43 = vmul.f32 0.03125, %v10775_v45  ;;  %v10772_v16 = vpop.xlane.xlu0 %10771 }
0x2c0b   :  { %v10778_v7 = vmul.f32 0.03125, %v10772_v16 }
0x2c0c   :  { %v10783_v48 = vadd.f32 1e-05, %v10779_v43 }
0x2c0d   :  { %v10782_v62 = vadd.f32 1e-05, %v10778_v7 }
0x2c0e   :  { %13528 = vrsqrt.f32 %v10783_v48 }
0x2c0f   :  { %13530 = vrsqrt.f32 %v10782_v62 }
0x2c11   :  { %v13525_v3 = vpop.eup %13524 }
0x2c12   :  { %v13527_v17 = vpop.eup %13526  ;;  %v10789_v5 = vmul.f32 %v13525_v3, %v10757_v35 }
0x2c13   :  { %v10788_v60 = vmul.f32 %v13527_v17, %v10756_v51 }
0x2c14   :  { %v10799_v40 = vmul.f32 %v11537_v41, %v10789_v5 }
0x2c15   :  { %v10798_v18 = vmul.f32 %v11537_v41, %v10788_v60 }
0x2c16   :  { %v10809_v52 = vadd.f32 %v11538_v23, %v10799_v40 }
0x2c17   :  { %v10808_v46 = vadd.f32 %v11538_v23, %v10798_v18 }
0x2c18   :  { %v13529_v1 = vpop.eup %13528  ;;  %v10814_v53 = vsel %vm10813_vm9, %v10809_v52, 0.0 }
0x2c19   :  { %v13531_v32 = vpop.eup %13530  ;;  %v10791_v55 = vmul.f32 %v13529_v1, %v10759_v20  ;;  %v10812_v9 = vsel %vm990_vm3, %v10808_v46, 0.0 }
0x2c1a   :  { %v10790_v31 = vmul.f32 %v13531_v32, %v10758_v42  ;;  %v10815_v30 = vadd.f32 %v10814_v53, %v10812_v9 }
0x2c1b   :  { %v10801_v44 = vmul.f32 %v11537_v41, %v10791_v55 }
0x2c1c   :  { %v10800_v25 = vmul.f32 %v11537_v41, %v10790_v31  ;;  %v10816_v27 = vrot.slane %v10815_v30, 4 }
0x2c1d   :  { %v10811_v0 = vadd.f32 %v11538_v23, %v10801_v44 }
0x2c1e   :  { %v10810_v37 = vadd.f32 %v11538_v23, %v10800_v25  ;;  %v10817_v29 = vadd.f32 %v10816_v27, %v10815_v30 }
0x2c1f   :  { %v10823_v49 = vsel %vm10813_vm9, %v10811_v0, 0.0 }
0x2c20   :  { %v10818_v24 = vrot.slane %v10817_v29, 2  ;;  %v10822_v21 = vsel %vm990_vm3, %v10810_v37, 0.0 }
0x2c21   :  { %v10824_v59 = vadd.f32 %v10823_v49, %v10822_v21 }
0x2c22   :  { %v10819_v58 = vadd.f32 %v10818_v24, %v10817_v29 }
0x2c23   :  { %v10825_v57 = vrot.slane %v10824_v59, 4 }
0x2c24   :  { %v10820_v14 = vrot.slane %v10819_v58, 1 }
0x2c25   :  { %v10826_v12 = vadd.f32 %v10825_v57, %v10824_v59 }
0x2c26   :  { %v10821_v56 = vadd.f32 %v10820_v14, %v10819_v58 }
0x2c27   :  { %v10827_v61 = vrot.slane %v10826_v12, 2 }
0x2c28   :  { %v10832_v35 = vmul.f32 0.06666667, %v10821_v56 }
0x2c29   :  { %v10828_v8 = vadd.f32 %v10827_v61, %v10826_v12 }
0x2c2b   :  { %v10829_v19 = vrot.slane %v10828_v8, 1 }
0x2c2d   :  { %v10830_v13 = vadd.f32 %v10829_v19, %v10828_v8 }
0x2c2f   :  { %v10833_v51 = vmul.f32 0.06666667, %v10830_v13 }
0x2c31   :  { %v10837_v22 = vsel %vm10836_vm10, %v10833_v51, %v10832_v35 }
0x2c32   :  { %10840 = vst.msk [vmem:[#allocation7] sm:$0x3] %vm10839_vm11, %v10837_v22 }
0x2c33   :  { %13555 = shalt.err (!%p13552_p9)
}
0x2c34   :  { %s13556_s25 = scalar_lea.hbm %s15678_s21, 32 }
0x2c35   :  { %p13557_p10 = scmp.ne.s32.totalorder %s15678_s21, %s13556_s25  ;;  %p13560_p11 = scmp.lt.u32.totalorder %s13556_s25, %s15678_s21 }
0x2c37   :  { %p13562_p12 = pnand %p13560_p11, %p13557_p10 }
0x2c39   :  { %13565 = shalt.err (!%p13562_p12)
}
0x2c3a   :  { %10850 = dma.vmem_to_hbm [thread:$0]  %s10848_s20, 32, %s15678_s21, [#allocation5]  }
0x2c3b   :  { %13600 = dma.done.wait [#allocation5], 32  }
0x2c3c   :  { %13601 = vsyncadd [#allocation5], 4294967264 }
0x2c3d   :  { %10854 = vsyncpa [#allocation5], 1 }
0x2c3e   :  { %10855 = vsyncpa [#allocation6], 1 }
0x2c3f   :  { %10856 = vsyncmov [#allocation3] }
0x2c42   :  { %s10857_s28 = vpop.sfrf %10856 }
0x2c43   :  { %p11539_p13 = scmp.ne.s32.totalorder %s10857_s28, 0 }
0x2c45   :  { %10861 = shalt.err (%p11539_p13)  }
0x2c46   :  { %10863 = vsyncmov [#allocation3 + $0x1] }
0x2c49   :  { %s10864_s29 = vpop.sfrf %10863 }
0x2c4a   :  { %p11540_p0 = scmp.ne.s32.totalorder %s10864_s29, 0 }
0x2c4c   :  { %10868 = shalt.err (%p11540_p0)  }
0x2c4d   :  { %10870 = vsyncmov [#allocation3 + $0x2] }
0x2c50   :  { %s10871_s0 = vpop.sfrf %10870 }
0x2c51   :  { %p11541_p1 = scmp.ne.s32.totalorder %s10871_s0, 0 }
0x2c53   :  { %10875 = shalt.err (%p11541_p1)  }
0x2c54   :  { %10877 = vsyncmov [#allocation3 + $0x3] }
0x2c57   :  { %s10878_s13 = vpop.sfrf %10877 }
0x2c58   :  { %p11542_p2 = scmp.ne.s32.totalorder %s10878_s13, 0 }
0x2c5a   :  { %10882 = shalt.err (%p11542_p2)  }
0x2c5b   :  { %10884 = vsyncmov [#allocation3 + $0x4] }
0x2c5e   :  { %s10885_s21 = vpop.sfrf %10884 }
0x2c5f   :  { %p11543_p3 = scmp.ne.s32.totalorder %s10885_s21, 0 }
0x2c61   :  { %10889 = shalt.err (%p11543_p3)  }
0x2c62   :  { %10891 = vsyncmov [#allocation3 + $0x5] }
0x2c65   :  { %s10892_s14 = vpop.sfrf %10891 }
0x2c66   :  { %p11544_p4 = scmp.ne.s32.totalorder %s10892_s14, 0 }
0x2c68   :  { %10896 = shalt.err (%p11544_p4)  }
0x2c69   :  { %10898 = vsyncmov [#allocation3 + $0x6] }
0x2c6c   :  { %s10899_s7 = vpop.sfrf %10898 }
0x2c6d   :  { %p11545_p5 = scmp.ne.s32.totalorder %s10899_s7, 0 }
0x2c6f   :  { %10903 = shalt.err (%p11545_p5)  }
0x2c70   :  { %10905 = vsyncmov [#allocation3 + $0x7] }
0x2c73   :  { %s10906_s10 = vpop.sfrf %10905 }
0x2c74   :  { %p11546_p6 = scmp.ne.s32.totalorder %s10906_s10, 0 }
0x2c76   :  { %10910 = shalt.err (%p11546_p6)  }
0x2c77   :  { %10912 = vsyncmov [#allocation3 + $0x8] }
0x2c7a   :  { %s10913_s8 = vpop.sfrf %10912 }
0x2c7b   :  { %p11547_p7 = scmp.ne.s32.totalorder %s10913_s8, 0 }
0x2c7d   :  { %10917 = shalt.err (%p11547_p7)  }
0x2c7e   :  { %10919 = vsyncmov [#allocation3 + $0x9] }
0x2c81   :  { %s10920_s30 = vpop.sfrf %10919 }
0x2c82   :  { %p11548_p8 = scmp.ne.s32.totalorder %s10920_s30, 0 }
0x2c84   :  { %10924 = shalt.err (%p11548_p8)  }
0x2c85   :  { %10926 = vsyncmov [#allocation3 + $0xa] }
0x2c88   :  { %s10927_s5 = vpop.sfrf %10926 }
0x2c89   :  { %p11549_p9 = scmp.ne.s32.totalorder %s10927_s5, 0 }
0x2c8b   :  { %10931 = shalt.err (%p11549_p9)  }
0x2c8c   :  { %10933 = vsyncmov [#allocation3 + $0xb] }
0x2c8f   :  { %s10934_s22 = vpop.sfrf %10933 }
0x2c90   :  { %p11550_p10 = scmp.ne.s32.totalorder %s10934_s22, 0 }
0x2c92   :  { %10938 = shalt.err (%p11550_p10)  }
0x2c93   :  { %10940 = vsyncmov [#allocation3 + $0xc] }
0x2c96   :  { %s10941_s23 = vpop.sfrf %10940 }
0x2c97   :  { %p11551_p11 = scmp.ne.s32.totalorder %s10941_s23, 0 }
0x2c99   :  { %10945 = shalt.err (%p11551_p11)  }
0x2c9a   :  { %10947 = vsyncmov [#allocation3 + $0xd] }
0x2c9d   :  { %s10948_s16 = vpop.sfrf %10947 }
0x2c9e   :  { %p11552_p12 = scmp.ne.s32.totalorder %s10948_s16, 0 }
0x2ca0   :  { %10952 = shalt.err (%p11552_p12)  }
0x2ca1   :  { %10954 = vsyncmov [#allocation3 + $0xe] }
0x2ca4   :  { %s10955_s17 = vpop.sfrf %10954 }
0x2ca5   :  { %p11553_p13 = scmp.ne.s32.totalorder %s10955_s17, 0 }
0x2ca7   :  { %10959 = shalt.err (%p11553_p13)  }
0x2ca8   :  { %10961 = vsyncmov [#allocation3 + $0xf] }
0x2cab   :  { %s10962_s18 = vpop.sfrf %10961 }
0x2cac   :  { %p11554_p0 = scmp.ne.s32.totalorder %s10962_s18, 0 }
0x2cae   :  { %10966 = shalt.err (%p11554_p0)  }

</bundles_post_ra>
